<compile_context>
chip_gen: v6e
topology: v6e:2x2x1
jax: 0.10.0
libtpu: 0.0.40
codegen_flags: <defaults>
</compile_context>

<pallas_src>
import jax
import jax.numpy as jnp
import numpy as np
from jax import lax
from jax.experimental import pallas as pl
from jax.experimental.pallas import tpu as pltpu

SOS_TOKEN = 0
EOS_TOKEN = 1
NEG_INF = -1e30  # baked into padded bias lanes (kills padded logits everywhere)


def attn_decoder_kernel(tgt_ref, tf_ref,                               # SMEM int32 (T,)
                        h0_ref, enc_ref, emb_ref,
                        attn_we_ref, attn_wh_ref, attn_b_ref,
                        comb_we_ref, comb_wa_ref, comb_b_ref,
                        wih_ref, whh_ref, bih_ref, bhh_ref,
                        wout_ref, bout_ref,                            # VMEM f32
                        logp_ref, attnw_ref, hout_ref,                 # outputs (VMEM)
                        tok_smem):                                     # SMEM (1,) i32 scratch
    H = h0_ref.shape[1]
    T = logp_ref.shape[0]
    Vp = logp_ref.shape[1]

    h = h0_ref[...]                       # (1, H)
    tok = SOS_TOKEN                       # python int for step 0 -> static gather
    done = jnp.int32(0)

    # T is small and static: fully unroll the recurrence at trace time so the
    # scheduler sees across iterations and every SMEM read / row store is static.
    for t in range(T):
        # --- scalar SMEM reads first: keep the scalar path ahead of vector work ---
        tf_t = tf_ref[t]
        tgt_t = tgt_ref[t]

        # --- embedding (dropout == identity in eval mode) ---
        emb = emb_ref[pl.ds(tok, 1), :]                                 # (1, H)

        # --- attention over encoder outputs; padded lanes carry a -1e30 bias ---
        a_logits = (jnp.dot(emb, attn_we_ref[...], preferred_element_type=jnp.float32)
                    + jnp.dot(h, attn_wh_ref[...], preferred_element_type=jnp.float32)
                    + attn_b_ref[...])                                  # (1, Lp)
        a_shift = a_logits - jnp.max(a_logits, axis=1, keepdims=True)
        a_exp = jnp.exp(a_shift)
        attn_w = a_exp * pl.reciprocal(jnp.sum(a_exp, axis=1, keepdims=True),
                                       approx=True)
        attn_applied = jnp.dot(attn_w, enc_ref[...],
                               preferred_element_type=jnp.float32)      # (1, H)

        # --- attn_combine + relu (torch.cat avoided by splitting the weight) ---
        x = (jnp.dot(emb, comb_we_ref[...], preferred_element_type=jnp.float32)
             + jnp.dot(attn_applied, comb_wa_ref[...], preferred_element_type=jnp.float32)
             + comb_b_ref[...])
        x = jax.nn.relu(x)

        # --- fused GRU cell: one (1,H)@(H,3H) per operand, gates (r|z|n) ---
        gi = jnp.dot(x, wih_ref[...], preferred_element_type=jnp.float32) + bih_ref[...]
        gh = jnp.dot(h, whh_ref[...], preferred_element_type=jnp.float32) + bhh_ref[...]
        r = jax.nn.sigmoid(gi[:, 0:H] + gh[:, 0:H])
        z = jax.nn.sigmoid(gi[:, H:2 * H] + gh[:, H:2 * H])
        n = jnp.tanh(gi[:, 2 * H:3 * H] + r * gh[:, 2 * H:3 * H])
        h_gru = (1.0 - z) * n + z * h

        # --- output projection + log_softmax (padded vocab lanes are -1e30) ---
        logits = (jnp.dot(h_gru, wout_ref[...], preferred_element_type=jnp.float32)
                  + bout_ref[...])                                      # (1, Vp)
        shifted = logits - jnp.max(logits, axis=1, keepdims=True)
        logp = shifted - jnp.log(jnp.sum(jnp.exp(shifted), axis=1, keepdims=True))

        keep = done == 0                  # rows after a (non-tf) EOS stay zero
        logp_ref[pl.ds(t, 1), :] = jnp.where(keep, logp, jnp.zeros_like(logp))
        attnw_ref[pl.ds(t, 1), :] = jnp.where(keep, attn_w, jnp.zeros_like(attn_w))

        # --- next-token selection: heavy argmax only when NOT teacher forcing ---
        tok_smem[0] = tgt_t

        @pl.when(tf_t == 0)
        def _():
            idx = lax.broadcasted_iota(jnp.int32, logp.shape, 1)
            is_max = logp == jnp.max(logp, axis=1, keepdims=True)
            tok_smem[0] = jnp.min(jnp.where(is_max, idx, jnp.int32(Vp)))

        next_tok = tok_smem[0]
        is_eos = (next_tok == EOS_TOKEN).astype(jnp.int32)
        done = jnp.maximum(done, (1 - tf_t) * is_eos)
        h = jnp.where(keep, h_gru, h)     # hidden freezes once "broken"
        tok = next_tok

    hout_ref[...] = h


def _round_up(x, m):
    return ((x + m - 1) // m) * m


def make_params(key, vocab, hidden, max_length):
    ks = jax.random.split(key, 13)
    scale = jnp.float32(0.1)

    def rnd(k, shape):
        return jax.random.normal(k, shape, jnp.float32) * scale

    return dict(
        embedding=rnd(ks[0], (vocab, hidden)),
        attn_we=rnd(ks[1], (hidden, max_length)),    # attn Linear, embedded half
        attn_wh=rnd(ks[2], (hidden, max_length)),    # attn Linear, hidden half
        attn_b=rnd(ks[3], (1, max_length)),
        comb_we=rnd(ks[4], (hidden, hidden)),        # attn_combine, embedded half
        comb_wa=rnd(ks[5], (hidden, hidden)),        # attn_combine, attended half
        comb_b=rnd(ks[6], (1, hidden)),
        gru_wih=rnd(ks[7], (hidden, 3 * hidden)),    # fused (r|z|n)
        gru_whh=rnd(ks[8], (hidden, 3 * hidden)),
        gru_bih=rnd(ks[9], (1, 3 * hidden)),
        gru_bhh=rnd(ks[10], (1, 3 * hidden)),
        w_out=rnd(ks[11], (hidden, vocab)),
        b_out=rnd(ks[12], (1, vocab)),
    )


@jax.jit
def attn_decoder_forward(tgt_tokens, tf_flags, h0, encoder_outputs, params):
    T = tgt_tokens.shape[0]
    H = h0.shape[-1]
    L = encoder_outputs.shape[0]
    V = params["w_out"].shape[1]
    Lp = _round_up(L, 128)
    Vp = _round_up(V, 128)
    f32 = jnp.float32

    # Lane-pad attention length and vocab to multiples of 128.  Padded weight
    # columns are zero and padded bias lanes are -1e30, so padded logits lose
    # every max / softmax / argmax without any in-kernel masking.
    enc_pad = jnp.zeros((Lp, H), f32).at[:L, :].set(encoder_outputs.astype(f32))
    attn_we = jnp.zeros((H, Lp), f32).at[:, :L].set(params["attn_we"])
    attn_wh = jnp.zeros((H, Lp), f32).at[:, :L].set(params["attn_wh"])
    attn_b = jnp.full((1, Lp), NEG_INF, f32).at[:, :L].set(params["attn_b"])
    w_out = jnp.zeros((H, Vp), f32).at[:, :V].set(params["w_out"])
    b_out = jnp.full((1, Vp), NEG_INF, f32).at[:, :V].set(params["b_out"])

    smem = pl.BlockSpec(memory_space=pltpu.MemorySpace.SMEM)
    vmem = pl.BlockSpec(memory_space=pltpu.MemorySpace.VMEM)

    logp, attn_w, h_fin = pl.pallas_call(
        attn_decoder_kernel,
        out_shape=(jax.ShapeDtypeStruct((T, Vp), f32),
                   jax.ShapeDtypeStruct((T, Lp), f32),
                   jax.ShapeDtypeStruct((1, H), f32)),
        in_specs=[smem, smem] + [vmem] * 15,
        out_specs=(vmem, vmem, vmem),
        scratch_shapes=[pltpu.SMEM((1,), jnp.int32)],
    )(tgt_tokens.astype(jnp.int32), tf_flags.astype(jnp.int32),
      h0.astype(f32).reshape(1, H), enc_pad, params["embedding"],
      attn_we, attn_wh, attn_b,
      params["comb_we"], params["comb_wa"], params["comb_b"],
      params["gru_wih"], params["gru_whh"], params["gru_bih"], params["gru_bhh"],
      w_out, b_out)

    # PyTorch conventions: stacked (T,1,V) log-probs, (1,1,H) hidden, (T,1,L) attn.
    return (logp[:, :V].reshape(T, 1, V),
            h_fin.reshape(1, 1, H),
            attn_w[:, :L].reshape(T, 1, L))


def attn_decoder_reference(tgt_tokens, tf_flags, h0, encoder_outputs, params):
    p = {k: np.asarray(v, np.float32) for k, v in params.items()}
    tgt = np.asarray(tgt_tokens).reshape(-1)
    tf = np.asarray(tf_flags).reshape(-1)
    enc = np.asarray(encoder_outputs, np.float32)
    h = np.asarray(h0, np.float32).reshape(1, -1).copy()

    H = h.shape[1]
    L = enc.shape[0]
    V = p["w_out"].shape[1]
    T = tgt.shape[0]

    def sigmoid(v):
        return 1.0 / (1.0 + np.exp(-v))

    logps = np.zeros((T, 1, V), np.float32)
    attns = np.zeros((T, 1, L), np.float32)
    tok, done = SOS_TOKEN, False
    for t in range(T):
        if done:
            break
        emb = p["embedding"][tok][None, :]
        a_logits = emb @ p["attn_we"] + h @ p["attn_wh"] + p["attn_b"]
        a = np.exp(a_logits - a_logits.max(axis=1, keepdims=True))
        attn_w = a / a.sum(axis=1, keepdims=True)
        applied = attn_w @ enc
        x = np.maximum(emb @ p["comb_we"] + applied @ p["comb_wa"] + p["comb_b"], 0.0)
        gi = x @ p["gru_wih"] + p["gru_bih"]
        gh = h @ p["gru_whh"] + p["gru_bhh"]
        r = sigmoid(gi[:, :H] + gh[:, :H])
        z = sigmoid(gi[:, H:2 * H] + gh[:, H:2 * H])
        n = np.tanh(gi[:, 2 * H:] + r * gh[:, 2 * H:])
        h = (1.0 - z) * n + z * h
        logits = h @ p["w_out"] + p["b_out"]
        sh = logits - logits.max(axis=1, keepdims=True)
        logp = sh - np.log(np.exp(sh).sum(axis=1, keepdims=True))
        logps[t] = logp
        attns[t] = attn_w
        topi = int(np.argmax(logp))
        use_tf = bool(tf[t])
        nxt = int(tgt[t]) if use_tf else topi
        if (not use_tf) and nxt == EOS_TOKEN:
            done = True
        tok = nxt
    return logps, h.reshape(1, 1, H), attns


if __name__ == "__main__":
    HIDDEN = 128        # lane-aligned (review: lane-dense shapes); spec uses 512
    VOCAB = 100         # padded to 128 inside the wrapper
    MAX_LEN = 20        # MAX_LENGTH from the spec; padded to 128 inside the wrapper
    TARGET_LEN = 8

    key = jax.random.PRNGKey(0)
    kp, kt, kh, ke = jax.random.split(key, 4)
    params = make_params(kp, VOCAB, HIDDEN, MAX_LEN)
    tgt = jax.random.randint(kt, (TARGET_LEN,), 2, VOCAB, dtype=jnp.int32)
    h0 = jax.random.normal(kh, (1, 1, HIDDEN), jnp.float32) * 0.1
    enc_outputs = jax.random.normal(ke, (MAX_LEN, HIDDEN), jnp.float32) * 0.1

    # Deterministic stand-in for `random.random() < teacher_forcing_ratio`.
    tf_all = jnp.ones((TARGET_LEN,), jnp.int32)
    tf_mix = jnp.array([1, 0, 1, 1, 0, 1, 0, 1], jnp.int32)

    # Run 1: pure teacher forcing -> deterministic, compare everything to reference.
    out_tf, hid_tf, attn_tf = jax.block_until_ready(
        attn_decoder_forward(tgt, tf_all, h0, enc_outputs, params))
    ref_out, ref_hid, ref_attn = attn_decoder_reference(tgt, tf_all, h0, enc_outputs, params)
    assert out_tf.shape == (TARGET_LEN, 1, VOCAB)
    assert hid_tf.shape == (1, 1, HIDDEN)
    assert attn_tf.shape == (TARGET_LEN, 1, MAX_LEN)
    np.testing.assert_allclose(np.asarray(out_tf), ref_out, atol=2e-2, rtol=0)
    np.testing.assert_allclose(np.asarray(attn_tf), ref_attn, atol=2e-2, rtol=0)
    np.testing.assert_allclose(np.asarray(hid_tf), ref_hid, atol=2e-2, rtol=0)

    # Run 2: mixed flags -> exercises the gated argmax / EOS-break path.
    out_mix, hid_mix, attn_mix = jax.block_until_ready(
        attn_decoder_forward(tgt, tf_mix, h0, enc_outputs, params))
    np.testing.assert_array_equal(np.asarray(out_mix[0]), np.asarray(out_tf[0]))
    rows = np.asarray(out_mix[:, 0, :])
    row_sum = np.exp(rows).sum(axis=1)
    zero_row = np.all(rows == 0.0, axis=1)
    assert np.all(zero_row | (np.abs(row_sum - 1.0) < 1e-3))
    arows = np.asarray(attn_mix[:, 0, :])
    arow_sum = arows.sum(axis=1)
    azero_row = np.all(arows == 0.0, axis=1)
    assert np.all(azero_row | (np.abs(arow_sum - 1.0) < 2e-2))
    assert not zero_row[0]

    print("KERNEL_OK")
</pallas_src>

<mosaic_0001>
module attributes {stable_mosaic.version = 11 : i64} {
  func.func @attn_decoder_kernel(%arg0: memref<8xi32, #tpu.memory_space<smem>>, %arg1: memref<8xi32, #tpu.memory_space<smem>>, %arg2: memref<1x128xf32, #tpu.memory_space<vmem>>, %arg3: memref<128x128xf32, #tpu.memory_space<vmem>>, %arg4: memref<100x128xf32, #tpu.memory_space<vmem>>, %arg5: memref<128x128xf32, #tpu.memory_space<vmem>>, %arg6: memref<128x128xf32, #tpu.memory_space<vmem>>, %arg7: memref<1x128xf32, #tpu.memory_space<vmem>>, %arg8: memref<128x128xf32, #tpu.memory_space<vmem>>, %arg9: memref<128x128xf32, #tpu.memory_space<vmem>>, %arg10: memref<1x128xf32, #tpu.memory_space<vmem>>, %arg11: memref<128x384xf32, #tpu.memory_space<vmem>>, %arg12: memref<128x384xf32, #tpu.memory_space<vmem>>, %arg13: memref<1x384xf32, #tpu.memory_space<vmem>>, %arg14: memref<1x384xf32, #tpu.memory_space<vmem>>, %arg15: memref<128x128xf32, #tpu.memory_space<vmem>>, %arg16: memref<1x128xf32, #tpu.memory_space<vmem>>, %arg17: memref<8x128xf32, #tpu.memory_space<vmem>>, %arg18: memref<8x128xf32, #tpu.memory_space<vmem>>, %arg19: memref<1x128xf32, #tpu.memory_space<vmem>>, %arg20: memref<1xi32, #tpu.memory_space<smem>>) attributes {dimension_semantics = [], scalar_prefetch = 0 : i64, scratch_operands = 1 : i64, tpu.core_type = #tpu.core_type<tc>} {
    %c0 = arith.constant 0 : index
    %c0_0 = arith.constant 0 : index
    %0 = vector.load %arg2[%c0, %c0_0] : memref<1x128xf32, #tpu.memory_space<vmem>>, vector<1x128xf32>
    %c0_1 = arith.constant 0 : index
    %1 = memref.load %arg1[%c0_1] : memref<8xi32, #tpu.memory_space<smem>>
    %c0_2 = arith.constant 0 : index
    %2 = memref.load %arg0[%c0_2] : memref<8xi32, #tpu.memory_space<smem>>
    %c0_3 = arith.constant 0 : index
    %c0_4 = arith.constant 0 : index
    %3 = vector.load %arg4[%c0_3, %c0_4] : memref<100x128xf32, #tpu.memory_space<vmem>>, vector<1x128xf32>
    %c0_5 = arith.constant 0 : index
    %c0_6 = arith.constant 0 : index
    %4 = vector.load %arg5[%c0_5, %c0_6] : memref<128x128xf32, #tpu.memory_space<vmem>>, vector<128x128xf32>
    %cst = arith.constant dense<0.000000e+00> : vector<1x128xf32>
    %5 = tpu.matmul %3, %4, %cst {dimension_numbers = #tpu.dot_dimension_numbers<[1], [0], [0], [1], [0, 0, 1, 1], [], []>} : vector<1x128xf32>, vector<128x128xf32>, vector<1x128xf32> -> vector<1x128xf32>
    %c0_7 = arith.constant 0 : index
    %c0_8 = arith.constant 0 : index
    %6 = vector.load %arg6[%c0_7, %c0_8] : memref<128x128xf32, #tpu.memory_space<vmem>>, vector<128x128xf32>
    %cst_9 = arith.constant dense<0.000000e+00> : vector<1x128xf32>
    %7 = tpu.matmul %0, %6, %cst_9 {dimension_numbers = #tpu.dot_dimension_numbers<[1], [0], [0], [1], [0, 0, 1, 1], [], []>} : vector<1x128xf32>, vector<128x128xf32>, vector<1x128xf32> -> vector<1x128xf32>
    %8 = arith.addf %5, %7 : vector<1x128xf32>
    %c0_10 = arith.constant 0 : index
    %c0_11 = arith.constant 0 : index
    %9 = vector.load %arg7[%c0_10, %c0_11] : memref<1x128xf32, #tpu.memory_space<vmem>>, vector<1x128xf32>
    %10 = arith.addf %8, %9 : vector<1x128xf32>
    %cst_12 = arith.constant dense<0xFF800000> : vector<1xf32>
    %11 = vector.multi_reduction <maximumf>, %10, %cst_12 [1] : vector<1x128xf32> to vector<1xf32>
    %12 = vector.shape_cast %11 : vector<1xf32> to vector<1x1xf32>
    %13 = vector.broadcast %12 : vector<1x1xf32> to vector<1x128xf32>
    %14 = arith.subf %10, %13 : vector<1x128xf32>
    %15 = math.exp %14 : vector<1x128xf32>
    %cst_13 = arith.constant dense<0.000000e+00> : vector<1xf32>
    %16 = vector.multi_reduction <add>, %15, %cst_13 [1] : vector<1x128xf32> to vector<1xf32>
    %17 = vector.shape_cast %16 : vector<1xf32> to vector<1x1xf32>
    %18 = tpu.reciprocal %17 {approx = true} : vector<1x1xf32> -> vector<1x1xf32>
    %19 = vector.broadcast %18 : vector<1x1xf32> to vector<1x128xf32>
    %20 = arith.mulf %15, %19 : vector<1x128xf32>
    %c0_14 = arith.constant 0 : index
    %c0_15 = arith.constant 0 : index
    %21 = vector.load %arg3[%c0_14, %c0_15] : memref<128x128xf32, #tpu.memory_space<vmem>>, vector<128x128xf32>
    %cst_16 = arith.constant dense<0.000000e+00> : vector<1x128xf32>
    %22 = tpu.matmul %20, %21, %cst_16 {dimension_numbers = #tpu.dot_dimension_numbers<[1], [0], [0], [1], [0, 0, 1, 1], [], []>} : vector<1x128xf32>, vector<128x128xf32>, vector<1x128xf32> -> vector<1x128xf32>
    %c0_17 = arith.constant 0 : index
    %c0_18 = arith.constant 0 : index
    %23 = vector.load %arg8[%c0_17, %c0_18] : memref<128x128xf32, #tpu.memory_space<vmem>>, vector<128x128xf32>
    %cst_19 = arith.constant dense<0.000000e+00> : vector<1x128xf32>
    %24 = tpu.matmul %3, %23, %cst_19 {dimension_numbers = #tpu.dot_dimension_numbers<[1], [0], [0], [1], [0, 0, 1, 1], [], []>} : vector<1x128xf32>, vector<128x128xf32>, vector<1x128xf32> -> vector<1x128xf32>
    %c0_20 = arith.constant 0 : index
    %c0_21 = arith.constant 0 : index
    %25 = vector.load %arg9[%c0_20, %c0_21] : memref<128x128xf32, #tpu.memory_space<vmem>>, vector<128x128xf32>
    %cst_22 = arith.constant dense<0.000000e+00> : vector<1x128xf32>
    %26 = tpu.matmul %22, %25, %cst_22 {dimension_numbers = #tpu.dot_dimension_numbers<[1], [0], [0], [1], [0, 0, 1, 1], [], []>} : vector<1x128xf32>, vector<128x128xf32>, vector<1x128xf32> -> vector<1x128xf32>
    %27 = arith.addf %24, %26 : vector<1x128xf32>
    %c0_23 = arith.constant 0 : index
    %c0_24 = arith.constant 0 : index
    %28 = vector.load %arg10[%c0_23, %c0_24] : memref<1x128xf32, #tpu.memory_space<vmem>>, vector<1x128xf32>
    %29 = arith.addf %27, %28 : vector<1x128xf32>
    %cst_25 = arith.constant 0.000000e+00 : f32
    %30 = vector.broadcast %cst_25 : f32 to vector<1x128xf32>
    %31 = arith.maximumf %29, %30 : vector<1x128xf32>
    %c0_26 = arith.constant 0 : index
    %c0_27 = arith.constant 0 : index
    %32 = vector.load %arg11[%c0_26, %c0_27] : memref<128x384xf32, #tpu.memory_space<vmem>>, vector<128x384xf32>
    %cst_28 = arith.constant dense<0.000000e+00> : vector<1x384xf32>
    %33 = tpu.matmul %31, %32, %cst_28 {dimension_numbers = #tpu.dot_dimension_numbers<[1], [0], [0], [1], [0, 0, 1, 1], [], []>} : vector<1x128xf32>, vector<128x384xf32>, vector<1x384xf32> -> vector<1x384xf32>
    %c0_29 = arith.constant 0 : index
    %c0_30 = arith.constant 0 : index
    %34 = vector.load %arg13[%c0_29, %c0_30] : memref<1x384xf32, #tpu.memory_space<vmem>>, vector<1x384xf32>
    %35 = arith.addf %33, %34 : vector<1x384xf32>
    %c0_31 = arith.constant 0 : index
    %c0_32 = arith.constant 0 : index
    %36 = vector.load %arg12[%c0_31, %c0_32] : memref<128x384xf32, #tpu.memory_space<vmem>>, vector<128x384xf32>
    %cst_33 = arith.constant dense<0.000000e+00> : vector<1x384xf32>
    %37 = tpu.matmul %0, %36, %cst_33 {dimension_numbers = #tpu.dot_dimension_numbers<[1], [0], [0], [1], [0, 0, 1, 1], [], []>} : vector<1x128xf32>, vector<128x384xf32>, vector<1x384xf32> -> vector<1x384xf32>
    %c0_34 = arith.constant 0 : index
    %c0_35 = arith.constant 0 : index
    %38 = vector.load %arg14[%c0_34, %c0_35] : memref<1x384xf32, #tpu.memory_space<vmem>>, vector<1x384xf32>
    %39 = arith.addf %37, %38 : vector<1x384xf32>
    %40 = vector.extract_strided_slice %35 {offsets = [0, 0], sizes = [1, 128], strides = [1, 1]} : vector<1x384xf32> to vector<1x128xf32>
    %41 = vector.extract_strided_slice %39 {offsets = [0, 0], sizes = [1, 128], strides = [1, 1]} : vector<1x384xf32> to vector<1x128xf32>
    %42 = arith.addf %40, %41 : vector<1x128xf32>
    %43 = arith.negf %42 : vector<1x128xf32>
    %44 = math.exp %43 : vector<1x128xf32>
    %cst_36 = arith.constant 1.000000e+00 : f32
    %45 = vector.broadcast %cst_36 : f32 to vector<1x128xf32>
    %46 = arith.addf %45, %44 : vector<1x128xf32>
    %47 = arith.divf %45, %46 : vector<1x128xf32>
    %48 = vector.extract_strided_slice %35 {offsets = [0, 128], sizes = [1, 128], strides = [1, 1]} : vector<1x384xf32> to vector<1x128xf32>
    %49 = vector.extract_strided_slice %39 {offsets = [0, 128], sizes = [1, 128], strides = [1, 1]} : vector<1x384xf32> to vector<1x128xf32>
    %50 = arith.addf %48, %49 : vector<1x128xf32>
    %51 = arith.negf %50 : vector<1x128xf32>
    %52 = math.exp %51 : vector<1x128xf32>
    %cst_37 = arith.constant 1.000000e+00 : f32
    %53 = vector.broadcast %cst_37 : f32 to vector<1x128xf32>
    %54 = arith.addf %53, %52 : vector<1x128xf32>
    %55 = arith.divf %53, %54 : vector<1x128xf32>
    %56 = vector.extract_strided_slice %35 {offsets = [0, 256], sizes = [1, 128], strides = [1, 1]} : vector<1x384xf32> to vector<1x128xf32>
    %57 = vector.extract_strided_slice %39 {offsets = [0, 256], sizes = [1, 128], strides = [1, 1]} : vector<1x384xf32> to vector<1x128xf32>
    %58 = arith.mulf %47, %57 : vector<1x128xf32>
    %59 = arith.addf %56, %58 : vector<1x128xf32>
    %60 = math.tanh %59 : vector<1x128xf32>
    %cst_38 = arith.constant 1.000000e+00 : f32
    %61 = vector.broadcast %cst_38 : f32 to vector<1x128xf32>
    %62 = arith.subf %61, %55 : vector<1x128xf32>
    %63 = arith.mulf %62, %60 : vector<1x128xf32>
    %64 = arith.mulf %55, %0 : vector<1x128xf32>
    %65 = arith.addf %63, %64 : vector<1x128xf32>
    %c0_39 = arith.constant 0 : index
    %c0_40 = arith.constant 0 : index
    %66 = vector.load %arg15[%c0_39, %c0_40] : memref<128x128xf32, #tpu.memory_space<vmem>>, vector<128x128xf32>
    %cst_41 = arith.constant dense<0.000000e+00> : vector<1x128xf32>
    %67 = tpu.matmul %65, %66, %cst_41 {dimension_numbers = #tpu.dot_dimension_numbers<[1], [0], [0], [1], [0, 0, 1, 1], [], []>} : vector<1x128xf32>, vector<128x128xf32>, vector<1x128xf32> -> vector<1x128xf32>
    %c0_42 = arith.constant 0 : index
    %c0_43 = arith.constant 0 : index
    %68 = vector.load %arg16[%c0_42, %c0_43] : memref<1x128xf32, #tpu.memory_space<vmem>>, vector<1x128xf32>
    %69 = arith.addf %67, %68 : vector<1x128xf32>
    %cst_44 = arith.constant dense<0xFF800000> : vector<1xf32>
    %70 = vector.multi_reduction <maximumf>, %69, %cst_44 [1] : vector<1x128xf32> to vector<1xf32>
    %71 = vector.shape_cast %70 : vector<1xf32> to vector<1x1xf32>
    %72 = vector.broadcast %71 : vector<1x1xf32> to vector<1x128xf32>
    %73 = arith.subf %69, %72 : vector<1x128xf32>
    %74 = math.exp %73 : vector<1x128xf32>
    %cst_45 = arith.constant dense<0.000000e+00> : vector<1xf32>
    %75 = vector.multi_reduction <add>, %74, %cst_45 [1] : vector<1x128xf32> to vector<1xf32>
    %76 = vector.shape_cast %75 : vector<1xf32> to vector<1x1xf32>
    %77 = math.log %76 : vector<1x1xf32>
    %78 = vector.broadcast %77 : vector<1x1xf32> to vector<1x128xf32>
    %79 = arith.subf %73, %78 : vector<1x128xf32>
    %c0_i32 = arith.constant 0 : i32
    %c0_i32_46 = arith.constant 0 : i32
    %80 = arith.cmpi eq, %c0_i32, %c0_i32_46 : i32
    %cst_47 = arith.constant 0.000000e+00 : f32
    %81 = vector.broadcast %cst_47 : f32 to vector<1x128xf32>
    %82 = arith.select %80, %79, %81 : vector<1x128xf32>
    %c0_48 = arith.constant 0 : index
    %c0_49 = arith.constant 0 : index
    %83 = vector.load %arg17[%c0_48, %c0_49] : memref<8x128xf32, #tpu.memory_space<vmem>>, vector<1x128xf32>
    tpu.vector_store %arg17[%c0_48, %c0_49], %82 {strides = array<i32>} : memref<8x128xf32, #tpu.memory_space<vmem>>, vector<1x128xf32>,
    %cst_50 = arith.constant 0.000000e+00 : f32
    %84 = vector.broadcast %cst_50 : f32 to vector<1x128xf32>
    %85 = arith.select %80, %20, %84 : vector<1x128xf32>
    %c0_51 = arith.constant 0 : index
    %c0_52 = arith.constant 0 : index
    %86 = vector.load %arg18[%c0_51, %c0_52] : memref<8x128xf32, #tpu.memory_space<vmem>>, vector<1x128xf32>
    tpu.vector_store %arg18[%c0_51, %c0_52], %85 {strides = array<i32>} : memref<8x128xf32, #tpu.memory_space<vmem>>, vector<1x128xf32>,
    %c0_53 = arith.constant 0 : index
    %87 = memref.load %arg20[%c0_53] : memref<1xi32, #tpu.memory_space<smem>>
    memref.store %2, %arg20[%c0_53] : memref<1xi32, #tpu.memory_space<smem>>
    %c0_i32_54 = arith.constant 0 : i32
    %88 = arith.cmpi eq, %1, %c0_i32_54 : i32
    %89 = arith.extui %88 : i1 to i32
    %c0_i32_55 = arith.constant 0 : i32
    %90 = arith.cmpi ne, %89, %c0_i32_55 : i32
    scf.if %90 {
      %779 = tpu.iota {dimensions = array<i32: 1>} : vector<1x128xi32>
      %cst_457 = arith.constant dense<0xFF800000> : vector<1xf32>
      %780 = vector.multi_reduction <maximumf>, %79, %cst_457 [1] : vector<1x128xf32> to vector<1xf32>
      %781 = vector.shape_cast %780 : vector<1xf32> to vector<1x1xf32>
      %782 = vector.broadcast %781 : vector<1x1xf32> to vector<1x128xf32>
      %783 = arith.cmpf oeq, %79, %782 : vector<1x128xf32>
      %c128_i32 = arith.constant 128 : i32
      %784 = vector.broadcast %c128_i32 : i32 to vector<1x128xi32>
      %785 = arith.select %783, %779, %784 : vector<1x128xi1>, vector<1x128xi32>
      %786 = vector.shape_cast %785 : vector<1x128xi32> to vector<1x1x128xi32>
      %cst_458 = arith.constant dense<2147483647> : vector<1xi32>
      %787 = vector.multi_reduction <minsi>, %786, %cst_458 [1, 2] : vector<1x1x128xi32> to vector<1xi32>
      %788 = vector.shape_cast %787 : vector<1xi32> to vector<1x1x1xi32>
      %789 = vector.extract %788[0, 0, 0] : i32 from vector<1x1x1xi32>
      %c0_459 = arith.constant 0 : index
      %790 = memref.load %arg20[%c0_459] : memref<1xi32, #tpu.memory_space<smem>>
      memref.store %789, %arg20[%c0_459] : memref<1xi32, #tpu.memory_space<smem>>
    } else {
    }
    %c0_56 = arith.constant 0 : index
    %91 = memref.load %arg20[%c0_56] : memref<1xi32, #tpu.memory_space<smem>>
    %c1_i32 = arith.constant 1 : i32
    %92 = arith.cmpi eq, %91, %c1_i32 : i32
    %93 = arith.extui %92 : i1 to i32
    %c1_i32_57 = arith.constant 1 : i32
    %94 = arith.subi %c1_i32_57, %1 : i32
    %95 = arith.muli %94, %93 : i32
    %c0_i32_58 = arith.constant 0 : i32
    %96 = arith.maxsi %c0_i32_58, %95 : i32
    %97 = arith.select %80, %65, %0 : vector<1x128xf32>
    %c1 = arith.constant 1 : index
    %98 = memref.load %arg1[%c1] : memref<8xi32, #tpu.memory_space<smem>>
    %c1_59 = arith.constant 1 : index
    %99 = memref.load %arg0[%c1_59] : memref<8xi32, #tpu.memory_space<smem>>
    %100 = arith.index_cast %91 : i32 to index
    %c0_60 = arith.constant 0 : index
    %101 = vector.load %arg4[%100, %c0_60] : memref<100x128xf32, #tpu.memory_space<vmem>>, vector<1x128xf32>
    %c0_61 = arith.constant 0 : index
    %c0_62 = arith.constant 0 : index
    %102 = vector.load %arg5[%c0_61, %c0_62] : memref<128x128xf32, #tpu.memory_space<vmem>>, vector<128x128xf32>
    %cst_63 = arith.constant dense<0.000000e+00> : vector<1x128xf32>
    %103 = tpu.matmul %101, %102, %cst_63 {dimension_numbers = #tpu.dot_dimension_numbers<[1], [0], [0], [1], [0, 0, 1, 1], [], []>} : vector<1x128xf32>, vector<128x128xf32>, vector<1x128xf32> -> vector<1x128xf32>
    %c0_64 = arith.constant 0 : index
    %c0_65 = arith.constant 0 : index
    %104 = vector.load %arg6[%c0_64, %c0_65] : memref<128x128xf32, #tpu.memory_space<vmem>>, vector<128x128xf32>
    %cst_66 = arith.constant dense<0.000000e+00> : vector<1x128xf32>
    %105 = tpu.matmul %97, %104, %cst_66 {dimension_numbers = #tpu.dot_dimension_numbers<[1], [0], [0], [1], [0, 0, 1, 1], [], []>} : vector<1x128xf32>, vector<128x128xf32>, vector<1x128xf32> -> vector<1x128xf32>
    %106 = arith.addf %103, %105 : vector<1x128xf32>
    %c0_67 = arith.constant 0 : index
    %c0_68 = arith.constant 0 : index
    %107 = vector.load %arg7[%c0_67, %c0_68] : memref<1x128xf32, #tpu.memory_space<vmem>>, vector<1x128xf32>
    %108 = arith.addf %106, %107 : vector<1x128xf32>
    %cst_69 = arith.constant dense<0xFF800000> : vector<1xf32>
    %109 = vector.multi_reduction <maximumf>, %108, %cst_69 [1] : vector<1x128xf32> to vector<1xf32>
    %110 = vector.shape_cast %109 : vector<1xf32> to vector<1x1xf32>
    %111 = vector.broadcast %110 : vector<1x1xf32> to vector<1x128xf32>
    %112 = arith.subf %108, %111 : vector<1x128xf32>
    %113 = math.exp %112 : vector<1x128xf32>
    %cst_70 = arith.constant dense<0.000000e+00> : vector<1xf32>
    %114 = vector.multi_reduction <add>, %113, %cst_70 [1] : vector<1x128xf32> to vector<1xf32>
    %115 = vector.shape_cast %114 : vector<1xf32> to vector<1x1xf32>
    %116 = tpu.reciprocal %115 {approx = true} : vector<1x1xf32> -> vector<1x1xf32>
    %117 = vector.broadcast %116 : vector<1x1xf32> to vector<1x128xf32>
    %118 = arith.mulf %113, %117 : vector<1x128xf32>
    %c0_71 = arith.constant 0 : index
    %c0_72 = arith.constant 0 : index
    %119 = vector.load %arg3[%c0_71, %c0_72] : memref<128x128xf32, #tpu.memory_space<vmem>>, vector<128x128xf32>
    %cst_73 = arith.constant dense<0.000000e+00> : vector<1x128xf32>
    %120 = tpu.matmul %118, %119, %cst_73 {dimension_numbers = #tpu.dot_dimension_numbers<[1], [0], [0], [1], [0, 0, 1, 1], [], []>} : vector<1x128xf32>, vector<128x128xf32>, vector<1x128xf32> -> vector<1x128xf32>
    %c0_74 = arith.constant 0 : index
    %c0_75 = arith.constant 0 : index
    %121 = vector.load %arg8[%c0_74, %c0_75] : memref<128x128xf32, #tpu.memory_space<vmem>>, vector<128x128xf32>
    %cst_76 = arith.constant dense<0.000000e+00> : vector<1x128xf32>
    %122 = tpu.matmul %101, %121, %cst_76 {dimension_numbers = #tpu.dot_dimension_numbers<[1], [0], [0], [1], [0, 0, 1, 1], [], []>} : vector<1x128xf32>, vector<128x128xf32>, vector<1x128xf32> -> vector<1x128xf32>
    %c0_77 = arith.constant 0 : index
    %c0_78 = arith.constant 0 : index
    %123 = vector.load %arg9[%c0_77, %c0_78] : memref<128x128xf32, #tpu.memory_space<vmem>>, vector<128x128xf32>
    %cst_79 = arith.constant dense<0.000000e+00> : vector<1x128xf32>
    %124 = tpu.matmul %120, %123, %cst_79 {dimension_numbers = #tpu.dot_dimension_numbers<[1], [0], [0], [1], [0, 0, 1, 1], [], []>} : vector<1x128xf32>, vector<128x128xf32>, vector<1x128xf32> -> vector<1x128xf32>
    %125 = arith.addf %122, %124 : vector<1x128xf32>
    %c0_80 = arith.constant 0 : index
    %c0_81 = arith.constant 0 : index
    %126 = vector.load %arg10[%c0_80, %c0_81] : memref<1x128xf32, #tpu.memory_space<vmem>>, vector<1x128xf32>
    %127 = arith.addf %125, %126 : vector<1x128xf32>
    %cst_82 = arith.constant 0.000000e+00 : f32
    %128 = vector.broadcast %cst_82 : f32 to vector<1x128xf32>
    %129 = arith.maximumf %127, %128 : vector<1x128xf32>
    %c0_83 = arith.constant 0 : index
    %c0_84 = arith.constant 0 : index
    %130 = vector.load %arg11[%c0_83, %c0_84] : memref<128x384xf32, #tpu.memory_space<vmem>>, vector<128x384xf32>
    %cst_85 = arith.constant dense<0.000000e+00> : vector<1x384xf32>
    %131 = tpu.matmul %129, %130, %cst_85 {dimension_numbers = #tpu.dot_dimension_numbers<[1], [0], [0], [1], [0, 0, 1, 1], [], []>} : vector<1x128xf32>, vector<128x384xf32>, vector<1x384xf32> -> vector<1x384xf32>
    %c0_86 = arith.constant 0 : index
    %c0_87 = arith.constant 0 : index
    %132 = vector.load %arg13[%c0_86, %c0_87] : memref<1x384xf32, #tpu.memory_space<vmem>>, vector<1x384xf32>
    %133 = arith.addf %131, %132 : vector<1x384xf32>
    %c0_88 = arith.constant 0 : index
    %c0_89 = arith.constant 0 : index
    %134 = vector.load %arg12[%c0_88, %c0_89] : memref<128x384xf32, #tpu.memory_space<vmem>>, vector<128x384xf32>
    %cst_90 = arith.constant dense<0.000000e+00> : vector<1x384xf32>
    %135 = tpu.matmul %97, %134, %cst_90 {dimension_numbers = #tpu.dot_dimension_numbers<[1], [0], [0], [1], [0, 0, 1, 1], [], []>} : vector<1x128xf32>, vector<128x384xf32>, vector<1x384xf32> -> vector<1x384xf32>
    %c0_91 = arith.constant 0 : index
    %c0_92 = arith.constant 0 : index
    %136 = vector.load %arg14[%c0_91, %c0_92] : memref<1x384xf32, #tpu.memory_space<vmem>>, vector<1x384xf32>
    %137 = arith.addf %135, %136 : vector<1x384xf32>
    %138 = vector.extract_strided_slice %133 {offsets = [0, 0], sizes = [1, 128], strides = [1, 1]} : vector<1x384xf32> to vector<1x128xf32>
    %139 = vector.extract_strided_slice %137 {offsets = [0, 0], sizes = [1, 128], strides = [1, 1]} : vector<1x384xf32> to vector<1x128xf32>
    %140 = arith.addf %138, %139 : vector<1x128xf32>
    %141 = arith.negf %140 : vector<1x128xf32>
    %142 = math.exp %141 : vector<1x128xf32>
    %cst_93 = arith.constant 1.000000e+00 : f32
    %143 = vector.broadcast %cst_93 : f32 to vector<1x128xf32>
    %144 = arith.addf %143, %142 : vector<1x128xf32>
    %145 = arith.divf %143, %144 : vector<1x128xf32>
    %146 = vector.extract_strided_slice %133 {offsets = [0, 128], sizes = [1, 128], strides = [1, 1]} : vector<1x384xf32> to vector<1x128xf32>
    %147 = vector.extract_strided_slice %137 {offsets = [0, 128], sizes = [1, 128], strides = [1, 1]} : vector<1x384xf32> to vector<1x128xf32>
    %148 = arith.addf %146, %147 : vector<1x128xf32>
    %149 = arith.negf %148 : vector<1x128xf32>
    %150 = math.exp %149 : vector<1x128xf32>
    %cst_94 = arith.constant 1.000000e+00 : f32
    %151 = vector.broadcast %cst_94 : f32 to vector<1x128xf32>
    %152 = arith.addf %151, %150 : vector<1x128xf32>
    %153 = arith.divf %151, %152 : vector<1x128xf32>
    %154 = vector.extract_strided_slice %133 {offsets = [0, 256], sizes = [1, 128], strides = [1, 1]} : vector<1x384xf32> to vector<1x128xf32>
    %155 = vector.extract_strided_slice %137 {offsets = [0, 256], sizes = [1, 128], strides = [1, 1]} : vector<1x384xf32> to vector<1x128xf32>
    %156 = arith.mulf %145, %155 : vector<1x128xf32>
    %157 = arith.addf %154, %156 : vector<1x128xf32>
    %158 = math.tanh %157 : vector<1x128xf32>
    %cst_95 = arith.constant 1.000000e+00 : f32
    %159 = vector.broadcast %cst_95 : f32 to vector<1x128xf32>
    %160 = arith.subf %159, %153 : vector<1x128xf32>
    %161 = arith.mulf %160, %158 : vector<1x128xf32>
    %162 = arith.mulf %153, %97 : vector<1x128xf32>
    %163 = arith.addf %161, %162 : vector<1x128xf32>
    %c0_96 = arith.constant 0 : index
    %c0_97 = arith.constant 0 : index
    %164 = vector.load %arg15[%c0_96, %c0_97] : memref<128x128xf32, #tpu.memory_space<vmem>>, vector<128x128xf32>
    %cst_98 = arith.constant dense<0.000000e+00> : vector<1x128xf32>
    %165 = tpu.matmul %163, %164, %cst_98 {dimension_numbers = #tpu.dot_dimension_numbers<[1], [0], [0], [1], [0, 0, 1, 1], [], []>} : vector<1x128xf32>, vector<128x128xf32>, vector<1x128xf32> -> vector<1x128xf32>
    %c0_99 = arith.constant 0 : index
    %c0_100 = arith.constant 0 : index
    %166 = vector.load %arg16[%c0_99, %c0_100] : memref<1x128xf32, #tpu.memory_space<vmem>>, vector<1x128xf32>
    %167 = arith.addf %165, %166 : vector<1x128xf32>
    %cst_101 = arith.constant dense<0xFF800000> : vector<1xf32>
    %168 = vector.multi_reduction <maximumf>, %167, %cst_101 [1] : vector<1x128xf32> to vector<1xf32>
    %169 = vector.shape_cast %168 : vector<1xf32> to vector<1x1xf32>
    %170 = vector.broadcast %169 : vector<1x1xf32> to vector<1x128xf32>
    %171 = arith.subf %167, %170 : vector<1x128xf32>
    %172 = math.exp %171 : vector<1x128xf32>
    %cst_102 = arith.constant dense<0.000000e+00> : vector<1xf32>
    %173 = vector.multi_reduction <add>, %172, %cst_102 [1] : vector<1x128xf32> to vector<1xf32>
    %174 = vector.shape_cast %173 : vector<1xf32> to vector<1x1xf32>
    %175 = math.log %174 : vector<1x1xf32>
    %176 = vector.broadcast %175 : vector<1x1xf32> to vector<1x128xf32>
    %177 = arith.subf %171, %176 : vector<1x128xf32>
    %c0_i32_103 = arith.constant 0 : i32
    %178 = arith.cmpi eq, %96, %c0_i32_103 : i32
    %cst_104 = arith.constant 0.000000e+00 : f32
    %179 = vector.broadcast %cst_104 : f32 to vector<1x128xf32>
    %180 = arith.select %178, %177, %179 : vector<1x128xf32>
    %c1_105 = arith.constant 1 : index
    %c0_106 = arith.constant 0 : index
    %181 = vector.load %arg17[%c1_105, %c0_106] : memref<8x128xf32, #tpu.memory_space<vmem>>, vector<1x128xf32>
    tpu.vector_store %arg17[%c1_105, %c0_106], %180 {strides = array<i32>} : memref<8x128xf32, #tpu.memory_space<vmem>>, vector<1x128xf32>,
    %cst_107 = arith.constant 0.000000e+00 : f32
    %182 = vector.broadcast %cst_107 : f32 to vector<1x128xf32>
    %183 = arith.select %178, %118, %182 : vector<1x128xf32>
    %c1_108 = arith.constant 1 : index
    %c0_109 = arith.constant 0 : index
    %184 = vector.load %arg18[%c1_108, %c0_109] : memref<8x128xf32, #tpu.memory_space<vmem>>, vector<1x128xf32>
    tpu.vector_store %arg18[%c1_108, %c0_109], %183 {strides = array<i32>} : memref<8x128xf32, #tpu.memory_space<vmem>>, vector<1x128xf32>,
    %c0_110 = arith.constant 0 : index
    %185 = memref.load %arg20[%c0_110] : memref<1xi32, #tpu.memory_space<smem>>
    memref.store %99, %arg20[%c0_110] : memref<1xi32, #tpu.memory_space<smem>>
    %c0_i32_111 = arith.constant 0 : i32
    %186 = arith.cmpi eq, %98, %c0_i32_111 : i32
    %187 = arith.extui %186 : i1 to i32
    %c0_i32_112 = arith.constant 0 : i32
    %188 = arith.cmpi ne, %187, %c0_i32_112 : i32
    scf.if %188 {
      %779 = tpu.iota {dimensions = array<i32: 1>} : vector<1x128xi32>
      %cst_457 = arith.constant dense<0xFF800000> : vector<1xf32>
      %780 = vector.multi_reduction <maximumf>, %177, %cst_457 [1] : vector<1x128xf32> to vector<1xf32>
      %781 = vector.shape_cast %780 : vector<1xf32> to vector<1x1xf32>
      %782 = vector.broadcast %781 : vector<1x1xf32> to vector<1x128xf32>
      %783 = arith.cmpf oeq, %177, %782 : vector<1x128xf32>
      %c128_i32 = arith.constant 128 : i32
      %784 = vector.broadcast %c128_i32 : i32 to vector<1x128xi32>
      %785 = arith.select %783, %779, %784 : vector<1x128xi1>, vector<1x128xi32>
      %786 = vector.shape_cast %785 : vector<1x128xi32> to vector<1x1x128xi32>
      %cst_458 = arith.constant dense<2147483647> : vector<1xi32>
      %787 = vector.multi_reduction <minsi>, %786, %cst_458 [1, 2] : vector<1x1x128xi32> to vector<1xi32>
      %788 = vector.shape_cast %787 : vector<1xi32> to vector<1x1x1xi32>
      %789 = vector.extract %788[0, 0, 0] : i32 from vector<1x1x1xi32>
      %c0_459 = arith.constant 0 : index
      %790 = memref.load %arg20[%c0_459] : memref<1xi32, #tpu.memory_space<smem>>
      memref.store %789, %arg20[%c0_459] : memref<1xi32, #tpu.memory_space<smem>>
    } else {
    }
    %c0_113 = arith.constant 0 : index
    %189 = memref.load %arg20[%c0_113] : memref<1xi32, #tpu.memory_space<smem>>
    %c1_i32_114 = arith.constant 1 : i32
    %190 = arith.cmpi eq, %189, %c1_i32_114 : i32
    %191 = arith.extui %190 : i1 to i32
    %c1_i32_115 = arith.constant 1 : i32
    %192 = arith.subi %c1_i32_115, %98 : i32
    %193 = arith.muli %192, %191 : i32
    %194 = arith.maxsi %96, %193 : i32
    %195 = arith.select %178, %163, %97 : vector<1x128xf32>
    %c2 = arith.constant 2 : index
    %196 = memref.load %arg1[%c2] : memref<8xi32, #tpu.memory_space<smem>>
    %c2_116 = arith.constant 2 : index
    %197 = memref.load %arg0[%c2_116] : memref<8xi32, #tpu.memory_space<smem>>
    %198 = arith.index_cast %189 : i32 to index
    %c0_117 = arith.constant 0 : index
    %199 = vector.load %arg4[%198, %c0_117] : memref<100x128xf32, #tpu.memory_space<vmem>>, vector<1x128xf32>
    %c0_118 = arith.constant 0 : index
    %c0_119 = arith.constant 0 : index
    %200 = vector.load %arg5[%c0_118, %c0_119] : memref<128x128xf32, #tpu.memory_space<vmem>>, vector<128x128xf32>
    %cst_120 = arith.constant dense<0.000000e+00> : vector<1x128xf32>
    %201 = tpu.matmul %199, %200, %cst_120 {dimension_numbers = #tpu.dot_dimension_numbers<[1], [0], [0], [1], [0, 0, 1, 1], [], []>} : vector<1x128xf32>, vector<128x128xf32>, vector<1x128xf32> -> vector<1x128xf32>
    %c0_121 = arith.constant 0 : index
    %c0_122 = arith.constant 0 : index
    %202 = vector.load %arg6[%c0_121, %c0_122] : memref<128x128xf32, #tpu.memory_space<vmem>>, vector<128x128xf32>
    %cst_123 = arith.constant dense<0.000000e+00> : vector<1x128xf32>
    %203 = tpu.matmul %195, %202, %cst_123 {dimension_numbers = #tpu.dot_dimension_numbers<[1], [0], [0], [1], [0, 0, 1, 1], [], []>} : vector<1x128xf32>, vector<128x128xf32>, vector<1x128xf32> -> vector<1x128xf32>
    %204 = arith.addf %201, %203 : vector<1x128xf32>
    %c0_124 = arith.constant 0 : index
    %c0_125 = arith.constant 0 : index
    %205 = vector.load %arg7[%c0_124, %c0_125] : memref<1x128xf32, #tpu.memory_space<vmem>>, vector<1x128xf32>
    %206 = arith.addf %204, %205 : vector<1x128xf32>
    %cst_126 = arith.constant dense<0xFF800000> : vector<1xf32>
    %207 = vector.multi_reduction <maximumf>, %206, %cst_126 [1] : vector<1x128xf32> to vector<1xf32>
    %208 = vector.shape_cast %207 : vector<1xf32> to vector<1x1xf32>
    %209 = vector.broadcast %208 : vector<1x1xf32> to vector<1x128xf32>
    %210 = arith.subf %206, %209 : vector<1x128xf32>
    %211 = math.exp %210 : vector<1x128xf32>
    %cst_127 = arith.constant dense<0.000000e+00> : vector<1xf32>
    %212 = vector.multi_reduction <add>, %211, %cst_127 [1] : vector<1x128xf32> to vector<1xf32>
    %213 = vector.shape_cast %212 : vector<1xf32> to vector<1x1xf32>
    %214 = tpu.reciprocal %213 {approx = true} : vector<1x1xf32> -> vector<1x1xf32>
    %215 = vector.broadcast %214 : vector<1x1xf32> to vector<1x128xf32>
    %216 = arith.mulf %211, %215 : vector<1x128xf32>
    %c0_128 = arith.constant 0 : index
    %c0_129 = arith.constant 0 : index
    %217 = vector.load %arg3[%c0_128, %c0_129] : memref<128x128xf32, #tpu.memory_space<vmem>>, vector<128x128xf32>
    %cst_130 = arith.constant dense<0.000000e+00> : vector<1x128xf32>
    %218 = tpu.matmul %216, %217, %cst_130 {dimension_numbers = #tpu.dot_dimension_numbers<[1], [0], [0], [1], [0, 0, 1, 1], [], []>} : vector<1x128xf32>, vector<128x128xf32>, vector<1x128xf32> -> vector<1x128xf32>
    %c0_131 = arith.constant 0 : index
    %c0_132 = arith.constant 0 : index
    %219 = vector.load %arg8[%c0_131, %c0_132] : memref<128x128xf32, #tpu.memory_space<vmem>>, vector<128x128xf32>
    %cst_133 = arith.constant dense<0.000000e+00> : vector<1x128xf32>
    %220 = tpu.matmul %199, %219, %cst_133 {dimension_numbers = #tpu.dot_dimension_numbers<[1], [0], [0], [1], [0, 0, 1, 1], [], []>} : vector<1x128xf32>, vector<128x128xf32>, vector<1x128xf32> -> vector<1x128xf32>
    %c0_134 = arith.constant 0 : index
    %c0_135 = arith.constant 0 : index
    %221 = vector.load %arg9[%c0_134, %c0_135] : memref<128x128xf32, #tpu.memory_space<vmem>>, vector<128x128xf32>
    %cst_136 = arith.constant dense<0.000000e+00> : vector<1x128xf32>
    %222 = tpu.matmul %218, %221, %cst_136 {dimension_numbers = #tpu.dot_dimension_numbers<[1], [0], [0], [1], [0, 0, 1, 1], [], []>} : vector<1x128xf32>, vector<128x128xf32>, vector<1x128xf32> -> vector<1x128xf32>
    %223 = arith.addf %220, %222 : vector<1x128xf32>
    %c0_137 = arith.constant 0 : index
    %c0_138 = arith.constant 0 : index
    %224 = vector.load %arg10[%c0_137, %c0_138] : memref<1x128xf32, #tpu.memory_space<vmem>>, vector<1x128xf32>
    %225 = arith.addf %223, %224 : vector<1x128xf32>
    %cst_139 = arith.constant 0.000000e+00 : f32
    %226 = vector.broadcast %cst_139 : f32 to vector<1x128xf32>
    %227 = arith.maximumf %225, %226 : vector<1x128xf32>
    %c0_140 = arith.constant 0 : index
    %c0_141 = arith.constant 0 : index
    %228 = vector.load %arg11[%c0_140, %c0_141] : memref<128x384xf32, #tpu.memory_space<vmem>>, vector<128x384xf32>
    %cst_142 = arith.constant dense<0.000000e+00> : vector<1x384xf32>
    %229 = tpu.matmul %227, %228, %cst_142 {dimension_numbers = #tpu.dot_dimension_numbers<[1], [0], [0], [1], [0, 0, 1, 1], [], []>} : vector<1x128xf32>, vector<128x384xf32>, vector<1x384xf32> -> vector<1x384xf32>
    %c0_143 = arith.constant 0 : index
    %c0_144 = arith.constant 0 : index
    %230 = vector.load %arg13[%c0_143, %c0_144] : memref<1x384xf32, #tpu.memory_space<vmem>>, vector<1x384xf32>
    %231 = arith.addf %229, %230 : vector<1x384xf32>
    %c0_145 = arith.constant 0 : index
    %c0_146 = arith.constant 0 : index
    %232 = vector.load %arg12[%c0_145, %c0_146] : memref<128x384xf32, #tpu.memory_space<vmem>>, vector<128x384xf32>
    %cst_147 = arith.constant dense<0.000000e+00> : vector<1x384xf32>
    %233 = tpu.matmul %195, %232, %cst_147 {dimension_numbers = #tpu.dot_dimension_numbers<[1], [0], [0], [1], [0, 0, 1, 1], [], []>} : vector<1x128xf32>, vector<128x384xf32>, vector<1x384xf32> -> vector<1x384xf32>
    %c0_148 = arith.constant 0 : index
    %c0_149 = arith.constant 0 : index
    %234 = vector.load %arg14[%c0_148, %c0_149] : memref<1x384xf32, #tpu.memory_space<vmem>>, vector<1x384xf32>
    %235 = arith.addf %233, %234 : vector<1x384xf32>
    %236 = vector.extract_strided_slice %231 {offsets = [0, 0], sizes = [1, 128], strides = [1, 1]} : vector<1x384xf32> to vector<1x128xf32>
    %237 = vector.extract_strided_slice %235 {offsets = [0, 0], sizes = [1, 128], strides = [1, 1]} : vector<1x384xf32> to vector<1x128xf32>
    %238 = arith.addf %236, %237 : vector<1x128xf32>
    %239 = arith.negf %238 : vector<1x128xf32>
    %240 = math.exp %239 : vector<1x128xf32>
    %cst_150 = arith.constant 1.000000e+00 : f32
    %241 = vector.broadcast %cst_150 : f32 to vector<1x128xf32>
    %242 = arith.addf %241, %240 : vector<1x128xf32>
    %243 = arith.divf %241, %242 : vector<1x128xf32>
    %244 = vector.extract_strided_slice %231 {offsets = [0, 128], sizes = [1, 128], strides = [1, 1]} : vector<1x384xf32> to vector<1x128xf32>
    %245 = vector.extract_strided_slice %235 {offsets = [0, 128], sizes = [1, 128], strides = [1, 1]} : vector<1x384xf32> to vector<1x128xf32>
    %246 = arith.addf %244, %245 : vector<1x128xf32>
    %247 = arith.negf %246 : vector<1x128xf32>
    %248 = math.exp %247 : vector<1x128xf32>
    %cst_151 = arith.constant 1.000000e+00 : f32
    %249 = vector.broadcast %cst_151 : f32 to vector<1x128xf32>
    %250 = arith.addf %249, %248 : vector<1x128xf32>
    %251 = arith.divf %249, %250 : vector<1x128xf32>
    %252 = vector.extract_strided_slice %231 {offsets = [0, 256], sizes = [1, 128], strides = [1, 1]} : vector<1x384xf32> to vector<1x128xf32>
    %253 = vector.extract_strided_slice %235 {offsets = [0, 256], sizes = [1, 128], strides = [1, 1]} : vector<1x384xf32> to vector<1x128xf32>
    %254 = arith.mulf %243, %253 : vector<1x128xf32>
    %255 = arith.addf %252, %254 : vector<1x128xf32>
    %256 = math.tanh %255 : vector<1x128xf32>
    %cst_152 = arith.constant 1.000000e+00 : f32
    %257 = vector.broadcast %cst_152 : f32 to vector<1x128xf32>
    %258 = arith.subf %257, %251 : vector<1x128xf32>
    %259 = arith.mulf %258, %256 : vector<1x128xf32>
    %260 = arith.mulf %251, %195 : vector<1x128xf32>
    %261 = arith.addf %259, %260 : vector<1x128xf32>
    %c0_153 = arith.constant 0 : index
    %c0_154 = arith.constant 0 : index
    %262 = vector.load %arg15[%c0_153, %c0_154] : memref<128x128xf32, #tpu.memory_space<vmem>>, vector<128x128xf32>
    %cst_155 = arith.constant dense<0.000000e+00> : vector<1x128xf32>
    %263 = tpu.matmul %261, %262, %cst_155 {dimension_numbers = #tpu.dot_dimension_numbers<[1], [0], [0], [1], [0, 0, 1, 1], [], []>} : vector<1x128xf32>, vector<128x128xf32>, vector<1x128xf32> -> vector<1x128xf32>
    %c0_156 = arith.constant 0 : index
    %c0_157 = arith.constant 0 : index
    %264 = vector.load %arg16[%c0_156, %c0_157] : memref<1x128xf32, #tpu.memory_space<vmem>>, vector<1x128xf32>
    %265 = arith.addf %263, %264 : vector<1x128xf32>
    %cst_158 = arith.constant dense<0xFF800000> : vector<1xf32>
    %266 = vector.multi_reduction <maximumf>, %265, %cst_158 [1] : vector<1x128xf32> to vector<1xf32>
    %267 = vector.shape_cast %266 : vector<1xf32> to vector<1x1xf32>
    %268 = vector.broadcast %267 : vector<1x1xf32> to vector<1x128xf32>
    %269 = arith.subf %265, %268 : vector<1x128xf32>
    %270 = math.exp %269 : vector<1x128xf32>
    %cst_159 = arith.constant dense<0.000000e+00> : vector<1xf32>
    %271 = vector.multi_reduction <add>, %270, %cst_159 [1] : vector<1x128xf32> to vector<1xf32>
    %272 = vector.shape_cast %271 : vector<1xf32> to vector<1x1xf32>
    %273 = math.log %272 : vector<1x1xf32>
    %274 = vector.broadcast %273 : vector<1x1xf32> to vector<1x128xf32>
    %275 = arith.subf %269, %274 : vector<1x128xf32>
    %c0_i32_160 = arith.constant 0 : i32
    %276 = arith.cmpi eq, %194, %c0_i32_160 : i32
    %cst_161 = arith.constant 0.000000e+00 : f32
    %277 = vector.broadcast %cst_161 : f32 to vector<1x128xf32>
    %278 = arith.select %276, %275, %277 : vector<1x128xf32>
    %c2_162 = arith.constant 2 : index
    %c0_163 = arith.constant 0 : index
    %279 = vector.load %arg17[%c2_162, %c0_163] : memref<8x128xf32, #tpu.memory_space<vmem>>, vector<1x128xf32>
    tpu.vector_store %arg17[%c2_162, %c0_163], %278 {strides = array<i32>} : memref<8x128xf32, #tpu.memory_space<vmem>>, vector<1x128xf32>,
    %cst_164 = arith.constant 0.000000e+00 : f32
    %280 = vector.broadcast %cst_164 : f32 to vector<1x128xf32>
    %281 = arith.select %276, %216, %280 : vector<1x128xf32>
    %c2_165 = arith.constant 2 : index
    %c0_166 = arith.constant 0 : index
    %282 = vector.load %arg18[%c2_165, %c0_166] : memref<8x128xf32, #tpu.memory_space<vmem>>, vector<1x128xf32>
    tpu.vector_store %arg18[%c2_165, %c0_166], %281 {strides = array<i32>} : memref<8x128xf32, #tpu.memory_space<vmem>>, vector<1x128xf32>,
    %c0_167 = arith.constant 0 : index
    %283 = memref.load %arg20[%c0_167] : memref<1xi32, #tpu.memory_space<smem>>
    memref.store %197, %arg20[%c0_167] : memref<1xi32, #tpu.memory_space<smem>>
    %c0_i32_168 = arith.constant 0 : i32
    %284 = arith.cmpi eq, %196, %c0_i32_168 : i32
    %285 = arith.extui %284 : i1 to i32
    %c0_i32_169 = arith.constant 0 : i32
    %286 = arith.cmpi ne, %285, %c0_i32_169 : i32
    scf.if %286 {
      %779 = tpu.iota {dimensions = array<i32: 1>} : vector<1x128xi32>
      %cst_457 = arith.constant dense<0xFF800000> : vector<1xf32>
      %780 = vector.multi_reduction <maximumf>, %275, %cst_457 [1] : vector<1x128xf32> to vector<1xf32>
      %781 = vector.shape_cast %780 : vector<1xf32> to vector<1x1xf32>
      %782 = vector.broadcast %781 : vector<1x1xf32> to vector<1x128xf32>
      %783 = arith.cmpf oeq, %275, %782 : vector<1x128xf32>
      %c128_i32 = arith.constant 128 : i32
      %784 = vector.broadcast %c128_i32 : i32 to vector<1x128xi32>
      %785 = arith.select %783, %779, %784 : vector<1x128xi1>, vector<1x128xi32>
      %786 = vector.shape_cast %785 : vector<1x128xi32> to vector<1x1x128xi32>
      %cst_458 = arith.constant dense<2147483647> : vector<1xi32>
      %787 = vector.multi_reduction <minsi>, %786, %cst_458 [1, 2] : vector<1x1x128xi32> to vector<1xi32>
      %788 = vector.shape_cast %787 : vector<1xi32> to vector<1x1x1xi32>
      %789 = vector.extract %788[0, 0, 0] : i32 from vector<1x1x1xi32>
      %c0_459 = arith.constant 0 : index
      %790 = memref.load %arg20[%c0_459] : memref<1xi32, #tpu.memory_space<smem>>
      memref.store %789, %arg20[%c0_459] : memref<1xi32, #tpu.memory_space<smem>>
    } else {
    }
    %c0_170 = arith.constant 0 : index
    %287 = memref.load %arg20[%c0_170] : memref<1xi32, #tpu.memory_space<smem>>
    %c1_i32_171 = arith.constant 1 : i32
    %288 = arith.cmpi eq, %287, %c1_i32_171 : i32
    %289 = arith.extui %288 : i1 to i32
    %c1_i32_172 = arith.constant 1 : i32
    %290 = arith.subi %c1_i32_172, %196 : i32
    %291 = arith.muli %290, %289 : i32
    %292 = arith.maxsi %194, %291 : i32
    %293 = arith.select %276, %261, %195 : vector<1x128xf32>
    %c3 = arith.constant 3 : index
    %294 = memref.load %arg1[%c3] : memref<8xi32, #tpu.memory_space<smem>>
    %c3_173 = arith.constant 3 : index
    %295 = memref.load %arg0[%c3_173] : memref<8xi32, #tpu.memory_space<smem>>
    %296 = arith.index_cast %287 : i32 to index
    %c0_174 = arith.constant 0 : index
    %297 = vector.load %arg4[%296, %c0_174] : memref<100x128xf32, #tpu.memory_space<vmem>>, vector<1x128xf32>
    %c0_175 = arith.constant 0 : index
    %c0_176 = arith.constant 0 : index
    %298 = vector.load %arg5[%c0_175, %c0_176] : memref<128x128xf32, #tpu.memory_space<vmem>>, vector<128x128xf32>
    %cst_177 = arith.constant dense<0.000000e+00> : vector<1x128xf32>
    %299 = tpu.matmul %297, %298, %cst_177 {dimension_numbers = #tpu.dot_dimension_numbers<[1], [0], [0], [1], [0, 0, 1, 1], [], []>} : vector<1x128xf32>, vector<128x128xf32>, vector<1x128xf32> -> vector<1x128xf32>
    %c0_178 = arith.constant 0 : index
    %c0_179 = arith.constant 0 : index
    %300 = vector.load %arg6[%c0_178, %c0_179] : memref<128x128xf32, #tpu.memory_space<vmem>>, vector<128x128xf32>
    %cst_180 = arith.constant dense<0.000000e+00> : vector<1x128xf32>
    %301 = tpu.matmul %293, %300, %cst_180 {dimension_numbers = #tpu.dot_dimension_numbers<[1], [0], [0], [1], [0, 0, 1, 1], [], []>} : vector<1x128xf32>, vector<128x128xf32>, vector<1x128xf32> -> vector<1x128xf32>
    %302 = arith.addf %299, %301 : vector<1x128xf32>
    %c0_181 = arith.constant 0 : index
    %c0_182 = arith.constant 0 : index
    %303 = vector.load %arg7[%c0_181, %c0_182] : memref<1x128xf32, #tpu.memory_space<vmem>>, vector<1x128xf32>
    %304 = arith.addf %302, %303 : vector<1x128xf32>
    %cst_183 = arith.constant dense<0xFF800000> : vector<1xf32>
    %305 = vector.multi_reduction <maximumf>, %304, %cst_183 [1] : vector<1x128xf32> to vector<1xf32>
    %306 = vector.shape_cast %305 : vector<1xf32> to vector<1x1xf32>
    %307 = vector.broadcast %306 : vector<1x1xf32> to vector<1x128xf32>
    %308 = arith.subf %304, %307 : vector<1x128xf32>
    %309 = math.exp %308 : vector<1x128xf32>
    %cst_184 = arith.constant dense<0.000000e+00> : vector<1xf32>
    %310 = vector.multi_reduction <add>, %309, %cst_184 [1] : vector<1x128xf32> to vector<1xf32>
    %311 = vector.shape_cast %310 : vector<1xf32> to vector<1x1xf32>
    %312 = tpu.reciprocal %311 {approx = true} : vector<1x1xf32> -> vector<1x1xf32>
    %313 = vector.broadcast %312 : vector<1x1xf32> to vector<1x128xf32>
    %314 = arith.mulf %309, %313 : vector<1x128xf32>
    %c0_185 = arith.constant 0 : index
    %c0_186 = arith.constant 0 : index
    %315 = vector.load %arg3[%c0_185, %c0_186] : memref<128x128xf32, #tpu.memory_space<vmem>>, vector<128x128xf32>
    %cst_187 = arith.constant dense<0.000000e+00> : vector<1x128xf32>
    %316 = tpu.matmul %314, %315, %cst_187 {dimension_numbers = #tpu.dot_dimension_numbers<[1], [0], [0], [1], [0, 0, 1, 1], [], []>} : vector<1x128xf32>, vector<128x128xf32>, vector<1x128xf32> -> vector<1x128xf32>
    %c0_188 = arith.constant 0 : index
    %c0_189 = arith.constant 0 : index
    %317 = vector.load %arg8[%c0_188, %c0_189] : memref<128x128xf32, #tpu.memory_space<vmem>>, vector<128x128xf32>
    %cst_190 = arith.constant dense<0.000000e+00> : vector<1x128xf32>
    %318 = tpu.matmul %297, %317, %cst_190 {dimension_numbers = #tpu.dot_dimension_numbers<[1], [0], [0], [1], [0, 0, 1, 1], [], []>} : vector<1x128xf32>, vector<128x128xf32>, vector<1x128xf32> -> vector<1x128xf32>
    %c0_191 = arith.constant 0 : index
    %c0_192 = arith.constant 0 : index
    %319 = vector.load %arg9[%c0_191, %c0_192] : memref<128x128xf32, #tpu.memory_space<vmem>>, vector<128x128xf32>
    %cst_193 = arith.constant dense<0.000000e+00> : vector<1x128xf32>
    %320 = tpu.matmul %316, %319, %cst_193 {dimension_numbers = #tpu.dot_dimension_numbers<[1], [0], [0], [1], [0, 0, 1, 1], [], []>} : vector<1x128xf32>, vector<128x128xf32>, vector<1x128xf32> -> vector<1x128xf32>
    %321 = arith.addf %318, %320 : vector<1x128xf32>
    %c0_194 = arith.constant 0 : index
    %c0_195 = arith.constant 0 : index
    %322 = vector.load %arg10[%c0_194, %c0_195] : memref<1x128xf32, #tpu.memory_space<vmem>>, vector<1x128xf32>
    %323 = arith.addf %321, %322 : vector<1x128xf32>
    %cst_196 = arith.constant 0.000000e+00 : f32
    %324 = vector.broadcast %cst_196 : f32 to vector<1x128xf32>
    %325 = arith.maximumf %323, %324 : vector<1x128xf32>
    %c0_197 = arith.constant 0 : index
    %c0_198 = arith.constant 0 : index
    %326 = vector.load %arg11[%c0_197, %c0_198] : memref<128x384xf32, #tpu.memory_space<vmem>>, vector<128x384xf32>
    %cst_199 = arith.constant dense<0.000000e+00> : vector<1x384xf32>
    %327 = tpu.matmul %325, %326, %cst_199 {dimension_numbers = #tpu.dot_dimension_numbers<[1], [0], [0], [1], [0, 0, 1, 1], [], []>} : vector<1x128xf32>, vector<128x384xf32>, vector<1x384xf32> -> vector<1x384xf32>
    %c0_200 = arith.constant 0 : index
    %c0_201 = arith.constant 0 : index
    %328 = vector.load %arg13[%c0_200, %c0_201] : memref<1x384xf32, #tpu.memory_space<vmem>>, vector<1x384xf32>
    %329 = arith.addf %327, %328 : vector<1x384xf32>
    %c0_202 = arith.constant 0 : index
    %c0_203 = arith.constant 0 : index
    %330 = vector.load %arg12[%c0_202, %c0_203] : memref<128x384xf32, #tpu.memory_space<vmem>>, vector<128x384xf32>
    %cst_204 = arith.constant dense<0.000000e+00> : vector<1x384xf32>
    %331 = tpu.matmul %293, %330, %cst_204 {dimension_numbers = #tpu.dot_dimension_numbers<[1], [0], [0], [1], [0, 0, 1, 1], [], []>} : vector<1x128xf32>, vector<128x384xf32>, vector<1x384xf32> -> vector<1x384xf32>
    %c0_205 = arith.constant 0 : index
    %c0_206 = arith.constant 0 : index
    %332 = vector.load %arg14[%c0_205, %c0_206] : memref<1x384xf32, #tpu.memory_space<vmem>>, vector<1x384xf32>
    %333 = arith.addf %331, %332 : vector<1x384xf32>
    %334 = vector.extract_strided_slice %329 {offsets = [0, 0], sizes = [1, 128], strides = [1, 1]} : vector<1x384xf32> to vector<1x128xf32>
    %335 = vector.extract_strided_slice %333 {offsets = [0, 0], sizes = [1, 128], strides = [1, 1]} : vector<1x384xf32> to vector<1x128xf32>
    %336 = arith.addf %334, %335 : vector<1x128xf32>
    %337 = arith.negf %336 : vector<1x128xf32>
    %338 = math.exp %337 : vector<1x128xf32>
    %cst_207 = arith.constant 1.000000e+00 : f32
    %339 = vector.broadcast %cst_207 : f32 to vector<1x128xf32>
    %340 = arith.addf %339, %338 : vector<1x128xf32>
    %341 = arith.divf %339, %340 : vector<1x128xf32>
    %342 = vector.extract_strided_slice %329 {offsets = [0, 128], sizes = [1, 128], strides = [1, 1]} : vector<1x384xf32> to vector<1x128xf32>
    %343 = vector.extract_strided_slice %333 {offsets = [0, 128], sizes = [1, 128], strides = [1, 1]} : vector<1x384xf32> to vector<1x128xf32>
    %344 = arith.addf %342, %343 : vector<1x128xf32>
    %345 = arith.negf %344 : vector<1x128xf32>
    %346 = math.exp %345 : vector<1x128xf32>
    %cst_208 = arith.constant 1.000000e+00 : f32
    %347 = vector.broadcast %cst_208 : f32 to vector<1x128xf32>
    %348 = arith.addf %347, %346 : vector<1x128xf32>
    %349 = arith.divf %347, %348 : vector<1x128xf32>
    %350 = vector.extract_strided_slice %329 {offsets = [0, 256], sizes = [1, 128], strides = [1, 1]} : vector<1x384xf32> to vector<1x128xf32>
    %351 = vector.extract_strided_slice %333 {offsets = [0, 256], sizes = [1, 128], strides = [1, 1]} : vector<1x384xf32> to vector<1x128xf32>
    %352 = arith.mulf %341, %351 : vector<1x128xf32>
    %353 = arith.addf %350, %352 : vector<1x128xf32>
    %354 = math.tanh %353 : vector<1x128xf32>
    %cst_209 = arith.constant 1.000000e+00 : f32
    %355 = vector.broadcast %cst_209 : f32 to vector<1x128xf32>
    %356 = arith.subf %355, %349 : vector<1x128xf32>
    %357 = arith.mulf %356, %354 : vector<1x128xf32>
    %358 = arith.mulf %349, %293 : vector<1x128xf32>
    %359 = arith.addf %357, %358 : vector<1x128xf32>
    %c0_210 = arith.constant 0 : index
    %c0_211 = arith.constant 0 : index
    %360 = vector.load %arg15[%c0_210, %c0_211] : memref<128x128xf32, #tpu.memory_space<vmem>>, vector<128x128xf32>
    %cst_212 = arith.constant dense<0.000000e+00> : vector<1x128xf32>
    %361 = tpu.matmul %359, %360, %cst_212 {dimension_numbers = #tpu.dot_dimension_numbers<[1], [0], [0], [1], [0, 0, 1, 1], [], []>} : vector<1x128xf32>, vector<128x128xf32>, vector<1x128xf32> -> vector<1x128xf32>
    %c0_213 = arith.constant 0 : index
    %c0_214 = arith.constant 0 : index
    %362 = vector.load %arg16[%c0_213, %c0_214] : memref<1x128xf32, #tpu.memory_space<vmem>>, vector<1x128xf32>
    %363 = arith.addf %361, %362 : vector<1x128xf32>
    %cst_215 = arith.constant dense<0xFF800000> : vector<1xf32>
    %364 = vector.multi_reduction <maximumf>, %363, %cst_215 [1] : vector<1x128xf32> to vector<1xf32>
    %365 = vector.shape_cast %364 : vector<1xf32> to vector<1x1xf32>
    %366 = vector.broadcast %365 : vector<1x1xf32> to vector<1x128xf32>
    %367 = arith.subf %363, %366 : vector<1x128xf32>
    %368 = math.exp %367 : vector<1x128xf32>
    %cst_216 = arith.constant dense<0.000000e+00> : vector<1xf32>
    %369 = vector.multi_reduction <add>, %368, %cst_216 [1] : vector<1x128xf32> to vector<1xf32>
    %370 = vector.shape_cast %369 : vector<1xf32> to vector<1x1xf32>
    %371 = math.log %370 : vector<1x1xf32>
    %372 = vector.broadcast %371 : vector<1x1xf32> to vector<1x128xf32>
    %373 = arith.subf %367, %372 : vector<1x128xf32>
    %c0_i32_217 = arith.constant 0 : i32
    %374 = arith.cmpi eq, %292, %c0_i32_217 : i32
    %cst_218 = arith.constant 0.000000e+00 : f32
    %375 = vector.broadcast %cst_218 : f32 to vector<1x128xf32>
    %376 = arith.select %374, %373, %375 : vector<1x128xf32>
    %c3_219 = arith.constant 3 : index
    %c0_220 = arith.constant 0 : index
    %377 = vector.load %arg17[%c3_219, %c0_220] : memref<8x128xf32, #tpu.memory_space<vmem>>, vector<1x128xf32>
    tpu.vector_store %arg17[%c3_219, %c0_220], %376 {strides = array<i32>} : memref<8x128xf32, #tpu.memory_space<vmem>>, vector<1x128xf32>,
    %cst_221 = arith.constant 0.000000e+00 : f32
    %378 = vector.broadcast %cst_221 : f32 to vector<1x128xf32>
    %379 = arith.select %374, %314, %378 : vector<1x128xf32>
    %c3_222 = arith.constant 3 : index
    %c0_223 = arith.constant 0 : index
    %380 = vector.load %arg18[%c3_222, %c0_223] : memref<8x128xf32, #tpu.memory_space<vmem>>, vector<1x128xf32>
    tpu.vector_store %arg18[%c3_222, %c0_223], %379 {strides = array<i32>} : memref<8x128xf32, #tpu.memory_space<vmem>>, vector<1x128xf32>,
    %c0_224 = arith.constant 0 : index
    %381 = memref.load %arg20[%c0_224] : memref<1xi32, #tpu.memory_space<smem>>
    memref.store %295, %arg20[%c0_224] : memref<1xi32, #tpu.memory_space<smem>>
    %c0_i32_225 = arith.constant 0 : i32
    %382 = arith.cmpi eq, %294, %c0_i32_225 : i32
    %383 = arith.extui %382 : i1 to i32
    %c0_i32_226 = arith.constant 0 : i32
    %384 = arith.cmpi ne, %383, %c0_i32_226 : i32
    scf.if %384 {
      %779 = tpu.iota {dimensions = array<i32: 1>} : vector<1x128xi32>
      %cst_457 = arith.constant dense<0xFF800000> : vector<1xf32>
      %780 = vector.multi_reduction <maximumf>, %373, %cst_457 [1] : vector<1x128xf32> to vector<1xf32>
      %781 = vector.shape_cast %780 : vector<1xf32> to vector<1x1xf32>
      %782 = vector.broadcast %781 : vector<1x1xf32> to vector<1x128xf32>
      %783 = arith.cmpf oeq, %373, %782 : vector<1x128xf32>
      %c128_i32 = arith.constant 128 : i32
      %784 = vector.broadcast %c128_i32 : i32 to vector<1x128xi32>
      %785 = arith.select %783, %779, %784 : vector<1x128xi1>, vector<1x128xi32>
      %786 = vector.shape_cast %785 : vector<1x128xi32> to vector<1x1x128xi32>
      %cst_458 = arith.constant dense<2147483647> : vector<1xi32>
      %787 = vector.multi_reduction <minsi>, %786, %cst_458 [1, 2] : vector<1x1x128xi32> to vector<1xi32>
      %788 = vector.shape_cast %787 : vector<1xi32> to vector<1x1x1xi32>
      %789 = vector.extract %788[0, 0, 0] : i32 from vector<1x1x1xi32>
      %c0_459 = arith.constant 0 : index
      %790 = memref.load %arg20[%c0_459] : memref<1xi32, #tpu.memory_space<smem>>
      memref.store %789, %arg20[%c0_459] : memref<1xi32, #tpu.memory_space<smem>>
    } else {
    }
    %c0_227 = arith.constant 0 : index
    %385 = memref.load %arg20[%c0_227] : memref<1xi32, #tpu.memory_space<smem>>
    %c1_i32_228 = arith.constant 1 : i32
    %386 = arith.cmpi eq, %385, %c1_i32_228 : i32
    %387 = arith.extui %386 : i1 to i32
    %c1_i32_229 = arith.constant 1 : i32
    %388 = arith.subi %c1_i32_229, %294 : i32
    %389 = arith.muli %388, %387 : i32
    %390 = arith.maxsi %292, %389 : i32
    %391 = arith.select %374, %359, %293 : vector<1x128xf32>
    %c4 = arith.constant 4 : index
    %392 = memref.load %arg1[%c4] : memref<8xi32, #tpu.memory_space<smem>>
    %c4_230 = arith.constant 4 : index
    %393 = memref.load %arg0[%c4_230] : memref<8xi32, #tpu.memory_space<smem>>
    %394 = arith.index_cast %385 : i32 to index
    %c0_231 = arith.constant 0 : index
    %395 = vector.load %arg4[%394, %c0_231] : memref<100x128xf32, #tpu.memory_space<vmem>>, vector<1x128xf32>
    %c0_232 = arith.constant 0 : index
    %c0_233 = arith.constant 0 : index
    %396 = vector.load %arg5[%c0_232, %c0_233] : memref<128x128xf32, #tpu.memory_space<vmem>>, vector<128x128xf32>
    %cst_234 = arith.constant dense<0.000000e+00> : vector<1x128xf32>
    %397 = tpu.matmul %395, %396, %cst_234 {dimension_numbers = #tpu.dot_dimension_numbers<[1], [0], [0], [1], [0, 0, 1, 1], [], []>} : vector<1x128xf32>, vector<128x128xf32>, vector<1x128xf32> -> vector<1x128xf32>
    %c0_235 = arith.constant 0 : index
    %c0_236 = arith.constant 0 : index
    %398 = vector.load %arg6[%c0_235, %c0_236] : memref<128x128xf32, #tpu.memory_space<vmem>>, vector<128x128xf32>
    %cst_237 = arith.constant dense<0.000000e+00> : vector<1x128xf32>
    %399 = tpu.matmul %391, %398, %cst_237 {dimension_numbers = #tpu.dot_dimension_numbers<[1], [0], [0], [1], [0, 0, 1, 1], [], []>} : vector<1x128xf32>, vector<128x128xf32>, vector<1x128xf32> -> vector<1x128xf32>
    %400 = arith.addf %397, %399 : vector<1x128xf32>
    %c0_238 = arith.constant 0 : index
    %c0_239 = arith.constant 0 : index
    %401 = vector.load %arg7[%c0_238, %c0_239] : memref<1x128xf32, #tpu.memory_space<vmem>>, vector<1x128xf32>
    %402 = arith.addf %400, %401 : vector<1x128xf32>
    %cst_240 = arith.constant dense<0xFF800000> : vector<1xf32>
    %403 = vector.multi_reduction <maximumf>, %402, %cst_240 [1] : vector<1x128xf32> to vector<1xf32>
    %404 = vector.shape_cast %403 : vector<1xf32> to vector<1x1xf32>
    %405 = vector.broadcast %404 : vector<1x1xf32> to vector<1x128xf32>
    %406 = arith.subf %402, %405 : vector<1x128xf32>
    %407 = math.exp %406 : vector<1x128xf32>
    %cst_241 = arith.constant dense<0.000000e+00> : vector<1xf32>
    %408 = vector.multi_reduction <add>, %407, %cst_241 [1] : vector<1x128xf32> to vector<1xf32>
    %409 = vector.shape_cast %408 : vector<1xf32> to vector<1x1xf32>
    %410 = tpu.reciprocal %409 {approx = true} : vector<1x1xf32> -> vector<1x1xf32>
    %411 = vector.broadcast %410 : vector<1x1xf32> to vector<1x128xf32>
    %412 = arith.mulf %407, %411 : vector<1x128xf32>
    %c0_242 = arith.constant 0 : index
    %c0_243 = arith.constant 0 : index
    %413 = vector.load %arg3[%c0_242, %c0_243] : memref<128x128xf32, #tpu.memory_space<vmem>>, vector<128x128xf32>
    %cst_244 = arith.constant dense<0.000000e+00> : vector<1x128xf32>
    %414 = tpu.matmul %412, %413, %cst_244 {dimension_numbers = #tpu.dot_dimension_numbers<[1], [0], [0], [1], [0, 0, 1, 1], [], []>} : vector<1x128xf32>, vector<128x128xf32>, vector<1x128xf32> -> vector<1x128xf32>
    %c0_245 = arith.constant 0 : index
    %c0_246 = arith.constant 0 : index
    %415 = vector.load %arg8[%c0_245, %c0_246] : memref<128x128xf32, #tpu.memory_space<vmem>>, vector<128x128xf32>
    %cst_247 = arith.constant dense<0.000000e+00> : vector<1x128xf32>
    %416 = tpu.matmul %395, %415, %cst_247 {dimension_numbers = #tpu.dot_dimension_numbers<[1], [0], [0], [1], [0, 0, 1, 1], [], []>} : vector<1x128xf32>, vector<128x128xf32>, vector<1x128xf32> -> vector<1x128xf32>
    %c0_248 = arith.constant 0 : index
    %c0_249 = arith.constant 0 : index
    %417 = vector.load %arg9[%c0_248, %c0_249] : memref<128x128xf32, #tpu.memory_space<vmem>>, vector<128x128xf32>
    %cst_250 = arith.constant dense<0.000000e+00> : vector<1x128xf32>
    %418 = tpu.matmul %414, %417, %cst_250 {dimension_numbers = #tpu.dot_dimension_numbers<[1], [0], [0], [1], [0, 0, 1, 1], [], []>} : vector<1x128xf32>, vector<128x128xf32>, vector<1x128xf32> -> vector<1x128xf32>
    %419 = arith.addf %416, %418 : vector<1x128xf32>
    %c0_251 = arith.constant 0 : index
    %c0_252 = arith.constant 0 : index
    %420 = vector.load %arg10[%c0_251, %c0_252] : memref<1x128xf32, #tpu.memory_space<vmem>>, vector<1x128xf32>
    %421 = arith.addf %419, %420 : vector<1x128xf32>
    %cst_253 = arith.constant 0.000000e+00 : f32
    %422 = vector.broadcast %cst_253 : f32 to vector<1x128xf32>
    %423 = arith.maximumf %421, %422 : vector<1x128xf32>
    %c0_254 = arith.constant 0 : index
    %c0_255 = arith.constant 0 : index
    %424 = vector.load %arg11[%c0_254, %c0_255] : memref<128x384xf32, #tpu.memory_space<vmem>>, vector<128x384xf32>
    %cst_256 = arith.constant dense<0.000000e+00> : vector<1x384xf32>
    %425 = tpu.matmul %423, %424, %cst_256 {dimension_numbers = #tpu.dot_dimension_numbers<[1], [0], [0], [1], [0, 0, 1, 1], [], []>} : vector<1x128xf32>, vector<128x384xf32>, vector<1x384xf32> -> vector<1x384xf32>
    %c0_257 = arith.constant 0 : index
    %c0_258 = arith.constant 0 : index
    %426 = vector.load %arg13[%c0_257, %c0_258] : memref<1x384xf32, #tpu.memory_space<vmem>>, vector<1x384xf32>
    %427 = arith.addf %425, %426 : vector<1x384xf32>
    %c0_259 = arith.constant 0 : index
    %c0_260 = arith.constant 0 : index
    %428 = vector.load %arg12[%c0_259, %c0_260] : memref<128x384xf32, #tpu.memory_space<vmem>>, vector<128x384xf32>
    %cst_261 = arith.constant dense<0.000000e+00> : vector<1x384xf32>
    %429 = tpu.matmul %391, %428, %cst_261 {dimension_numbers = #tpu.dot_dimension_numbers<[1], [0], [0], [1], [0, 0, 1, 1], [], []>} : vector<1x128xf32>, vector<128x384xf32>, vector<1x384xf32> -> vector<1x384xf32>
    %c0_262 = arith.constant 0 : index
    %c0_263 = arith.constant 0 : index
    %430 = vector.load %arg14[%c0_262, %c0_263] : memref<1x384xf32, #tpu.memory_space<vmem>>, vector<1x384xf32>
    %431 = arith.addf %429, %430 : vector<1x384xf32>
    %432 = vector.extract_strided_slice %427 {offsets = [0, 0], sizes = [1, 128], strides = [1, 1]} : vector<1x384xf32> to vector<1x128xf32>
    %433 = vector.extract_strided_slice %431 {offsets = [0, 0], sizes = [1, 128], strides = [1, 1]} : vector<1x384xf32> to vector<1x128xf32>
    %434 = arith.addf %432, %433 : vector<1x128xf32>
    %435 = arith.negf %434 : vector<1x128xf32>
    %436 = math.exp %435 : vector<1x128xf32>
    %cst_264 = arith.constant 1.000000e+00 : f32
    %437 = vector.broadcast %cst_264 : f32 to vector<1x128xf32>
    %438 = arith.addf %437, %436 : vector<1x128xf32>
    %439 = arith.divf %437, %438 : vector<1x128xf32>
    %440 = vector.extract_strided_slice %427 {offsets = [0, 128], sizes = [1, 128], strides = [1, 1]} : vector<1x384xf32> to vector<1x128xf32>
    %441 = vector.extract_strided_slice %431 {offsets = [0, 128], sizes = [1, 128], strides = [1, 1]} : vector<1x384xf32> to vector<1x128xf32>
    %442 = arith.addf %440, %441 : vector<1x128xf32>
    %443 = arith.negf %442 : vector<1x128xf32>
    %444 = math.exp %443 : vector<1x128xf32>
    %cst_265 = arith.constant 1.000000e+00 : f32
    %445 = vector.broadcast %cst_265 : f32 to vector<1x128xf32>
    %446 = arith.addf %445, %444 : vector<1x128xf32>
    %447 = arith.divf %445, %446 : vector<1x128xf32>
    %448 = vector.extract_strided_slice %427 {offsets = [0, 256], sizes = [1, 128], strides = [1, 1]} : vector<1x384xf32> to vector<1x128xf32>
    %449 = vector.extract_strided_slice %431 {offsets = [0, 256], sizes = [1, 128], strides = [1, 1]} : vector<1x384xf32> to vector<1x128xf32>
    %450 = arith.mulf %439, %449 : vector<1x128xf32>
    %451 = arith.addf %448, %450 : vector<1x128xf32>
    %452 = math.tanh %451 : vector<1x128xf32>
    %cst_266 = arith.constant 1.000000e+00 : f32
    %453 = vector.broadcast %cst_266 : f32 to vector<1x128xf32>
    %454 = arith.subf %453, %447 : vector<1x128xf32>
    %455 = arith.mulf %454, %452 : vector<1x128xf32>
    %456 = arith.mulf %447, %391 : vector<1x128xf32>
    %457 = arith.addf %455, %456 : vector<1x128xf32>
    %c0_267 = arith.constant 0 : index
    %c0_268 = arith.constant 0 : index
    %458 = vector.load %arg15[%c0_267, %c0_268] : memref<128x128xf32, #tpu.memory_space<vmem>>, vector<128x128xf32>
    %cst_269 = arith.constant dense<0.000000e+00> : vector<1x128xf32>
    %459 = tpu.matmul %457, %458, %cst_269 {dimension_numbers = #tpu.dot_dimension_numbers<[1], [0], [0], [1], [0, 0, 1, 1], [], []>} : vector<1x128xf32>, vector<128x128xf32>, vector<1x128xf32> -> vector<1x128xf32>
    %c0_270 = arith.constant 0 : index
    %c0_271 = arith.constant 0 : index
    %460 = vector.load %arg16[%c0_270, %c0_271] : memref<1x128xf32, #tpu.memory_space<vmem>>, vector<1x128xf32>
    %461 = arith.addf %459, %460 : vector<1x128xf32>
    %cst_272 = arith.constant dense<0xFF800000> : vector<1xf32>
    %462 = vector.multi_reduction <maximumf>, %461, %cst_272 [1] : vector<1x128xf32> to vector<1xf32>
    %463 = vector.shape_cast %462 : vector<1xf32> to vector<1x1xf32>
    %464 = vector.broadcast %463 : vector<1x1xf32> to vector<1x128xf32>
    %465 = arith.subf %461, %464 : vector<1x128xf32>
    %466 = math.exp %465 : vector<1x128xf32>
    %cst_273 = arith.constant dense<0.000000e+00> : vector<1xf32>
    %467 = vector.multi_reduction <add>, %466, %cst_273 [1] : vector<1x128xf32> to vector<1xf32>
    %468 = vector.shape_cast %467 : vector<1xf32> to vector<1x1xf32>
    %469 = math.log %468 : vector<1x1xf32>
    %470 = vector.broadcast %469 : vector<1x1xf32> to vector<1x128xf32>
    %471 = arith.subf %465, %470 : vector<1x128xf32>
    %c0_i32_274 = arith.constant 0 : i32
    %472 = arith.cmpi eq, %390, %c0_i32_274 : i32
    %cst_275 = arith.constant 0.000000e+00 : f32
    %473 = vector.broadcast %cst_275 : f32 to vector<1x128xf32>
    %474 = arith.select %472, %471, %473 : vector<1x128xf32>
    %c4_276 = arith.constant 4 : index
    %c0_277 = arith.constant 0 : index
    %475 = vector.load %arg17[%c4_276, %c0_277] : memref<8x128xf32, #tpu.memory_space<vmem>>, vector<1x128xf32>
    tpu.vector_store %arg17[%c4_276, %c0_277], %474 {strides = array<i32>} : memref<8x128xf32, #tpu.memory_space<vmem>>, vector<1x128xf32>,
    %cst_278 = arith.constant 0.000000e+00 : f32
    %476 = vector.broadcast %cst_278 : f32 to vector<1x128xf32>
    %477 = arith.select %472, %412, %476 : vector<1x128xf32>
    %c4_279 = arith.constant 4 : index
    %c0_280 = arith.constant 0 : index
    %478 = vector.load %arg18[%c4_279, %c0_280] : memref<8x128xf32, #tpu.memory_space<vmem>>, vector<1x128xf32>
    tpu.vector_store %arg18[%c4_279, %c0_280], %477 {strides = array<i32>} : memref<8x128xf32, #tpu.memory_space<vmem>>, vector<1x128xf32>,
    %c0_281 = arith.constant 0 : index
    %479 = memref.load %arg20[%c0_281] : memref<1xi32, #tpu.memory_space<smem>>
    memref.store %393, %arg20[%c0_281] : memref<1xi32, #tpu.memory_space<smem>>
    %c0_i32_282 = arith.constant 0 : i32
    %480 = arith.cmpi eq, %392, %c0_i32_282 : i32
    %481 = arith.extui %480 : i1 to i32
    %c0_i32_283 = arith.constant 0 : i32
    %482 = arith.cmpi ne, %481, %c0_i32_283 : i32
    scf.if %482 {
      %779 = tpu.iota {dimensions = array<i32: 1>} : vector<1x128xi32>
      %cst_457 = arith.constant dense<0xFF800000> : vector<1xf32>
      %780 = vector.multi_reduction <maximumf>, %471, %cst_457 [1] : vector<1x128xf32> to vector<1xf32>
      %781 = vector.shape_cast %780 : vector<1xf32> to vector<1x1xf32>
      %782 = vector.broadcast %781 : vector<1x1xf32> to vector<1x128xf32>
      %783 = arith.cmpf oeq, %471, %782 : vector<1x128xf32>
      %c128_i32 = arith.constant 128 : i32
      %784 = vector.broadcast %c128_i32 : i32 to vector<1x128xi32>
      %785 = arith.select %783, %779, %784 : vector<1x128xi1>, vector<1x128xi32>
      %786 = vector.shape_cast %785 : vector<1x128xi32> to vector<1x1x128xi32>
      %cst_458 = arith.constant dense<2147483647> : vector<1xi32>
      %787 = vector.multi_reduction <minsi>, %786, %cst_458 [1, 2] : vector<1x1x128xi32> to vector<1xi32>
      %788 = vector.shape_cast %787 : vector<1xi32> to vector<1x1x1xi32>
      %789 = vector.extract %788[0, 0, 0] : i32 from vector<1x1x1xi32>
      %c0_459 = arith.constant 0 : index
      %790 = memref.load %arg20[%c0_459] : memref<1xi32, #tpu.memory_space<smem>>
      memref.store %789, %arg20[%c0_459] : memref<1xi32, #tpu.memory_space<smem>>
    } else {
    }
    %c0_284 = arith.constant 0 : index
    %483 = memref.load %arg20[%c0_284] : memref<1xi32, #tpu.memory_space<smem>>
    %c1_i32_285 = arith.constant 1 : i32
    %484 = arith.cmpi eq, %483, %c1_i32_285 : i32
    %485 = arith.extui %484 : i1 to i32
    %c1_i32_286 = arith.constant 1 : i32
    %486 = arith.subi %c1_i32_286, %392 : i32
    %487 = arith.muli %486, %485 : i32
    %488 = arith.maxsi %390, %487 : i32
    %489 = arith.select %472, %457, %391 : vector<1x128xf32>
    %c5 = arith.constant 5 : index
    %490 = memref.load %arg1[%c5] : memref<8xi32, #tpu.memory_space<smem>>
    %c5_287 = arith.constant 5 : index
    %491 = memref.load %arg0[%c5_287] : memref<8xi32, #tpu.memory_space<smem>>
    %492 = arith.index_cast %483 : i32 to index
    %c0_288 = arith.constant 0 : index
    %493 = vector.load %arg4[%492, %c0_288] : memref<100x128xf32, #tpu.memory_space<vmem>>, vector<1x128xf32>
    %c0_289 = arith.constant 0 : index
    %c0_290 = arith.constant 0 : index
    %494 = vector.load %arg5[%c0_289, %c0_290] : memref<128x128xf32, #tpu.memory_space<vmem>>, vector<128x128xf32>
    %cst_291 = arith.constant dense<0.000000e+00> : vector<1x128xf32>
    %495 = tpu.matmul %493, %494, %cst_291 {dimension_numbers = #tpu.dot_dimension_numbers<[1], [0], [0], [1], [0, 0, 1, 1], [], []>} : vector<1x128xf32>, vector<128x128xf32>, vector<1x128xf32> -> vector<1x128xf32>
    %c0_292 = arith.constant 0 : index
    %c0_293 = arith.constant 0 : index
    %496 = vector.load %arg6[%c0_292, %c0_293] : memref<128x128xf32, #tpu.memory_space<vmem>>, vector<128x128xf32>
    %cst_294 = arith.constant dense<0.000000e+00> : vector<1x128xf32>
    %497 = tpu.matmul %489, %496, %cst_294 {dimension_numbers = #tpu.dot_dimension_numbers<[1], [0], [0], [1], [0, 0, 1, 1], [], []>} : vector<1x128xf32>, vector<128x128xf32>, vector<1x128xf32> -> vector<1x128xf32>
    %498 = arith.addf %495, %497 : vector<1x128xf32>
    %c0_295 = arith.constant 0 : index
    %c0_296 = arith.constant 0 : index
    %499 = vector.load %arg7[%c0_295, %c0_296] : memref<1x128xf32, #tpu.memory_space<vmem>>, vector<1x128xf32>
    %500 = arith.addf %498, %499 : vector<1x128xf32>
    %cst_297 = arith.constant dense<0xFF800000> : vector<1xf32>
    %501 = vector.multi_reduction <maximumf>, %500, %cst_297 [1] : vector<1x128xf32> to vector<1xf32>
    %502 = vector.shape_cast %501 : vector<1xf32> to vector<1x1xf32>
    %503 = vector.broadcast %502 : vector<1x1xf32> to vector<1x128xf32>
    %504 = arith.subf %500, %503 : vector<1x128xf32>
    %505 = math.exp %504 : vector<1x128xf32>
    %cst_298 = arith.constant dense<0.000000e+00> : vector<1xf32>
    %506 = vector.multi_reduction <add>, %505, %cst_298 [1] : vector<1x128xf32> to vector<1xf32>
    %507 = vector.shape_cast %506 : vector<1xf32> to vector<1x1xf32>
    %508 = tpu.reciprocal %507 {approx = true} : vector<1x1xf32> -> vector<1x1xf32>
    %509 = vector.broadcast %508 : vector<1x1xf32> to vector<1x128xf32>
    %510 = arith.mulf %505, %509 : vector<1x128xf32>
    %c0_299 = arith.constant 0 : index
    %c0_300 = arith.constant 0 : index
    %511 = vector.load %arg3[%c0_299, %c0_300] : memref<128x128xf32, #tpu.memory_space<vmem>>, vector<128x128xf32>
    %cst_301 = arith.constant dense<0.000000e+00> : vector<1x128xf32>
    %512 = tpu.matmul %510, %511, %cst_301 {dimension_numbers = #tpu.dot_dimension_numbers<[1], [0], [0], [1], [0, 0, 1, 1], [], []>} : vector<1x128xf32>, vector<128x128xf32>, vector<1x128xf32> -> vector<1x128xf32>
    %c0_302 = arith.constant 0 : index
    %c0_303 = arith.constant 0 : index
    %513 = vector.load %arg8[%c0_302, %c0_303] : memref<128x128xf32, #tpu.memory_space<vmem>>, vector<128x128xf32>
    %cst_304 = arith.constant dense<0.000000e+00> : vector<1x128xf32>
    %514 = tpu.matmul %493, %513, %cst_304 {dimension_numbers = #tpu.dot_dimension_numbers<[1], [0], [0], [1], [0, 0, 1, 1], [], []>} : vector<1x128xf32>, vector<128x128xf32>, vector<1x128xf32> -> vector<1x128xf32>
    %c0_305 = arith.constant 0 : index
    %c0_306 = arith.constant 0 : index
    %515 = vector.load %arg9[%c0_305, %c0_306] : memref<128x128xf32, #tpu.memory_space<vmem>>, vector<128x128xf32>
    %cst_307 = arith.constant dense<0.000000e+00> : vector<1x128xf32>
    %516 = tpu.matmul %512, %515, %cst_307 {dimension_numbers = #tpu.dot_dimension_numbers<[1], [0], [0], [1], [0, 0, 1, 1], [], []>} : vector<1x128xf32>, vector<128x128xf32>, vector<1x128xf32> -> vector<1x128xf32>
    %517 = arith.addf %514, %516 : vector<1x128xf32>
    %c0_308 = arith.constant 0 : index
    %c0_309 = arith.constant 0 : index
    %518 = vector.load %arg10[%c0_308, %c0_309] : memref<1x128xf32, #tpu.memory_space<vmem>>, vector<1x128xf32>
    %519 = arith.addf %517, %518 : vector<1x128xf32>
    %cst_310 = arith.constant 0.000000e+00 : f32
    %520 = vector.broadcast %cst_310 : f32 to vector<1x128xf32>
    %521 = arith.maximumf %519, %520 : vector<1x128xf32>
    %c0_311 = arith.constant 0 : index
    %c0_312 = arith.constant 0 : index
    %522 = vector.load %arg11[%c0_311, %c0_312] : memref<128x384xf32, #tpu.memory_space<vmem>>, vector<128x384xf32>
    %cst_313 = arith.constant dense<0.000000e+00> : vector<1x384xf32>
    %523 = tpu.matmul %521, %522, %cst_313 {dimension_numbers = #tpu.dot_dimension_numbers<[1], [0], [0], [1], [0, 0, 1, 1], [], []>} : vector<1x128xf32>, vector<128x384xf32>, vector<1x384xf32> -> vector<1x384xf32>
    %c0_314 = arith.constant 0 : index
    %c0_315 = arith.constant 0 : index
    %524 = vector.load %arg13[%c0_314, %c0_315] : memref<1x384xf32, #tpu.memory_space<vmem>>, vector<1x384xf32>
    %525 = arith.addf %523, %524 : vector<1x384xf32>
    %c0_316 = arith.constant 0 : index
    %c0_317 = arith.constant 0 : index
    %526 = vector.load %arg12[%c0_316, %c0_317] : memref<128x384xf32, #tpu.memory_space<vmem>>, vector<128x384xf32>
    %cst_318 = arith.constant dense<0.000000e+00> : vector<1x384xf32>
    %527 = tpu.matmul %489, %526, %cst_318 {dimension_numbers = #tpu.dot_dimension_numbers<[1], [0], [0], [1], [0, 0, 1, 1], [], []>} : vector<1x128xf32>, vector<128x384xf32>, vector<1x384xf32> -> vector<1x384xf32>
    %c0_319 = arith.constant 0 : index
    %c0_320 = arith.constant 0 : index
    %528 = vector.load %arg14[%c0_319, %c0_320] : memref<1x384xf32, #tpu.memory_space<vmem>>, vector<1x384xf32>
    %529 = arith.addf %527, %528 : vector<1x384xf32>
    %530 = vector.extract_strided_slice %525 {offsets = [0, 0], sizes = [1, 128], strides = [1, 1]} : vector<1x384xf32> to vector<1x128xf32>
    %531 = vector.extract_strided_slice %529 {offsets = [0, 0], sizes = [1, 128], strides = [1, 1]} : vector<1x384xf32> to vector<1x128xf32>
    %532 = arith.addf %530, %531 : vector<1x128xf32>
    %533 = arith.negf %532 : vector<1x128xf32>
    %534 = math.exp %533 : vector<1x128xf32>
    %cst_321 = arith.constant 1.000000e+00 : f32
    %535 = vector.broadcast %cst_321 : f32 to vector<1x128xf32>
    %536 = arith.addf %535, %534 : vector<1x128xf32>
    %537 = arith.divf %535, %536 : vector<1x128xf32>
    %538 = vector.extract_strided_slice %525 {offsets = [0, 128], sizes = [1, 128], strides = [1, 1]} : vector<1x384xf32> to vector<1x128xf32>
    %539 = vector.extract_strided_slice %529 {offsets = [0, 128], sizes = [1, 128], strides = [1, 1]} : vector<1x384xf32> to vector<1x128xf32>
    %540 = arith.addf %538, %539 : vector<1x128xf32>
    %541 = arith.negf %540 : vector<1x128xf32>
    %542 = math.exp %541 : vector<1x128xf32>
    %cst_322 = arith.constant 1.000000e+00 : f32
    %543 = vector.broadcast %cst_322 : f32 to vector<1x128xf32>
    %544 = arith.addf %543, %542 : vector<1x128xf32>
    %545 = arith.divf %543, %544 : vector<1x128xf32>
    %546 = vector.extract_strided_slice %525 {offsets = [0, 256], sizes = [1, 128], strides = [1, 1]} : vector<1x384xf32> to vector<1x128xf32>
    %547 = vector.extract_strided_slice %529 {offsets = [0, 256], sizes = [1, 128], strides = [1, 1]} : vector<1x384xf32> to vector<1x128xf32>
    %548 = arith.mulf %537, %547 : vector<1x128xf32>
    %549 = arith.addf %546, %548 : vector<1x128xf32>
    %550 = math.tanh %549 : vector<1x128xf32>
    %cst_323 = arith.constant 1.000000e+00 : f32
    %551 = vector.broadcast %cst_323 : f32 to vector<1x128xf32>
    %552 = arith.subf %551, %545 : vector<1x128xf32>
    %553 = arith.mulf %552, %550 : vector<1x128xf32>
    %554 = arith.mulf %545, %489 : vector<1x128xf32>
    %555 = arith.addf %553, %554 : vector<1x128xf32>
    %c0_324 = arith.constant 0 : index
    %c0_325 = arith.constant 0 : index
    %556 = vector.load %arg15[%c0_324, %c0_325] : memref<128x128xf32, #tpu.memory_space<vmem>>, vector<128x128xf32>
    %cst_326 = arith.constant dense<0.000000e+00> : vector<1x128xf32>
    %557 = tpu.matmul %555, %556, %cst_326 {dimension_numbers = #tpu.dot_dimension_numbers<[1], [0], [0], [1], [0, 0, 1, 1], [], []>} : vector<1x128xf32>, vector<128x128xf32>, vector<1x128xf32> -> vector<1x128xf32>
    %c0_327 = arith.constant 0 : index
    %c0_328 = arith.constant 0 : index
    %558 = vector.load %arg16[%c0_327, %c0_328] : memref<1x128xf32, #tpu.memory_space<vmem>>, vector<1x128xf32>
    %559 = arith.addf %557, %558 : vector<1x128xf32>
    %cst_329 = arith.constant dense<0xFF800000> : vector<1xf32>
    %560 = vector.multi_reduction <maximumf>, %559, %cst_329 [1] : vector<1x128xf32> to vector<1xf32>
    %561 = vector.shape_cast %560 : vector<1xf32> to vector<1x1xf32>
    %562 = vector.broadcast %561 : vector<1x1xf32> to vector<1x128xf32>
    %563 = arith.subf %559, %562 : vector<1x128xf32>
    %564 = math.exp %563 : vector<1x128xf32>
    %cst_330 = arith.constant dense<0.000000e+00> : vector<1xf32>
    %565 = vector.multi_reduction <add>, %564, %cst_330 [1] : vector<1x128xf32> to vector<1xf32>
    %566 = vector.shape_cast %565 : vector<1xf32> to vector<1x1xf32>
    %567 = math.log %566 : vector<1x1xf32>
    %568 = vector.broadcast %567 : vector<1x1xf32> to vector<1x128xf32>
    %569 = arith.subf %563, %568 : vector<1x128xf32>
    %c0_i32_331 = arith.constant 0 : i32
    %570 = arith.cmpi eq, %488, %c0_i32_331 : i32
    %cst_332 = arith.constant 0.000000e+00 : f32
    %571 = vector.broadcast %cst_332 : f32 to vector<1x128xf32>
    %572 = arith.select %570, %569, %571 : vector<1x128xf32>
    %c5_333 = arith.constant 5 : index
    %c0_334 = arith.constant 0 : index
    %573 = vector.load %arg17[%c5_333, %c0_334] : memref<8x128xf32, #tpu.memory_space<vmem>>, vector<1x128xf32>
    tpu.vector_store %arg17[%c5_333, %c0_334], %572 {strides = array<i32>} : memref<8x128xf32, #tpu.memory_space<vmem>>, vector<1x128xf32>,
    %cst_335 = arith.constant 0.000000e+00 : f32
    %574 = vector.broadcast %cst_335 : f32 to vector<1x128xf32>
    %575 = arith.select %570, %510, %574 : vector<1x128xf32>
    %c5_336 = arith.constant 5 : index
    %c0_337 = arith.constant 0 : index
    %576 = vector.load %arg18[%c5_336, %c0_337] : memref<8x128xf32, #tpu.memory_space<vmem>>, vector<1x128xf32>
    tpu.vector_store %arg18[%c5_336, %c0_337], %575 {strides = array<i32>} : memref<8x128xf32, #tpu.memory_space<vmem>>, vector<1x128xf32>,
    %c0_338 = arith.constant 0 : index
    %577 = memref.load %arg20[%c0_338] : memref<1xi32, #tpu.memory_space<smem>>
    memref.store %491, %arg20[%c0_338] : memref<1xi32, #tpu.memory_space<smem>>
    %c0_i32_339 = arith.constant 0 : i32
    %578 = arith.cmpi eq, %490, %c0_i32_339 : i32
    %579 = arith.extui %578 : i1 to i32
    %c0_i32_340 = arith.constant 0 : i32
    %580 = arith.cmpi ne, %579, %c0_i32_340 : i32
    scf.if %580 {
      %779 = tpu.iota {dimensions = array<i32: 1>} : vector<1x128xi32>
      %cst_457 = arith.constant dense<0xFF800000> : vector<1xf32>
      %780 = vector.multi_reduction <maximumf>, %569, %cst_457 [1] : vector<1x128xf32> to vector<1xf32>
      %781 = vector.shape_cast %780 : vector<1xf32> to vector<1x1xf32>
      %782 = vector.broadcast %781 : vector<1x1xf32> to vector<1x128xf32>
      %783 = arith.cmpf oeq, %569, %782 : vector<1x128xf32>
      %c128_i32 = arith.constant 128 : i32
      %784 = vector.broadcast %c128_i32 : i32 to vector<1x128xi32>
      %785 = arith.select %783, %779, %784 : vector<1x128xi1>, vector<1x128xi32>
      %786 = vector.shape_cast %785 : vector<1x128xi32> to vector<1x1x128xi32>
      %cst_458 = arith.constant dense<2147483647> : vector<1xi32>
      %787 = vector.multi_reduction <minsi>, %786, %cst_458 [1, 2] : vector<1x1x128xi32> to vector<1xi32>
      %788 = vector.shape_cast %787 : vector<1xi32> to vector<1x1x1xi32>
      %789 = vector.extract %788[0, 0, 0] : i32 from vector<1x1x1xi32>
      %c0_459 = arith.constant 0 : index
      %790 = memref.load %arg20[%c0_459] : memref<1xi32, #tpu.memory_space<smem>>
      memref.store %789, %arg20[%c0_459] : memref<1xi32, #tpu.memory_space<smem>>
    } else {
    }
    %c0_341 = arith.constant 0 : index
    %581 = memref.load %arg20[%c0_341] : memref<1xi32, #tpu.memory_space<smem>>
    %c1_i32_342 = arith.constant 1 : i32
    %582 = arith.cmpi eq, %581, %c1_i32_342 : i32
    %583 = arith.extui %582 : i1 to i32
    %c1_i32_343 = arith.constant 1 : i32
    %584 = arith.subi %c1_i32_343, %490 : i32
    %585 = arith.muli %584, %583 : i32
    %586 = arith.maxsi %488, %585 : i32
    %587 = arith.select %570, %555, %489 : vector<1x128xf32>
    %c6 = arith.constant 6 : index
    %588 = memref.load %arg1[%c6] : memref<8xi32, #tpu.memory_space<smem>>
    %c6_344 = arith.constant 6 : index
    %589 = memref.load %arg0[%c6_344] : memref<8xi32, #tpu.memory_space<smem>>
    %590 = arith.index_cast %581 : i32 to index
    %c0_345 = arith.constant 0 : index
    %591 = vector.load %arg4[%590, %c0_345] : memref<100x128xf32, #tpu.memory_space<vmem>>, vector<1x128xf32>
    %c0_346 = arith.constant 0 : index
    %c0_347 = arith.constant 0 : index
    %592 = vector.load %arg5[%c0_346, %c0_347] : memref<128x128xf32, #tpu.memory_space<vmem>>, vector<128x128xf32>
    %cst_348 = arith.constant dense<0.000000e+00> : vector<1x128xf32>
    %593 = tpu.matmul %591, %592, %cst_348 {dimension_numbers = #tpu.dot_dimension_numbers<[1], [0], [0], [1], [0, 0, 1, 1], [], []>} : vector<1x128xf32>, vector<128x128xf32>, vector<1x128xf32> -> vector<1x128xf32>
    %c0_349 = arith.constant 0 : index
    %c0_350 = arith.constant 0 : index
    %594 = vector.load %arg6[%c0_349, %c0_350] : memref<128x128xf32, #tpu.memory_space<vmem>>, vector<128x128xf32>
    %cst_351 = arith.constant dense<0.000000e+00> : vector<1x128xf32>
    %595 = tpu.matmul %587, %594, %cst_351 {dimension_numbers = #tpu.dot_dimension_numbers<[1], [0], [0], [1], [0, 0, 1, 1], [], []>} : vector<1x128xf32>, vector<128x128xf32>, vector<1x128xf32> -> vector<1x128xf32>
    %596 = arith.addf %593, %595 : vector<1x128xf32>
    %c0_352 = arith.constant 0 : index
    %c0_353 = arith.constant 0 : index
    %597 = vector.load %arg7[%c0_352, %c0_353] : memref<1x128xf32, #tpu.memory_space<vmem>>, vector<1x128xf32>
    %598 = arith.addf %596, %597 : vector<1x128xf32>
    %cst_354 = arith.constant dense<0xFF800000> : vector<1xf32>
    %599 = vector.multi_reduction <maximumf>, %598, %cst_354 [1] : vector<1x128xf32> to vector<1xf32>
    %600 = vector.shape_cast %599 : vector<1xf32> to vector<1x1xf32>
    %601 = vector.broadcast %600 : vector<1x1xf32> to vector<1x128xf32>
    %602 = arith.subf %598, %601 : vector<1x128xf32>
    %603 = math.exp %602 : vector<1x128xf32>
    %cst_355 = arith.constant dense<0.000000e+00> : vector<1xf32>
    %604 = vector.multi_reduction <add>, %603, %cst_355 [1] : vector<1x128xf32> to vector<1xf32>
    %605 = vector.shape_cast %604 : vector<1xf32> to vector<1x1xf32>
    %606 = tpu.reciprocal %605 {approx = true} : vector<1x1xf32> -> vector<1x1xf32>
    %607 = vector.broadcast %606 : vector<1x1xf32> to vector<1x128xf32>
    %608 = arith.mulf %603, %607 : vector<1x128xf32>
    %c0_356 = arith.constant 0 : index
    %c0_357 = arith.constant 0 : index
    %609 = vector.load %arg3[%c0_356, %c0_357] : memref<128x128xf32, #tpu.memory_space<vmem>>, vector<128x128xf32>
    %cst_358 = arith.constant dense<0.000000e+00> : vector<1x128xf32>
    %610 = tpu.matmul %608, %609, %cst_358 {dimension_numbers = #tpu.dot_dimension_numbers<[1], [0], [0], [1], [0, 0, 1, 1], [], []>} : vector<1x128xf32>, vector<128x128xf32>, vector<1x128xf32> -> vector<1x128xf32>
    %c0_359 = arith.constant 0 : index
    %c0_360 = arith.constant 0 : index
    %611 = vector.load %arg8[%c0_359, %c0_360] : memref<128x128xf32, #tpu.memory_space<vmem>>, vector<128x128xf32>
    %cst_361 = arith.constant dense<0.000000e+00> : vector<1x128xf32>
    %612 = tpu.matmul %591, %611, %cst_361 {dimension_numbers = #tpu.dot_dimension_numbers<[1], [0], [0], [1], [0, 0, 1, 1], [], []>} : vector<1x128xf32>, vector<128x128xf32>, vector<1x128xf32> -> vector<1x128xf32>
    %c0_362 = arith.constant 0 : index
    %c0_363 = arith.constant 0 : index
    %613 = vector.load %arg9[%c0_362, %c0_363] : memref<128x128xf32, #tpu.memory_space<vmem>>, vector<128x128xf32>
    %cst_364 = arith.constant dense<0.000000e+00> : vector<1x128xf32>
    %614 = tpu.matmul %610, %613, %cst_364 {dimension_numbers = #tpu.dot_dimension_numbers<[1], [0], [0], [1], [0, 0, 1, 1], [], []>} : vector<1x128xf32>, vector<128x128xf32>, vector<1x128xf32> -> vector<1x128xf32>
    %615 = arith.addf %612, %614 : vector<1x128xf32>
    %c0_365 = arith.constant 0 : index
    %c0_366 = arith.constant 0 : index
    %616 = vector.load %arg10[%c0_365, %c0_366] : memref<1x128xf32, #tpu.memory_space<vmem>>, vector<1x128xf32>
    %617 = arith.addf %615, %616 : vector<1x128xf32>
    %cst_367 = arith.constant 0.000000e+00 : f32
    %618 = vector.broadcast %cst_367 : f32 to vector<1x128xf32>
    %619 = arith.maximumf %617, %618 : vector<1x128xf32>
    %c0_368 = arith.constant 0 : index
    %c0_369 = arith.constant 0 : index
    %620 = vector.load %arg11[%c0_368, %c0_369] : memref<128x384xf32, #tpu.memory_space<vmem>>, vector<128x384xf32>
    %cst_370 = arith.constant dense<0.000000e+00> : vector<1x384xf32>
    %621 = tpu.matmul %619, %620, %cst_370 {dimension_numbers = #tpu.dot_dimension_numbers<[1], [0], [0], [1], [0, 0, 1, 1], [], []>} : vector<1x128xf32>, vector<128x384xf32>, vector<1x384xf32> -> vector<1x384xf32>
    %c0_371 = arith.constant 0 : index
    %c0_372 = arith.constant 0 : index
    %622 = vector.load %arg13[%c0_371, %c0_372] : memref<1x384xf32, #tpu.memory_space<vmem>>, vector<1x384xf32>
    %623 = arith.addf %621, %622 : vector<1x384xf32>
    %c0_373 = arith.constant 0 : index
    %c0_374 = arith.constant 0 : index
    %624 = vector.load %arg12[%c0_373, %c0_374] : memref<128x384xf32, #tpu.memory_space<vmem>>, vector<128x384xf32>
    %cst_375 = arith.constant dense<0.000000e+00> : vector<1x384xf32>
    %625 = tpu.matmul %587, %624, %cst_375 {dimension_numbers = #tpu.dot_dimension_numbers<[1], [0], [0], [1], [0, 0, 1, 1], [], []>} : vector<1x128xf32>, vector<128x384xf32>, vector<1x384xf32> -> vector<1x384xf32>
    %c0_376 = arith.constant 0 : index
    %c0_377 = arith.constant 0 : index
    %626 = vector.load %arg14[%c0_376, %c0_377] : memref<1x384xf32, #tpu.memory_space<vmem>>, vector<1x384xf32>
    %627 = arith.addf %625, %626 : vector<1x384xf32>
    %628 = vector.extract_strided_slice %623 {offsets = [0, 0], sizes = [1, 128], strides = [1, 1]} : vector<1x384xf32> to vector<1x128xf32>
    %629 = vector.extract_strided_slice %627 {offsets = [0, 0], sizes = [1, 128], strides = [1, 1]} : vector<1x384xf32> to vector<1x128xf32>
    %630 = arith.addf %628, %629 : vector<1x128xf32>
    %631 = arith.negf %630 : vector<1x128xf32>
    %632 = math.exp %631 : vector<1x128xf32>
    %cst_378 = arith.constant 1.000000e+00 : f32
    %633 = vector.broadcast %cst_378 : f32 to vector<1x128xf32>
    %634 = arith.addf %633, %632 : vector<1x128xf32>
    %635 = arith.divf %633, %634 : vector<1x128xf32>
    %636 = vector.extract_strided_slice %623 {offsets = [0, 128], sizes = [1, 128], strides = [1, 1]} : vector<1x384xf32> to vector<1x128xf32>
    %637 = vector.extract_strided_slice %627 {offsets = [0, 128], sizes = [1, 128], strides = [1, 1]} : vector<1x384xf32> to vector<1x128xf32>
    %638 = arith.addf %636, %637 : vector<1x128xf32>
    %639 = arith.negf %638 : vector<1x128xf32>
    %640 = math.exp %639 : vector<1x128xf32>
    %cst_379 = arith.constant 1.000000e+00 : f32
    %641 = vector.broadcast %cst_379 : f32 to vector<1x128xf32>
    %642 = arith.addf %641, %640 : vector<1x128xf32>
    %643 = arith.divf %641, %642 : vector<1x128xf32>
    %644 = vector.extract_strided_slice %623 {offsets = [0, 256], sizes = [1, 128], strides = [1, 1]} : vector<1x384xf32> to vector<1x128xf32>
    %645 = vector.extract_strided_slice %627 {offsets = [0, 256], sizes = [1, 128], strides = [1, 1]} : vector<1x384xf32> to vector<1x128xf32>
    %646 = arith.mulf %635, %645 : vector<1x128xf32>
    %647 = arith.addf %644, %646 : vector<1x128xf32>
    %648 = math.tanh %647 : vector<1x128xf32>
    %cst_380 = arith.constant 1.000000e+00 : f32
    %649 = vector.broadcast %cst_380 : f32 to vector<1x128xf32>
    %650 = arith.subf %649, %643 : vector<1x128xf32>
    %651 = arith.mulf %650, %648 : vector<1x128xf32>
    %652 = arith.mulf %643, %587 : vector<1x128xf32>
    %653 = arith.addf %651, %652 : vector<1x128xf32>
    %c0_381 = arith.constant 0 : index
    %c0_382 = arith.constant 0 : index
    %654 = vector.load %arg15[%c0_381, %c0_382] : memref<128x128xf32, #tpu.memory_space<vmem>>, vector<128x128xf32>
    %cst_383 = arith.constant dense<0.000000e+00> : vector<1x128xf32>
    %655 = tpu.matmul %653, %654, %cst_383 {dimension_numbers = #tpu.dot_dimension_numbers<[1], [0], [0], [1], [0, 0, 1, 1], [], []>} : vector<1x128xf32>, vector<128x128xf32>, vector<1x128xf32> -> vector<1x128xf32>
    %c0_384 = arith.constant 0 : index
    %c0_385 = arith.constant 0 : index
    %656 = vector.load %arg16[%c0_384, %c0_385] : memref<1x128xf32, #tpu.memory_space<vmem>>, vector<1x128xf32>
    %657 = arith.addf %655, %656 : vector<1x128xf32>
    %cst_386 = arith.constant dense<0xFF800000> : vector<1xf32>
    %658 = vector.multi_reduction <maximumf>, %657, %cst_386 [1] : vector<1x128xf32> to vector<1xf32>
    %659 = vector.shape_cast %658 : vector<1xf32> to vector<1x1xf32>
    %660 = vector.broadcast %659 : vector<1x1xf32> to vector<1x128xf32>
    %661 = arith.subf %657, %660 : vector<1x128xf32>
    %662 = math.exp %661 : vector<1x128xf32>
    %cst_387 = arith.constant dense<0.000000e+00> : vector<1xf32>
    %663 = vector.multi_reduction <add>, %662, %cst_387 [1] : vector<1x128xf32> to vector<1xf32>
    %664 = vector.shape_cast %663 : vector<1xf32> to vector<1x1xf32>
    %665 = math.log %664 : vector<1x1xf32>
    %666 = vector.broadcast %665 : vector<1x1xf32> to vector<1x128xf32>
    %667 = arith.subf %661, %666 : vector<1x128xf32>
    %c0_i32_388 = arith.constant 0 : i32
    %668 = arith.cmpi eq, %586, %c0_i32_388 : i32
    %cst_389 = arith.constant 0.000000e+00 : f32
    %669 = vector.broadcast %cst_389 : f32 to vector<1x128xf32>
    %670 = arith.select %668, %667, %669 : vector<1x128xf32>
    %c6_390 = arith.constant 6 : index
    %c0_391 = arith.constant 0 : index
    %671 = vector.load %arg17[%c6_390, %c0_391] : memref<8x128xf32, #tpu.memory_space<vmem>>, vector<1x128xf32>
    tpu.vector_store %arg17[%c6_390, %c0_391], %670 {strides = array<i32>} : memref<8x128xf32, #tpu.memory_space<vmem>>, vector<1x128xf32>,
    %cst_392 = arith.constant 0.000000e+00 : f32
    %672 = vector.broadcast %cst_392 : f32 to vector<1x128xf32>
    %673 = arith.select %668, %608, %672 : vector<1x128xf32>
    %c6_393 = arith.constant 6 : index
    %c0_394 = arith.constant 0 : index
    %674 = vector.load %arg18[%c6_393, %c0_394] : memref<8x128xf32, #tpu.memory_space<vmem>>, vector<1x128xf32>
    tpu.vector_store %arg18[%c6_393, %c0_394], %673 {strides = array<i32>} : memref<8x128xf32, #tpu.memory_space<vmem>>, vector<1x128xf32>,
    %c0_395 = arith.constant 0 : index
    %675 = memref.load %arg20[%c0_395] : memref<1xi32, #tpu.memory_space<smem>>
    memref.store %589, %arg20[%c0_395] : memref<1xi32, #tpu.memory_space<smem>>
    %c0_i32_396 = arith.constant 0 : i32
    %676 = arith.cmpi eq, %588, %c0_i32_396 : i32
    %677 = arith.extui %676 : i1 to i32
    %c0_i32_397 = arith.constant 0 : i32
    %678 = arith.cmpi ne, %677, %c0_i32_397 : i32
    scf.if %678 {
      %779 = tpu.iota {dimensions = array<i32: 1>} : vector<1x128xi32>
      %cst_457 = arith.constant dense<0xFF800000> : vector<1xf32>
      %780 = vector.multi_reduction <maximumf>, %667, %cst_457 [1] : vector<1x128xf32> to vector<1xf32>
      %781 = vector.shape_cast %780 : vector<1xf32> to vector<1x1xf32>
      %782 = vector.broadcast %781 : vector<1x1xf32> to vector<1x128xf32>
      %783 = arith.cmpf oeq, %667, %782 : vector<1x128xf32>
      %c128_i32 = arith.constant 128 : i32
      %784 = vector.broadcast %c128_i32 : i32 to vector<1x128xi32>
      %785 = arith.select %783, %779, %784 : vector<1x128xi1>, vector<1x128xi32>
      %786 = vector.shape_cast %785 : vector<1x128xi32> to vector<1x1x128xi32>
      %cst_458 = arith.constant dense<2147483647> : vector<1xi32>
      %787 = vector.multi_reduction <minsi>, %786, %cst_458 [1, 2] : vector<1x1x128xi32> to vector<1xi32>
      %788 = vector.shape_cast %787 : vector<1xi32> to vector<1x1x1xi32>
      %789 = vector.extract %788[0, 0, 0] : i32 from vector<1x1x1xi32>
      %c0_459 = arith.constant 0 : index
      %790 = memref.load %arg20[%c0_459] : memref<1xi32, #tpu.memory_space<smem>>
      memref.store %789, %arg20[%c0_459] : memref<1xi32, #tpu.memory_space<smem>>
    } else {
    }
    %c0_398 = arith.constant 0 : index
    %679 = memref.load %arg20[%c0_398] : memref<1xi32, #tpu.memory_space<smem>>
    %c1_i32_399 = arith.constant 1 : i32
    %680 = arith.cmpi eq, %679, %c1_i32_399 : i32
    %681 = arith.extui %680 : i1 to i32
    %c1_i32_400 = arith.constant 1 : i32
    %682 = arith.subi %c1_i32_400, %588 : i32
    %683 = arith.muli %682, %681 : i32
    %684 = arith.maxsi %586, %683 : i32
    %685 = arith.select %668, %653, %587 : vector<1x128xf32>
    %c7 = arith.constant 7 : index
    %686 = memref.load %arg1[%c7] : memref<8xi32, #tpu.memory_space<smem>>
    %c7_401 = arith.constant 7 : index
    %687 = memref.load %arg0[%c7_401] : memref<8xi32, #tpu.memory_space<smem>>
    %688 = arith.index_cast %679 : i32 to index
    %c0_402 = arith.constant 0 : index
    %689 = vector.load %arg4[%688, %c0_402] : memref<100x128xf32, #tpu.memory_space<vmem>>, vector<1x128xf32>
    %c0_403 = arith.constant 0 : index
    %c0_404 = arith.constant 0 : index
    %690 = vector.load %arg5[%c0_403, %c0_404] : memref<128x128xf32, #tpu.memory_space<vmem>>, vector<128x128xf32>
    %cst_405 = arith.constant dense<0.000000e+00> : vector<1x128xf32>
    %691 = tpu.matmul %689, %690, %cst_405 {dimension_numbers = #tpu.dot_dimension_numbers<[1], [0], [0], [1], [0, 0, 1, 1], [], []>} : vector<1x128xf32>, vector<128x128xf32>, vector<1x128xf32> -> vector<1x128xf32>
    %c0_406 = arith.constant 0 : index
    %c0_407 = arith.constant 0 : index
    %692 = vector.load %arg6[%c0_406, %c0_407] : memref<128x128xf32, #tpu.memory_space<vmem>>, vector<128x128xf32>
    %cst_408 = arith.constant dense<0.000000e+00> : vector<1x128xf32>
    %693 = tpu.matmul %685, %692, %cst_408 {dimension_numbers = #tpu.dot_dimension_numbers<[1], [0], [0], [1], [0, 0, 1, 1], [], []>} : vector<1x128xf32>, vector<128x128xf32>, vector<1x128xf32> -> vector<1x128xf32>
    %694 = arith.addf %691, %693 : vector<1x128xf32>
    %c0_409 = arith.constant 0 : index
    %c0_410 = arith.constant 0 : index
    %695 = vector.load %arg7[%c0_409, %c0_410] : memref<1x128xf32, #tpu.memory_space<vmem>>, vector<1x128xf32>
    %696 = arith.addf %694, %695 : vector<1x128xf32>
    %cst_411 = arith.constant dense<0xFF800000> : vector<1xf32>
    %697 = vector.multi_reduction <maximumf>, %696, %cst_411 [1] : vector<1x128xf32> to vector<1xf32>
    %698 = vector.shape_cast %697 : vector<1xf32> to vector<1x1xf32>
    %699 = vector.broadcast %698 : vector<1x1xf32> to vector<1x128xf32>
    %700 = arith.subf %696, %699 : vector<1x128xf32>
    %701 = math.exp %700 : vector<1x128xf32>
    %cst_412 = arith.constant dense<0.000000e+00> : vector<1xf32>
    %702 = vector.multi_reduction <add>, %701, %cst_412 [1] : vector<1x128xf32> to vector<1xf32>
    %703 = vector.shape_cast %702 : vector<1xf32> to vector<1x1xf32>
    %704 = tpu.reciprocal %703 {approx = true} : vector<1x1xf32> -> vector<1x1xf32>
    %705 = vector.broadcast %704 : vector<1x1xf32> to vector<1x128xf32>
    %706 = arith.mulf %701, %705 : vector<1x128xf32>
    %c0_413 = arith.constant 0 : index
    %c0_414 = arith.constant 0 : index
    %707 = vector.load %arg3[%c0_413, %c0_414] : memref<128x128xf32, #tpu.memory_space<vmem>>, vector<128x128xf32>
    %cst_415 = arith.constant dense<0.000000e+00> : vector<1x128xf32>
    %708 = tpu.matmul %706, %707, %cst_415 {dimension_numbers = #tpu.dot_dimension_numbers<[1], [0], [0], [1], [0, 0, 1, 1], [], []>} : vector<1x128xf32>, vector<128x128xf32>, vector<1x128xf32> -> vector<1x128xf32>
    %c0_416 = arith.constant 0 : index
    %c0_417 = arith.constant 0 : index
    %709 = vector.load %arg8[%c0_416, %c0_417] : memref<128x128xf32, #tpu.memory_space<vmem>>, vector<128x128xf32>
    %cst_418 = arith.constant dense<0.000000e+00> : vector<1x128xf32>
    %710 = tpu.matmul %689, %709, %cst_418 {dimension_numbers = #tpu.dot_dimension_numbers<[1], [0], [0], [1], [0, 0, 1, 1], [], []>} : vector<1x128xf32>, vector<128x128xf32>, vector<1x128xf32> -> vector<1x128xf32>
    %c0_419 = arith.constant 0 : index
    %c0_420 = arith.constant 0 : index
    %711 = vector.load %arg9[%c0_419, %c0_420] : memref<128x128xf32, #tpu.memory_space<vmem>>, vector<128x128xf32>
    %cst_421 = arith.constant dense<0.000000e+00> : vector<1x128xf32>
    %712 = tpu.matmul %708, %711, %cst_421 {dimension_numbers = #tpu.dot_dimension_numbers<[1], [0], [0], [1], [0, 0, 1, 1], [], []>} : vector<1x128xf32>, vector<128x128xf32>, vector<1x128xf32> -> vector<1x128xf32>
    %713 = arith.addf %710, %712 : vector<1x128xf32>
    %c0_422 = arith.constant 0 : index
    %c0_423 = arith.constant 0 : index
    %714 = vector.load %arg10[%c0_422, %c0_423] : memref<1x128xf32, #tpu.memory_space<vmem>>, vector<1x128xf32>
    %715 = arith.addf %713, %714 : vector<1x128xf32>
    %cst_424 = arith.constant 0.000000e+00 : f32
    %716 = vector.broadcast %cst_424 : f32 to vector<1x128xf32>
    %717 = arith.maximumf %715, %716 : vector<1x128xf32>
    %c0_425 = arith.constant 0 : index
    %c0_426 = arith.constant 0 : index
    %718 = vector.load %arg11[%c0_425, %c0_426] : memref<128x384xf32, #tpu.memory_space<vmem>>, vector<128x384xf32>
    %cst_427 = arith.constant dense<0.000000e+00> : vector<1x384xf32>
    %719 = tpu.matmul %717, %718, %cst_427 {dimension_numbers = #tpu.dot_dimension_numbers<[1], [0], [0], [1], [0, 0, 1, 1], [], []>} : vector<1x128xf32>, vector<128x384xf32>, vector<1x384xf32> -> vector<1x384xf32>
    %c0_428 = arith.constant 0 : index
    %c0_429 = arith.constant 0 : index
    %720 = vector.load %arg13[%c0_428, %c0_429] : memref<1x384xf32, #tpu.memory_space<vmem>>, vector<1x384xf32>
    %721 = arith.addf %719, %720 : vector<1x384xf32>
    %c0_430 = arith.constant 0 : index
    %c0_431 = arith.constant 0 : index
    %722 = vector.load %arg12[%c0_430, %c0_431] : memref<128x384xf32, #tpu.memory_space<vmem>>, vector<128x384xf32>
    %cst_432 = arith.constant dense<0.000000e+00> : vector<1x384xf32>
    %723 = tpu.matmul %685, %722, %cst_432 {dimension_numbers = #tpu.dot_dimension_numbers<[1], [0], [0], [1], [0, 0, 1, 1], [], []>} : vector<1x128xf32>, vector<128x384xf32>, vector<1x384xf32> -> vector<1x384xf32>
    %c0_433 = arith.constant 0 : index
    %c0_434 = arith.constant 0 : index
    %724 = vector.load %arg14[%c0_433, %c0_434] : memref<1x384xf32, #tpu.memory_space<vmem>>, vector<1x384xf32>
    %725 = arith.addf %723, %724 : vector<1x384xf32>
    %726 = vector.extract_strided_slice %721 {offsets = [0, 0], sizes = [1, 128], strides = [1, 1]} : vector<1x384xf32> to vector<1x128xf32>
    %727 = vector.extract_strided_slice %725 {offsets = [0, 0], sizes = [1, 128], strides = [1, 1]} : vector<1x384xf32> to vector<1x128xf32>
    %728 = arith.addf %726, %727 : vector<1x128xf32>
    %729 = arith.negf %728 : vector<1x128xf32>
    %730 = math.exp %729 : vector<1x128xf32>
    %cst_435 = arith.constant 1.000000e+00 : f32
    %731 = vector.broadcast %cst_435 : f32 to vector<1x128xf32>
    %732 = arith.addf %731, %730 : vector<1x128xf32>
    %733 = arith.divf %731, %732 : vector<1x128xf32>
    %734 = vector.extract_strided_slice %721 {offsets = [0, 128], sizes = [1, 128], strides = [1, 1]} : vector<1x384xf32> to vector<1x128xf32>
    %735 = vector.extract_strided_slice %725 {offsets = [0, 128], sizes = [1, 128], strides = [1, 1]} : vector<1x384xf32> to vector<1x128xf32>
    %736 = arith.addf %734, %735 : vector<1x128xf32>
    %737 = arith.negf %736 : vector<1x128xf32>
    %738 = math.exp %737 : vector<1x128xf32>
    %cst_436 = arith.constant 1.000000e+00 : f32
    %739 = vector.broadcast %cst_436 : f32 to vector<1x128xf32>
    %740 = arith.addf %739, %738 : vector<1x128xf32>
    %741 = arith.divf %739, %740 : vector<1x128xf32>
    %742 = vector.extract_strided_slice %721 {offsets = [0, 256], sizes = [1, 128], strides = [1, 1]} : vector<1x384xf32> to vector<1x128xf32>
    %743 = vector.extract_strided_slice %725 {offsets = [0, 256], sizes = [1, 128], strides = [1, 1]} : vector<1x384xf32> to vector<1x128xf32>
    %744 = arith.mulf %733, %743 : vector<1x128xf32>
    %745 = arith.addf %742, %744 : vector<1x128xf32>
    %746 = math.tanh %745 : vector<1x128xf32>
    %cst_437 = arith.constant 1.000000e+00 : f32
    %747 = vector.broadcast %cst_437 : f32 to vector<1x128xf32>
    %748 = arith.subf %747, %741 : vector<1x128xf32>
    %749 = arith.mulf %748, %746 : vector<1x128xf32>
    %750 = arith.mulf %741, %685 : vector<1x128xf32>
    %751 = arith.addf %749, %750 : vector<1x128xf32>
    %c0_438 = arith.constant 0 : index
    %c0_439 = arith.constant 0 : index
    %752 = vector.load %arg15[%c0_438, %c0_439] : memref<128x128xf32, #tpu.memory_space<vmem>>, vector<128x128xf32>
    %cst_440 = arith.constant dense<0.000000e+00> : vector<1x128xf32>
    %753 = tpu.matmul %751, %752, %cst_440 {dimension_numbers = #tpu.dot_dimension_numbers<[1], [0], [0], [1], [0, 0, 1, 1], [], []>} : vector<1x128xf32>, vector<128x128xf32>, vector<1x128xf32> -> vector<1x128xf32>
    %c0_441 = arith.constant 0 : index
    %c0_442 = arith.constant 0 : index
    %754 = vector.load %arg16[%c0_441, %c0_442] : memref<1x128xf32, #tpu.memory_space<vmem>>, vector<1x128xf32>
    %755 = arith.addf %753, %754 : vector<1x128xf32>
    %cst_443 = arith.constant dense<0xFF800000> : vector<1xf32>
    %756 = vector.multi_reduction <maximumf>, %755, %cst_443 [1] : vector<1x128xf32> to vector<1xf32>
    %757 = vector.shape_cast %756 : vector<1xf32> to vector<1x1xf32>
    %758 = vector.broadcast %757 : vector<1x1xf32> to vector<1x128xf32>
    %759 = arith.subf %755, %758 : vector<1x128xf32>
    %760 = math.exp %759 : vector<1x128xf32>
    %cst_444 = arith.constant dense<0.000000e+00> : vector<1xf32>
    %761 = vector.multi_reduction <add>, %760, %cst_444 [1] : vector<1x128xf32> to vector<1xf32>
    %762 = vector.shape_cast %761 : vector<1xf32> to vector<1x1xf32>
    %763 = math.log %762 : vector<1x1xf32>
    %764 = vector.broadcast %763 : vector<1x1xf32> to vector<1x128xf32>
    %765 = arith.subf %759, %764 : vector<1x128xf32>
    %c0_i32_445 = arith.constant 0 : i32
    %766 = arith.cmpi eq, %684, %c0_i32_445 : i32
    %cst_446 = arith.constant 0.000000e+00 : f32
    %767 = vector.broadcast %cst_446 : f32 to vector<1x128xf32>
    %768 = arith.select %766, %765, %767 : vector<1x128xf32>
    %c7_447 = arith.constant 7 : index
    %c0_448 = arith.constant 0 : index
    %769 = vector.load %arg17[%c7_447, %c0_448] : memref<8x128xf32, #tpu.memory_space<vmem>>, vector<1x128xf32>
    tpu.vector_store %arg17[%c7_447, %c0_448], %768 {strides = array<i32>} : memref<8x128xf32, #tpu.memory_space<vmem>>, vector<1x128xf32>,
    %cst_449 = arith.constant 0.000000e+00 : f32
    %770 = vector.broadcast %cst_449 : f32 to vector<1x128xf32>
    %771 = arith.select %766, %706, %770 : vector<1x128xf32>
    %c7_450 = arith.constant 7 : index
    %c0_451 = arith.constant 0 : index
    %772 = vector.load %arg18[%c7_450, %c0_451] : memref<8x128xf32, #tpu.memory_space<vmem>>, vector<1x128xf32>
    tpu.vector_store %arg18[%c7_450, %c0_451], %771 {strides = array<i32>} : memref<8x128xf32, #tpu.memory_space<vmem>>, vector<1x128xf32>,
    %c0_452 = arith.constant 0 : index
    %773 = memref.load %arg20[%c0_452] : memref<1xi32, #tpu.memory_space<smem>>
    memref.store %687, %arg20[%c0_452] : memref<1xi32, #tpu.memory_space<smem>>
    %c0_i32_453 = arith.constant 0 : i32
    %774 = arith.cmpi eq, %686, %c0_i32_453 : i32
    %775 = arith.extui %774 : i1 to i32
    %c0_i32_454 = arith.constant 0 : i32
    %776 = arith.cmpi ne, %775, %c0_i32_454 : i32
    scf.if %776 {
      %779 = tpu.iota {dimensions = array<i32: 1>} : vector<1x128xi32>
      %cst_457 = arith.constant dense<0xFF800000> : vector<1xf32>
      %780 = vector.multi_reduction <maximumf>, %765, %cst_457 [1] : vector<1x128xf32> to vector<1xf32>
      %781 = vector.shape_cast %780 : vector<1xf32> to vector<1x1xf32>
      %782 = vector.broadcast %781 : vector<1x1xf32> to vector<1x128xf32>
      %783 = arith.cmpf oeq, %765, %782 : vector<1x128xf32>
      %c128_i32 = arith.constant 128 : i32
      %784 = vector.broadcast %c128_i32 : i32 to vector<1x128xi32>
      %785 = arith.select %783, %779, %784 : vector<1x128xi1>, vector<1x128xi32>
      %786 = vector.shape_cast %785 : vector<1x128xi32> to vector<1x1x128xi32>
      %cst_458 = arith.constant dense<2147483647> : vector<1xi32>
      %787 = vector.multi_reduction <minsi>, %786, %cst_458 [1, 2] : vector<1x1x128xi32> to vector<1xi32>
      %788 = vector.shape_cast %787 : vector<1xi32> to vector<1x1x1xi32>
      %789 = vector.extract %788[0, 0, 0] : i32 from vector<1x1x1xi32>
      %c0_459 = arith.constant 0 : index
      %790 = memref.load %arg20[%c0_459] : memref<1xi32, #tpu.memory_space<smem>>
      memref.store %789, %arg20[%c0_459] : memref<1xi32, #tpu.memory_space<smem>>
    } else {
    }
    %777 = arith.select %766, %751, %685 : vector<1x128xf32>
    %c0_455 = arith.constant 0 : index
    %c0_456 = arith.constant 0 : index
    %778 = vector.load %arg19[%c0_455, %c0_456] : memref<1x128xf32, #tpu.memory_space<vmem>>, vector<1x128xf32>
    tpu.vector_store %arg19[%c0_455, %c0_456], %777 {strides = array<i32>} : memref<1x128xf32, #tpu.memory_space<vmem>>, vector<1x128xf32>,
    return
  }
}

</mosaic_0001>

<bundles_post_ra>
// kernel: attn_decoder_forward.1
= control target key start
LH: loop header
LB: loop body
LE: loop exit
PB: predicated region body
PF: predicated region fallthrough
CT: control target
= control target key end

     0   :  { %s18500_s0 = inlined_call_operand.vmem [shape: s32[8], index: 0, kind: input, shape index: {}]   ;;  %s18501_s1 = inlined_call_operand.vmem [shape: s32[8], index: 1, kind: input, shape index: {}]   ;;  %s18502_s2 = inlined_call_operand.vmem [shape: f32[1,128], index: 2, kind: input, shape index: {}]   ;;  %s18503_s3 = inlined_call_operand.vmem [shape: f32[128,128], index: 3, kind: input, shape index: {}]   ;;  %s18504_s4 = inlined_call_operand.vmem [shape: f32[100,128], index: 4, kind: input, shape index: {}]   ;;  %s18505_s5 = inlined_call_operand.vmem [shape: f32[128,128], index: 5, kind: input, shape index: {}]   ;;  %s18506_s6 = inlined_call_operand.vmem [shape: f32[128,128], index: 6, kind: input, shape index: {}]   ;;  %s18507_s7 = inlined_call_operand.vmem [shape: f32[1,128], index: 7, kind: input, shape index: {}]   ;;  %s18508_s8 = inlined_call_operand.vmem [shape: f32[128,128], index: 8, kind: input, shape index: {}]   ;;  %s18509_s9 = inlined_call_operand.vmem [shape: f32[128,128], index: 9, kind: input, shape index: {}]   ;;  %s18510_s10 = inlined_call_operand.vmem [shape: f32[1,128], index: 10, kind: input, shape index: {}]   ;;  %s18511_s11 = inlined_call_operand.vmem [shape: f32[128,384], index: 11, kind: input, shape index: {}]   ;;  %s18512_s12 = inlined_call_operand.vmem [shape: f32[128,384], index: 12, kind: input, shape index: {}]   ;;  %s18513_s13 = inlined_call_operand.vmem [shape: f32[1,384], index: 13, kind: input, shape index: {}]   ;;  %s18514_s14 = inlined_call_operand.vmem [shape: f32[1,384], index: 14, kind: input, shape index: {}]   ;;  %s18515_s15 = inlined_call_operand.vmem [shape: f32[128,128], index: 15, kind: input, shape index: {}]   ;;  %s18516_s16 = inlined_call_operand.vmem [shape: f32[1,128], index: 16, kind: input, shape index: {}]   ;;  %s18517_s17 = inlined_call_operand.hbm [shape: f32[8,128], index: 17, kind: output, shape index: {0}]   ;;  %s18518_s18 = inlined_call_operand.hbm [shape: f32[8,128], index: 18, kind: output, shape index: {1}]   ;;  %s18519_s19 = inlined_call_operand.hbm [shape: f32[1,128], index: 19, kind: output, shape index: {2}]  }
   0x1   :  { %18529 = sst [smem:[#allocation16_spill]] %s18500_s0 }
   0x2   :  { %18530 = sst [smem:[#allocation17_spill]] %s18501_s1 }
   0x3   :  { %18531 = sst [smem:[#allocation18_spill]] %s18502_s2 }
   0x4   :  { %18532 = sst [smem:[#allocation19_spill]] %s18503_s3 }
   0x5   :  { %25 = vsyncpa [#allocation5], 0 }
   0x6   :  { %26 = vsyncpa [#allocation7], 0 }
   0x7   :  { %27 = vsyncpa [#allocation4], 0 }
   0x8   :  { %28 = vsyncpa [#allocation10], 0  ;;  %s18533_s20 = sld [smem:[#allocation16_spill]] }
   0x9   :  { %s18534_s2 = sld [smem:[#allocation17_spill]] }
   0xe   :  { %s35_s21 = sshll.u32 %s18533_s20, 4  ;;  %s36_s21 = int_to_ptr.vmem [resolvable:$true] %s35_s21 }
   0xf   :  { %s45_s23 = sshll.u32 %s18534_s2, 4  ;;  %s11947_s24 = scalar_lea.vmem %s36_s21, 16  ;;  %s46_s23 = int_to_ptr.vmem [resolvable:$true] %s45_s23 }
  0x10   :  { %p11948_p0 = scmp.ne.s32.totalorder %s36_s21, %s11947_s24  ;;  %p11952_p1 = scmp.lt.s32.totalorder %s36_s21, %s36_s21 }
  0x11   :  { %p11953_p2 = scmp.lt.s32.totalorder %s11947_s24, %s11947_s24 }
  0x13   :  { %p11954_p3 = por %p11953_p2, %p11952_p1 }
  0x15   :  { %p11955_p4 = pnand %p11954_p3, %p11948_p0 }
  0x17   :  { %11958 = shalt.err (!%p11955_p4)
}
  0x18   :  { %s12039_s25 = smov [#allocation3]   ;;  %s11959_s3 = scalar_lea.vmem %s46_s23, 16 }
  0x19   :  { %38 = dma.vmem_to_smem %s36_s21, 16, %s12039_s25, [#allocation5]  }
  0x1a   :  { %p11960_p5 = scmp.ne.s32.totalorder %s46_s23, %s11959_s3  ;;  %p11964_p6 = scmp.lt.s32.totalorder %s46_s23, %s46_s23 }
  0x1b   :  { %p11965_p7 = scmp.lt.s32.totalorder %s11959_s3, %s11959_s3 }
  0x1d   :  { %p11966_p8 = por %p11965_p7, %p11964_p6 }
  0x1f   :  { %p11967_p9 = pnand %p11966_p8, %p11960_p5 }
  0x21   :  { %11970 = shalt.err (!%p11967_p9)
}
  0x22   :  { %s12040_s26 = smov [#allocation6]  }
  0x23   :  { %48 = dma.vmem_to_smem %s46_s23, 16, %s12040_s26, [#allocation7]  }
  0x24   :  { %12031 = dma.done.wait [#allocation5], 16  }
  0x25   :  { %12032 = vsyncadd [#allocation5], 4294967280 }
  0x26   :  { %12033 = dma.done.wait [#allocation7], 16  }
  0x27   :  { %12034 = vsyncadd [#allocation7], 4294967280 }
  0x28   :  { %85 = sfence }
  0x29   :  { %s12152_s27 = sld [smem:[#allocation6]]  ;;  %v121_v0 = vld [vmem:[%s18506_s6 + $0x78] sm:$0xff]  ;;  %v12041_v2 = vmov 0.0   ;;  %v120_v3 = vld [vmem:[%s18506_s6 + $0x70] sm:$0xff]  ;;  %v119_v5 = vld [vmem:[%s18506_s6 + $0x68] sm:$0xff]  ;;  %vm12042_vm0 = vmmov 0  }
  0x2a   :  { %v105_v1 = vld [vmem:[%s18505_s5 + $0x78] sm:$0xff]  ;;  %s88_s20 = sld [smem:[#allocation3]]  ;;  %9539 = vmatprep.subr.mxu0 %v12041_v2  ;;  %9574 = vmatprep.subr.mxu1 %v12041_v2  ;;  %v104_v4 = vld [vmem:[%s18505_s5 + $0x70] sm:$0xff]  ;;  %v103_v6 = vld [vmem:[%s18505_s5 + $0x68] sm:$0xff]  ;;  %vm264_vm1 = vcmask 1040384  }
  0x2b   :  { %9540 = vmatpush3.msra.mxu0 %v121_v0  ;;  %9575 = vmatpush3.msra.mxu1 %v105_v1  ;;  %v118_v7 = vld [vmem:[%s18506_s6 + $0x60] sm:$0xff]  ;;  %v117_v9 = vld [vmem:[%s18506_s6 + $0x58] sm:$0xff]  ;;  %v116_v11 = vld [vmem:[%s18506_s6 + $0x50] sm:$0xff]  ;;  %s18536_s21 = sld [smem:[#allocation19_spill]] }
  0x2c   :  { %9541 = vmatprep.subr.mxu0 %v12041_v2  ;;  %9576 = vmatprep.subr.mxu1 %v12041_v2  ;;  %v102_v8 = vld [vmem:[%s18505_s5 + $0x60] sm:$0xff]  ;;  %v101_v10 = vld [vmem:[%s18505_s5 + $0x58] sm:$0xff]  ;;  %v100_v12 = vld [vmem:[%s18505_s5 + $0x50] sm:$0xff] }
  0x2d   :  { %9542 = vmatpush3.msra.mxu0 %v120_v3  ;;  %9577 = vmatpush3.msra.mxu1 %v104_v4  ;;  %v115_v13 = vld [vmem:[%s18506_s6 + $0x48] sm:$0xff]  ;;  %v114_v15 = vld [vmem:[%s18506_s6 + $0x40] sm:$0xff]  ;;  %v113_v17 = vld [vmem:[%s18506_s6 + $0x38] sm:$0xff] }
  0x2e   :  { %9543 = vmatprep.subr.mxu0 %v12041_v2  ;;  %9578 = vmatprep.subr.mxu1 %v12041_v2  ;;  %v99_v14 = vld [vmem:[%s18505_s5 + $0x48] sm:$0xff]  ;;  %v98_v16 = vld [vmem:[%s18505_s5 + $0x40] sm:$0xff]  ;;  %v97_v18 = vld [vmem:[%s18505_s5 + $0x38] sm:$0xff] }
  0x2f   :  { %9544 = vmatpush3.msra.mxu0 %v119_v5  ;;  %9579 = vmatpush3.msra.mxu1 %v103_v6  ;;  %v112_v19 = vld [vmem:[%s18506_s6 + $0x30] sm:$0xff]  ;;  %v111_v21 = vld [vmem:[%s18506_s6 + $0x28] sm:$0xff]  ;;  %v110_v23 = vld [vmem:[%s18506_s6 + $0x20] sm:$0xff]  ;;  %p8415_p10 = scmp.ne.s32.totalorder %s12152_s27, 0 }
  0x30   :  { %9545 = vmatprep.subr.mxu0 %v12041_v2  ;;  %9580 = vmatprep.subr.mxu1 %v12041_v2  ;;  %1072 = sst [smem:[#allocation2]] %s88_s20  ;;  %v96_v20 = vld [vmem:[%s18505_s5 + $0x30] sm:$0xff]  ;;  %v95_v22 = vld [vmem:[%s18505_s5 + $0x28] sm:$0xff]  ;;  %v94_v24 = vld [vmem:[%s18505_s5 + $0x20] sm:$0xff] }
  0x31   :  { %9546 = vmatpush3.msra.mxu0 %v118_v7  ;;  %9581 = vmatpush3.msra.mxu1 %v102_v8  ;;  %v109_v25 = vld [vmem:[%s18506_s6 + $0x18] sm:$0xff]  ;;  %v108_v27 = vld [vmem:[%s18506_s6 + $0x10] sm:$0xff]  ;;  %v107_v29 = vld [vmem:[%s18506_s6 + $0x8] sm:$0xff]  ;;  %s18535_s20 = sld [smem:[#allocation18_spill]] }
  0x32   :  { %9547 = vmatprep.subr.mxu0 %v12041_v2  ;;  %9582 = vmatprep.subr.mxu1 %v12041_v2  ;;  %v93_v26 = vld [vmem:[%s18505_s5 + $0x18] sm:$0xff]  ;;  %v92_v28 = vld [vmem:[%s18505_s5 + $0x10] sm:$0xff]  ;;  %v91_v30 = vld [vmem:[%s18505_s5 + $0x8] sm:$0xff] }
  0x33   :  { %9548 = vmatpush3.msra.mxu0 %v117_v9  ;;  %9583 = vmatpush3.msra.mxu1 %v101_v10  ;;  %v106_v31 = vld [vmem:[%s18506_s6] sm:$0xff]  ;;  %v291_v43 = vld [vmem:[%s18536_s21 + $0x78] sm:$0xff]  ;;  %v290_v44 = vld [vmem:[%s18536_s21 + $0x70] sm:$0xff] }
  0x34   :  { %9549 = vmatprep.subr.mxu0 %v12041_v2  ;;  %9584 = vmatprep.subr.mxu1 %v12041_v2  ;;  %v90_v32 = vld [vmem:[%s18505_s5] sm:$0xff]  ;;  %v289_v45 = vld [vmem:[%s18536_s21 + $0x68] sm:$0xff]  ;;  %v287_v47 = vld [vmem:[%s18536_s21 + $0x58] sm:$0xff] }
  0x35   :  { %9550 = vmatpush3.msra.mxu0 %v116_v11  ;;  %9585 = vmatpush3.msra.mxu1 %v100_v12  ;;  %v12290_v34 = vld [vmem:[%s18504_s4] sm:$0x1]  ;;  %v286_v48 = vld [vmem:[%s18536_s21 + $0x50] sm:$0xff]  ;;  %v285_v49 = vld [vmem:[%s18536_s21 + $0x48] sm:$0xff] }
  0x36   :  { %9551 = vmatprep.subr.mxu0 %v12041_v2  ;;  %9586 = vmatprep.subr.mxu1 %v12041_v2  ;;  %v262_v37 = vld [vmem:[%s18507_s7] sm:$0x1]  ;;  %v283_v56 = vld [vmem:[%s18536_s21 + $0x38] sm:$0xff]  ;;  %v282_v57 = vld [vmem:[%s18536_s21 + $0x30] sm:$0xff] }
  0x37   :  { %9552 = vmatpush3.msra.mxu0 %v115_v13  ;;  %9587 = vmatpush3.msra.mxu1 %v99_v14  ;;  %v12285_v33 = vld [vmem:[%s18535_s20] sm:$0x1]  ;;  %v281_v58 = vld [vmem:[%s18536_s21 + $0x28] sm:$0xff]  ;;  %v279_v60 = vld [vmem:[%s18536_s21 + $0x18] sm:$0xff] }
  0x38   :  { %9553 = vmatprep.subr.mxu0 %v12041_v2  ;;  %9588 = vmatprep.subr.mxu1 %v12041_v2  ;;  %v288_v46 = vld [vmem:[%s18536_s21 + $0x60] sm:$0xff]  ;;  %v278_v61 = vld [vmem:[%s18536_s21 + $0x10] sm:$0xff]  ;;  %v277_v62 = vld [vmem:[%s18536_s21 + $0x8] sm:$0xff] }
  0x39   :  { %9554 = vmatpush3.msra.mxu0 %v114_v15  ;;  %9589 = vmatpush3.msra.mxu1 %v98_v16  ;;  %v284_v50 = vld [vmem:[%s18536_s21 + $0x40] sm:$0xff]  ;;  %v393_v0 = vld [vmem:[%s18509_s9 + $0x78] sm:$0xff]  ;;  %v392_v1 = vld [vmem:[%s18509_s9 + $0x70] sm:$0xff] }
  0x3a   :  { %9555 = vmatprep.subr.mxu0 %v12041_v2  ;;  %9590 = vmatprep.subr.mxu1 %v12041_v2  ;;  %v280_v59 = vld [vmem:[%s18536_s21 + $0x20] sm:$0xff]  ;;  %v391_v3 = vld [vmem:[%s18509_s9 + $0x68] sm:$0xff]  ;;  %v389_v5 = vld [vmem:[%s18509_s9 + $0x58] sm:$0xff] }
  0x3b   :  { %9556 = vmatpush3.msra.mxu0 %v113_v17  ;;  %9591 = vmatpush3.msra.mxu1 %v97_v18  ;;  %v276_v63 = vld [vmem:[%s18536_s21] sm:$0xff]  ;;  %v388_v6 = vld [vmem:[%s18509_s9 + $0x50] sm:$0xff]  ;;  %v387_v7 = vld [vmem:[%s18509_s9 + $0x48] sm:$0xff] }
  0x3c   :  { %9557 = vmatprep.subr.mxu0 %v12041_v2  ;;  %9592 = vmatprep.subr.mxu1 %v12041_v2  ;;  %v390_v4 = vld [vmem:[%s18509_s9 + $0x60] sm:$0xff]  ;;  %v385_v9 = vld [vmem:[%s18509_s9 + $0x38] sm:$0xff]  ;;  %v384_v10 = vld [vmem:[%s18509_s9 + $0x30] sm:$0xff] }
  0x3d   :  { %9558 = vmatpush3.msra.mxu0 %v112_v19  ;;  %9593 = vmatpush3.msra.mxu1 %v96_v20  ;;  %v386_v8 = vld [vmem:[%s18509_s9 + $0x40] sm:$0xff]  ;;  %v383_v11 = vld [vmem:[%s18509_s9 + $0x28] sm:$0xff]  ;;  %v381_v13 = vld [vmem:[%s18509_s9 + $0x18] sm:$0xff] }
  0x3e   :  { %9559 = vmatprep.subr.mxu0 %v12041_v2  ;;  %9594 = vmatprep.subr.mxu1 %v12041_v2  ;;  %v382_v12 = vld [vmem:[%s18509_s9 + $0x20] sm:$0xff]  ;;  %v380_v14 = vld [vmem:[%s18509_s9 + $0x10] sm:$0xff]  ;;  %v379_v15 = vld [vmem:[%s18509_s9 + $0x8] sm:$0xff] }
  0x3f   :  { %9560 = vmatpush3.msra.mxu0 %v111_v21  ;;  %9595 = vmatpush3.msra.mxu1 %v95_v22  ;;  %v377_v19 = vld [vmem:[%s18508_s8 + $0x78] sm:$0xff]  ;;  %v376_v20 = vld [vmem:[%s18508_s8 + $0x70] sm:$0xff]  ;;  %v375_v21 = vld [vmem:[%s18508_s8 + $0x68] sm:$0xff] }
  0x40   :  { %9561 = vmatprep.subr.mxu0 %v12041_v2  ;;  %9596 = vmatprep.subr.mxu1 %v12041_v2  ;;  %v374_v22 = vld [vmem:[%s18508_s8 + $0x60] sm:$0xff] }
  0x41   :  { %9562 = vmatpush3.msra.mxu0 %v110_v23  ;;  %9597 = vmatpush3.msra.mxu1 %v94_v24  ;;  %v373_v23 = vld [vmem:[%s18508_s8 + $0x58] sm:$0xff]  ;;  %v372_v24 = vld [vmem:[%s18508_s8 + $0x50] sm:$0xff] }
  0x42   :  { %9563 = vmatprep.subr.mxu0 %v12041_v2  ;;  %9598 = vmatprep.subr.mxu1 %v12041_v2 }
  0x43   :  { %9564 = vmatpush3.msra.mxu0 %v109_v25  ;;  %9599 = vmatpush3.msra.mxu1 %v93_v26  ;;  %v371_v25 = vld [vmem:[%s18508_s8 + $0x48] sm:$0xff]  ;;  %v370_v26 = vld [vmem:[%s18508_s8 + $0x40] sm:$0xff] }
  0x44   :  { %9565 = vmatprep.subr.mxu0 %v12041_v2  ;;  %9600 = vmatprep.subr.mxu1 %v12041_v2 }
  0x45   :  { %9566 = vmatpush3.msra.mxu0 %v108_v27  ;;  %9601 = vmatpush3.msra.mxu1 %v92_v28  ;;  %v369_v27 = vld [vmem:[%s18508_s8 + $0x38] sm:$0xff]  ;;  %v368_v28 = vld [vmem:[%s18508_s8 + $0x30] sm:$0xff] }
  0x46   :  { %9567 = vmatprep.subr.mxu0 %v12041_v2  ;;  %9602 = vmatprep.subr.mxu1 %v12041_v2 }
  0x47   :  { %9568 = vmatpush3.msra.mxu0 %v107_v29  ;;  %9603 = vmatpush3.msra.mxu1 %v91_v30  ;;  %v367_v29 = vld [vmem:[%s18508_s8 + $0x28] sm:$0xff]  ;;  %v366_v30 = vld [vmem:[%s18508_s8 + $0x20] sm:$0xff] }
  0x48   :  { %9569 = vmatprep.subr.mxu0 %v12041_v2  ;;  %9604 = vmatprep.subr.mxu1 %v12041_v2 }
  0x49   :  { %9570 = vmatpush3.msra.mxu0 %v106_v31  ;;  %9571 = vmatprep.mubr.msk.f32.mxu0 %vm12042_vm0, %v12041_v2  ;;  %v365_v31 = vld [vmem:[%s18508_s8 + $0x18] sm:$0xff] }
  0x4a   :  { %9605 = vmatpush3.msra.mxu1 %v90_v32  ;;  %9606 = vmatprep.mubr.msk.f32.mxu1 %vm12042_vm0, %v12041_v2  ;;  %v364_v32 = vld [vmem:[%s18508_s8 + $0x10] sm:$0xff] }
  0x4b   :  { %9572 = vmatmul.mubr.f32.vlgmr.msra.gmra.mxu0 %v12285_v33  ;;  %9607 = vmatmul.mubr.f32.vlgmr.msra.gmra.mxu1 %v12290_v34 }
  0x4c   :  { %9609 = vmatprep.subr.mxu0 %v12041_v2  ;;  %9641 = vmatprep.mubr.msk.f32.mxu0 %vm12042_vm0, %v12041_v2 }
  0x4d   :  { %9644 = vmatprep.subr.mxu1 %v12041_v2  ;;  %9676 = vmatprep.mubr.msk.f32.mxu1 %vm12042_vm0, %v12041_v2 }
  0x4e   :  { %9610 = vmatpush3.msra.mxu0 %v291_v43  ;;  %9645 = vmatpush3.msra.mxu1 %v393_v0  ;;  %v569_v43 = vld [vmem:[%s18511_s11 + $0x100] sm:$0xff]  ;;  %v564_v0 = vld [vmem:[%s18511_s11 + $0xd8] sm:$0xff] }
  0x4f   :  { %9611 = vmatprep.subr.mxu0 %v12041_v2  ;;  %9646 = vmatprep.subr.mxu1 %v12041_v2 }
  0x50   :  { %9612 = vmatpush3.msra.mxu0 %v290_v44  ;;  %9647 = vmatpush3.msra.mxu1 %v392_v1  ;;  %v566_v44 = vld [vmem:[%s18511_s11 + $0xe8] sm:$0xff] }
  0x51   :  { %9613 = vmatprep.subr.mxu0 %v12041_v2  ;;  %9648 = vmatprep.subr.mxu1 %v12041_v2  ;;  %v562_v1 = vld [vmem:[%s18511_s11 + $0xc8] sm:$0xff] }
  0x52   :  { %9614 = vmatpush3.msra.mxu0 %v289_v45  ;;  %9649 = vmatpush3.msra.mxu1 %v391_v3  ;;  %v563_v45 = vld [vmem:[%s18511_s11 + $0xd0] sm:$0xff]  ;;  %v561_v3 = vld [vmem:[%s18511_s11 + $0xc0] sm:$0xff] }
  0x53   :  { %9615 = vmatprep.subr.mxu0 %v12041_v2  ;;  %9650 = vmatprep.subr.mxu1 %v12041_v2 }
  0x54   :  { %9616 = vmatpush3.msra.mxu0 %v288_v46  ;;  %9651 = vmatpush3.msra.mxu1 %v390_v4  ;;  %v560_v46 = vld [vmem:[%s18511_s11 + $0xb8] sm:$0xff]  ;;  %v559_v4 = vld [vmem:[%s18511_s11 + $0xb0] sm:$0xff] }
  0x55   :  { %9617 = vmatprep.subr.mxu0 %v12041_v2  ;;  %9652 = vmatprep.subr.mxu1 %v12041_v2 }
  0x56   :  { %9618 = vmatpush3.msra.mxu0 %v287_v47  ;;  %9653 = vmatpush3.msra.mxu1 %v389_v5  ;;  %v557_v47 = vld [vmem:[%s18511_s11 + $0xa0] sm:$0xff]  ;;  %v558_v5 = vld [vmem:[%s18511_s11 + $0xa8] sm:$0xff] }
  0x57   :  { %9619 = vmatprep.subr.mxu0 %v12041_v2  ;;  %9654 = vmatprep.subr.mxu1 %v12041_v2 }
  0x58   :  { %9620 = vmatpush3.msra.mxu0 %v286_v48  ;;  %9655 = vmatpush3.msra.mxu1 %v388_v6  ;;  %v554_v48 = vld [vmem:[%s18511_s11 + $0x88] sm:$0xff]  ;;  %v556_v6 = vld [vmem:[%s18511_s11 + $0x98] sm:$0xff] }
  0x59   :  { %9621 = vmatprep.subr.mxu0 %v12041_v2  ;;  %9656 = vmatprep.subr.mxu1 %v12041_v2 }
  0x5a   :  { %9622 = vmatpush3.msra.mxu0 %v285_v49  ;;  %9657 = vmatpush3.msra.mxu1 %v387_v7  ;;  %v551_v49 = vld [vmem:[%s18511_s11 + $0x70] sm:$0xff] }
  0x5b   :  { %9623 = vmatprep.subr.mxu0 %v12041_v2  ;;  %9658 = vmatprep.subr.mxu1 %v12041_v2  ;;  %v555_v7 = vld [vmem:[%s18511_s11 + $0x90] sm:$0xff] }
  0x5c   :  { %9624 = vmatpush3.msra.mxu0 %v284_v50  ;;  %9659 = vmatpush3.msra.mxu1 %v386_v8  ;;  %v582_v50 = vld [vmem:[%s18511_s11 + $0x168] sm:$0xff]  ;;  %v553_v8 = vld [vmem:[%s18511_s11 + $0x80] sm:$0xff] }
  0x5d   :  { %9625 = vmatprep.subr.mxu0 %v12041_v2  ;;  %9660 = vmatprep.subr.mxu1 %v12041_v2 }
  0x5e   :  { %9626 = vmatpush3.msra.mxu0 %v283_v56  ;;  %9661 = vmatpush3.msra.mxu1 %v385_v9  ;;  %v576_v56 = vld [vmem:[%s18511_s11 + $0x138] sm:$0xff] }
  0x5f   :  { %9627 = vmatprep.subr.mxu0 %v12041_v2  ;;  %9662 = vmatprep.subr.mxu1 %v12041_v2  ;;  %v552_v9 = vld [vmem:[%s18511_s11 + $0x78] sm:$0xff] }
  0x60   :  { %9628 = vmatpush3.msra.mxu0 %v282_v57  ;;  %9663 = vmatpush3.msra.mxu1 %v384_v10  ;;  %v574_v57 = vld [vmem:[%s18511_s11 + $0x128] sm:$0xff] }
  0x61   :  { %9629 = vmatprep.subr.mxu0 %v12041_v2  ;;  %9664 = vmatprep.subr.mxu1 %v12041_v2  ;;  %v550_v10 = vld [vmem:[%s18511_s11 + $0x68] sm:$0xff] }
  0x62   :  { %9630 = vmatpush3.msra.mxu0 %v281_v58  ;;  %9665 = vmatpush3.msra.mxu1 %v383_v11  ;;  %v573_v58 = vld [vmem:[%s18511_s11 + $0x120] sm:$0xff] }
  0x63   :  { %9631 = vmatprep.subr.mxu0 %v12041_v2  ;;  %9666 = vmatprep.subr.mxu1 %v12041_v2  ;;  %v549_v11 = vld [vmem:[%s18511_s11 + $0x60] sm:$0xff] }
  0x64   :  { %9632 = vmatpush3.msra.mxu0 %v280_v59  ;;  %9667 = vmatpush3.msra.mxu1 %v382_v12  ;;  %v571_v59 = vld [vmem:[%s18511_s11 + $0x110] sm:$0xff] }
  0x65   :  { %9633 = vmatprep.subr.mxu0 %v12041_v2  ;;  %9668 = vmatprep.subr.mxu1 %v12041_v2  ;;  %v547_v12 = vld [vmem:[%s18511_s11 + $0x50] sm:$0xff] }
  0x66   :  { %9634 = vmatpush3.msra.mxu0 %v279_v60  ;;  %9669 = vmatpush3.msra.mxu1 %v381_v13  ;;  %v570_v60 = vld [vmem:[%s18511_s11 + $0x108] sm:$0xff] }
  0x67   :  { %9635 = vmatprep.subr.mxu0 %v12041_v2  ;;  %9670 = vmatprep.subr.mxu1 %v12041_v2  ;;  %v546_v13 = vld [vmem:[%s18511_s11 + $0x48] sm:$0xff] }
  0x68   :  { %9636 = vmatpush3.msra.mxu0 %v278_v61  ;;  %9671 = vmatpush3.msra.mxu1 %v380_v14  ;;  %v568_v61 = vld [vmem:[%s18511_s11 + $0xf8] sm:$0xff] }
  0x69   :  { %9637 = vmatprep.subr.mxu0 %v12041_v2  ;;  %9672 = vmatprep.subr.mxu1 %v12041_v2 }
  0x6a   :  { %9638 = vmatpush3.msra.mxu0 %v277_v62  ;;  %9673 = vmatpush3.msra.mxu1 %v379_v15  ;;  %v567_v62 = vld [vmem:[%s18511_s11 + $0xf0] sm:$0xff] }
  0x6b   :  { %9639 = vmatprep.subr.mxu0 %v12041_v2  ;;  %9674 = vmatprep.subr.mxu1 %v12041_v2 }
  0x6c   :  { %9640 = vmatpush3.msra.mxu0 %v276_v63  ;;  %v565_v63 = vld [vmem:[%s18511_s11 + $0xe0] sm:$0xff] }
  0x6d   :  { %9679 = vmatprep.subr.mxu0 %v12041_v2 }
 0x10b   :  { %v188_v35 = vpop.f32.mrf.mxu0  ;;  %v258_v36 = vpop.f32.mrf.mxu1 }
 0x10c   :  { %v259_v38 = vadd.f32 %v258_v36, %v188_v35  ;;  %v363_v35 = vld [vmem:[%s18508_s8 + $0x8] sm:$0xff]  ;;  %v362_v36 = vld [vmem:[%s18508_s8] sm:$0xff] }
 0x10d   :  { %v9573_v39 = vpop.f32.mrf.mxu0  ;;  %v9608_v40 = vpop.f32.mrf.mxu1 }
 0x10e   :  { %v263_v41 = vadd.f32 %v262_v37, %v259_v38  ;;  %v378_v37 = vld [vmem:[%s18509_s9] sm:$0xff]  ;;  %v583_v38 = vld [vmem:[%s18511_s11 + $0x170] sm:$0xff]  ;;  %v584_v39 = vld [vmem:[%s18511_s11 + $0x178] sm:$0xff] }
 0x10f   :  { %9675 = vmatpush3.msra.mxu1 %v378_v37  ;;  %v578_v40 = vld [vmem:[%s18511_s11 + $0x148] sm:$0xff]  ;;  %v790_v37 = vld [vmem:[%s18512_s12 + $0x178] sm:$0xff] }
 0x110   :  { %v265_v42 = vsel %vm264_vm1, %v263_v41, -inf  ;;  %602 = vmatprep.subr.mxu1 %v583_v38  ;;  %v785_v38 = vld [vmem:[%s18512_s12 + $0x150] sm:$0xff] }
 0x111   :  { %266 = vmax.xlane.f32.xlu0 %v265_v42  ;;  %v572_v42 = vld [vmem:[%s18511_s11 + $0x118] sm:$0xff] }
 0x19a   :  { %v267_v51 = vpop.xlane.xlu0 %266 }
 0x19b   :  { %v268_v52 = vsub.f32 %v263_v41, %v267_v51  ;;  %v575_v41 = vld [vmem:[%s18511_s11 + $0x130] sm:$0xff] }
 0x19d   :  { %v269_v53 = vmul.f32 1.442695, %v268_v52  ;;  %v580_v52 = vld [vmem:[%s18511_s11 + $0x158] sm:$0xff] }
 0x19f   :  { %11802 = vpow2.f32 %v269_v53  ;;  %v579_v53 = vld [vmem:[%s18511_s11 + $0x150] sm:$0xff] }
 0x1ac   :  { %v12340_v54 = vpop.eup %11802 }
 0x1ad   :  { %v271_v55 = vsel %vm264_vm1, %v12340_v54, 0.0 }
 0x1ae   :  { %272 = vadd.xlane.f32.xlu0 %v271_v55  ;;  %v577_v55 = vld [vmem:[%s18511_s11 + $0x140] sm:$0xff] }
 0x237   :  { %v273_v16 = vpop.xlane.xlu0 %272 }
 0x238   :  { %11804 = vrcp.f32 %v273_v16  ;;  %v544_v16 = vld [vmem:[%s18511_s11 + $0x38] sm:$0xff] }
 0x245   :  { %v11805_v17 = vpop.eup %11804 }
 0x246   :  { %v275_v18 = vmul.f32 %v11805_v17, %v12340_v54  ;;  %v548_v17 = vld [vmem:[%s18511_s11 + $0x58] sm:$0xff] }
 0x248   :  { %9642 = vmatmul.mubr.f32.vlgmr.msra.gmra.mxu0 %v275_v18  ;;  %1070 = vst [vmem:[#allocation9] sm:$0x1] %v275_v18  ;;  %v543_v18 = vld [vmem:[%s18511_s11 + $0x30] sm:$0xff] }
 0x249   :  { %9680 = vmatpush3.msra.mxu0 %v377_v19  ;;  %9711 = vmatprep.mubr.msk.f32.mxu0 %vm12042_vm0, %v12041_v2  ;;  %v541_v19 = vld [vmem:[%s18511_s11 + $0x20] sm:$0xff] }
 0x24a   :  { %9681 = vmatprep.subr.mxu0 %v12041_v2 }
 0x24b   :  { %9682 = vmatpush3.msra.mxu0 %v376_v20  ;;  %v545_v20 = vld [vmem:[%s18511_s11 + $0x40] sm:$0xff] }
 0x24c   :  { %9683 = vmatprep.subr.mxu0 %v12041_v2 }
 0x24d   :  { %9684 = vmatpush3.msra.mxu0 %v375_v21  ;;  %v540_v21 = vld [vmem:[%s18511_s11 + $0x18] sm:$0xff] }
 0x24e   :  { %9685 = vmatprep.subr.mxu0 %v12041_v2 }
 0x24f   :  { %9686 = vmatpush3.msra.mxu0 %v374_v22  ;;  %v538_v22 = vld [vmem:[%s18511_s11 + $0x8] sm:$0xff] }
 0x250   :  { %9687 = vmatprep.subr.mxu0 %v12041_v2 }
 0x251   :  { %9688 = vmatpush3.msra.mxu0 %v373_v23  ;;  %v542_v23 = vld [vmem:[%s18511_s11 + $0x28] sm:$0xff] }
 0x252   :  { %9689 = vmatprep.subr.mxu0 %v12041_v2 }
 0x253   :  { %9690 = vmatpush3.msra.mxu0 %v372_v24  ;;  %v537_v24 = vld [vmem:[%s18511_s11] sm:$0xff] }
 0x254   :  { %9691 = vmatprep.subr.mxu0 %v12041_v2 }
 0x255   :  { %9692 = vmatpush3.msra.mxu0 %v371_v25  ;;  %v539_v25 = vld [vmem:[%s18511_s11 + $0x10] sm:$0xff] }
 0x256   :  { %9693 = vmatprep.subr.mxu0 %v12041_v2 }
 0x257   :  { %9694 = vmatpush3.msra.mxu0 %v370_v26  ;;  %v789_v26 = vld [vmem:[%s18512_s12 + $0x170] sm:$0xff] }
 0x258   :  { %9695 = vmatprep.subr.mxu0 %v12041_v2 }
 0x259   :  { %9696 = vmatpush3.msra.mxu0 %v369_v27 }
 0x25a   :  { %9697 = vmatprep.subr.mxu0 %v12041_v2 }
 0x25b   :  { %9698 = vmatpush3.msra.mxu0 %v368_v28  ;;  %v534_v28 = vld [vmem:[%s18510_s10] sm:$0x1] }
 0x25c   :  { %9699 = vmatprep.subr.mxu0 %v12041_v2 }
 0x25d   :  { %9700 = vmatpush3.msra.mxu0 %v367_v29 }
 0x25e   :  { %9701 = vmatprep.subr.mxu0 %v12041_v2 }
 0x25f   :  { %9702 = vmatpush3.msra.mxu0 %v366_v30 }
 0x260   :  { %9703 = vmatprep.subr.mxu0 %v12041_v2 }
 0x261   :  { %9704 = vmatpush3.msra.mxu0 %v365_v31 }
 0x262   :  { %9705 = vmatprep.subr.mxu0 %v12041_v2 }
 0x263   :  { %9706 = vmatpush3.msra.mxu0 %v364_v32 }
 0x264   :  { %9707 = vmatprep.subr.mxu0 %v12041_v2 }
 0x265   :  { %9708 = vmatpush3.msra.mxu0 %v363_v35  ;;  %v788_v35 = vld [vmem:[%s18512_s12 + $0x168] sm:$0xff] }
 0x266   :  { %9709 = vmatprep.subr.mxu0 %v12041_v2 }
 0x267   :  { %9710 = vmatpush3.msra.mxu0 %v362_v36  ;;  %v786_v36 = vld [vmem:[%s18512_s12 + $0x158] sm:$0xff] }
 0x268   :  { %9712 = vmatmul.mubr.f32.vlgmr.msra.gmra.mxu0 %v12290_v34  ;;  %9714 = vmatprep.subr.mxu0 %v12041_v2  ;;  %v581_v34 = vld [vmem:[%s18511_s11 + $0x160] sm:$0xff] }
 0x269   :  { %9746 = vmatprep.mubr.msk.f32.mxu0 %vm12042_vm0, %v12041_v2  ;;  %9715 = vmatpush3.msra.mxu0 %v584_v39  ;;  %v783_v39 = vld [vmem:[%s18512_s12 + $0x140] sm:$0xff] }
 0x26a   :  { %9716 = vmatprep.subr.mxu0 %v12041_v2 }
 0x26b   :  { %9717 = vmatpush3.msra.mxu0 %v581_v34  ;;  %v787_v34 = vld [vmem:[%s18512_s12 + $0x160] sm:$0xff] }
 0x26c   :  { %9718 = vmatprep.subr.mxu0 %v12041_v2 }
 0x26d   :  { %9719 = vmatpush3.msra.mxu0 %v578_v40  ;;  %v782_v40 = vld [vmem:[%s18512_s12 + $0x138] sm:$0xff] }
 0x26e   :  { %9720 = vmatprep.subr.mxu0 %v12041_v2 }
 0x26f   :  { %9721 = vmatpush3.msra.mxu0 %v575_v41  ;;  %v780_v41 = vld [vmem:[%s18512_s12 + $0x128] sm:$0xff] }
 0x270   :  { %9722 = vmatprep.subr.mxu0 %v12041_v2 }
 0x271   :  { %9723 = vmatpush3.msra.mxu0 %v572_v42  ;;  %v784_v42 = vld [vmem:[%s18512_s12 + $0x148] sm:$0xff] }
 0x272   :  { %9724 = vmatprep.subr.mxu0 %v12041_v2 }
 0x273   :  { %9725 = vmatpush3.msra.mxu0 %v569_v43  ;;  %v779_v43 = vld [vmem:[%s18512_s12 + $0x120] sm:$0xff] }
 0x274   :  { %9726 = vmatprep.subr.mxu0 %v12041_v2 }
 0x275   :  { %9727 = vmatpush3.msra.mxu0 %v566_v44  ;;  %v777_v44 = vld [vmem:[%s18512_s12 + $0x110] sm:$0xff] }
 0x276   :  { %9728 = vmatprep.subr.mxu0 %v12041_v2 }
 0x277   :  { %9729 = vmatpush3.msra.mxu0 %v563_v45  ;;  %v781_v45 = vld [vmem:[%s18512_s12 + $0x130] sm:$0xff] }
 0x278   :  { %9730 = vmatprep.subr.mxu0 %v12041_v2 }
 0x279   :  { %9731 = vmatpush3.msra.mxu0 %v560_v46  ;;  %v776_v46 = vld [vmem:[%s18512_s12 + $0x108] sm:$0xff] }
 0x27a   :  { %9732 = vmatprep.subr.mxu0 %v12041_v2 }
 0x27b   :  { %9733 = vmatpush3.msra.mxu0 %v557_v47  ;;  %v774_v47 = vld [vmem:[%s18512_s12 + $0xf8] sm:$0xff] }
 0x27c   :  { %9734 = vmatprep.subr.mxu0 %v12041_v2 }
 0x27d   :  { %9735 = vmatpush3.msra.mxu0 %v554_v48  ;;  %v778_v48 = vld [vmem:[%s18512_s12 + $0x118] sm:$0xff] }
 0x27e   :  { %9736 = vmatprep.subr.mxu0 %v12041_v2 }
 0x27f   :  { %9737 = vmatpush3.msra.mxu0 %v551_v49  ;;  %v773_v49 = vld [vmem:[%s18512_s12 + $0xf0] sm:$0xff] }
 0x280   :  { %9738 = vmatprep.subr.mxu0 %v12041_v2 }
 0x281   :  { %9739 = vmatpush3.msra.mxu0 %v548_v17  ;;  %v745_v17 = vld [vmem:[%s18512_s12 + $0x10] sm:$0xff] }
 0x282   :  { %9740 = vmatprep.subr.mxu0 %v12041_v2 }
 0x283   :  { %9741 = vmatpush3.msra.mxu0 %v545_v20  ;;  %v982_v20 = vld [vmem:[%s18515_s15 + $0x60] sm:$0xff] }
 0x284   :  { %9742 = vmatprep.subr.mxu0 %v12041_v2 }
 0x285   :  { %9743 = vmatpush3.msra.mxu0 %v542_v23  ;;  %v979_v23 = vld [vmem:[%s18515_s15 + $0x48] sm:$0xff] }
 0x286   :  { %9744 = vmatprep.subr.mxu0 %v12041_v2 }
 0x287   :  { %9745 = vmatpush3.msra.mxu0 %v539_v25  ;;  %v977_v25 = vld [vmem:[%s18515_s15 + $0x38] sm:$0xff] }
 0x288   :  { %9749 = vmatprep.subr.mxu0 %v12041_v2 }
 0x308   :  { %v358_v51 = vpop.f32.mrf.mxu0 }
 0x309   :  { %9677 = vmatmul.mubr.f32.vlgmr.msra.gmra.mxu1 %v358_v51  ;;  %v775_v51 = vld [vmem:[%s18512_s12 + $0x100] sm:$0xff] }
 0x30a   :  { %v9643_v54 = vpop.f32.mrf.mxu0  ;;  %603 = vmatpush1.msra.mxu1 %v582_v50  ;;  %666 = vmatprep.mubr.f32.mxu1 %v12041_v2  ;;  %v771_v50 = vld [vmem:[%s18512_s12 + $0xe0] sm:$0xff] }
 0x30b   :  { %604 = vmatprep.subr.mxu1 %v580_v52  ;;  %v770_v52 = vld [vmem:[%s18512_s12 + $0xd8] sm:$0xff]  ;;  %v772_v54 = vld [vmem:[%s18512_s12 + $0xe8] sm:$0xff] }
 0x30c   :  { %605 = vmatpush1.msra.mxu1 %v579_v53  ;;  %v768_v53 = vld [vmem:[%s18512_s12 + $0xc8] sm:$0xff] }
 0x30d   :  { %606 = vmatprep.subr.mxu1 %v577_v55  ;;  %v767_v55 = vld [vmem:[%s18512_s12 + $0xc0] sm:$0xff] }
 0x30e   :  { %607 = vmatpush1.msra.mxu1 %v576_v56  ;;  %v765_v56 = vld [vmem:[%s18512_s12 + $0xb0] sm:$0xff] }
 0x30f   :  { %608 = vmatprep.subr.mxu1 %v574_v57  ;;  %v769_v57 = vld [vmem:[%s18512_s12 + $0xd0] sm:$0xff] }
 0x310   :  { %609 = vmatpush1.msra.mxu1 %v573_v58  ;;  %v764_v58 = vld [vmem:[%s18512_s12 + $0xa8] sm:$0xff] }
 0x311   :  { %610 = vmatprep.subr.mxu1 %v571_v59  ;;  %v762_v59 = vld [vmem:[%s18512_s12 + $0x98] sm:$0xff] }
 0x312   :  { %611 = vmatpush1.msra.mxu1 %v570_v60  ;;  %v766_v60 = vld [vmem:[%s18512_s12 + $0xb8] sm:$0xff] }
 0x313   :  { %612 = vmatprep.subr.mxu1 %v568_v61  ;;  %v761_v61 = vld [vmem:[%s18512_s12 + $0x90] sm:$0xff] }
 0x314   :  { %613 = vmatpush1.msra.mxu1 %v567_v62  ;;  %v759_v62 = vld [vmem:[%s18512_s12 + $0x80] sm:$0xff] }
 0x315   :  { %614 = vmatprep.subr.mxu1 %v565_v63  ;;  %v763_v63 = vld [vmem:[%s18512_s12 + $0xa0] sm:$0xff] }
 0x316   :  { %615 = vmatpush1.msra.mxu1 %v564_v0  ;;  %v758_v0 = vld [vmem:[%s18512_s12 + $0x78] sm:$0xff] }
 0x317   :  { %616 = vmatprep.subr.mxu1 %v562_v1  ;;  %v756_v1 = vld [vmem:[%s18512_s12 + $0x68] sm:$0xff] }
 0x318   :  { %617 = vmatpush1.msra.mxu1 %v561_v3  ;;  %v760_v3 = vld [vmem:[%s18512_s12 + $0x88] sm:$0xff] }
 0x319   :  { %618 = vmatprep.subr.mxu1 %v559_v4  ;;  %v755_v4 = vld [vmem:[%s18512_s12 + $0x60] sm:$0xff] }
 0x31a   :  { %619 = vmatpush1.msra.mxu1 %v558_v5  ;;  %v753_v5 = vld [vmem:[%s18512_s12 + $0x50] sm:$0xff] }
 0x31b   :  { %620 = vmatprep.subr.mxu1 %v556_v6  ;;  %v757_v6 = vld [vmem:[%s18512_s12 + $0x70] sm:$0xff] }
 0x31c   :  { %621 = vmatpush1.msra.mxu1 %v555_v7  ;;  %v752_v7 = vld [vmem:[%s18512_s12 + $0x48] sm:$0xff] }
 0x31d   :  { %622 = vmatprep.subr.mxu1 %v553_v8  ;;  %v750_v8 = vld [vmem:[%s18512_s12 + $0x38] sm:$0xff] }
 0x31e   :  { %623 = vmatpush1.msra.mxu1 %v552_v9  ;;  %v754_v9 = vld [vmem:[%s18512_s12 + $0x58] sm:$0xff] }
 0x31f   :  { %624 = vmatprep.subr.mxu1 %v550_v10  ;;  %v749_v10 = vld [vmem:[%s18512_s12 + $0x30] sm:$0xff] }
 0x320   :  { %625 = vmatpush1.msra.mxu1 %v549_v11  ;;  %v747_v11 = vld [vmem:[%s18512_s12 + $0x20] sm:$0xff] }
 0x321   :  { %626 = vmatprep.subr.mxu1 %v547_v12  ;;  %v751_v12 = vld [vmem:[%s18512_s12 + $0x40] sm:$0xff] }
 0x322   :  { %627 = vmatpush1.msra.mxu1 %v546_v13  ;;  %v746_v13 = vld [vmem:[%s18512_s12 + $0x18] sm:$0xff] }
 0x323   :  { %628 = vmatprep.subr.mxu1 %v544_v16  ;;  %v743_v16 = vld [vmem:[%s18512_s12] sm:$0xff] }
 0x324   :  { %629 = vmatpush1.msra.mxu1 %v543_v18  ;;  %v985_v18 = vld [vmem:[%s18515_s15 + $0x78] sm:$0xff] }
 0x325   :  { %630 = vmatprep.subr.mxu1 %v541_v19  ;;  %v984_v19 = vld [vmem:[%s18515_s15 + $0x70] sm:$0xff] }
 0x326   :  { %631 = vmatpush1.msra.mxu1 %v540_v21  ;;  %v981_v21 = vld [vmem:[%s18515_s15 + $0x58] sm:$0xff] }
 0x327   :  { %632 = vmatprep.subr.mxu1 %v538_v22  ;;  %v980_v22 = vld [vmem:[%s18515_s15 + $0x50] sm:$0xff] }
 0x328   :  { %v530_v14 = vpop.f32.mrf.mxu0  ;;  %633 = vmatpush1.msra.mxu1 %v537_v24  ;;  %v978_v24 = vld [vmem:[%s18515_s15 + $0x40] sm:$0xff] }
 0x329   :  { %808 = vmatprep.subr.mxu1 %v789_v26  ;;  %v976_v26 = vld [vmem:[%s18515_s15 + $0x30] sm:$0xff] }
 0x32a   :  { %v9713_v15 = vpop.f32.mrf.mxu0 }
 0x32b   :  { %v748_v15 = vld [vmem:[%s18512_s12 + $0x28] sm:$0xff] }
 0x3c9   :  { %v460_v27 = vpop.f32.mrf.mxu1 }
 0x3ca   :  { %v531_v29 = vadd.f32 %v530_v14, %v460_v27  ;;  %v744_v14 = vld [vmem:[%s18512_s12 + $0x8] sm:$0xff] }
 0x3cb   :  { %v9678_v30 = vpop.f32.mrf.mxu1  ;;  %v975_v27 = vld [vmem:[%s18515_s15 + $0x28] sm:$0xff] }
 0x3cc   :  { %v535_v31 = vadd.f32 %v534_v28, %v531_v29  ;;  %v974_v28 = vld [vmem:[%s18515_s15 + $0x20] sm:$0xff]  ;;  %v973_v29 = vld [vmem:[%s18515_s15 + $0x18] sm:$0xff]  ;;  %v972_v30 = vld [vmem:[%s18515_s15 + $0x10] sm:$0xff] }
 0x3ce   :  { %v536_v32 = vmax.f32 %v535_v31, 0.0  ;;  %v971_v31 = vld [vmem:[%s18515_s15 + $0x8] sm:$0xff] }
 0x3d0   :  { %667 = vmatmul.mubr.f32.vlgmr.msra.gmra.mxu1 %v536_v32  ;;  %9747 = vmatmul.mubr.f32.vlgmr.msra.gmra.mxu0 %v536_v32  ;;  %v970_v32 = vld [vmem:[%s18515_s15] sm:$0xff] }
 0x3d1   :  { %809 = vmatpush1.msra.mxu1 %v788_v35  ;;  %872 = vmatprep.mubr.f32.mxu1 %v12041_v2 }
 0x3d2   :  { %810 = vmatprep.subr.mxu1 %v786_v36  ;;  %9750 = vmatpush3.msra.mxu0 %v790_v37  ;;  %v587_v37 = vlaneseq }
 0x3d3   :  { %811 = vmatpush1.msra.mxu1 %v785_v38  ;;  %9751 = vmatprep.subr.mxu0 %v12041_v2 }
 0x3d4   :  { %812 = vmatprep.subr.mxu1 %v783_v39  ;;  %9752 = vmatpush3.msra.mxu0 %v787_v34  ;;  %v588_v38 = vshrl.u32 %v587_v37, 7  ;;  %v585_v34 = vld [vmem:[%s18513_s13] sm:$0x7] }
 0x3d5   :  { %813 = vmatpush1.msra.mxu1 %v782_v40  ;;  %9753 = vmatprep.subr.mxu0 %v12041_v2 }
 0x3d6   :  { %814 = vmatprep.subr.mxu1 %v780_v41  ;;  %9754 = vmatpush3.msra.mxu0 %v784_v42  ;;  %v12904_v39 = vsub.s32 0, %v588_v38  ;;  %v791_v41 = vld [vmem:[%s18514_s14] sm:$0x7] }
 0x3d7   :  { %815 = vmatpush1.msra.mxu1 %v779_v43  ;;  %9755 = vmatprep.subr.mxu0 %v12041_v2 }
 0x3d8   :  { %816 = vmatprep.subr.mxu1 %v777_v44  ;;  %9756 = vmatpush3.msra.mxu0 %v781_v45  ;;  %v590_v42 = vrot.slane %v585_v34, %v12904_v39  ;;  %v796_v43 = vrot.slane %v791_v41, %v12904_v39  ;;  %v12914_v45 = vsub.s32 1, %v588_v38 }
 0x3d9   :  { %817 = vmatpush1.msra.mxu1 %v776_v46  ;;  %9757 = vmatprep.subr.mxu0 %v12041_v2 }
 0x3da   :  { %818 = vmatprep.subr.mxu1 %v774_v47  ;;  %9758 = vmatpush3.msra.mxu0 %v778_v48 }
 0x3db   :  { %819 = vmatpush1.msra.mxu1 %v773_v49  ;;  %9759 = vmatprep.subr.mxu0 %v12041_v2  ;;  %v800_v49 = vrot.slane %v791_v41, %v12914_v45 }
 0x3dc   :  { %820 = vmatprep.subr.mxu1 %v771_v50  ;;  %9760 = vmatpush3.msra.mxu0 %v775_v51 }
 0x3dd   :  { %821 = vmatpush1.msra.mxu1 %v770_v52  ;;  %9761 = vmatprep.subr.mxu0 %v12041_v2  ;;  %v594_v52 = vrot.slane %v585_v34, %v12914_v45 }
 0x3de   :  { %822 = vmatprep.subr.mxu1 %v768_v53  ;;  %9762 = vmatpush3.msra.mxu0 %v772_v54 }
 0x3df   :  { %823 = vmatpush1.msra.mxu1 %v767_v55  ;;  %9763 = vmatprep.subr.mxu0 %v12041_v2 }
 0x3e0   :  { %824 = vmatprep.subr.mxu1 %v765_v56  ;;  %9764 = vmatpush3.msra.mxu0 %v769_v57 }
 0x3e1   :  { %825 = vmatpush1.msra.mxu1 %v764_v58  ;;  %9765 = vmatprep.subr.mxu0 %v12041_v2 }
 0x3e2   :  { %826 = vmatprep.subr.mxu1 %v762_v59  ;;  %9766 = vmatpush3.msra.mxu0 %v766_v60 }
 0x3e3   :  { %827 = vmatpush1.msra.mxu1 %v761_v61  ;;  %9767 = vmatprep.subr.mxu0 %v12041_v2 }
 0x3e4   :  { %828 = vmatprep.subr.mxu1 %v759_v62  ;;  %9768 = vmatpush3.msra.mxu0 %v763_v63  ;;  %v12918_v62 = vsub.s32 2, %v588_v38 }
 0x3e5   :  { %829 = vmatpush1.msra.mxu1 %v758_v0  ;;  %9769 = vmatprep.subr.mxu0 %v12041_v2 }
 0x3e6   :  { %830 = vmatprep.subr.mxu1 %v756_v1  ;;  %9770 = vmatpush3.msra.mxu0 %v760_v3  ;;  %v804_v63 = vrot.slane %v791_v41, %v12918_v62  ;;  %v598_v1 = vrot.slane %v585_v34, %v12918_v62 }
 0x3e7   :  { %831 = vmatpush1.msra.mxu1 %v755_v4  ;;  %9771 = vmatprep.subr.mxu0 %v12041_v2 }
 0x3e8   :  { %832 = vmatprep.subr.mxu1 %v753_v5  ;;  %9772 = vmatpush3.msra.mxu0 %v757_v6 }
 0x3e9   :  { %833 = vmatpush1.msra.mxu1 %v752_v7  ;;  %9773 = vmatprep.subr.mxu0 %v12041_v2 }
 0x3ea   :  { %834 = vmatprep.subr.mxu1 %v750_v8  ;;  %9774 = vmatpush3.msra.mxu0 %v754_v9 }
 0x3eb   :  { %835 = vmatpush1.msra.mxu1 %v749_v10  ;;  %9775 = vmatprep.subr.mxu0 %v12041_v2 }
 0x3ec   :  { %836 = vmatprep.subr.mxu1 %v747_v11  ;;  %9776 = vmatpush3.msra.mxu0 %v751_v12 }
 0x3ed   :  { %837 = vmatpush1.msra.mxu1 %v746_v13  ;;  %9777 = vmatprep.subr.mxu0 %v12041_v2  ;;  %v11820_v13 = vld [vmem:[%s18535_s20] sm:$0x1] }
 0x3ee   :  { %838 = vmatprep.subr.mxu1 %v744_v14  ;;  %9778 = vmatpush3.msra.mxu0 %v748_v15 }
 0x3ef   :  { %839 = vmatpush1.msra.mxu1 %v743_v16  ;;  %9779 = vmatprep.subr.mxu0 %v12041_v2  ;;  %v986_v16 = vld [vmem:[%s18516_s16] sm:$0x1] }
 0x3f0   :  { %873 = vmatmul.mubr.f32.vlgmr.msra.gmra.mxu1 %v12285_v33  ;;  %9780 = vmatpush3.msra.mxu0 %v745_v17 }
 0x3f1   :  { %9781 = vmatprep.mubr.msk.f32.mxu0 %vm12042_vm0, %v12041_v2  ;;  %9784 = vmatprep.subr.mxu1 %v12041_v2 }
 0x3f2   :  { %9782 = vmatmul.mubr.f32.vlgmr.msra.gmra.mxu0 %v12285_v33  ;;  %9816 = vmatprep.mubr.msk.f32.mxu1 %vm12042_vm0, %v12041_v2  ;;  %v983_v33 = vld [vmem:[%s18515_s15 + $0x68] sm:$0xff] }
 0x3f3   :  { %9785 = vmatpush3.msra.mxu1 %v985_v18 }
 0x3f4   :  { %9786 = vmatprep.subr.mxu1 %v12041_v2 }
 0x3f5   :  { %9787 = vmatpush3.msra.mxu1 %v984_v19 }
 0x3f6   :  { %9788 = vmatprep.subr.mxu1 %v12041_v2 }
 0x3f7   :  { %9789 = vmatpush3.msra.mxu1 %v983_v33 }
 0x3f8   :  { %9790 = vmatprep.subr.mxu1 %v12041_v2 }
 0x3f9   :  { %9791 = vmatpush3.msra.mxu1 %v982_v20 }
 0x3fa   :  { %9792 = vmatprep.subr.mxu1 %v12041_v2 }
 0x3fb   :  { %9793 = vmatpush3.msra.mxu1 %v981_v21 }
 0x3fc   :  { %9794 = vmatprep.subr.mxu1 %v12041_v2 }
 0x3fd   :  { %9795 = vmatpush3.msra.mxu1 %v980_v22 }
 0x3fe   :  { %9796 = vmatprep.subr.mxu1 %v12041_v2 }
 0x3ff   :  { %9797 = vmatpush3.msra.mxu1 %v979_v23 }
 0x400   :  { %9798 = vmatprep.subr.mxu1 %v12041_v2 }
 0x401   :  { %9799 = vmatpush3.msra.mxu1 %v978_v24 }
 0x402   :  { %9800 = vmatprep.subr.mxu1 %v12041_v2 }
 0x403   :  { %9801 = vmatpush3.msra.mxu1 %v977_v25 }
 0x404   :  { %9802 = vmatprep.subr.mxu1 %v12041_v2 }
 0x405   :  { %9803 = vmatpush3.msra.mxu1 %v976_v26 }
 0x406   :  { %9804 = vmatprep.subr.mxu1 %v12041_v2 }
 0x407   :  { %9805 = vmatpush3.msra.mxu1 %v975_v27 }
 0x408   :  { %9806 = vmatprep.subr.mxu1 %v12041_v2 }
 0x409   :  { %9807 = vmatpush3.msra.mxu1 %v974_v28 }
 0x40a   :  { %9808 = vmatprep.subr.mxu1 %v12041_v2 }
 0x40b   :  { %9809 = vmatpush3.msra.mxu1 %v973_v29 }
 0x40c   :  { %9810 = vmatprep.subr.mxu1 %v12041_v2 }
 0x40d   :  { %9811 = vmatpush3.msra.mxu1 %v972_v30 }
 0x40e   :  { %9812 = vmatprep.subr.mxu1 %v12041_v2 }
 0x40f   :  { %9813 = vmatpush3.msra.mxu1 %v971_v31 }
 0x410   :  { %9814 = vmatprep.subr.mxu1 %v12041_v2 }
 0x411   :  { %9815 = vmatpush3.msra.mxu1 %v970_v32 }
 0x490   :  { %v739_v35 = vpop.f32.mrf.mxu0  ;;  %v668_v40 = vpop.f32.mrf.mxu1 }
 0x491   :  { %v669_v47 = vadd.f32 %v668_v40, %v590_v42  ;;  %v740_v6 = vadd.f32 %v739_v35, %v598_v1 }
 0x492   :  { %v9748_v36 = vpop.f32.mrf.mxu0  ;;  %v670_v44 = vpop.f32.mrf.mxu1 }
 0x493   :  { %v671_v57 = vadd.f32 %v670_v44, %v594_v52 }
 0x4b0   :  { %v874_v46 = vpop.f32.mrf.mxu1 }
 0x4b1   :  { %v875_v48 = vadd.f32 %v874_v46, %v796_v43 }
 0x4b2   :  { %v876_v50 = vpop.f32.mrf.mxu1  ;;  %v945_v51 = vpop.f32.mrf.mxu0 }
 0x4b3   :  { %v949_v53 = vadd.f32 %v875_v48, %v669_v47  ;;  %v877_v56 = vadd.f32 %v876_v50, %v800_v49  ;;  %v946_v4 = vadd.f32 %v945_v51, %v804_v63 }
 0x4b4   :  { %v9783_v54 = vpop.f32.mrf.mxu0 }
 0x4b5   :  { %v8413_v55 = vmul.f32 -1.442695, %v949_v53  ;;  %v956_v58 = vadd.f32 %v877_v56, %v671_v57 }
 0x4b7   :  { %11806 = vpow2.f32 %v8413_v55  ;;  %v8414_v59 = vmul.f32 -1.442695, %v956_v58 }
 0x4b9   :  { %11808 = vpow2.f32 %v8414_v59 }
 0x4c4   :  { %v11807_v60 = vpop.eup %11806 }
 0x4c5   :  { %v953_v61 = vadd.f32 1.0, %v11807_v60 }
 0x4c6   :  { %v11809_v0 = vpop.eup %11808 }
 0x4c7   :  { %11810 = vrcp.f32 %v953_v61  ;;  %v960_v3 = vadd.f32 1.0, %v11809_v0 }
 0x4c9   :  { %11812 = vrcp.f32 %v960_v3 }
 0x4d4   :  { %v11811_v5 = vpop.eup %11810 }
 0x4d5   :  { %v963_v7 = vmul.f32 %v11811_v5, %v946_v4 }
 0x4d6   :  { %v11813_v9 = vpop.eup %11812 }
 0x4d7   :  { %v964_v8 = vadd.f32 %v963_v7, %v740_v6  ;;  %v966_v10 = vsub.f32 1.0, %v11813_v9  ;;  %v968_v14 = vmul.f32 %v11820_v13, %v11813_v9 }
 0x4d9   :  { %11814 = vtanh.f32 %v964_v8 }
 0x4e6   :  { %v11815_v11 = vpop.eup %11814 }
 0x4e7   :  { %v967_v12 = vmul.f32 %v11815_v11, %v966_v10 }
 0x4e9   :  { %v12925_v15 = vadd.f32 %v968_v14, %v967_v12 }
 0x4eb   :  { %9817 = vmatmul.mubr.f32.vlgmr.msra.gmra.mxu1 %v12925_v15 }
 0x5ab   :  { %v1053_v17 = vpop.f32.mrf.mxu1 }
 0x5ac   :  { %v1054_v18 = vadd.f32 %v1053_v17, %v986_v16 }
 0x5ad   :  { %v9818_v19 = vpop.f32.mrf.mxu1 }
 0x5ae   :  { %v1057_v33 = vsel %vm264_vm1, %v1054_v18, -inf }
 0x5af   :  { %1058 = vmax.xlane.f32.xlu1 %v1057_v33 }
 0x638   :  { %v1059_v20 = vpop.xlane.xlu1 %1058 }
 0x639   :  { %v1060_v21 = vsub.f32 %v1054_v18, %v1059_v20 }
 0x63b   :  { %v1061_v22 = vmul.f32 1.442695, %v1060_v21 }
 0x63d   :  { %11816 = vpow2.f32 %v1061_v22 }
 0x64a   :  { %v11817_v23 = vpop.eup %11816 }
 0x64b   :  { %v1063_v24 = vsel %vm264_vm1, %v11817_v23, 0.0 }
 0x64c   :  { %1064 = vadd.xlane.f32.xlu1 %v1063_v24 }
 0x6d5   :  { %v1065_v25 = vpop.xlane.xlu1 %1064 }
 0x6d6   :  { %11818 = vlog2.f32 %v1065_v25 }
 0x6e3   :  { %v11819_v26 = vpop.eup %11818 }
 0x6e4   :  { %v1067_v27 = vmul.f32 0.6931472, %v11819_v26  ;;  %1076 = sbr.rel (%p8415_p10) target bundleno = 2260 (0x8d4), region = 81 }
 0x6e6   :  { %v1068_v28 = vsub.f32 %v1060_v21, %v1067_v27 }
 0x6e8   :  { %1069 = vst [vmem:[#allocation8] sm:$0x1] %v1068_v28 }
 0x6e9   :  { %v1079_v29 = vsel %vm264_vm1, %v1068_v28, -inf  ;;  %v1078_v30 = vand.u32 127, %v587_v37 }
 0x6ea   :  { %1080 = vmax.xlane.f32.xlu0 %v1079_v29 }
 0x773   :  { %v1081_v31 = vpop.xlane.xlu0 %1080 }
 0x774   :  { %vm1082_vm2 = vcmp.eq.f32.partialorder %v1068_v28, %v1081_v31 }
 0x775   :  { %v1083_v32 = vsel %vm1082_vm2, %v1078_v30, 128 }
 0x776   :  { %v1084_v35 = vsel %vm264_vm1, %v1083_v32, 2147483647 }
 0x777   :  { %v1086_v36 = vshra.s32 %v1084_v35, 16  ;;  %v1085_v34 = vand.u32 65535, %v1084_v35 }
 0x779   :  { %v1088_v38 = vcvt.s32.f32 %v1086_v36  ;;  %v1087_v41 = vcvt.s32.f32 %v1085_v34 }
 0x77b   :  { %1089 = vmin.xlane.f32.xlu0 %v1088_v38 }
 0x804   :  { %v1090_v40 = vpop.xlane.xlu0 %1089 }
 0x805   :  { %vm1091_vm3 = vcmp.eq.f32.partialorder %v1088_v38, %v1090_v40  ;;  %v1096_v43 = vcvt.f32.s32 %v1090_v40 }
 0x806   :  { %v1092_v42 = vsel %vm1091_vm3, %v1087_v41, inf }
 0x807   :  { %1093 = vmin.xlane.f32.xlu1 %v1092_v42  ;;  %v1097_v46 = vshll.u32 %v1096_v43, 16 }
 0x890   :  { %v1094_v44 = vpop.xlane.xlu1 %1093 }
 0x891   :  { %v1095_v47 = vcvt.f32.s32 %v1094_v44 }
 0x893   :  { %v1098_v48 = vadd.s32 %v1097_v46, %v1095_v47 }
 0x895   :  { %v1099_v49 = vrot.slane %v1098_v48, 4 }
 0x897   :  { %vm1100_vm4 = vcmp.lt.s32.totalorder %v1098_v48, %v1099_v49 }
 0x898   :  { %v1101_v50 = vsel %vm1100_vm4, %v1098_v48, %v1099_v49 }
 0x899   :  { %v1102_v51 = vrot.slane %v1101_v50, 2 }
 0x89b   :  { %vm1103_vm5 = vcmp.lt.s32.totalorder %v1101_v50, %v1102_v51 }
 0x89c   :  { %v1104_v52 = vsel %vm1103_vm5, %v1101_v50, %v1102_v51 }
 0x89d   :  { %v1105_v53 = vrot.slane %v1104_v52, 1 }
 0x89f   :  { %vm1106_vm6 = vcmp.lt.s32.totalorder %v1104_v52, %v1105_v53 }
 0x8a0   :  { %v1107_v54 = vsel %vm1106_vm6, %v1104_v52, %v1105_v53 }
 0x8a1   :  { %11779 = vpush %v1107_v54 }
 0x8d2   :  { %s11780_s20 = spop %11779 }
 0x8d3   :  { %1109 = sst [smem:[#allocation2]] %s11780_s20 }
 0x8d4 PF:  { %s12937_s25 = sld [smem:[#allocation6 + $0x1]]  ;;  %9819 = vmatprep.subr.mxu0 %v12041_v2  ;;  %9854 = vmatprep.subr.mxu1 %v12041_v2  ;;  %v1152_v55 = vld [vmem:[%s18506_s6 + $0x78] sm:$0xff]  ;;  %v1151_v57 = vld [vmem:[%s18506_s6 + $0x70] sm:$0xff]  ;;  %v1150_v59 = vld [vmem:[%s18506_s6 + $0x68] sm:$0xff]  ;;  %s1113_s21 = ssub.s32 1, %s12152_s27 }
 0x8d5   :  { %v1136_v56 = vld [vmem:[%s18505_s5 + $0x78] sm:$0xff]  ;;  %9820 = vmatpush3.msra.mxu0 %v1152_v55  ;;  %v1135_v58 = vld [vmem:[%s18505_s5 + $0x70] sm:$0xff]  ;;  %v1134_v60 = vld [vmem:[%s18505_s5 + $0x68] sm:$0xff]  ;;  %s8417_s20 = sld [smem:[#allocation3 + $0x1]]  ;;  %9851 = vmatprep.mubr.msk.f32.mxu0 %vm12042_vm0, %v12041_v2 }
 0x8d6   :  { %9855 = vmatpush3.msra.mxu1 %v1136_v56  ;;  %9821 = vmatprep.subr.mxu0 %v12041_v2  ;;  %v1149_v61 = vld [vmem:[%s18506_s6 + $0x60] sm:$0xff]  ;;  %v1148_v0 = vld [vmem:[%s18506_s6 + $0x58] sm:$0xff]  ;;  %s12977_s22 = sld [smem:[#allocation2]]  ;;  %v1147_v3 = vld [vmem:[%s18506_s6 + $0x50] sm:$0xff] }
 0x8d7   :  { %9856 = vmatprep.subr.mxu1 %v12041_v2  ;;  %9822 = vmatpush3.msra.mxu0 %v1151_v57  ;;  %v1133_v63 = vld [vmem:[%s18505_s5 + $0x60] sm:$0xff]  ;;  %v1132_v1 = vld [vmem:[%s18505_s5 + $0x58] sm:$0xff]  ;;  %v1131_v4 = vld [vmem:[%s18505_s5 + $0x50] sm:$0xff]  ;;  %s18537_s3 = sld [smem:[#allocation19_spill]] }
 0x8d8   :  { %9857 = vmatpush3.msra.mxu1 %v1135_v58  ;;  %9823 = vmatprep.subr.mxu0 %v12041_v2  ;;  %v1146_v5 = vld [vmem:[%s18506_s6 + $0x48] sm:$0xff]  ;;  %v1145_v7 = vld [vmem:[%s18506_s6 + $0x40] sm:$0xff]  ;;  %v1144_v9 = vld [vmem:[%s18506_s6 + $0x38] sm:$0xff] }
 0x8d9   :  { %9858 = vmatprep.subr.mxu1 %v12041_v2  ;;  %9824 = vmatpush3.msra.mxu0 %v1150_v59  ;;  %v1130_v6 = vld [vmem:[%s18505_s5 + $0x48] sm:$0xff]  ;;  %v1129_v8 = vld [vmem:[%s18505_s5 + $0x40] sm:$0xff]  ;;  %v1128_v10 = vld [vmem:[%s18505_s5 + $0x38] sm:$0xff] }
 0x8da   :  { %9859 = vmatpush3.msra.mxu1 %v1134_v60  ;;  %9825 = vmatprep.subr.mxu0 %v12041_v2  ;;  %v1143_v11 = vld [vmem:[%s18506_s6 + $0x30] sm:$0xff]  ;;  %v1142_v13 = vld [vmem:[%s18506_s6 + $0x28] sm:$0xff]  ;;  %v1141_v16 = vld [vmem:[%s18506_s6 + $0x20] sm:$0xff]  ;;  %p8420_p0 = scmp.ne.s32.totalorder %s12937_s25, 0 }
 0x8db   :  { %9860 = vmatprep.subr.mxu1 %v12041_v2  ;;  %9826 = vmatpush3.msra.mxu0 %v1149_v61  ;;  %2107 = sst [smem:[#allocation2]] %s8417_s20  ;;  %v1127_v12 = vld [vmem:[%s18505_s5 + $0x30] sm:$0xff]  ;;  %v1126_v14 = vld [vmem:[%s18505_s5 + $0x28] sm:$0xff]  ;;  %v1125_v17 = vld [vmem:[%s18505_s5 + $0x20] sm:$0xff] }
 0x8dc   :  { %9861 = vmatpush3.msra.mxu1 %v1133_v63  ;;  %9827 = vmatprep.subr.mxu0 %v12041_v2  ;;  %v1140_v18 = vld [vmem:[%s18506_s6 + $0x18] sm:$0xff]  ;;  %v1139_v33 = vld [vmem:[%s18506_s6 + $0x10] sm:$0xff]  ;;  %v1138_v21 = vld [vmem:[%s18506_s6 + $0x8] sm:$0xff]  ;;  %s1119_s29 = scalar_lea.vmem %s18504_s4, %s12977_s22  ;;  %p1111_p11 = scmp.eq.s32.totalorder %s12977_s22, 1 }
 0x8dd   :  { %9862 = vmatprep.subr.mxu1 %v12041_v2  ;;  %9828 = vmatpush3.msra.mxu0 %v1148_v0  ;;  %v1124_v19 = vld [vmem:[%s18505_s5 + $0x18] sm:$0xff]  ;;  %v1123_v20 = vld [vmem:[%s18505_s5 + $0x10] sm:$0xff]  ;;  %v1122_v22 = vld [vmem:[%s18505_s5 + $0x8] sm:$0xff] }
 0x8de   :  { %9863 = vmatpush3.msra.mxu1 %v1132_v1  ;;  %9829 = vmatprep.subr.mxu0 %v12041_v2  ;;  %v1137_v23 = vld [vmem:[%s18506_s6] sm:$0xff]  ;;  %v1321_v36 = vld [vmem:[%s18537_s3 + $0x78] sm:$0xff]  ;;  %v1320_v38 = vld [vmem:[%s18537_s3 + $0x70] sm:$0xff] }
 0x8df   :  { %9864 = vmatprep.subr.mxu1 %v12041_v2  ;;  %9830 = vmatpush3.msra.mxu0 %v1147_v3  ;;  %v1121_v24 = vld [vmem:[%s18505_s5] sm:$0xff]  ;;  %v1319_v34 = vld [vmem:[%s18537_s3 + $0x68] sm:$0xff]  ;;  %v1317_v41 = vld [vmem:[%s18537_s3 + $0x58] sm:$0xff] }
 0x8e0   :  { %9865 = vmatpush3.msra.mxu1 %v1131_v4  ;;  %9831 = vmatprep.subr.mxu0 %v12041_v2  ;;  %v13073_v25 = vld [vmem:[%s1119_s29] sm:$0x1]  ;;  %v1316_v42 = vld [vmem:[%s18537_s3 + $0x50] sm:$0xff]  ;;  %v1315_v43 = vld [vmem:[%s18537_s3 + $0x48] sm:$0xff]  ;;  %s1112_s29 = scalar_select %p1111_p11, 1, 0 }
 0x8e1   :  { %9866 = vmatprep.subr.mxu1 %v12041_v2  ;;  %9832 = vmatpush3.msra.mxu0 %v1146_v5  ;;  %v1293_v28 = vld [vmem:[%s18507_s7] sm:$0x1]  ;;  %v1313_v51 = vld [vmem:[%s18537_s3 + $0x38] sm:$0xff]  ;;  %v1312_v52 = vld [vmem:[%s18537_s3 + $0x30] sm:$0xff] }
 0x8e2   :  { %9867 = vmatpush3.msra.mxu1 %v1130_v6  ;;  %9833 = vmatprep.subr.mxu0 %v12041_v2  ;;  %v1318_v40 = vld [vmem:[%s18537_s3 + $0x60] sm:$0xff]  ;;  %v1311_v53 = vld [vmem:[%s18537_s3 + $0x28] sm:$0xff]  ;;  %v1309_v55 = vld [vmem:[%s18537_s3 + $0x18] sm:$0xff]  ;;  %s1114_s20 = smul.u32 %s1113_s21, %s1112_s29 }
 0x8e3   :  { %9868 = vmatprep.subr.mxu1 %v12041_v2  ;;  %9834 = vmatpush3.msra.mxu0 %v1145_v7  ;;  %v1314_v44 = vld [vmem:[%s18537_s3 + $0x40] sm:$0xff]  ;;  %v1308_v56 = vld [vmem:[%s18537_s3 + $0x10] sm:$0xff]  ;;  %v1307_v57 = vld [vmem:[%s18537_s3 + $0x8] sm:$0xff] }
 0x8e4   :  { %9869 = vmatpush3.msra.mxu1 %v1129_v8  ;;  %9835 = vmatprep.subr.mxu0 %v12041_v2  ;;  %v1310_v54 = vld [vmem:[%s18537_s3 + $0x20] sm:$0xff]  ;;  %v1423_v59 = vld [vmem:[%s18509_s9 + $0x78] sm:$0xff]  ;;  %v1422_v60 = vld [vmem:[%s18509_s9 + $0x70] sm:$0xff]  ;;  %p1115_p12 = scmp.gt.s32.totalorder %s1114_s20, 0 }
 0x8e5   :  { %9870 = vmatprep.subr.mxu1 %v12041_v2  ;;  %9836 = vmatpush3.msra.mxu0 %v1144_v9  ;;  %v1306_v58 = vld [vmem:[%s18537_s3] sm:$0xff]  ;;  %v1421_v61 = vld [vmem:[%s18509_s9 + $0x68] sm:$0xff]  ;;  %v1419_v0 = vld [vmem:[%s18509_s9 + $0x58] sm:$0xff] }
 0x8e6   :  { %9871 = vmatpush3.msra.mxu1 %v1128_v10  ;;  %9837 = vmatprep.subr.mxu0 %v12041_v2  ;;  %v1420_v63 = vld [vmem:[%s18509_s9 + $0x60] sm:$0xff]  ;;  %v1418_v1 = vld [vmem:[%s18509_s9 + $0x50] sm:$0xff]  ;;  %v1417_v3 = vld [vmem:[%s18509_s9 + $0x48] sm:$0xff]  ;;  %s18559_s20 = smov (!%p1115_p12, %s1114_s20), 0 }
 0x8e7   :  { %9872 = vmatprep.subr.mxu1 %v12041_v2  ;;  %9838 = vmatpush3.msra.mxu0 %v1143_v11  ;;  %v1416_v4 = vld [vmem:[%s18509_s9 + $0x40] sm:$0xff]  ;;  %v1415_v5 = vld [vmem:[%s18509_s9 + $0x38] sm:$0xff]  ;;  %v1414_v6 = vld [vmem:[%s18509_s9 + $0x30] sm:$0xff]  ;;  %p2099_p13 = scmp.eq.s32.totalorder %s18559_s20, 0 }
 0x8e8   :  { %9873 = vmatpush3.msra.mxu1 %v1127_v12  ;;  %9839 = vmatprep.subr.mxu0 %v12041_v2  ;;  %v1413_v7 = vld [vmem:[%s18509_s9 + $0x28] sm:$0xff]  ;;  %v1412_v8 = vld [vmem:[%s18509_s9 + $0x20] sm:$0xff]  ;;  %v1411_v9 = vld [vmem:[%s18509_s9 + $0x18] sm:$0xff] }
 0x8e9   :  { %9874 = vmatprep.subr.mxu1 %v12041_v2  ;;  %9840 = vmatpush3.msra.mxu0 %v1142_v13  ;;  %v1410_v10 = vld [vmem:[%s18509_s9 + $0x10] sm:$0xff]  ;;  %v1409_v11 = vld [vmem:[%s18509_s9 + $0x8] sm:$0xff]  ;;  %s2100_s0 = scalar_select %p2099_p13, 1, 0 }
 0x8ea   :  { %9875 = vmatpush3.msra.mxu1 %v1126_v14  ;;  %9841 = vmatprep.subr.mxu0 %v12041_v2 }
 0x8eb   :  { %9876 = vmatprep.subr.mxu1 %v12041_v2  ;;  %9842 = vmatpush3.msra.mxu0 %v1141_v16  ;;  %v2101_v13 = vstv %s2100_s0 }
 0x8ec   :  { %9877 = vmatpush3.msra.mxu1 %v1125_v17  ;;  %9843 = vmatprep.subr.mxu0 %v12041_v2  ;;  %vm13224_vm7 = vcmp.eq.s32.totalorder %v2101_v13, 1  ;;  %v1580_v13 = vld [vmem:[%s18511_s11 + $0x68] sm:$0xff] }
 0x8ed   :  { %9878 = vmatprep.subr.mxu1 %v12041_v2  ;;  %9844 = vmatpush3.msra.mxu0 %v1140_v18  ;;  %v1407_v18 = vld [vmem:[%s18508_s8 + $0x78] sm:$0xff] }
 0x8ee   :  { %9879 = vmatpush3.msra.mxu1 %v1124_v19  ;;  %9845 = vmatprep.subr.mxu0 %v12041_v2  ;;  %v1406_v19 = vld [vmem:[%s18508_s8 + $0x70] sm:$0xff] }
 0x8ef   :  { %9880 = vmatprep.subr.mxu1 %v12041_v2  ;;  %9846 = vmatpush3.msra.mxu0 %v1139_v33 }
 0x8f0   :  { %9881 = vmatpush3.msra.mxu1 %v1123_v20  ;;  %9847 = vmatprep.subr.mxu0 %v12041_v2  ;;  %v1405_v20 = vld [vmem:[%s18508_s8 + $0x68] sm:$0xff] }
 0x8f1   :  { %9882 = vmatprep.subr.mxu1 %v12041_v2  ;;  %9848 = vmatpush3.msra.mxu0 %v1138_v21  ;;  %v1404_v21 = vld [vmem:[%s18508_s8 + $0x60] sm:$0xff] }
 0x8f2   :  { %9883 = vmatpush3.msra.mxu1 %v1122_v22  ;;  %9849 = vmatprep.subr.mxu0 %v12041_v2  ;;  %v1403_v22 = vld [vmem:[%s18508_s8 + $0x58] sm:$0xff] }
 0x8f3   :  { %9884 = vmatprep.subr.mxu1 %v12041_v2  ;;  %9850 = vmatpush3.msra.mxu0 %v1137_v23  ;;  %v1402_v23 = vld [vmem:[%s18508_s8 + $0x50] sm:$0xff] }
 0x8f4   :  { %9885 = vmatpush3.msra.mxu1 %v1121_v24  ;;  %9886 = vmatprep.mubr.msk.f32.mxu1 %vm12042_vm0, %v12041_v2  ;;  %v1401_v24 = vld [vmem:[%s18508_s8 + $0x48] sm:$0xff] }
 0x8f5   :  { %9852 = vmatmul.mubr.f32.vlgmr.msra.gmra.mxu0 %v12925_v15  ;;  %9887 = vmatmul.mubr.f32.vlgmr.msra.gmra.mxu1 %v13073_v25 }
 0x8f6   :  { %9889 = vmatprep.subr.mxu0 %v12041_v2  ;;  %9921 = vmatprep.mubr.msk.f32.mxu0 %vm12042_vm0, %v12041_v2 }
 0x8f7   :  { %9924 = vmatprep.subr.mxu1 %v12041_v2  ;;  %9956 = vmatprep.mubr.msk.f32.mxu1 %vm12042_vm0, %v12041_v2 }
 0x8f8   :  { %9890 = vmatpush3.msra.mxu0 %v1321_v36  ;;  %9925 = vmatpush3.msra.mxu1 %v1423_v59  ;;  %v1392_v36 = vld [vmem:[%s18508_s8] sm:$0xff]  ;;  %v1604_v59 = vld [vmem:[%s18511_s11 + $0x128] sm:$0xff] }
 0x8f9   :  { %9891 = vmatprep.subr.mxu0 %v12041_v2  ;;  %9926 = vmatprep.subr.mxu1 %v12041_v2 }
 0x8fa   :  { %9892 = vmatpush3.msra.mxu0 %v1320_v38  ;;  %9927 = vmatpush3.msra.mxu1 %v1422_v60  ;;  %v1408_v38 = vld [vmem:[%s18509_s9] sm:$0xff] }
 0x8fb   :  { %9893 = vmatprep.subr.mxu0 %v12041_v2  ;;  %9928 = vmatprep.subr.mxu1 %v12041_v2  ;;  %v1603_v60 = vld [vmem:[%s18511_s11 + $0x120] sm:$0xff] }
 0x8fc   :  { %9894 = vmatpush3.msra.mxu0 %v1319_v34  ;;  %9929 = vmatpush3.msra.mxu1 %v1421_v61  ;;  %v1613_v34 = vld [vmem:[%s18511_s11 + $0x170] sm:$0xff] }
 0x8fd   :  { %9895 = vmatprep.subr.mxu0 %v12041_v2  ;;  %9930 = vmatprep.subr.mxu1 %v12041_v2  ;;  %v1601_v61 = vld [vmem:[%s18511_s11 + $0x110] sm:$0xff] }
 0x8fe   :  { %9896 = vmatpush3.msra.mxu0 %v1318_v40  ;;  %9931 = vmatpush3.msra.mxu1 %v1420_v63  ;;  %v1614_v40 = vld [vmem:[%s18511_s11 + $0x178] sm:$0xff]  ;;  %v1600_v63 = vld [vmem:[%s18511_s11 + $0x108] sm:$0xff] }
 0x8ff   :  { %9897 = vmatprep.subr.mxu0 %v12041_v2  ;;  %9932 = vmatprep.subr.mxu1 %v12041_v2 }
 0x900   :  { %9898 = vmatpush3.msra.mxu0 %v1317_v41  ;;  %9933 = vmatpush3.msra.mxu1 %v1419_v0  ;;  %v1608_v41 = vld [vmem:[%s18511_s11 + $0x148] sm:$0xff]  ;;  %v1598_v0 = vld [vmem:[%s18511_s11 + $0xf8] sm:$0xff] }
 0x901   :  { %9899 = vmatprep.subr.mxu0 %v12041_v2  ;;  %9934 = vmatprep.subr.mxu1 %v12041_v2 }
 0x902   :  { %9900 = vmatpush3.msra.mxu0 %v1316_v42  ;;  %9935 = vmatpush3.msra.mxu1 %v1418_v1  ;;  %v1605_v42 = vld [vmem:[%s18511_s11 + $0x130] sm:$0xff] }
 0x903   :  { %9901 = vmatprep.subr.mxu0 %v12041_v2  ;;  %9936 = vmatprep.subr.mxu1 %v12041_v2  ;;  %v1597_v1 = vld [vmem:[%s18511_s11 + $0xf0] sm:$0xff] }
 0x904   :  { %9902 = vmatpush3.msra.mxu0 %v1315_v43  ;;  %9937 = vmatpush3.msra.mxu1 %v1417_v3  ;;  %v1602_v43 = vld [vmem:[%s18511_s11 + $0x118] sm:$0xff]  ;;  %v1595_v3 = vld [vmem:[%s18511_s11 + $0xe0] sm:$0xff] }
 0x905   :  { %9903 = vmatprep.subr.mxu0 %v12041_v2  ;;  %9938 = vmatprep.subr.mxu1 %v12041_v2 }
 0x906   :  { %9904 = vmatpush3.msra.mxu0 %v1314_v44  ;;  %9939 = vmatpush3.msra.mxu1 %v1416_v4  ;;  %v1599_v44 = vld [vmem:[%s18511_s11 + $0x100] sm:$0xff]  ;;  %v1594_v4 = vld [vmem:[%s18511_s11 + $0xd8] sm:$0xff] }
 0x907   :  { %9905 = vmatprep.subr.mxu0 %v12041_v2  ;;  %9940 = vmatprep.subr.mxu1 %v12041_v2 }
 0x908   :  { %9906 = vmatpush3.msra.mxu0 %v1313_v51  ;;  %9941 = vmatpush3.msra.mxu1 %v1415_v5  ;;  %v1581_v51 = vld [vmem:[%s18511_s11 + $0x70] sm:$0xff]  ;;  %v1592_v5 = vld [vmem:[%s18511_s11 + $0xc8] sm:$0xff] }
 0x909   :  { %9907 = vmatprep.subr.mxu0 %v12041_v2  ;;  %9942 = vmatprep.subr.mxu1 %v12041_v2 }
 0x90a   :  { %9908 = vmatpush3.msra.mxu0 %v1312_v52  ;;  %9943 = vmatpush3.msra.mxu1 %v1414_v6  ;;  %v1612_v52 = vld [vmem:[%s18511_s11 + $0x168] sm:$0xff]  ;;  %v1591_v6 = vld [vmem:[%s18511_s11 + $0xc0] sm:$0xff] }
 0x90b   :  { %9909 = vmatprep.subr.mxu0 %v12041_v2  ;;  %9944 = vmatprep.subr.mxu1 %v12041_v2 }
 0x90c   :  { %9910 = vmatpush3.msra.mxu0 %v1311_v53  ;;  %9945 = vmatpush3.msra.mxu1 %v1413_v7  ;;  %v1589_v7 = vld [vmem:[%s18511_s11 + $0xb0] sm:$0xff] }
 0x90d   :  { %9911 = vmatprep.subr.mxu0 %v12041_v2  ;;  %9946 = vmatprep.subr.mxu1 %v12041_v2 }
 0x90e   :  { %9912 = vmatpush3.msra.mxu0 %v1310_v54  ;;  %9947 = vmatpush3.msra.mxu1 %v1412_v8  ;;  %v1610_v54 = vld [vmem:[%s18511_s11 + $0x158] sm:$0xff]  ;;  %v1588_v8 = vld [vmem:[%s18511_s11 + $0xa8] sm:$0xff] }
 0x90f   :  { %9913 = vmatprep.subr.mxu0 %v12041_v2  ;;  %9948 = vmatprep.subr.mxu1 %v12041_v2 }
 0x910   :  { %9914 = vmatpush3.msra.mxu0 %v1309_v55  ;;  %9949 = vmatpush3.msra.mxu1 %v1411_v9  ;;  %v1609_v55 = vld [vmem:[%s18511_s11 + $0x150] sm:$0xff]  ;;  %v1586_v9 = vld [vmem:[%s18511_s11 + $0x98] sm:$0xff] }
 0x911   :  { %9915 = vmatprep.subr.mxu0 %v12041_v2  ;;  %9950 = vmatprep.subr.mxu1 %v12041_v2 }
 0x912   :  { %9916 = vmatpush3.msra.mxu0 %v1308_v56  ;;  %9951 = vmatpush3.msra.mxu1 %v1410_v10  ;;  %v1585_v10 = vld [vmem:[%s18511_s11 + $0x90] sm:$0xff] }
 0x913   :  { %9917 = vmatprep.subr.mxu0 %v12041_v2  ;;  %9952 = vmatprep.subr.mxu1 %v12041_v2 }
 0x914   :  { %9918 = vmatpush3.msra.mxu0 %v1307_v57  ;;  %9953 = vmatpush3.msra.mxu1 %v1409_v11  ;;  %v1607_v57 = vld [vmem:[%s18511_s11 + $0x140] sm:$0xff] }
 0x915   :  { %9919 = vmatprep.subr.mxu0 %v12041_v2  ;;  %9954 = vmatprep.subr.mxu1 %v12041_v2  ;;  %v1583_v11 = vld [vmem:[%s18511_s11 + $0x80] sm:$0xff] }
 0x916   :  { %9920 = vmatpush3.msra.mxu0 %v1306_v58  ;;  %9955 = vmatpush3.msra.mxu1 %v1408_v38  ;;  %v1606_v58 = vld [vmem:[%s18511_s11 + $0x138] sm:$0xff] }
 0x917   :  { %9959 = vmatprep.subr.mxu0 %v12041_v2  ;;  %1632 = vmatprep.subr.mxu1 %v1613_v34 }
 0x9b5   :  { %v1219_v26 = vpop.f32.mrf.mxu0  ;;  %v1289_v27 = vpop.f32.mrf.mxu1 }
 0x9b6   :  { %v1290_v29 = vadd.f32 %v1289_v27, %v1219_v26  ;;  %v1400_v26 = vld [vmem:[%s18508_s8 + $0x40] sm:$0xff]  ;;  %v1399_v27 = vld [vmem:[%s18508_s8 + $0x38] sm:$0xff] }
 0x9b7   :  { %v9853_v30 = vpop.f32.mrf.mxu0  ;;  %v9888_v31 = vpop.f32.mrf.mxu1 }
 0x9b8   :  { %v1294_v32 = vadd.f32 %v1293_v28, %v1290_v29  ;;  %v1398_v28 = vld [vmem:[%s18508_s8 + $0x30] sm:$0xff]  ;;  %v1397_v29 = vld [vmem:[%s18508_s8 + $0x28] sm:$0xff]  ;;  %v1396_v30 = vld [vmem:[%s18508_s8 + $0x20] sm:$0xff] }
 0x9b9   :  { %v1395_v31 = vld [vmem:[%s18508_s8 + $0x18] sm:$0xff] }
 0x9ba   :  { %v1295_v35 = vsel %vm264_vm1, %v1294_v32, -inf }
 0x9bb   :  { %1296 = vmax.xlane.f32.xlu0 %v1295_v35  ;;  %v1393_v35 = vld [vmem:[%s18508_s8 + $0x8] sm:$0xff] }
 0xa44   :  { %v1297_v46 = vpop.xlane.xlu0 %1296 }
 0xa45   :  { %v1298_v47 = vsub.f32 %v1294_v32, %v1297_v46  ;;  %v1394_v32 = vld [vmem:[%s18508_s8 + $0x10] sm:$0xff]  ;;  %v1596_v46 = vld [vmem:[%s18511_s11 + $0xe8] sm:$0xff] }
 0xa47   :  { %v1299_v48 = vmul.f32 1.442695, %v1298_v47  ;;  %v1593_v47 = vld [vmem:[%s18511_s11 + $0xd0] sm:$0xff] }
 0xa49   :  { %11821 = vpow2.f32 %v1299_v48  ;;  %v1590_v48 = vld [vmem:[%s18511_s11 + $0xb8] sm:$0xff] }
 0xa56   :  { %v13123_v49 = vpop.eup %11821 }
 0xa57   :  { %v1301_v50 = vsel %vm264_vm1, %v13123_v49, 0.0 }
 0xa58   :  { %1302 = vadd.xlane.f32.xlu0 %v1301_v50  ;;  %v1584_v50 = vld [vmem:[%s18511_s11 + $0x88] sm:$0xff] }
 0xae1   :  { %v1303_v12 = vpop.xlane.xlu0 %1302 }
 0xae2   :  { %11823 = vrcp.f32 %v1303_v12  ;;  %v1582_v12 = vld [vmem:[%s18511_s11 + $0x78] sm:$0xff] }
 0xaef   :  { %v11824_v14 = vpop.eup %11823 }
 0xaf0   :  { %v1305_v17 = vmul.f32 %v11824_v14, %v13123_v49  ;;  %v1587_v49 = vld [vmem:[%s18511_s11 + $0xa0] sm:$0xff] }
 0xaf1   :  { %v1579_v14 = vld [vmem:[%s18511_s11 + $0x60] sm:$0xff] }
 0xaf2   :  { %9922 = vmatmul.mubr.f32.vlgmr.msra.gmra.mxu0 %v1305_v17  ;;  %v2105_v33 = vsel %vm13224_vm7, %v1305_v17, 0.0  ;;  %v1577_v17 = vld [vmem:[%s18511_s11 + $0x50] sm:$0xff] }
 0xaf3   :  { %9960 = vmatpush3.msra.mxu0 %v1407_v18  ;;  %9991 = vmatprep.mubr.msk.f32.mxu0 %vm12042_vm0, %v12041_v2  ;;  %2106 = vst [vmem:[#allocation9 + $0x1] sm:$0x1] %v2105_v33  ;;  %v1576_v18 = vld [vmem:[%s18511_s11 + $0x48] sm:$0xff] }
 0xaf4   :  { %9961 = vmatprep.subr.mxu0 %v12041_v2 }
 0xaf5   :  { %9962 = vmatpush3.msra.mxu0 %v1406_v19 }
 0xaf6   :  { %9963 = vmatprep.subr.mxu0 %v12041_v2 }
 0xaf7   :  { %9964 = vmatpush3.msra.mxu0 %v1405_v20  ;;  %v1574_v20 = vld [vmem:[%s18511_s11 + $0x38] sm:$0xff] }
 0xaf8   :  { %9965 = vmatprep.subr.mxu0 %v12041_v2 }
 0xaf9   :  { %9966 = vmatpush3.msra.mxu0 %v1404_v21  ;;  %v1578_v21 = vld [vmem:[%s18511_s11 + $0x58] sm:$0xff] }
 0xafa   :  { %9967 = vmatprep.subr.mxu0 %v12041_v2 }
 0xafb   :  { %9968 = vmatpush3.msra.mxu0 %v1403_v22  ;;  %v1573_v22 = vld [vmem:[%s18511_s11 + $0x30] sm:$0xff] }
 0xafc   :  { %9969 = vmatprep.subr.mxu0 %v12041_v2 }
 0xafd   :  { %9970 = vmatpush3.msra.mxu0 %v1402_v23  ;;  %v1571_v23 = vld [vmem:[%s18511_s11 + $0x20] sm:$0xff] }
 0xafe   :  { %9971 = vmatprep.subr.mxu0 %v12041_v2 }
 0xaff   :  { %9972 = vmatpush3.msra.mxu0 %v1401_v24  ;;  %v1575_v24 = vld [vmem:[%s18511_s11 + $0x40] sm:$0xff] }
 0xb00   :  { %9973 = vmatprep.subr.mxu0 %v12041_v2 }
 0xb01   :  { %9974 = vmatpush3.msra.mxu0 %v1400_v26  ;;  %v1570_v26 = vld [vmem:[%s18511_s11 + $0x18] sm:$0xff] }
 0xb02   :  { %9975 = vmatprep.subr.mxu0 %v12041_v2 }
 0xb03   :  { %9976 = vmatpush3.msra.mxu0 %v1399_v27  ;;  %v1568_v27 = vld [vmem:[%s18511_s11 + $0x8] sm:$0xff] }
 0xb04   :  { %9977 = vmatprep.subr.mxu0 %v12041_v2 }
 0xb05   :  { %9978 = vmatpush3.msra.mxu0 %v1398_v28  ;;  %v1572_v28 = vld [vmem:[%s18511_s11 + $0x28] sm:$0xff] }
 0xb06   :  { %9979 = vmatprep.subr.mxu0 %v12041_v2 }
 0xb07   :  { %9980 = vmatpush3.msra.mxu0 %v1397_v29  ;;  %v1567_v29 = vld [vmem:[%s18511_s11] sm:$0xff] }
 0xb08   :  { %9981 = vmatprep.subr.mxu0 %v12041_v2 }
 0xb09   :  { %9982 = vmatpush3.msra.mxu0 %v1396_v30  ;;  %v1569_v30 = vld [vmem:[%s18511_s11 + $0x10] sm:$0xff] }
 0xb0a   :  { %9983 = vmatprep.subr.mxu0 %v12041_v2 }
 0xb0b   :  { %9984 = vmatpush3.msra.mxu0 %v1395_v31  ;;  %v1819_v31 = vld [vmem:[%s18512_s12 + $0x170] sm:$0xff] }
 0xb0c   :  { %9985 = vmatprep.subr.mxu0 %v12041_v2 }
 0xb0d   :  { %9986 = vmatpush3.msra.mxu0 %v1394_v32 }
 0xb0e   :  { %9987 = vmatprep.subr.mxu0 %v12041_v2 }
 0xb0f   :  { %9988 = vmatpush3.msra.mxu0 %v1393_v35  ;;  %v1564_v35 = vld [vmem:[%s18510_s10] sm:$0x1] }
 0xb10   :  { %9989 = vmatprep.subr.mxu0 %v12041_v2 }
 0xb11   :  { %9990 = vmatpush3.msra.mxu0 %v1392_v36 }
 0xb12   :  { %9992 = vmatmul.mubr.f32.vlgmr.msra.gmra.mxu0 %v13073_v25  ;;  %9994 = vmatprep.subr.mxu0 %v12041_v2  ;;  %v1611_v25 = vld [vmem:[%s18511_s11 + $0x160] sm:$0xff] }
 0xb13   :  { %10026 = vmatprep.mubr.msk.f32.mxu0 %vm12042_vm0, %v12041_v2  ;;  %9995 = vmatpush3.msra.mxu0 %v1614_v40 }
 0xb14   :  { %9996 = vmatprep.subr.mxu0 %v12041_v2 }
 0xb15   :  { %9997 = vmatpush3.msra.mxu0 %v1611_v25  ;;  %v1818_v25 = vld [vmem:[%s18512_s12 + $0x168] sm:$0xff] }
 0xb16   :  { %9998 = vmatprep.subr.mxu0 %v12041_v2 }
 0xb17   :  { %9999 = vmatpush3.msra.mxu0 %v1608_v41  ;;  %v1816_v41 = vld [vmem:[%s18512_s12 + $0x158] sm:$0xff] }
 0xb18   :  { %10000 = vmatprep.subr.mxu0 %v12041_v2 }
 0xb19   :  { %10001 = vmatpush3.msra.mxu0 %v1605_v42  ;;  %v1820_v42 = vld [vmem:[%s18512_s12 + $0x178] sm:$0xff] }
 0xb1a   :  { %10002 = vmatprep.subr.mxu0 %v12041_v2 }
 0xb1b   :  { %10003 = vmatpush3.msra.mxu0 %v1602_v43  ;;  %v1815_v43 = vld [vmem:[%s18512_s12 + $0x150] sm:$0xff] }
 0xb1c   :  { %10004 = vmatprep.subr.mxu0 %v12041_v2 }
 0xb1d   :  { %10005 = vmatpush3.msra.mxu0 %v1599_v44  ;;  %v1813_v44 = vld [vmem:[%s18512_s12 + $0x140] sm:$0xff] }
 0xb1e   :  { %10006 = vmatprep.subr.mxu0 %v12041_v2 }
 0xb1f   :  { %10007 = vmatpush3.msra.mxu0 %v1596_v46  ;;  %v1817_v46 = vld [vmem:[%s18512_s12 + $0x160] sm:$0xff] }
 0xb20   :  { %10008 = vmatprep.subr.mxu0 %v12041_v2 }
 0xb21   :  { %10009 = vmatpush3.msra.mxu0 %v1593_v47  ;;  %v1812_v47 = vld [vmem:[%s18512_s12 + $0x138] sm:$0xff] }
 0xb22   :  { %10010 = vmatprep.subr.mxu0 %v12041_v2 }
 0xb23   :  { %10011 = vmatpush3.msra.mxu0 %v1590_v48  ;;  %v1810_v48 = vld [vmem:[%s18512_s12 + $0x128] sm:$0xff] }
 0xb24   :  { %10012 = vmatprep.subr.mxu0 %v12041_v2 }
 0xb25   :  { %10013 = vmatpush3.msra.mxu0 %v1587_v49  ;;  %v1814_v49 = vld [vmem:[%s18512_s12 + $0x148] sm:$0xff] }
 0xb26   :  { %10014 = vmatprep.subr.mxu0 %v12041_v2 }
 0xb27   :  { %10015 = vmatpush3.msra.mxu0 %v1584_v50  ;;  %v1809_v50 = vld [vmem:[%s18512_s12 + $0x120] sm:$0xff] }
 0xb28   :  { %10016 = vmatprep.subr.mxu0 %v12041_v2 }
 0xb29   :  { %10017 = vmatpush3.msra.mxu0 %v1581_v51  ;;  %v1807_v51 = vld [vmem:[%s18512_s12 + $0x110] sm:$0xff] }
 0xb2a   :  { %10018 = vmatprep.subr.mxu0 %v12041_v2 }
 0xb2b   :  { %10019 = vmatpush3.msra.mxu0 %v1578_v21  ;;  %v1781_v21 = vld [vmem:[%s18512_s12 + $0x40] sm:$0xff] }
 0xb2c   :  { %10020 = vmatprep.subr.mxu0 %v12041_v2 }
 0xb2d   :  { %10021 = vmatpush3.msra.mxu0 %v1575_v24  ;;  %v1778_v24 = vld [vmem:[%s18512_s12 + $0x28] sm:$0xff] }
 0xb2e   :  { %10022 = vmatprep.subr.mxu0 %v12041_v2 }
 0xb2f   :  { %10023 = vmatpush3.msra.mxu0 %v1572_v28  ;;  %v2015_v28 = vld [vmem:[%s18515_s15 + $0x78] sm:$0xff] }
 0xb30   :  { %10024 = vmatprep.subr.mxu0 %v12041_v2 }
 0xb31   :  { %10025 = vmatpush3.msra.mxu0 %v1569_v30  ;;  %v2013_v30 = vld [vmem:[%s18515_s15 + $0x68] sm:$0xff] }
 0xb32   :  { %10029 = vmatprep.subr.mxu0 %v12041_v2 }
 0xbb2   :  { %v1388_v53 = vpop.f32.mrf.mxu0 }
 0xbb3   :  { %9957 = vmatmul.mubr.f32.vlgmr.msra.gmra.mxu1 %v1388_v53  ;;  %v1806_v53 = vld [vmem:[%s18512_s12 + $0x108] sm:$0xff] }
 0xbb4   :  { %v9923_v56 = vpop.f32.mrf.mxu0  ;;  %1633 = vmatpush1.msra.mxu1 %v1612_v52  ;;  %1696 = vmatprep.mubr.f32.mxu1 %v12041_v2  ;;  %v1811_v52 = vld [vmem:[%s18512_s12 + $0x130] sm:$0xff] }
 0xbb5   :  { %1634 = vmatprep.subr.mxu1 %v1610_v54  ;;  %v1804_v54 = vld [vmem:[%s18512_s12 + $0xf8] sm:$0xff]  ;;  %v1803_v56 = vld [vmem:[%s18512_s12 + $0xf0] sm:$0xff] }
 0xbb6   :  { %1635 = vmatpush1.msra.mxu1 %v1609_v55  ;;  %v1808_v55 = vld [vmem:[%s18512_s12 + $0x118] sm:$0xff] }
 0xbb7   :  { %1636 = vmatprep.subr.mxu1 %v1607_v57  ;;  %v1801_v57 = vld [vmem:[%s18512_s12 + $0xe0] sm:$0xff] }
 0xbb8   :  { %1637 = vmatpush1.msra.mxu1 %v1606_v58  ;;  %v1805_v58 = vld [vmem:[%s18512_s12 + $0x100] sm:$0xff] }
 0xbb9   :  { %1638 = vmatprep.subr.mxu1 %v1604_v59  ;;  %v1800_v59 = vld [vmem:[%s18512_s12 + $0xd8] sm:$0xff] }
 0xbba   :  { %1639 = vmatpush1.msra.mxu1 %v1603_v60  ;;  %v1798_v60 = vld [vmem:[%s18512_s12 + $0xc8] sm:$0xff] }
 0xbbb   :  { %1640 = vmatprep.subr.mxu1 %v1601_v61  ;;  %v1802_v61 = vld [vmem:[%s18512_s12 + $0xe8] sm:$0xff] }
 0xbbc   :  { %1641 = vmatpush1.msra.mxu1 %v1600_v63  ;;  %v1797_v63 = vld [vmem:[%s18512_s12 + $0xc0] sm:$0xff] }
 0xbbd   :  { %1642 = vmatprep.subr.mxu1 %v1598_v0  ;;  %v1795_v0 = vld [vmem:[%s18512_s12 + $0xb0] sm:$0xff] }
 0xbbe   :  { %1643 = vmatpush1.msra.mxu1 %v1597_v1  ;;  %v1799_v1 = vld [vmem:[%s18512_s12 + $0xd0] sm:$0xff] }
 0xbbf   :  { %1644 = vmatprep.subr.mxu1 %v1595_v3  ;;  %v1794_v3 = vld [vmem:[%s18512_s12 + $0xa8] sm:$0xff] }
 0xbc0   :  { %1645 = vmatpush1.msra.mxu1 %v1594_v4  ;;  %v1792_v4 = vld [vmem:[%s18512_s12 + $0x98] sm:$0xff] }
 0xbc1   :  { %1646 = vmatprep.subr.mxu1 %v1592_v5  ;;  %v1796_v5 = vld [vmem:[%s18512_s12 + $0xb8] sm:$0xff] }
 0xbc2   :  { %1647 = vmatpush1.msra.mxu1 %v1591_v6  ;;  %v1791_v6 = vld [vmem:[%s18512_s12 + $0x90] sm:$0xff] }
 0xbc3   :  { %1648 = vmatprep.subr.mxu1 %v1589_v7  ;;  %v1789_v7 = vld [vmem:[%s18512_s12 + $0x80] sm:$0xff] }
 0xbc4   :  { %1649 = vmatpush1.msra.mxu1 %v1588_v8  ;;  %v1793_v8 = vld [vmem:[%s18512_s12 + $0xa0] sm:$0xff] }
 0xbc5   :  { %1650 = vmatprep.subr.mxu1 %v1586_v9  ;;  %v1788_v9 = vld [vmem:[%s18512_s12 + $0x78] sm:$0xff] }
 0xbc6   :  { %1651 = vmatpush1.msra.mxu1 %v1585_v10  ;;  %v1786_v10 = vld [vmem:[%s18512_s12 + $0x68] sm:$0xff] }
 0xbc7   :  { %1652 = vmatprep.subr.mxu1 %v1583_v11  ;;  %v1790_v11 = vld [vmem:[%s18512_s12 + $0x88] sm:$0xff] }
 0xbc8   :  { %1653 = vmatpush1.msra.mxu1 %v1582_v12  ;;  %v1785_v12 = vld [vmem:[%s18512_s12 + $0x60] sm:$0xff] }
 0xbc9   :  { %1654 = vmatprep.subr.mxu1 %v1580_v13  ;;  %v1783_v13 = vld [vmem:[%s18512_s12 + $0x50] sm:$0xff] }
 0xbca   :  { %1655 = vmatpush1.msra.mxu1 %v1579_v14  ;;  %v1787_v14 = vld [vmem:[%s18512_s12 + $0x70] sm:$0xff] }
 0xbcb   :  { %1656 = vmatprep.subr.mxu1 %v1577_v17  ;;  %v1782_v17 = vld [vmem:[%s18512_s12 + $0x48] sm:$0xff] }
 0xbcc   :  { %1657 = vmatpush1.msra.mxu1 %v1576_v18  ;;  %v1780_v18 = vld [vmem:[%s18512_s12 + $0x38] sm:$0xff] }
 0xbcd   :  { %1658 = vmatprep.subr.mxu1 %v1574_v20  ;;  %v1777_v20 = vld [vmem:[%s18512_s12 + $0x20] sm:$0xff] }
 0xbce   :  { %1659 = vmatpush1.msra.mxu1 %v1573_v22  ;;  %v1776_v22 = vld [vmem:[%s18512_s12 + $0x18] sm:$0xff] }
 0xbcf   :  { %1660 = vmatprep.subr.mxu1 %v1571_v23  ;;  %v1774_v23 = vld [vmem:[%s18512_s12 + $0x8] sm:$0xff] }
 0xbd0   :  { %1661 = vmatpush1.msra.mxu1 %v1570_v26  ;;  %v1773_v26 = vld [vmem:[%s18512_s12] sm:$0xff] }
 0xbd1   :  { %1662 = vmatprep.subr.mxu1 %v1568_v27  ;;  %v1775_v27 = vld [vmem:[%s18512_s12 + $0x10] sm:$0xff] }
 0xbd2   :  { %v1560_v19 = vpop.f32.mrf.mxu0  ;;  %1663 = vmatpush1.msra.mxu1 %v1567_v29  ;;  %v2014_v29 = vld [vmem:[%s18515_s15 + $0x70] sm:$0xff] }
 0xbd3   :  { %1838 = vmatprep.subr.mxu1 %v1819_v31  ;;  %v2012_v31 = vld [vmem:[%s18515_s15 + $0x60] sm:$0xff] }
 0xbd4   :  { %v9993_v33 = vpop.f32.mrf.mxu0 }
 0xbd5   :  { %v1779_v33 = vld [vmem:[%s18512_s12 + $0x30] sm:$0xff] }
 0xc73   :  { %v1490_v32 = vpop.f32.mrf.mxu1 }
 0xc74   :  { %v1561_v36 = vadd.f32 %v1560_v19, %v1490_v32  ;;  %v1784_v19 = vld [vmem:[%s18512_s12 + $0x58] sm:$0xff] }
 0xc75   :  { %v9958_v38 = vpop.f32.mrf.mxu1  ;;  %v2011_v32 = vld [vmem:[%s18515_s15 + $0x58] sm:$0xff] }
 0xc76   :  { %v1565_v34 = vadd.f32 %v1564_v35, %v1561_v36  ;;  %v2010_v35 = vld [vmem:[%s18515_s15 + $0x50] sm:$0xff]  ;;  %v2009_v36 = vld [vmem:[%s18515_s15 + $0x48] sm:$0xff]  ;;  %v2008_v38 = vld [vmem:[%s18515_s15 + $0x40] sm:$0xff] }
 0xc78   :  { %v1566_v40 = vmax.f32 %v1565_v34, 0.0  ;;  %v2007_v34 = vld [vmem:[%s18515_s15 + $0x38] sm:$0xff] }
 0xc7a   :  { %1697 = vmatmul.mubr.f32.vlgmr.msra.gmra.mxu1 %v1566_v40  ;;  %10027 = vmatmul.mubr.f32.vlgmr.msra.gmra.mxu0 %v1566_v40  ;;  %v2006_v40 = vld [vmem:[%s18515_s15 + $0x30] sm:$0xff] }
 0xc7b   :  { %1839 = vmatpush1.msra.mxu1 %v1818_v25  ;;  %1902 = vmatprep.mubr.f32.mxu1 %v12041_v2  ;;  %v2005_v25 = vld [vmem:[%s18515_s15 + $0x28] sm:$0xff] }
 0xc7c   :  { %1840 = vmatprep.subr.mxu1 %v1816_v41  ;;  %10030 = vmatpush3.msra.mxu0 %v1820_v42  ;;  %v2004_v41 = vld [vmem:[%s18515_s15 + $0x20] sm:$0xff]  ;;  %v2003_v42 = vld [vmem:[%s18515_s15 + $0x18] sm:$0xff] }
 0xc7d   :  { %1841 = vmatpush1.msra.mxu1 %v1815_v43  ;;  %10031 = vmatprep.subr.mxu0 %v12041_v2  ;;  %v2002_v43 = vld [vmem:[%s18515_s15 + $0x10] sm:$0xff] }
 0xc7e   :  { %1842 = vmatprep.subr.mxu1 %v1813_v44  ;;  %10032 = vmatpush3.msra.mxu0 %v1817_v46  ;;  %v2001_v44 = vld [vmem:[%s18515_s15 + $0x8] sm:$0xff]  ;;  %v2000_v46 = vld [vmem:[%s18515_s15] sm:$0xff] }
 0xc7f   :  { %1843 = vmatpush1.msra.mxu1 %v1812_v47  ;;  %10033 = vmatprep.subr.mxu0 %v12041_v2 }
 0xc80   :  { %1844 = vmatprep.subr.mxu1 %v1810_v48  ;;  %10034 = vmatpush3.msra.mxu0 %v1814_v49  ;;  %v1615_v49 = vld [vmem:[%s18513_s13] sm:$0x7] }
 0xc81   :  { %1845 = vmatpush1.msra.mxu1 %v1809_v50  ;;  %10035 = vmatprep.subr.mxu0 %v12041_v2 }
 0xc82   :  { %1846 = vmatprep.subr.mxu1 %v1807_v51  ;;  %10036 = vmatpush3.msra.mxu0 %v1811_v52  ;;  %v1821_v51 = vld [vmem:[%s18514_s14] sm:$0x7]  ;;  %v1620_v52 = vrot.slane %v1615_v49, %v12904_v39 }
 0xc83   :  { %1847 = vmatpush1.msra.mxu1 %v1806_v53  ;;  %10037 = vmatprep.subr.mxu0 %v12041_v2  ;;  %v1826_v53 = vrot.slane %v1821_v51, %v12904_v39 }
 0xc84   :  { %1848 = vmatprep.subr.mxu1 %v1804_v54  ;;  %10038 = vmatpush3.msra.mxu0 %v1808_v55 }
 0xc85   :  { %1849 = vmatpush1.msra.mxu1 %v1803_v56  ;;  %10039 = vmatprep.subr.mxu0 %v12041_v2 }
 0xc86   :  { %1850 = vmatprep.subr.mxu1 %v1801_v57  ;;  %10040 = vmatpush3.msra.mxu0 %v1805_v58  ;;  %v1830_v58 = vrot.slane %v1821_v51, %v12914_v45 }
 0xc87   :  { %1851 = vmatpush1.msra.mxu1 %v1800_v59  ;;  %10041 = vmatprep.subr.mxu0 %v12041_v2 }
 0xc88   :  { %1852 = vmatprep.subr.mxu1 %v1798_v60  ;;  %10042 = vmatpush3.msra.mxu0 %v1802_v61  ;;  %v1624_v61 = vrot.slane %v1615_v49, %v12914_v45 }
 0xc89   :  { %1853 = vmatpush1.msra.mxu1 %v1797_v63  ;;  %10043 = vmatprep.subr.mxu0 %v12041_v2 }
 0xc8a   :  { %1854 = vmatprep.subr.mxu1 %v1795_v0  ;;  %10044 = vmatpush3.msra.mxu0 %v1799_v1 }
 0xc8b   :  { %1855 = vmatpush1.msra.mxu1 %v1794_v3  ;;  %10045 = vmatprep.subr.mxu0 %v12041_v2 }
 0xc8c   :  { %1856 = vmatprep.subr.mxu1 %v1792_v4  ;;  %10046 = vmatpush3.msra.mxu0 %v1796_v5 }
 0xc8d   :  { %1857 = vmatpush1.msra.mxu1 %v1791_v6  ;;  %10047 = vmatprep.subr.mxu0 %v12041_v2 }
 0xc8e   :  { %1858 = vmatprep.subr.mxu1 %v1789_v7  ;;  %10048 = vmatpush3.msra.mxu0 %v1793_v8 }
 0xc8f   :  { %1859 = vmatpush1.msra.mxu1 %v1788_v9  ;;  %10049 = vmatprep.subr.mxu0 %v12041_v2  ;;  %v1834_v9 = vrot.slane %v1821_v51, %v12918_v62 }
 0xc90   :  { %1860 = vmatprep.subr.mxu1 %v1786_v10  ;;  %10050 = vmatpush3.msra.mxu0 %v1790_v11  ;;  %v1628_v11 = vrot.slane %v1615_v49, %v12918_v62 }
 0xc91   :  { %1861 = vmatpush1.msra.mxu1 %v1785_v12  ;;  %10051 = vmatprep.subr.mxu0 %v12041_v2 }
 0xc92   :  { %1862 = vmatprep.subr.mxu1 %v1783_v13  ;;  %10052 = vmatpush3.msra.mxu0 %v1787_v14 }
 0xc93   :  { %1863 = vmatpush1.msra.mxu1 %v1782_v17  ;;  %10053 = vmatprep.subr.mxu0 %v12041_v2 }
 0xc94   :  { %1864 = vmatprep.subr.mxu1 %v1780_v18  ;;  %10054 = vmatpush3.msra.mxu0 %v1784_v19 }
 0xc95   :  { %1865 = vmatpush1.msra.mxu1 %v1779_v33  ;;  %10055 = vmatprep.subr.mxu0 %v12041_v2 }
 0xc96   :  { %1866 = vmatprep.subr.mxu1 %v1777_v20  ;;  %10056 = vmatpush3.msra.mxu0 %v1781_v21 }
 0xc97   :  { %1867 = vmatpush1.msra.mxu1 %v1776_v22  ;;  %10057 = vmatprep.subr.mxu0 %v12041_v2 }
 0xc98   :  { %1868 = vmatprep.subr.mxu1 %v1774_v23  ;;  %10058 = vmatpush3.msra.mxu0 %v1778_v24 }
 0xc99   :  { %1869 = vmatpush1.msra.mxu1 %v1773_v26  ;;  %10059 = vmatprep.subr.mxu0 %v12041_v2  ;;  %v2016_v26 = vld [vmem:[%s18516_s16] sm:$0x1] }
 0xc9a   :  { %1903 = vmatmul.mubr.f32.vlgmr.msra.gmra.mxu1 %v12925_v15  ;;  %10060 = vmatpush3.msra.mxu0 %v1775_v27 }
 0xc9b   :  { %10061 = vmatprep.mubr.msk.f32.mxu0 %vm12042_vm0, %v12041_v2  ;;  %10064 = vmatprep.subr.mxu1 %v12041_v2 }
 0xc9c   :  { %10062 = vmatmul.mubr.f32.vlgmr.msra.gmra.mxu0 %v12925_v15  ;;  %10096 = vmatprep.mubr.msk.f32.mxu1 %vm12042_vm0, %v12041_v2 }
 0xc9d   :  { %10065 = vmatpush3.msra.mxu1 %v2015_v28 }
 0xc9e   :  { %10066 = vmatprep.subr.mxu1 %v12041_v2 }
 0xc9f   :  { %10067 = vmatpush3.msra.mxu1 %v2014_v29 }
 0xca0   :  { %10068 = vmatprep.subr.mxu1 %v12041_v2 }
 0xca1   :  { %10069 = vmatpush3.msra.mxu1 %v2013_v30 }
 0xca2   :  { %10070 = vmatprep.subr.mxu1 %v12041_v2 }
 0xca3   :  { %10071 = vmatpush3.msra.mxu1 %v2012_v31 }
 0xca4   :  { %10072 = vmatprep.subr.mxu1 %v12041_v2 }
 0xca5   :  { %10073 = vmatpush3.msra.mxu1 %v2011_v32 }
 0xca6   :  { %10074 = vmatprep.subr.mxu1 %v12041_v2 }
 0xca7   :  { %10075 = vmatpush3.msra.mxu1 %v2010_v35 }
 0xca8   :  { %10076 = vmatprep.subr.mxu1 %v12041_v2 }
 0xca9   :  { %10077 = vmatpush3.msra.mxu1 %v2009_v36 }
 0xcaa   :  { %10078 = vmatprep.subr.mxu1 %v12041_v2 }
 0xcab   :  { %10079 = vmatpush3.msra.mxu1 %v2008_v38 }
 0xcac   :  { %10080 = vmatprep.subr.mxu1 %v12041_v2 }
 0xcad   :  { %10081 = vmatpush3.msra.mxu1 %v2007_v34 }
 0xcae   :  { %10082 = vmatprep.subr.mxu1 %v12041_v2 }
 0xcaf   :  { %10083 = vmatpush3.msra.mxu1 %v2006_v40 }
 0xcb0   :  { %10084 = vmatprep.subr.mxu1 %v12041_v2 }
 0xcb1   :  { %10085 = vmatpush3.msra.mxu1 %v2005_v25 }
 0xcb2   :  { %10086 = vmatprep.subr.mxu1 %v12041_v2 }
 0xcb3   :  { %10087 = vmatpush3.msra.mxu1 %v2004_v41 }
 0xcb4   :  { %10088 = vmatprep.subr.mxu1 %v12041_v2 }
 0xcb5   :  { %10089 = vmatpush3.msra.mxu1 %v2003_v42 }
 0xcb6   :  { %10090 = vmatprep.subr.mxu1 %v12041_v2 }
 0xcb7   :  { %10091 = vmatpush3.msra.mxu1 %v2002_v43 }
 0xcb8   :  { %10092 = vmatprep.subr.mxu1 %v12041_v2 }
 0xcb9   :  { %10093 = vmatpush3.msra.mxu1 %v2001_v44 }
 0xcba   :  { %10094 = vmatprep.subr.mxu1 %v12041_v2 }
 0xcbb   :  { %10095 = vmatpush3.msra.mxu1 %v2000_v46 }
 0xd3a   :  { %v1769_v47 = vpop.f32.mrf.mxu0  ;;  %v1698_v50 = vpop.f32.mrf.mxu1 }
 0xd3b   :  { %v1699_v56 = vadd.f32 %v1698_v50, %v1620_v52  ;;  %v1770_v17 = vadd.f32 %v1769_v47, %v1628_v11 }
 0xd3c   :  { %v10028_v48 = vpop.f32.mrf.mxu0  ;;  %v1700_v54 = vpop.f32.mrf.mxu1 }
 0xd3d   :  { %v1701_v4 = vadd.f32 %v1700_v54, %v1624_v61 }
 0xd5a   :  { %v1904_v55 = vpop.f32.mrf.mxu1 }
 0xd5b   :  { %v1905_v57 = vadd.f32 %v1904_v55, %v1826_v53 }
 0xd5c   :  { %v1906_v59 = vpop.f32.mrf.mxu1  ;;  %v1975_v60 = vpop.f32.mrf.mxu0 }
 0xd5d   :  { %v1979_v63 = vadd.f32 %v1905_v57, %v1699_v56  ;;  %v1907_v3 = vadd.f32 %v1906_v59, %v1830_v58  ;;  %v1976_v13 = vadd.f32 %v1975_v60, %v1834_v9 }
 0xd5e   :  { %v10063_v0 = vpop.f32.mrf.mxu0 }
 0xd5f   :  { %v8418_v1 = vmul.f32 -1.442695, %v1979_v63  ;;  %v1986_v5 = vadd.f32 %v1907_v3, %v1701_v4 }
 0xd61   :  { %11825 = vpow2.f32 %v8418_v1  ;;  %v8419_v6 = vmul.f32 -1.442695, %v1986_v5 }
 0xd63   :  { %11827 = vpow2.f32 %v8419_v6 }
 0xd6e   :  { %v11826_v7 = vpop.eup %11825 }
 0xd6f   :  { %v1983_v8 = vadd.f32 1.0, %v11826_v7 }
 0xd70   :  { %v11828_v10 = vpop.eup %11827 }
 0xd71   :  { %11829 = vrcp.f32 %v1983_v8  ;;  %v1990_v12 = vadd.f32 1.0, %v11828_v10 }
 0xd73   :  { %11831 = vrcp.f32 %v1990_v12 }
 0xd7e   :  { %v11830_v14 = vpop.eup %11829 }
 0xd7f   :  { %v1993_v18 = vmul.f32 %v11830_v14, %v1976_v13 }
 0xd80   :  { %v11832_v33 = vpop.eup %11831 }
 0xd81   :  { %v1994_v19 = vadd.f32 %v1993_v18, %v1770_v17  ;;  %v1996_v20 = vsub.f32 1.0, %v11832_v33  ;;  %v1998_v23 = vmul.f32 %v11832_v33, %v12925_v15 }
 0xd83   :  { %11833 = vtanh.f32 %v1994_v19 }
 0xd90   :  { %v11834_v21 = vpop.eup %11833 }
 0xd91   :  { %v1997_v22 = vmul.f32 %v11834_v21, %v1996_v20 }
 0xd93   :  { %v13710_v24 = vadd.f32 %v1998_v23, %v1997_v22 }
 0xd95   :  { %10097 = vmatmul.mubr.f32.vlgmr.msra.gmra.mxu1 %v13710_v24 }
 0xe55   :  { %v2083_v27 = vpop.f32.mrf.mxu1 }
 0xe56   :  { %v2084_v28 = vadd.f32 %v2083_v27, %v2016_v26 }
 0xe57   :  { %v10098_v29 = vpop.f32.mrf.mxu1 }
 0xe58   :  { %v2087_v30 = vsel %vm264_vm1, %v2084_v28, -inf }
 0xe59   :  { %2088 = vmax.xlane.f32.xlu1 %v2087_v30 }
 0xee2   :  { %v2089_v31 = vpop.xlane.xlu1 %2088 }
 0xee3   :  { %v2090_v32 = vsub.f32 %v2084_v28, %v2089_v31 }
 0xee5   :  { %v2091_v35 = vmul.f32 1.442695, %v2090_v32 }
 0xee7   :  { %11835 = vpow2.f32 %v2091_v35 }
 0xef4   :  { %v11836_v36 = vpop.eup %11835 }
 0xef5   :  { %v2093_v38 = vsel %vm264_vm1, %v11836_v36, 0.0 }
 0xef6   :  { %2094 = vadd.xlane.f32.xlu1 %v2093_v38 }
 0xf7f   :  { %v2095_v34 = vpop.xlane.xlu1 %2094 }
 0xf80   :  { %11837 = vlog2.f32 %v2095_v34 }
 0xf8d   :  { %v11838_v40 = vpop.eup %11837 }
 0xf8e   :  { %v2097_v25 = vmul.f32 0.6931472, %v11838_v40 }
 0xf8f   :  { %2111 = sbr.rel (%p8420_p0) target bundleno = 4479 (0x117f), region = 85 }
 0xf90   :  { %v2098_v41 = vsub.f32 %v2090_v32, %v2097_v25 }
 0xf92   :  { %v2103_v42 = vsel %vm13224_vm7, %v2098_v41, 0.0 }
 0xf93   :  { %2104 = vst [vmem:[#allocation8 + $0x1] sm:$0x1] %v2103_v42 }
 0xf94   :  { %v2114_v43 = vsel %vm264_vm1, %v2098_v41, -inf  ;;  %v2113_v44 = vand.u32 127, %v587_v37 }
 0xf95   :  { %2115 = vmax.xlane.f32.xlu0 %v2114_v43 }
0x101e   :  { %v2116_v46 = vpop.xlane.xlu0 %2115 }
0x101f   :  { %vm2117_vm8 = vcmp.eq.f32.partialorder %v2098_v41, %v2116_v46 }
0x1020   :  { %v2118_v47 = vsel %vm2117_vm8, %v2113_v44, 128 }
0x1021   :  { %v2119_v48 = vsel %vm264_vm1, %v2118_v47, 2147483647 }
0x1022   :  { %v2121_v49 = vshra.s32 %v2119_v48, 16  ;;  %v2120_v51 = vand.u32 65535, %v2119_v48 }
0x1024   :  { %v2123_v50 = vcvt.s32.f32 %v2121_v49  ;;  %v2122_v53 = vcvt.s32.f32 %v2120_v51 }
0x1026   :  { %2124 = vmin.xlane.f32.xlu0 %v2123_v50 }
0x10af   :  { %v2125_v52 = vpop.xlane.xlu0 %2124 }
0x10b0   :  { %vm2126_vm9 = vcmp.eq.f32.partialorder %v2123_v50, %v2125_v52  ;;  %v2131_v55 = vcvt.f32.s32 %v2125_v52 }
0x10b1   :  { %v2127_v54 = vsel %vm2126_vm9, %v2122_v53, inf }
0x10b2   :  { %2128 = vmin.xlane.f32.xlu1 %v2127_v54  ;;  %v2132_v57 = vshll.u32 %v2131_v55, 16 }
0x113b   :  { %v2129_v56 = vpop.xlane.xlu1 %2128 }
0x113c   :  { %v2130_v58 = vcvt.f32.s32 %v2129_v56 }
0x113e   :  { %v2133_v59 = vadd.s32 %v2132_v57, %v2130_v58 }
0x1140   :  { %v2134_v60 = vrot.slane %v2133_v59, 4 }
0x1142   :  { %vm2135_vm10 = vcmp.lt.s32.totalorder %v2133_v59, %v2134_v60 }
0x1143   :  { %v2136_v61 = vsel %vm2135_vm10, %v2133_v59, %v2134_v60 }
0x1144   :  { %v2137_v63 = vrot.slane %v2136_v61, 2 }
0x1146   :  { %vm2138_vm11 = vcmp.lt.s32.totalorder %v2136_v61, %v2137_v63 }
0x1147   :  { %v2139_v0 = vsel %vm2138_vm11, %v2136_v61, %v2137_v63 }
0x1148   :  { %v2140_v1 = vrot.slane %v2139_v0, 1 }
0x114a   :  { %vm2141_vm12 = vcmp.lt.s32.totalorder %v2139_v0, %v2140_v1 }
0x114b   :  { %v2142_v3 = vsel %vm2141_vm12, %v2139_v0, %v2140_v1 }
0x114c   :  { %11781 = vpush %v2142_v3 }
0x117d   :  { %s11782_s24 = spop %11781 }
0x117e   :  { %2144 = sst [smem:[#allocation2]] %s11782_s24 }
0x117f PF:  { %s13724_s26 = sld [smem:[#allocation6 + $0x2]]  ;;  %10099 = vmatprep.subr.mxu0 %v12041_v2  ;;  %10134 = vmatprep.subr.mxu1 %v12041_v2  ;;  %v2188_v4 = vld [vmem:[%s18506_s6 + $0x78] sm:$0xff]  ;;  %v2187_v6 = vld [vmem:[%s18506_s6 + $0x70] sm:$0xff]  ;;  %v2186_v8 = vld [vmem:[%s18506_s6 + $0x68] sm:$0xff]  ;;  %v13864_v41 = vsel %vm13224_vm7, %v13710_v24, %v12925_v15  ;;  %s2148_s0 = ssub.s32 1, %s12937_s25 }
0x1180   :  { %v2172_v5 = vld [vmem:[%s18505_s5 + $0x78] sm:$0xff]  ;;  %10100 = vmatpush3.msra.mxu0 %v2188_v4  ;;  %v2171_v7 = vld [vmem:[%s18505_s5 + $0x70] sm:$0xff]  ;;  %v2170_v9 = vld [vmem:[%s18505_s5 + $0x68] sm:$0xff]  ;;  %s8422_s3 = sld [smem:[#allocation3 + $0x2]]  ;;  %10131 = vmatprep.mubr.msk.f32.mxu0 %vm12042_vm0, %v12041_v2 }
0x1181   :  { %10135 = vmatpush3.msra.mxu1 %v2172_v5  ;;  %10101 = vmatprep.subr.mxu0 %v12041_v2  ;;  %v2185_v10 = vld [vmem:[%s18506_s6 + $0x60] sm:$0xff]  ;;  %v2184_v12 = vld [vmem:[%s18506_s6 + $0x58] sm:$0xff]  ;;  %s13764_s2 = sld [smem:[#allocation2]]  ;;  %v2183_v14 = vld [vmem:[%s18506_s6 + $0x50] sm:$0xff] }
0x1182   :  { %10136 = vmatprep.subr.mxu1 %v12041_v2  ;;  %10102 = vmatpush3.msra.mxu0 %v2187_v6  ;;  %v2169_v11 = vld [vmem:[%s18505_s5 + $0x60] sm:$0xff]  ;;  %v2168_v13 = vld [vmem:[%s18505_s5 + $0x58] sm:$0xff]  ;;  %v2167_v17 = vld [vmem:[%s18505_s5 + $0x50] sm:$0xff]  ;;  %s18540_s30 = sld [smem:[#allocation19_spill]] }
0x1183   :  { %10137 = vmatpush3.msra.mxu1 %v2171_v7  ;;  %10103 = vmatprep.subr.mxu0 %v12041_v2  ;;  %v2182_v18 = vld [vmem:[%s18506_s6 + $0x48] sm:$0xff]  ;;  %v2181_v33 = vld [vmem:[%s18506_s6 + $0x40] sm:$0xff]  ;;  %v2180_v21 = vld [vmem:[%s18506_s6 + $0x38] sm:$0xff] }
0x1184   :  { %10138 = vmatprep.subr.mxu1 %v12041_v2  ;;  %10104 = vmatpush3.msra.mxu0 %v2186_v8  ;;  %v2166_v19 = vld [vmem:[%s18505_s5 + $0x48] sm:$0xff]  ;;  %v2165_v20 = vld [vmem:[%s18505_s5 + $0x40] sm:$0xff]  ;;  %v2164_v22 = vld [vmem:[%s18505_s5 + $0x38] sm:$0xff] }
0x1185   :  { %10139 = vmatpush3.msra.mxu1 %v2170_v9  ;;  %10105 = vmatprep.subr.mxu0 %v12041_v2  ;;  %v2179_v23 = vld [vmem:[%s18506_s6 + $0x30] sm:$0xff]  ;;  %v2178_v27 = vld [vmem:[%s18506_s6 + $0x28] sm:$0xff]  ;;  %v2177_v29 = vld [vmem:[%s18506_s6 + $0x20] sm:$0xff]  ;;  %p8425_p4 = scmp.ne.s32.totalorder %s13724_s26, 0 }
0x1186   :  { %10140 = vmatprep.subr.mxu1 %v12041_v2  ;;  %10106 = vmatpush3.msra.mxu0 %v2185_v10  ;;  %3143 = sst [smem:[#allocation2]] %s8422_s3  ;;  %v2163_v26 = vld [vmem:[%s18505_s5 + $0x30] sm:$0xff]  ;;  %v2162_v28 = vld [vmem:[%s18505_s5 + $0x28] sm:$0xff]  ;;  %v2161_v30 = vld [vmem:[%s18505_s5 + $0x20] sm:$0xff] }
0x1187   :  { %10141 = vmatpush3.msra.mxu1 %v2169_v11  ;;  %10107 = vmatprep.subr.mxu0 %v12041_v2  ;;  %v2176_v31 = vld [vmem:[%s18506_s6 + $0x18] sm:$0xff]  ;;  %v2175_v35 = vld [vmem:[%s18506_s6 + $0x10] sm:$0xff]  ;;  %v2174_v38 = vld [vmem:[%s18506_s6 + $0x8] sm:$0xff]  ;;  %s2155_s27 = scalar_lea.vmem %s18504_s4, %s13764_s2  ;;  %p2146_p1 = scmp.eq.s32.totalorder %s13764_s2, 1 }
0x1188   :  { %10142 = vmatprep.subr.mxu1 %v12041_v2  ;;  %10108 = vmatpush3.msra.mxu0 %v2184_v12  ;;  %v2160_v32 = vld [vmem:[%s18505_s5 + $0x18] sm:$0xff]  ;;  %v2159_v36 = vld [vmem:[%s18505_s5 + $0x10] sm:$0xff]  ;;  %v2158_v34 = vld [vmem:[%s18505_s5 + $0x8] sm:$0xff] }
0x1189   :  { %10143 = vmatpush3.msra.mxu1 %v2168_v13  ;;  %10109 = vmatprep.subr.mxu0 %v12041_v2  ;;  %v2173_v40 = vld [vmem:[%s18506_s6] sm:$0xff]  ;;  %v2357_v49 = vld [vmem:[%s18540_s30 + $0x78] sm:$0xff]  ;;  %v2356_v50 = vld [vmem:[%s18540_s30 + $0x70] sm:$0xff]  ;;  %s2147_s21 = scalar_select %p2146_p1, 1, 0 }
0x118a   :  { %10144 = vmatprep.subr.mxu1 %v12041_v2  ;;  %10110 = vmatpush3.msra.mxu0 %v2183_v14  ;;  %v2157_v25 = vld [vmem:[%s18505_s5] sm:$0xff]  ;;  %v2355_v51 = vld [vmem:[%s18540_s30 + $0x68] sm:$0xff]  ;;  %v2353_v53 = vld [vmem:[%s18540_s30 + $0x58] sm:$0xff] }
0x118b   :  { %10145 = vmatpush3.msra.mxu1 %v2167_v17  ;;  %10111 = vmatprep.subr.mxu0 %v12041_v2  ;;  %v13866_v42 = vld [vmem:[%s2155_s27] sm:$0x1]  ;;  %v2352_v54 = vld [vmem:[%s18540_s30 + $0x50] sm:$0xff]  ;;  %v2351_v55 = vld [vmem:[%s18540_s30 + $0x48] sm:$0xff]  ;;  %s2149_s22 = smul.u32 %s2148_s0, %s2147_s21 }
0x118c   :  { %10146 = vmatprep.subr.mxu1 %v12041_v2  ;;  %10112 = vmatpush3.msra.mxu0 %v2182_v18  ;;  %v2329_v24 = vld [vmem:[%s18507_s7] sm:$0x1]  ;;  %v2349_v63 = vld [vmem:[%s18540_s30 + $0x38] sm:$0xff]  ;;  %v2348_v0 = vld [vmem:[%s18540_s30 + $0x30] sm:$0xff] }
0x118d   :  { %10147 = vmatpush3.msra.mxu1 %v2166_v19  ;;  %10113 = vmatprep.subr.mxu0 %v12041_v2  ;;  %v2354_v52 = vld [vmem:[%s18540_s30 + $0x60] sm:$0xff]  ;;  %v2347_v1 = vld [vmem:[%s18540_s30 + $0x28] sm:$0xff]  ;;  %v2345_v4 = vld [vmem:[%s18540_s30 + $0x18] sm:$0xff]  ;;  %p2150_p2 = scmp.gt.s32.totalorder %s18559_s20, %s2149_s22 }
0x118e   :  { %10148 = vmatprep.subr.mxu1 %v12041_v2  ;;  %10114 = vmatpush3.msra.mxu0 %v2181_v33  ;;  %v2350_v56 = vld [vmem:[%s18540_s30 + $0x40] sm:$0xff]  ;;  %v2344_v5 = vld [vmem:[%s18540_s30 + $0x10] sm:$0xff]  ;;  %v2343_v6 = vld [vmem:[%s18540_s30 + $0x8] sm:$0xff] }
0x118f   :  { %10149 = vmatpush3.msra.mxu1 %v2165_v20  ;;  %10115 = vmatprep.subr.mxu0 %v12041_v2  ;;  %v2346_v3 = vld [vmem:[%s18540_s30 + $0x20] sm:$0xff]  ;;  %v2459_v8 = vld [vmem:[%s18509_s9 + $0x78] sm:$0xff]  ;;  %v2458_v9 = vld [vmem:[%s18509_s9 + $0x70] sm:$0xff]  ;;  %s18561_s20 = smov (!%p2150_p2, %s18559_s20), %s2149_s22 }
0x1190   :  { %10150 = vmatprep.subr.mxu1 %v12041_v2  ;;  %10116 = vmatpush3.msra.mxu0 %v2180_v21  ;;  %v2342_v7 = vld [vmem:[%s18540_s30] sm:$0xff]  ;;  %v2457_v10 = vld [vmem:[%s18509_s9 + $0x68] sm:$0xff]  ;;  %v2455_v12 = vld [vmem:[%s18509_s9 + $0x58] sm:$0xff]  ;;  %p3135_p3 = scmp.eq.s32.totalorder %s18561_s20, 0 }
0x1191   :  { %10151 = vmatpush3.msra.mxu1 %v2164_v22  ;;  %10117 = vmatprep.subr.mxu0 %v12041_v2  ;;  %v2456_v11 = vld [vmem:[%s18509_s9 + $0x60] sm:$0xff]  ;;  %v2454_v13 = vld [vmem:[%s18509_s9 + $0x50] sm:$0xff]  ;;  %v2453_v14 = vld [vmem:[%s18509_s9 + $0x48] sm:$0xff] }
0x1192   :  { %10152 = vmatprep.subr.mxu1 %v12041_v2  ;;  %10118 = vmatpush3.msra.mxu0 %v2179_v23  ;;  %v2452_v17 = vld [vmem:[%s18509_s9 + $0x40] sm:$0xff]  ;;  %v2451_v18 = vld [vmem:[%s18509_s9 + $0x38] sm:$0xff]  ;;  %v2450_v19 = vld [vmem:[%s18509_s9 + $0x30] sm:$0xff]  ;;  %s3136_s3 = scalar_select %p3135_p3, 1, 0 }
0x1193   :  { %10153 = vmatpush3.msra.mxu1 %v2163_v26  ;;  %10119 = vmatprep.subr.mxu0 %v12041_v2  ;;  %v2449_v33 = vld [vmem:[%s18509_s9 + $0x28] sm:$0xff]  ;;  %v2448_v20 = vld [vmem:[%s18509_s9 + $0x20] sm:$0xff]  ;;  %v2447_v21 = vld [vmem:[%s18509_s9 + $0x18] sm:$0xff] }
0x1194   :  { %10154 = vmatprep.subr.mxu1 %v12041_v2  ;;  %10120 = vmatpush3.msra.mxu0 %v2178_v27  ;;  %v2446_v22 = vld [vmem:[%s18509_s9 + $0x10] sm:$0xff]  ;;  %v2445_v23 = vld [vmem:[%s18509_s9 + $0x8] sm:$0xff]  ;;  %v3137_v27 = vstv %s3136_s3 }
0x1195   :  { %10155 = vmatpush3.msra.mxu1 %v2162_v28  ;;  %10121 = vmatprep.subr.mxu0 %v12041_v2  ;;  %vm14019_vm13 = vcmp.eq.s32.totalorder %v3137_v27, 1  ;;  %v2616_v27 = vld [vmem:[%s18511_s11 + $0x68] sm:$0xff] }
0x1196   :  { %10156 = vmatprep.subr.mxu1 %v12041_v2  ;;  %10122 = vmatpush3.msra.mxu0 %v2177_v29 }
0x1197   :  { %10157 = vmatpush3.msra.mxu1 %v2161_v30  ;;  %10123 = vmatprep.subr.mxu0 %v12041_v2 }
0x1198   :  { %10158 = vmatprep.subr.mxu1 %v12041_v2  ;;  %10124 = vmatpush3.msra.mxu0 %v2176_v31  ;;  %v2443_v31 = vld [vmem:[%s18508_s8 + $0x78] sm:$0xff] }
0x1199   :  { %10159 = vmatpush3.msra.mxu1 %v2160_v32  ;;  %10125 = vmatprep.subr.mxu0 %v12041_v2  ;;  %v2442_v32 = vld [vmem:[%s18508_s8 + $0x70] sm:$0xff] }
0x119a   :  { %10160 = vmatprep.subr.mxu1 %v12041_v2  ;;  %10126 = vmatpush3.msra.mxu0 %v2175_v35 }
0x119b   :  { %10161 = vmatpush3.msra.mxu1 %v2159_v36  ;;  %10127 = vmatprep.subr.mxu0 %v12041_v2  ;;  %v2441_v36 = vld [vmem:[%s18508_s8 + $0x68] sm:$0xff] }
0x119c   :  { %10162 = vmatprep.subr.mxu1 %v12041_v2  ;;  %10128 = vmatpush3.msra.mxu0 %v2174_v38  ;;  %v2440_v38 = vld [vmem:[%s18508_s8 + $0x60] sm:$0xff] }
0x119d   :  { %10163 = vmatpush3.msra.mxu1 %v2158_v34  ;;  %10129 = vmatprep.subr.mxu0 %v12041_v2  ;;  %v2439_v34 = vld [vmem:[%s18508_s8 + $0x58] sm:$0xff] }
0x119e   :  { %10164 = vmatprep.subr.mxu1 %v12041_v2  ;;  %10130 = vmatpush3.msra.mxu0 %v2173_v40  ;;  %v2438_v40 = vld [vmem:[%s18508_s8 + $0x50] sm:$0xff] }
0x119f   :  { %10165 = vmatpush3.msra.mxu1 %v2157_v25  ;;  %10166 = vmatprep.mubr.msk.f32.mxu1 %vm12042_vm0, %v12041_v2  ;;  %v2437_v25 = vld [vmem:[%s18508_s8 + $0x48] sm:$0xff] }
0x11a0   :  { %10132 = vmatmul.mubr.f32.vlgmr.msra.gmra.mxu0 %v13864_v41  ;;  %10167 = vmatmul.mubr.f32.vlgmr.msra.gmra.mxu1 %v13866_v42 }
0x11a1   :  { %10169 = vmatprep.subr.mxu0 %v12041_v2  ;;  %10201 = vmatprep.mubr.msk.f32.mxu0 %vm12042_vm0, %v12041_v2 }
0x11a2   :  { %10204 = vmatprep.subr.mxu1 %v12041_v2  ;;  %10236 = vmatprep.mubr.msk.f32.mxu1 %vm12042_vm0, %v12041_v2 }
0x11a3   :  { %10170 = vmatpush3.msra.mxu0 %v2357_v49  ;;  %10205 = vmatpush3.msra.mxu1 %v2459_v8  ;;  %v2428_v49 = vld [vmem:[%s18508_s8] sm:$0xff]  ;;  %v2640_v8 = vld [vmem:[%s18511_s11 + $0x128] sm:$0xff] }
0x11a4   :  { %10171 = vmatprep.subr.mxu0 %v12041_v2  ;;  %10206 = vmatprep.subr.mxu1 %v12041_v2 }
0x11a5   :  { %10172 = vmatpush3.msra.mxu0 %v2356_v50  ;;  %10207 = vmatpush3.msra.mxu1 %v2458_v9  ;;  %v2444_v50 = vld [vmem:[%s18509_s9] sm:$0xff] }
0x11a6   :  { %10173 = vmatprep.subr.mxu0 %v12041_v2  ;;  %10208 = vmatprep.subr.mxu1 %v12041_v2  ;;  %v2639_v9 = vld [vmem:[%s18511_s11 + $0x120] sm:$0xff] }
0x11a7   :  { %10174 = vmatpush3.msra.mxu0 %v2355_v51  ;;  %10209 = vmatpush3.msra.mxu1 %v2457_v10  ;;  %v2649_v51 = vld [vmem:[%s18511_s11 + $0x170] sm:$0xff] }
0x11a8   :  { %10175 = vmatprep.subr.mxu0 %v12041_v2  ;;  %10210 = vmatprep.subr.mxu1 %v12041_v2  ;;  %v2637_v10 = vld [vmem:[%s18511_s11 + $0x110] sm:$0xff] }
0x11a9   :  { %10176 = vmatpush3.msra.mxu0 %v2354_v52  ;;  %10211 = vmatpush3.msra.mxu1 %v2456_v11  ;;  %v2650_v52 = vld [vmem:[%s18511_s11 + $0x178] sm:$0xff]  ;;  %v2636_v11 = vld [vmem:[%s18511_s11 + $0x108] sm:$0xff] }
0x11aa   :  { %10177 = vmatprep.subr.mxu0 %v12041_v2  ;;  %10212 = vmatprep.subr.mxu1 %v12041_v2 }
0x11ab   :  { %10178 = vmatpush3.msra.mxu0 %v2353_v53  ;;  %10213 = vmatpush3.msra.mxu1 %v2455_v12  ;;  %v2644_v53 = vld [vmem:[%s18511_s11 + $0x148] sm:$0xff]  ;;  %v2634_v12 = vld [vmem:[%s18511_s11 + $0xf8] sm:$0xff] }
0x11ac   :  { %10179 = vmatprep.subr.mxu0 %v12041_v2  ;;  %10214 = vmatprep.subr.mxu1 %v12041_v2 }
0x11ad   :  { %10180 = vmatpush3.msra.mxu0 %v2352_v54  ;;  %10215 = vmatpush3.msra.mxu1 %v2454_v13  ;;  %v2641_v54 = vld [vmem:[%s18511_s11 + $0x130] sm:$0xff] }
0x11ae   :  { %10181 = vmatprep.subr.mxu0 %v12041_v2  ;;  %10216 = vmatprep.subr.mxu1 %v12041_v2  ;;  %v2633_v13 = vld [vmem:[%s18511_s11 + $0xf0] sm:$0xff] }
0x11af   :  { %10182 = vmatpush3.msra.mxu0 %v2351_v55  ;;  %10217 = vmatpush3.msra.mxu1 %v2453_v14  ;;  %v2638_v55 = vld [vmem:[%s18511_s11 + $0x118] sm:$0xff]  ;;  %v2631_v14 = vld [vmem:[%s18511_s11 + $0xe0] sm:$0xff] }
0x11b0   :  { %10183 = vmatprep.subr.mxu0 %v12041_v2  ;;  %10218 = vmatprep.subr.mxu1 %v12041_v2 }
0x11b1   :  { %10184 = vmatpush3.msra.mxu0 %v2350_v56  ;;  %10219 = vmatpush3.msra.mxu1 %v2452_v17  ;;  %v2635_v56 = vld [vmem:[%s18511_s11 + $0x100] sm:$0xff]  ;;  %v2630_v17 = vld [vmem:[%s18511_s11 + $0xd8] sm:$0xff] }
0x11b2   :  { %10185 = vmatprep.subr.mxu0 %v12041_v2  ;;  %10220 = vmatprep.subr.mxu1 %v12041_v2 }
0x11b3   :  { %10186 = vmatpush3.msra.mxu0 %v2349_v63  ;;  %10221 = vmatpush3.msra.mxu1 %v2451_v18  ;;  %v2617_v63 = vld [vmem:[%s18511_s11 + $0x70] sm:$0xff]  ;;  %v2628_v18 = vld [vmem:[%s18511_s11 + $0xc8] sm:$0xff] }
0x11b4   :  { %10187 = vmatprep.subr.mxu0 %v12041_v2  ;;  %10222 = vmatprep.subr.mxu1 %v12041_v2 }
0x11b5   :  { %10188 = vmatpush3.msra.mxu0 %v2348_v0  ;;  %10223 = vmatpush3.msra.mxu1 %v2450_v19  ;;  %v2648_v0 = vld [vmem:[%s18511_s11 + $0x168] sm:$0xff]  ;;  %v2627_v19 = vld [vmem:[%s18511_s11 + $0xc0] sm:$0xff] }
0x11b6   :  { %10189 = vmatprep.subr.mxu0 %v12041_v2  ;;  %10224 = vmatprep.subr.mxu1 %v12041_v2 }
0x11b7   :  { %10190 = vmatpush3.msra.mxu0 %v2347_v1  ;;  %10225 = vmatpush3.msra.mxu1 %v2449_v33  ;;  %v2625_v33 = vld [vmem:[%s18511_s11 + $0xb0] sm:$0xff] }
0x11b8   :  { %10191 = vmatprep.subr.mxu0 %v12041_v2  ;;  %10226 = vmatprep.subr.mxu1 %v12041_v2 }
0x11b9   :  { %10192 = vmatpush3.msra.mxu0 %v2346_v3  ;;  %10227 = vmatpush3.msra.mxu1 %v2448_v20  ;;  %v2646_v3 = vld [vmem:[%s18511_s11 + $0x158] sm:$0xff]  ;;  %v2624_v20 = vld [vmem:[%s18511_s11 + $0xa8] sm:$0xff] }
0x11ba   :  { %10193 = vmatprep.subr.mxu0 %v12041_v2  ;;  %10228 = vmatprep.subr.mxu1 %v12041_v2 }
0x11bb   :  { %10194 = vmatpush3.msra.mxu0 %v2345_v4  ;;  %10229 = vmatpush3.msra.mxu1 %v2447_v21  ;;  %v2645_v4 = vld [vmem:[%s18511_s11 + $0x150] sm:$0xff]  ;;  %v2622_v21 = vld [vmem:[%s18511_s11 + $0x98] sm:$0xff] }
0x11bc   :  { %10195 = vmatprep.subr.mxu0 %v12041_v2  ;;  %10230 = vmatprep.subr.mxu1 %v12041_v2 }
0x11bd   :  { %10196 = vmatpush3.msra.mxu0 %v2344_v5  ;;  %10231 = vmatpush3.msra.mxu1 %v2446_v22  ;;  %v2621_v22 = vld [vmem:[%s18511_s11 + $0x90] sm:$0xff] }
0x11be   :  { %10197 = vmatprep.subr.mxu0 %v12041_v2  ;;  %10232 = vmatprep.subr.mxu1 %v12041_v2 }
0x11bf   :  { %10198 = vmatpush3.msra.mxu0 %v2343_v6  ;;  %10233 = vmatpush3.msra.mxu1 %v2445_v23  ;;  %v2643_v6 = vld [vmem:[%s18511_s11 + $0x140] sm:$0xff] }
0x11c0   :  { %10199 = vmatprep.subr.mxu0 %v12041_v2  ;;  %10234 = vmatprep.subr.mxu1 %v12041_v2  ;;  %v2619_v23 = vld [vmem:[%s18511_s11 + $0x80] sm:$0xff] }
0x11c1   :  { %10200 = vmatpush3.msra.mxu0 %v2342_v7  ;;  %10235 = vmatpush3.msra.mxu1 %v2444_v50  ;;  %v2642_v7 = vld [vmem:[%s18511_s11 + $0x138] sm:$0xff] }
0x11c2   :  { %10239 = vmatprep.subr.mxu0 %v12041_v2  ;;  %2668 = vmatprep.subr.mxu1 %v2649_v51 }
0x1260   :  { %v2255_v15 = vpop.f32.mrf.mxu0  ;;  %v2325_v16 = vpop.f32.mrf.mxu1 }
0x1261   :  { %v2326_v43 = vadd.f32 %v2325_v16, %v2255_v15  ;;  %v2436_v15 = vld [vmem:[%s18508_s8 + $0x40] sm:$0xff]  ;;  %v2435_v16 = vld [vmem:[%s18508_s8 + $0x38] sm:$0xff] }
0x1262   :  { %v10133_v44 = vpop.f32.mrf.mxu0  ;;  %v10168_v46 = vpop.f32.mrf.mxu1 }
0x1263   :  { %v2330_v47 = vadd.f32 %v2329_v24, %v2326_v43  ;;  %v2434_v24 = vld [vmem:[%s18508_s8 + $0x30] sm:$0xff]  ;;  %v2433_v43 = vld [vmem:[%s18508_s8 + $0x28] sm:$0xff]  ;;  %v2432_v44 = vld [vmem:[%s18508_s8 + $0x20] sm:$0xff] }
0x1264   :  { %v2431_v46 = vld [vmem:[%s18508_s8 + $0x18] sm:$0xff] }
0x1265   :  { %v2331_v48 = vsel %vm264_vm1, %v2330_v47, -inf }
0x1266   :  { %2332 = vmax.xlane.f32.xlu0 %v2331_v48  ;;  %v2429_v48 = vld [vmem:[%s18508_s8 + $0x8] sm:$0xff] }
0x12ef   :  { %v2333_v57 = vpop.xlane.xlu0 %2332 }
0x12f0   :  { %v2334_v58 = vsub.f32 %v2330_v47, %v2333_v57  ;;  %v2430_v47 = vld [vmem:[%s18508_s8 + $0x10] sm:$0xff]  ;;  %v2632_v57 = vld [vmem:[%s18511_s11 + $0xe8] sm:$0xff] }
0x12f2   :  { %v2335_v59 = vmul.f32 1.442695, %v2334_v58  ;;  %v2629_v58 = vld [vmem:[%s18511_s11 + $0xd0] sm:$0xff] }
0x12f4   :  { %11839 = vpow2.f32 %v2335_v59  ;;  %v2626_v59 = vld [vmem:[%s18511_s11 + $0xb8] sm:$0xff] }
0x1301   :  { %v13916_v60 = vpop.eup %11839 }
0x1302   :  { %v2337_v61 = vsel %vm264_vm1, %v13916_v60, 0.0 }
0x1303   :  { %2338 = vadd.xlane.f32.xlu0 %v2337_v61  ;;  %v2620_v61 = vld [vmem:[%s18511_s11 + $0x88] sm:$0xff] }
0x138c   :  { %v2339_v26 = vpop.xlane.xlu0 %2338 }
0x138d   :  { %11841 = vrcp.f32 %v2339_v26  ;;  %v2618_v26 = vld [vmem:[%s18511_s11 + $0x78] sm:$0xff] }
0x139a   :  { %v11842_v28 = vpop.eup %11841 }
0x139b   :  { %v2341_v30 = vmul.f32 %v11842_v28, %v13916_v60  ;;  %v2623_v60 = vld [vmem:[%s18511_s11 + $0xa0] sm:$0xff] }
0x139c   :  { %v2615_v28 = vld [vmem:[%s18511_s11 + $0x60] sm:$0xff] }
0x139d   :  { %10202 = vmatmul.mubr.f32.vlgmr.msra.gmra.mxu0 %v2341_v30  ;;  %v3141_v35 = vsel %vm14019_vm13, %v2341_v30, 0.0  ;;  %v2613_v30 = vld [vmem:[%s18511_s11 + $0x50] sm:$0xff] }
0x139e   :  { %10240 = vmatpush3.msra.mxu0 %v2443_v31  ;;  %10271 = vmatprep.mubr.msk.f32.mxu0 %vm12042_vm0, %v12041_v2  ;;  %3142 = vst [vmem:[#allocation9 + $0x2] sm:$0x1] %v3141_v35  ;;  %v2612_v31 = vld [vmem:[%s18511_s11 + $0x48] sm:$0xff] }
0x139f   :  { %10241 = vmatprep.subr.mxu0 %v12041_v2 }
0x13a0   :  { %10242 = vmatpush3.msra.mxu0 %v2442_v32 }
0x13a1   :  { %10243 = vmatprep.subr.mxu0 %v12041_v2 }
0x13a2   :  { %10244 = vmatpush3.msra.mxu0 %v2441_v36  ;;  %v2610_v36 = vld [vmem:[%s18511_s11 + $0x38] sm:$0xff] }
0x13a3   :  { %10245 = vmatprep.subr.mxu0 %v12041_v2 }
0x13a4   :  { %10246 = vmatpush3.msra.mxu0 %v2440_v38  ;;  %v2614_v38 = vld [vmem:[%s18511_s11 + $0x58] sm:$0xff] }
0x13a5   :  { %10247 = vmatprep.subr.mxu0 %v12041_v2 }
0x13a6   :  { %10248 = vmatpush3.msra.mxu0 %v2439_v34  ;;  %v2609_v34 = vld [vmem:[%s18511_s11 + $0x30] sm:$0xff] }
0x13a7   :  { %10249 = vmatprep.subr.mxu0 %v12041_v2 }
0x13a8   :  { %10250 = vmatpush3.msra.mxu0 %v2438_v40  ;;  %v2607_v40 = vld [vmem:[%s18511_s11 + $0x20] sm:$0xff] }
0x13a9   :  { %10251 = vmatprep.subr.mxu0 %v12041_v2 }
0x13aa   :  { %10252 = vmatpush3.msra.mxu0 %v2437_v25  ;;  %v2611_v25 = vld [vmem:[%s18511_s11 + $0x40] sm:$0xff] }
0x13ab   :  { %10253 = vmatprep.subr.mxu0 %v12041_v2 }
0x13ac   :  { %10254 = vmatpush3.msra.mxu0 %v2436_v15  ;;  %v2606_v15 = vld [vmem:[%s18511_s11 + $0x18] sm:$0xff] }
0x13ad   :  { %10255 = vmatprep.subr.mxu0 %v12041_v2 }
0x13ae   :  { %10256 = vmatpush3.msra.mxu0 %v2435_v16  ;;  %v2604_v16 = vld [vmem:[%s18511_s11 + $0x8] sm:$0xff] }
0x13af   :  { %10257 = vmatprep.subr.mxu0 %v12041_v2 }
0x13b0   :  { %10258 = vmatpush3.msra.mxu0 %v2434_v24  ;;  %v2608_v24 = vld [vmem:[%s18511_s11 + $0x28] sm:$0xff] }
0x13b1   :  { %10259 = vmatprep.subr.mxu0 %v12041_v2 }
0x13b2   :  { %10260 = vmatpush3.msra.mxu0 %v2433_v43  ;;  %v2603_v43 = vld [vmem:[%s18511_s11] sm:$0xff] }
0x13b3   :  { %10261 = vmatprep.subr.mxu0 %v12041_v2 }
0x13b4   :  { %10262 = vmatpush3.msra.mxu0 %v2432_v44  ;;  %v2605_v44 = vld [vmem:[%s18511_s11 + $0x10] sm:$0xff] }
0x13b5   :  { %10263 = vmatprep.subr.mxu0 %v12041_v2 }
0x13b6   :  { %10264 = vmatpush3.msra.mxu0 %v2431_v46  ;;  %v2855_v46 = vld [vmem:[%s18512_s12 + $0x170] sm:$0xff] }
0x13b7   :  { %10265 = vmatprep.subr.mxu0 %v12041_v2 }
0x13b8   :  { %10266 = vmatpush3.msra.mxu0 %v2430_v47 }
0x13b9   :  { %10267 = vmatprep.subr.mxu0 %v12041_v2 }
0x13ba   :  { %10268 = vmatpush3.msra.mxu0 %v2429_v48  ;;  %v2600_v48 = vld [vmem:[%s18510_s10] sm:$0x1] }
0x13bb   :  { %10269 = vmatprep.subr.mxu0 %v12041_v2 }
0x13bc   :  { %10270 = vmatpush3.msra.mxu0 %v2428_v49 }
0x13bd   :  { %10272 = vmatmul.mubr.f32.vlgmr.msra.gmra.mxu0 %v13866_v42  ;;  %10274 = vmatprep.subr.mxu0 %v12041_v2  ;;  %v2647_v42 = vld [vmem:[%s18511_s11 + $0x160] sm:$0xff] }
0x13be   :  { %10306 = vmatprep.mubr.msk.f32.mxu0 %vm12042_vm0, %v12041_v2  ;;  %10275 = vmatpush3.msra.mxu0 %v2650_v52 }
0x13bf   :  { %10276 = vmatprep.subr.mxu0 %v12041_v2 }
0x13c0   :  { %10277 = vmatpush3.msra.mxu0 %v2647_v42  ;;  %v2854_v42 = vld [vmem:[%s18512_s12 + $0x168] sm:$0xff] }
0x13c1   :  { %10278 = vmatprep.subr.mxu0 %v12041_v2 }
0x13c2   :  { %10279 = vmatpush3.msra.mxu0 %v2644_v53  ;;  %v2852_v53 = vld [vmem:[%s18512_s12 + $0x158] sm:$0xff] }
0x13c3   :  { %10280 = vmatprep.subr.mxu0 %v12041_v2 }
0x13c4   :  { %10281 = vmatpush3.msra.mxu0 %v2641_v54  ;;  %v2856_v54 = vld [vmem:[%s18512_s12 + $0x178] sm:$0xff] }
0x13c5   :  { %10282 = vmatprep.subr.mxu0 %v12041_v2 }
0x13c6   :  { %10283 = vmatpush3.msra.mxu0 %v2638_v55  ;;  %v2851_v55 = vld [vmem:[%s18512_s12 + $0x150] sm:$0xff] }
0x13c7   :  { %10284 = vmatprep.subr.mxu0 %v12041_v2 }
0x13c8   :  { %10285 = vmatpush3.msra.mxu0 %v2635_v56  ;;  %v2849_v56 = vld [vmem:[%s18512_s12 + $0x140] sm:$0xff] }
0x13c9   :  { %10286 = vmatprep.subr.mxu0 %v12041_v2 }
0x13ca   :  { %10287 = vmatpush3.msra.mxu0 %v2632_v57  ;;  %v2853_v57 = vld [vmem:[%s18512_s12 + $0x160] sm:$0xff] }
0x13cb   :  { %10288 = vmatprep.subr.mxu0 %v12041_v2 }
0x13cc   :  { %10289 = vmatpush3.msra.mxu0 %v2629_v58  ;;  %v2848_v58 = vld [vmem:[%s18512_s12 + $0x138] sm:$0xff] }
0x13cd   :  { %10290 = vmatprep.subr.mxu0 %v12041_v2 }
0x13ce   :  { %10291 = vmatpush3.msra.mxu0 %v2626_v59  ;;  %v2846_v59 = vld [vmem:[%s18512_s12 + $0x128] sm:$0xff] }
0x13cf   :  { %10292 = vmatprep.subr.mxu0 %v12041_v2 }
0x13d0   :  { %10293 = vmatpush3.msra.mxu0 %v2623_v60  ;;  %v2850_v60 = vld [vmem:[%s18512_s12 + $0x148] sm:$0xff] }
0x13d1   :  { %10294 = vmatprep.subr.mxu0 %v12041_v2 }
0x13d2   :  { %10295 = vmatpush3.msra.mxu0 %v2620_v61  ;;  %v2845_v61 = vld [vmem:[%s18512_s12 + $0x120] sm:$0xff] }
0x13d3   :  { %10296 = vmatprep.subr.mxu0 %v12041_v2 }
0x13d4   :  { %10297 = vmatpush3.msra.mxu0 %v2617_v63  ;;  %v2843_v63 = vld [vmem:[%s18512_s12 + $0x110] sm:$0xff] }
0x13d5   :  { %10298 = vmatprep.subr.mxu0 %v12041_v2 }
0x13d6   :  { %10299 = vmatpush3.msra.mxu0 %v2614_v38  ;;  %v2817_v38 = vld [vmem:[%s18512_s12 + $0x40] sm:$0xff] }
0x13d7   :  { %10300 = vmatprep.subr.mxu0 %v12041_v2 }
0x13d8   :  { %10301 = vmatpush3.msra.mxu0 %v2611_v25  ;;  %v2814_v25 = vld [vmem:[%s18512_s12 + $0x28] sm:$0xff] }
0x13d9   :  { %10302 = vmatprep.subr.mxu0 %v12041_v2 }
0x13da   :  { %10303 = vmatpush3.msra.mxu0 %v2608_v24  ;;  %v3051_v24 = vld [vmem:[%s18515_s15 + $0x78] sm:$0xff] }
0x13db   :  { %10304 = vmatprep.subr.mxu0 %v12041_v2 }
0x13dc   :  { %10305 = vmatpush3.msra.mxu0 %v2605_v44  ;;  %v3049_v44 = vld [vmem:[%s18515_s15 + $0x68] sm:$0xff] }
0x13dd   :  { %10309 = vmatprep.subr.mxu0 %v12041_v2 }
0x145d   :  { %v2424_v1 = vpop.f32.mrf.mxu0 }
0x145e   :  { %10237 = vmatmul.mubr.f32.vlgmr.msra.gmra.mxu1 %v2424_v1  ;;  %v2842_v1 = vld [vmem:[%s18512_s12 + $0x108] sm:$0xff] }
0x145f   :  { %v10203_v5 = vpop.f32.mrf.mxu0  ;;  %2669 = vmatpush1.msra.mxu1 %v2648_v0  ;;  %2732 = vmatprep.mubr.f32.mxu1 %v12041_v2  ;;  %v2847_v0 = vld [vmem:[%s18512_s12 + $0x130] sm:$0xff] }
0x1460   :  { %2670 = vmatprep.subr.mxu1 %v2646_v3  ;;  %v2840_v3 = vld [vmem:[%s18512_s12 + $0xf8] sm:$0xff]  ;;  %v2839_v5 = vld [vmem:[%s18512_s12 + $0xf0] sm:$0xff] }
0x1461   :  { %2671 = vmatpush1.msra.mxu1 %v2645_v4  ;;  %v2844_v4 = vld [vmem:[%s18512_s12 + $0x118] sm:$0xff] }
0x1462   :  { %2672 = vmatprep.subr.mxu1 %v2643_v6  ;;  %v2837_v6 = vld [vmem:[%s18512_s12 + $0xe0] sm:$0xff] }
0x1463   :  { %2673 = vmatpush1.msra.mxu1 %v2642_v7  ;;  %v2841_v7 = vld [vmem:[%s18512_s12 + $0x100] sm:$0xff] }
0x1464   :  { %2674 = vmatprep.subr.mxu1 %v2640_v8  ;;  %v2836_v8 = vld [vmem:[%s18512_s12 + $0xd8] sm:$0xff] }
0x1465   :  { %2675 = vmatpush1.msra.mxu1 %v2639_v9  ;;  %v2834_v9 = vld [vmem:[%s18512_s12 + $0xc8] sm:$0xff] }
0x1466   :  { %2676 = vmatprep.subr.mxu1 %v2637_v10  ;;  %v2838_v10 = vld [vmem:[%s18512_s12 + $0xe8] sm:$0xff] }
0x1467   :  { %2677 = vmatpush1.msra.mxu1 %v2636_v11  ;;  %v2833_v11 = vld [vmem:[%s18512_s12 + $0xc0] sm:$0xff] }
0x1468   :  { %2678 = vmatprep.subr.mxu1 %v2634_v12  ;;  %v2831_v12 = vld [vmem:[%s18512_s12 + $0xb0] sm:$0xff] }
0x1469   :  { %2679 = vmatpush1.msra.mxu1 %v2633_v13  ;;  %v2835_v13 = vld [vmem:[%s18512_s12 + $0xd0] sm:$0xff] }
0x146a   :  { %2680 = vmatprep.subr.mxu1 %v2631_v14  ;;  %v2830_v14 = vld [vmem:[%s18512_s12 + $0xa8] sm:$0xff] }
0x146b   :  { %2681 = vmatpush1.msra.mxu1 %v2630_v17  ;;  %v2828_v17 = vld [vmem:[%s18512_s12 + $0x98] sm:$0xff] }
0x146c   :  { %2682 = vmatprep.subr.mxu1 %v2628_v18  ;;  %v2832_v18 = vld [vmem:[%s18512_s12 + $0xb8] sm:$0xff] }
0x146d   :  { %2683 = vmatpush1.msra.mxu1 %v2627_v19  ;;  %v2827_v19 = vld [vmem:[%s18512_s12 + $0x90] sm:$0xff] }
0x146e   :  { %2684 = vmatprep.subr.mxu1 %v2625_v33  ;;  %v2825_v33 = vld [vmem:[%s18512_s12 + $0x80] sm:$0xff] }
0x146f   :  { %2685 = vmatpush1.msra.mxu1 %v2624_v20  ;;  %v2829_v20 = vld [vmem:[%s18512_s12 + $0xa0] sm:$0xff] }
0x1470   :  { %2686 = vmatprep.subr.mxu1 %v2622_v21  ;;  %v2824_v21 = vld [vmem:[%s18512_s12 + $0x78] sm:$0xff] }
0x1471   :  { %2687 = vmatpush1.msra.mxu1 %v2621_v22  ;;  %v2822_v22 = vld [vmem:[%s18512_s12 + $0x68] sm:$0xff] }
0x1472   :  { %2688 = vmatprep.subr.mxu1 %v2619_v23  ;;  %v2826_v23 = vld [vmem:[%s18512_s12 + $0x88] sm:$0xff] }
0x1473   :  { %2689 = vmatpush1.msra.mxu1 %v2618_v26  ;;  %v2821_v26 = vld [vmem:[%s18512_s12 + $0x60] sm:$0xff] }
0x1474   :  { %2690 = vmatprep.subr.mxu1 %v2616_v27  ;;  %v2819_v27 = vld [vmem:[%s18512_s12 + $0x50] sm:$0xff] }
0x1475   :  { %2691 = vmatpush1.msra.mxu1 %v2615_v28  ;;  %v2823_v28 = vld [vmem:[%s18512_s12 + $0x70] sm:$0xff] }
0x1476   :  { %2692 = vmatprep.subr.mxu1 %v2613_v30  ;;  %v2818_v30 = vld [vmem:[%s18512_s12 + $0x48] sm:$0xff] }
0x1477   :  { %2693 = vmatpush1.msra.mxu1 %v2612_v31  ;;  %v2816_v31 = vld [vmem:[%s18512_s12 + $0x38] sm:$0xff] }
0x1478   :  { %2694 = vmatprep.subr.mxu1 %v2610_v36  ;;  %v2813_v36 = vld [vmem:[%s18512_s12 + $0x20] sm:$0xff] }
0x1479   :  { %2695 = vmatpush1.msra.mxu1 %v2609_v34  ;;  %v2812_v34 = vld [vmem:[%s18512_s12 + $0x18] sm:$0xff] }
0x147a   :  { %2696 = vmatprep.subr.mxu1 %v2607_v40  ;;  %v2810_v40 = vld [vmem:[%s18512_s12 + $0x8] sm:$0xff] }
0x147b   :  { %2697 = vmatpush1.msra.mxu1 %v2606_v15  ;;  %v2809_v15 = vld [vmem:[%s18512_s12] sm:$0xff] }
0x147c   :  { %2698 = vmatprep.subr.mxu1 %v2604_v16  ;;  %v2811_v16 = vld [vmem:[%s18512_s12 + $0x10] sm:$0xff] }
0x147d   :  { %v2596_v32 = vpop.f32.mrf.mxu0  ;;  %2699 = vmatpush1.msra.mxu1 %v2603_v43  ;;  %v3050_v43 = vld [vmem:[%s18515_s15 + $0x70] sm:$0xff] }
0x147e   :  { %2874 = vmatprep.subr.mxu1 %v2855_v46  ;;  %v3048_v46 = vld [vmem:[%s18515_s15 + $0x60] sm:$0xff] }
0x147f   :  { %v10273_v35 = vpop.f32.mrf.mxu0 }
0x1480   :  { %v2815_v35 = vld [vmem:[%s18512_s12 + $0x30] sm:$0xff] }
0x151e   :  { %v2526_v47 = vpop.f32.mrf.mxu1 }
0x151f   :  { %v2597_v49 = vadd.f32 %v2596_v32, %v2526_v47  ;;  %v2820_v32 = vld [vmem:[%s18512_s12 + $0x58] sm:$0xff] }
0x1520   :  { %v10238_v50 = vpop.f32.mrf.mxu1  ;;  %v3047_v47 = vld [vmem:[%s18515_s15 + $0x58] sm:$0xff] }
0x1521   :  { %v2601_v51 = vadd.f32 %v2600_v48, %v2597_v49  ;;  %v3046_v48 = vld [vmem:[%s18515_s15 + $0x50] sm:$0xff]  ;;  %v3045_v49 = vld [vmem:[%s18515_s15 + $0x48] sm:$0xff]  ;;  %v3044_v50 = vld [vmem:[%s18515_s15 + $0x40] sm:$0xff] }
0x1523   :  { %v2602_v52 = vmax.f32 %v2601_v51, 0.0  ;;  %v3043_v51 = vld [vmem:[%s18515_s15 + $0x38] sm:$0xff] }
0x1525   :  { %2733 = vmatmul.mubr.f32.vlgmr.msra.gmra.mxu1 %v2602_v52  ;;  %10307 = vmatmul.mubr.f32.vlgmr.msra.gmra.mxu0 %v2602_v52  ;;  %v3042_v52 = vld [vmem:[%s18515_s15 + $0x30] sm:$0xff] }
0x1526   :  { %2875 = vmatpush1.msra.mxu1 %v2854_v42  ;;  %2938 = vmatprep.mubr.f32.mxu1 %v12041_v2  ;;  %v3041_v42 = vld [vmem:[%s18515_s15 + $0x28] sm:$0xff] }
0x1527   :  { %2876 = vmatprep.subr.mxu1 %v2852_v53  ;;  %10310 = vmatpush3.msra.mxu0 %v2856_v54  ;;  %v3040_v53 = vld [vmem:[%s18515_s15 + $0x20] sm:$0xff]  ;;  %v3039_v54 = vld [vmem:[%s18515_s15 + $0x18] sm:$0xff] }
0x1528   :  { %2877 = vmatpush1.msra.mxu1 %v2851_v55  ;;  %10311 = vmatprep.subr.mxu0 %v12041_v2  ;;  %v3038_v55 = vld [vmem:[%s18515_s15 + $0x10] sm:$0xff] }
0x1529   :  { %2878 = vmatprep.subr.mxu1 %v2849_v56  ;;  %10312 = vmatpush3.msra.mxu0 %v2853_v57  ;;  %v3037_v56 = vld [vmem:[%s18515_s15 + $0x8] sm:$0xff]  ;;  %v3036_v57 = vld [vmem:[%s18515_s15] sm:$0xff] }
0x152a   :  { %2879 = vmatpush1.msra.mxu1 %v2848_v58  ;;  %10313 = vmatprep.subr.mxu0 %v12041_v2 }
0x152b   :  { %2880 = vmatprep.subr.mxu1 %v2846_v59  ;;  %10314 = vmatpush3.msra.mxu0 %v2850_v60  ;;  %v2651_v60 = vld [vmem:[%s18513_s13] sm:$0x7] }
0x152c   :  { %2881 = vmatpush1.msra.mxu1 %v2845_v61  ;;  %10315 = vmatprep.subr.mxu0 %v12041_v2 }
0x152d   :  { %2882 = vmatprep.subr.mxu1 %v2843_v63  ;;  %10316 = vmatpush3.msra.mxu0 %v2847_v0  ;;  %v2857_v63 = vld [vmem:[%s18514_s14] sm:$0x7]  ;;  %v2656_v0 = vrot.slane %v2651_v60, %v12904_v39 }
0x152e   :  { %2883 = vmatpush1.msra.mxu1 %v2842_v1  ;;  %10317 = vmatprep.subr.mxu0 %v12041_v2  ;;  %v2862_v1 = vrot.slane %v2857_v63, %v12904_v39 }
0x152f   :  { %2884 = vmatprep.subr.mxu1 %v2840_v3  ;;  %10318 = vmatpush3.msra.mxu0 %v2844_v4 }
0x1530   :  { %2885 = vmatpush1.msra.mxu1 %v2839_v5  ;;  %10319 = vmatprep.subr.mxu0 %v12041_v2 }
0x1531   :  { %2886 = vmatprep.subr.mxu1 %v2837_v6  ;;  %10320 = vmatpush3.msra.mxu0 %v2841_v7  ;;  %v2866_v7 = vrot.slane %v2857_v63, %v12914_v45 }
0x1532   :  { %2887 = vmatpush1.msra.mxu1 %v2836_v8  ;;  %10321 = vmatprep.subr.mxu0 %v12041_v2 }
0x1533   :  { %2888 = vmatprep.subr.mxu1 %v2834_v9  ;;  %10322 = vmatpush3.msra.mxu0 %v2838_v10  ;;  %v2660_v10 = vrot.slane %v2651_v60, %v12914_v45 }
0x1534   :  { %2889 = vmatpush1.msra.mxu1 %v2833_v11  ;;  %10323 = vmatprep.subr.mxu0 %v12041_v2 }
0x1535   :  { %2890 = vmatprep.subr.mxu1 %v2831_v12  ;;  %10324 = vmatpush3.msra.mxu0 %v2835_v13 }
0x1536   :  { %2891 = vmatpush1.msra.mxu1 %v2830_v14  ;;  %10325 = vmatprep.subr.mxu0 %v12041_v2 }
0x1537   :  { %2892 = vmatprep.subr.mxu1 %v2828_v17  ;;  %10326 = vmatpush3.msra.mxu0 %v2832_v18 }
0x1538   :  { %2893 = vmatpush1.msra.mxu1 %v2827_v19  ;;  %10327 = vmatprep.subr.mxu0 %v12041_v2 }
0x1539   :  { %2894 = vmatprep.subr.mxu1 %v2825_v33  ;;  %10328 = vmatpush3.msra.mxu0 %v2829_v20 }
0x153a   :  { %2895 = vmatpush1.msra.mxu1 %v2824_v21  ;;  %10329 = vmatprep.subr.mxu0 %v12041_v2  ;;  %v2870_v21 = vrot.slane %v2857_v63, %v12918_v62 }
0x153b   :  { %2896 = vmatprep.subr.mxu1 %v2822_v22  ;;  %10330 = vmatpush3.msra.mxu0 %v2826_v23  ;;  %v2664_v23 = vrot.slane %v2651_v60, %v12918_v62 }
0x153c   :  { %2897 = vmatpush1.msra.mxu1 %v2821_v26  ;;  %10331 = vmatprep.subr.mxu0 %v12041_v2 }
0x153d   :  { %2898 = vmatprep.subr.mxu1 %v2819_v27  ;;  %10332 = vmatpush3.msra.mxu0 %v2823_v28 }
0x153e   :  { %2899 = vmatpush1.msra.mxu1 %v2818_v30  ;;  %10333 = vmatprep.subr.mxu0 %v12041_v2 }
0x153f   :  { %2900 = vmatprep.subr.mxu1 %v2816_v31  ;;  %10334 = vmatpush3.msra.mxu0 %v2820_v32 }
0x1540   :  { %2901 = vmatpush1.msra.mxu1 %v2815_v35  ;;  %10335 = vmatprep.subr.mxu0 %v12041_v2 }
0x1541   :  { %2902 = vmatprep.subr.mxu1 %v2813_v36  ;;  %10336 = vmatpush3.msra.mxu0 %v2817_v38 }
0x1542   :  { %2903 = vmatpush1.msra.mxu1 %v2812_v34  ;;  %10337 = vmatprep.subr.mxu0 %v12041_v2 }
0x1543   :  { %2904 = vmatprep.subr.mxu1 %v2810_v40  ;;  %10338 = vmatpush3.msra.mxu0 %v2814_v25 }
0x1544   :  { %2905 = vmatpush1.msra.mxu1 %v2809_v15  ;;  %10339 = vmatprep.subr.mxu0 %v12041_v2  ;;  %v3052_v15 = vld [vmem:[%s18516_s16] sm:$0x1] }
0x1545   :  { %2939 = vmatmul.mubr.f32.vlgmr.msra.gmra.mxu1 %v13864_v41  ;;  %10340 = vmatpush3.msra.mxu0 %v2811_v16 }
0x1546   :  { %10341 = vmatprep.mubr.msk.f32.mxu0 %vm12042_vm0, %v12041_v2  ;;  %10344 = vmatprep.subr.mxu1 %v12041_v2 }
0x1547   :  { %10342 = vmatmul.mubr.f32.vlgmr.msra.gmra.mxu0 %v13864_v41  ;;  %10376 = vmatprep.mubr.msk.f32.mxu1 %vm12042_vm0, %v12041_v2 }
0x1548   :  { %10345 = vmatpush3.msra.mxu1 %v3051_v24 }
0x1549   :  { %10346 = vmatprep.subr.mxu1 %v12041_v2 }
0x154a   :  { %10347 = vmatpush3.msra.mxu1 %v3050_v43 }
0x154b   :  { %10348 = vmatprep.subr.mxu1 %v12041_v2 }
0x154c   :  { %10349 = vmatpush3.msra.mxu1 %v3049_v44 }
0x154d   :  { %10350 = vmatprep.subr.mxu1 %v12041_v2 }
0x154e   :  { %10351 = vmatpush3.msra.mxu1 %v3048_v46 }
0x154f   :  { %10352 = vmatprep.subr.mxu1 %v12041_v2 }
0x1550   :  { %10353 = vmatpush3.msra.mxu1 %v3047_v47 }
0x1551   :  { %10354 = vmatprep.subr.mxu1 %v12041_v2 }
0x1552   :  { %10355 = vmatpush3.msra.mxu1 %v3046_v48 }
0x1553   :  { %10356 = vmatprep.subr.mxu1 %v12041_v2 }
0x1554   :  { %10357 = vmatpush3.msra.mxu1 %v3045_v49 }
0x1555   :  { %10358 = vmatprep.subr.mxu1 %v12041_v2 }
0x1556   :  { %10359 = vmatpush3.msra.mxu1 %v3044_v50 }
0x1557   :  { %10360 = vmatprep.subr.mxu1 %v12041_v2 }
0x1558   :  { %10361 = vmatpush3.msra.mxu1 %v3043_v51 }
0x1559   :  { %10362 = vmatprep.subr.mxu1 %v12041_v2 }
0x155a   :  { %10363 = vmatpush3.msra.mxu1 %v3042_v52 }
0x155b   :  { %10364 = vmatprep.subr.mxu1 %v12041_v2 }
0x155c   :  { %10365 = vmatpush3.msra.mxu1 %v3041_v42 }
0x155d   :  { %10366 = vmatprep.subr.mxu1 %v12041_v2 }
0x155e   :  { %10367 = vmatpush3.msra.mxu1 %v3040_v53 }
0x155f   :  { %10368 = vmatprep.subr.mxu1 %v12041_v2 }
0x1560   :  { %10369 = vmatpush3.msra.mxu1 %v3039_v54 }
0x1561   :  { %10370 = vmatprep.subr.mxu1 %v12041_v2 }
0x1562   :  { %10371 = vmatpush3.msra.mxu1 %v3038_v55 }
0x1563   :  { %10372 = vmatprep.subr.mxu1 %v12041_v2 }
0x1564   :  { %10373 = vmatpush3.msra.mxu1 %v3037_v56 }
0x1565   :  { %10374 = vmatprep.subr.mxu1 %v12041_v2 }
0x1566   :  { %10375 = vmatpush3.msra.mxu1 %v3036_v57 }
0x15e5   :  { %v2805_v58 = vpop.f32.mrf.mxu0  ;;  %v2734_v61 = vpop.f32.mrf.mxu1 }
0x15e6   :  { %v2735_v5 = vadd.f32 %v2734_v61, %v2656_v0  ;;  %v2806_v30 = vadd.f32 %v2805_v58, %v2664_v23 }
0x15e7   :  { %v10308_v59 = vpop.f32.mrf.mxu0  ;;  %v2736_v3 = vpop.f32.mrf.mxu1 }
0x15e8   :  { %v2737_v17 = vadd.f32 %v2736_v3, %v2660_v10 }
0x1605   :  { %v2940_v4 = vpop.f32.mrf.mxu1 }
0x1606   :  { %v2941_v6 = vadd.f32 %v2940_v4, %v2862_v1 }
0x1607   :  { %v2942_v8 = vpop.f32.mrf.mxu1  ;;  %v3011_v9 = vpop.f32.mrf.mxu0 }
0x1608   :  { %v3015_v11 = vadd.f32 %v2941_v6, %v2735_v5  ;;  %v2943_v14 = vadd.f32 %v2942_v8, %v2866_v7  ;;  %v3012_v27 = vadd.f32 %v3011_v9, %v2870_v21 }
0x1609   :  { %v10343_v12 = vpop.f32.mrf.mxu0 }
0x160a   :  { %v8423_v13 = vmul.f32 -1.442695, %v3015_v11  ;;  %v3022_v18 = vadd.f32 %v2943_v14, %v2737_v17 }
0x160c   :  { %11843 = vpow2.f32 %v8423_v13  ;;  %v8424_v19 = vmul.f32 -1.442695, %v3022_v18 }
0x160e   :  { %11845 = vpow2.f32 %v8424_v19 }
0x1619   :  { %v11844_v33 = vpop.eup %11843 }
0x161a   :  { %v3019_v20 = vadd.f32 1.0, %v11844_v33 }
0x161b   :  { %v11846_v22 = vpop.eup %11845 }
0x161c   :  { %11847 = vrcp.f32 %v3019_v20  ;;  %v3026_v26 = vadd.f32 1.0, %v11846_v22 }
0x161e   :  { %11849 = vrcp.f32 %v3026_v26 }
0x1629   :  { %v11848_v28 = vpop.eup %11847 }
0x162a   :  { %v3029_v31 = vmul.f32 %v11848_v28, %v3012_v27 }
0x162b   :  { %v11850_v35 = vpop.eup %11849 }
0x162c   :  { %v3030_v32 = vadd.f32 %v3029_v31, %v2806_v30  ;;  %v3032_v36 = vsub.f32 1.0, %v11850_v35  ;;  %v3034_v40 = vmul.f32 %v11850_v35, %v13864_v41 }
0x162e   :  { %11851 = vtanh.f32 %v3030_v32 }
0x163b   :  { %v11852_v38 = vpop.eup %11851 }
0x163c   :  { %v3033_v34 = vmul.f32 %v11852_v38, %v3032_v36 }
0x163e   :  { %v14505_v25 = vadd.f32 %v3034_v40, %v3033_v34 }
0x1640   :  { %10377 = vmatmul.mubr.f32.vlgmr.msra.gmra.mxu1 %v14505_v25 }
0x1700   :  { %v3119_v16 = vpop.f32.mrf.mxu1 }
0x1701   :  { %v3120_v24 = vadd.f32 %v3119_v16, %v3052_v15 }
0x1702   :  { %v10378_v43 = vpop.f32.mrf.mxu1 }
0x1703   :  { %v3123_v44 = vsel %vm264_vm1, %v3120_v24, -inf }
0x1704   :  { %3124 = vmax.xlane.f32.xlu1 %v3123_v44 }
0x178d   :  { %v3125_v46 = vpop.xlane.xlu1 %3124 }
0x178e   :  { %v3126_v47 = vsub.f32 %v3120_v24, %v3125_v46 }
0x1790   :  { %v3127_v48 = vmul.f32 1.442695, %v3126_v47 }
0x1792   :  { %11853 = vpow2.f32 %v3127_v48 }
0x179f   :  { %v11854_v49 = vpop.eup %11853 }
0x17a0   :  { %v3129_v50 = vsel %vm264_vm1, %v11854_v49, 0.0 }
0x17a1   :  { %3130 = vadd.xlane.f32.xlu1 %v3129_v50 }
0x182a   :  { %v3131_v51 = vpop.xlane.xlu1 %3130 }
0x182b   :  { %11855 = vlog2.f32 %v3131_v51 }
0x1838   :  { %v11856_v52 = vpop.eup %11855 }
0x1839   :  { %v3133_v42 = vmul.f32 0.6931472, %v11856_v52 }
0x183a   :  { %3147 = sbr.rel (%p8425_p4) target bundleno = 6698 (0x1a2a), region = 89 }
0x183b   :  { %v3134_v53 = vsub.f32 %v3126_v47, %v3133_v42 }
0x183d   :  { %v3139_v54 = vsel %vm14019_vm13, %v3134_v53, 0.0 }
0x183e   :  { %3140 = vst [vmem:[#allocation8 + $0x2] sm:$0x1] %v3139_v54 }
0x183f   :  { %v3150_v55 = vsel %vm264_vm1, %v3134_v53, -inf  ;;  %v3149_v56 = vand.u32 127, %v587_v37 }
0x1840   :  { %3151 = vmax.xlane.f32.xlu0 %v3150_v55 }
0x18c9   :  { %v3152_v57 = vpop.xlane.xlu0 %3151 }
0x18ca   :  { %vm3153_vm14 = vcmp.eq.f32.partialorder %v3134_v53, %v3152_v57 }
0x18cb   :  { %v3154_v58 = vsel %vm3153_vm14, %v3149_v56, 128 }
0x18cc   :  { %v3155_v59 = vsel %vm264_vm1, %v3154_v58, 2147483647 }
0x18cd   :  { %v3157_v60 = vshra.s32 %v3155_v59, 16  ;;  %v3156_v63 = vand.u32 65535, %v3155_v59 }
0x18cf   :  { %v3159_v61 = vcvt.s32.f32 %v3157_v60  ;;  %v3158_v1 = vcvt.s32.f32 %v3156_v63 }
0x18d1   :  { %3160 = vmin.xlane.f32.xlu0 %v3159_v61 }
0x195a   :  { %v3161_v0 = vpop.xlane.xlu0 %3160 }
0x195b   :  { %vm3162_vm15 = vcmp.eq.f32.partialorder %v3159_v61, %v3161_v0  ;;  %v3167_v4 = vcvt.f32.s32 %v3161_v0 }
0x195c   :  { %v3163_v3 = vsel %vm3162_vm15, %v3158_v1, inf }
0x195d   :  { %3164 = vmin.xlane.f32.xlu1 %v3163_v3  ;;  %v3168_v6 = vshll.u32 %v3167_v4, 16 }
0x19e6   :  { %v3165_v5 = vpop.xlane.xlu1 %3164 }
0x19e7   :  { %v3166_v7 = vcvt.f32.s32 %v3165_v5 }
0x19e9   :  { %v3169_v8 = vadd.s32 %v3168_v6, %v3166_v7 }
0x19eb   :  { %v3170_v9 = vrot.slane %v3169_v8, 4 }
0x19ed   :  { %vm3171_vm2 = vcmp.lt.s32.totalorder %v3169_v8, %v3170_v9 }
0x19ee   :  { %v3172_v10 = vsel %vm3171_vm2, %v3169_v8, %v3170_v9 }
0x19ef   :  { %v3173_v11 = vrot.slane %v3172_v10, 2 }
0x19f1   :  { %vm3174_vm3 = vcmp.lt.s32.totalorder %v3172_v10, %v3173_v11 }
0x19f2   :  { %v3175_v12 = vsel %vm3174_vm3, %v3172_v10, %v3173_v11 }
0x19f3   :  { %v3176_v13 = vrot.slane %v3175_v12, 1 }
0x19f5   :  { %vm3177_vm4 = vcmp.lt.s32.totalorder %v3175_v12, %v3176_v13 }
0x19f6   :  { %v3178_v14 = vsel %vm3177_vm4, %v3175_v12, %v3176_v13 }
0x19f7   :  { %11783 = vpush %v3178_v14 }
0x1a28   :  { %s11784_s24 = spop %11783 }
0x1a29   :  { %3180 = sst [smem:[#allocation2]] %s11784_s24 }
0x1a2a PF:  { %s14519_s28 = sld [smem:[#allocation6 + $0x3]]  ;;  %10379 = vmatprep.subr.mxu0 %v12041_v2  ;;  %10414 = vmatprep.subr.mxu1 %v12041_v2  ;;  %v3224_v17 = vld [vmem:[%s18506_s6 + $0x78] sm:$0xff]  ;;  %v3223_v19 = vld [vmem:[%s18506_s6 + $0x70] sm:$0xff]  ;;  %v3222_v20 = vld [vmem:[%s18506_s6 + $0x68] sm:$0xff]  ;;  %v14659_v53 = vsel %vm14019_vm13, %v14505_v25, %v13864_v41  ;;  %s3184_s3 = ssub.s32 1, %s13724_s26 }
0x1a2b   :  { %v3208_v18 = vld [vmem:[%s18505_s5 + $0x78] sm:$0xff]  ;;  %10380 = vmatpush3.msra.mxu0 %v3224_v17  ;;  %v3207_v33 = vld [vmem:[%s18505_s5 + $0x70] sm:$0xff]  ;;  %v3206_v21 = vld [vmem:[%s18505_s5 + $0x68] sm:$0xff]  ;;  %s8427_s29 = sld [smem:[#allocation3 + $0x3]]  ;;  %10411 = vmatprep.mubr.msk.f32.mxu0 %vm12042_vm0, %v12041_v2 }
0x1a2c   :  { %10415 = vmatpush3.msra.mxu1 %v3208_v18  ;;  %10381 = vmatprep.subr.mxu0 %v12041_v2  ;;  %v3221_v22 = vld [vmem:[%s18506_s6 + $0x60] sm:$0xff]  ;;  %v3220_v26 = vld [vmem:[%s18506_s6 + $0x58] sm:$0xff]  ;;  %s14559_s23 = sld [smem:[#allocation2]]  ;;  %v3219_v28 = vld [vmem:[%s18506_s6 + $0x50] sm:$0xff] }
0x1a2d   :  { %10416 = vmatprep.subr.mxu1 %v12041_v2  ;;  %10382 = vmatpush3.msra.mxu0 %v3223_v19  ;;  %v3205_v23 = vld [vmem:[%s18505_s5 + $0x60] sm:$0xff]  ;;  %v3204_v27 = vld [vmem:[%s18505_s5 + $0x58] sm:$0xff]  ;;  %v3203_v30 = vld [vmem:[%s18505_s5 + $0x50] sm:$0xff]  ;;  %s18543_s27 = sld [smem:[#allocation19_spill]] }
0x1a2e   :  { %10417 = vmatpush3.msra.mxu1 %v3207_v33  ;;  %10383 = vmatprep.subr.mxu0 %v12041_v2  ;;  %v3218_v31 = vld [vmem:[%s18506_s6 + $0x48] sm:$0xff]  ;;  %v3217_v35 = vld [vmem:[%s18506_s6 + $0x40] sm:$0xff]  ;;  %v3216_v38 = vld [vmem:[%s18506_s6 + $0x38] sm:$0xff] }
0x1a2f   :  { %10418 = vmatprep.subr.mxu1 %v12041_v2  ;;  %10384 = vmatpush3.msra.mxu0 %v3222_v20  ;;  %v3202_v32 = vld [vmem:[%s18505_s5 + $0x48] sm:$0xff]  ;;  %v3201_v36 = vld [vmem:[%s18505_s5 + $0x40] sm:$0xff]  ;;  %v3200_v34 = vld [vmem:[%s18505_s5 + $0x38] sm:$0xff] }
0x1a30   :  { %10419 = vmatpush3.msra.mxu1 %v3206_v21  ;;  %10385 = vmatprep.subr.mxu0 %v12041_v2  ;;  %v3215_v40 = vld [vmem:[%s18506_s6 + $0x30] sm:$0xff]  ;;  %v3214_v16 = vld [vmem:[%s18506_s6 + $0x28] sm:$0xff]  ;;  %v3213_v43 = vld [vmem:[%s18506_s6 + $0x20] sm:$0xff]  ;;  %p8430_p8 = scmp.ne.s32.totalorder %s14519_s28, 0 }
0x1a31   :  { %10420 = vmatprep.subr.mxu1 %v12041_v2  ;;  %10386 = vmatpush3.msra.mxu0 %v3221_v22  ;;  %4179 = sst [smem:[#allocation2]] %s8427_s29  ;;  %v3199_v15 = vld [vmem:[%s18505_s5 + $0x30] sm:$0xff]  ;;  %v3198_v24 = vld [vmem:[%s18505_s5 + $0x28] sm:$0xff]  ;;  %v3197_v44 = vld [vmem:[%s18505_s5 + $0x20] sm:$0xff] }
0x1a32   :  { %10421 = vmatpush3.msra.mxu1 %v3205_v23  ;;  %10387 = vmatprep.subr.mxu0 %v12041_v2  ;;  %v3212_v46 = vld [vmem:[%s18506_s6 + $0x18] sm:$0xff]  ;;  %v3211_v48 = vld [vmem:[%s18506_s6 + $0x10] sm:$0xff]  ;;  %v3210_v50 = vld [vmem:[%s18506_s6 + $0x8] sm:$0xff]  ;;  %s3191_s25 = scalar_lea.vmem %s18504_s4, %s14559_s23  ;;  %p3182_p5 = scmp.eq.s32.totalorder %s14559_s23, 1 }
0x1a33   :  { %10422 = vmatprep.subr.mxu1 %v12041_v2  ;;  %10388 = vmatpush3.msra.mxu0 %v3220_v26  ;;  %v3196_v47 = vld [vmem:[%s18505_s5 + $0x18] sm:$0xff]  ;;  %v3195_v49 = vld [vmem:[%s18505_s5 + $0x10] sm:$0xff]  ;;  %v3194_v51 = vld [vmem:[%s18505_s5 + $0x8] sm:$0xff] }
0x1a34   :  { %10423 = vmatpush3.msra.mxu1 %v3204_v27  ;;  %10389 = vmatprep.subr.mxu0 %v12041_v2  ;;  %v3209_v52 = vld [vmem:[%s18506_s6] sm:$0xff]  ;;  %v3393_v60 = vld [vmem:[%s18543_s27 + $0x78] sm:$0xff]  ;;  %v3392_v61 = vld [vmem:[%s18543_s27 + $0x70] sm:$0xff]  ;;  %s3183_s22 = scalar_select %p3182_p5, 1, 0 }
0x1a35   :  { %10424 = vmatprep.subr.mxu1 %v12041_v2  ;;  %10390 = vmatpush3.msra.mxu0 %v3219_v28  ;;  %v3193_v42 = vld [vmem:[%s18505_s5] sm:$0xff]  ;;  %v3391_v63 = vld [vmem:[%s18543_s27 + $0x68] sm:$0xff]  ;;  %v3389_v1 = vld [vmem:[%s18543_s27 + $0x58] sm:$0xff] }
0x1a36   :  { %10425 = vmatpush3.msra.mxu1 %v3203_v30  ;;  %10391 = vmatprep.subr.mxu0 %v12041_v2  ;;  %v14661_v54 = vld [vmem:[%s3191_s25] sm:$0x1]  ;;  %v3388_v3 = vld [vmem:[%s18543_s27 + $0x50] sm:$0xff]  ;;  %v3387_v4 = vld [vmem:[%s18543_s27 + $0x48] sm:$0xff]  ;;  %s3185_s2 = smul.u32 %s3184_s3, %s3183_s22 }
0x1a37   :  { %10426 = vmatprep.subr.mxu1 %v12041_v2  ;;  %10392 = vmatpush3.msra.mxu0 %v3218_v31  ;;  %v3365_v25 = vld [vmem:[%s18507_s7] sm:$0x1]  ;;  %v3385_v11 = vld [vmem:[%s18543_s27 + $0x38] sm:$0xff]  ;;  %v3384_v12 = vld [vmem:[%s18543_s27 + $0x30] sm:$0xff] }
0x1a38   :  { %10427 = vmatpush3.msra.mxu1 %v3202_v32  ;;  %10393 = vmatprep.subr.mxu0 %v12041_v2  ;;  %v3390_v0 = vld [vmem:[%s18543_s27 + $0x60] sm:$0xff]  ;;  %v3383_v13 = vld [vmem:[%s18543_s27 + $0x28] sm:$0xff]  ;;  %v3381_v17 = vld [vmem:[%s18543_s27 + $0x18] sm:$0xff]  ;;  %p3186_p6 = scmp.gt.s32.totalorder %s18561_s20, %s3185_s2 }
0x1a39   :  { %10428 = vmatprep.subr.mxu1 %v12041_v2  ;;  %10394 = vmatpush3.msra.mxu0 %v3217_v35  ;;  %v3386_v5 = vld [vmem:[%s18543_s27 + $0x40] sm:$0xff]  ;;  %v3380_v18 = vld [vmem:[%s18543_s27 + $0x10] sm:$0xff]  ;;  %v3379_v19 = vld [vmem:[%s18543_s27 + $0x8] sm:$0xff] }
0x1a3a   :  { %10429 = vmatpush3.msra.mxu1 %v3201_v36  ;;  %10395 = vmatprep.subr.mxu0 %v12041_v2  ;;  %v3382_v14 = vld [vmem:[%s18543_s27 + $0x20] sm:$0xff]  ;;  %v3495_v20 = vld [vmem:[%s18509_s9 + $0x78] sm:$0xff]  ;;  %v3494_v21 = vld [vmem:[%s18509_s9 + $0x70] sm:$0xff]  ;;  %s18563_s20 = smov (!%p3186_p6, %s18561_s20), %s3185_s2 }
0x1a3b   :  { %10430 = vmatprep.subr.mxu1 %v12041_v2  ;;  %10396 = vmatpush3.msra.mxu0 %v3216_v38  ;;  %v3378_v33 = vld [vmem:[%s18543_s27] sm:$0xff]  ;;  %v3493_v22 = vld [vmem:[%s18509_s9 + $0x68] sm:$0xff]  ;;  %v3491_v26 = vld [vmem:[%s18509_s9 + $0x58] sm:$0xff]  ;;  %p4171_p7 = scmp.eq.s32.totalorder %s18563_s20, 0 }
0x1a3c   :  { %10431 = vmatpush3.msra.mxu1 %v3200_v34  ;;  %10397 = vmatprep.subr.mxu0 %v12041_v2  ;;  %v3492_v23 = vld [vmem:[%s18509_s9 + $0x60] sm:$0xff]  ;;  %v3490_v27 = vld [vmem:[%s18509_s9 + $0x50] sm:$0xff]  ;;  %v3489_v28 = vld [vmem:[%s18509_s9 + $0x48] sm:$0xff] }
0x1a3d   :  { %10432 = vmatprep.subr.mxu1 %v12041_v2  ;;  %10398 = vmatpush3.msra.mxu0 %v3215_v40  ;;  %v3488_v30 = vld [vmem:[%s18509_s9 + $0x40] sm:$0xff]  ;;  %v3487_v31 = vld [vmem:[%s18509_s9 + $0x38] sm:$0xff]  ;;  %v3486_v32 = vld [vmem:[%s18509_s9 + $0x30] sm:$0xff]  ;;  %s4172_s29 = scalar_select %p4171_p7, 1, 0 }
0x1a3e   :  { %10433 = vmatpush3.msra.mxu1 %v3199_v15  ;;  %10399 = vmatprep.subr.mxu0 %v12041_v2  ;;  %v3485_v35 = vld [vmem:[%s18509_s9 + $0x28] sm:$0xff]  ;;  %v3484_v36 = vld [vmem:[%s18509_s9 + $0x20] sm:$0xff]  ;;  %v3483_v38 = vld [vmem:[%s18509_s9 + $0x18] sm:$0xff] }
0x1a3f   :  { %10434 = vmatprep.subr.mxu1 %v12041_v2  ;;  %10400 = vmatpush3.msra.mxu0 %v3214_v16  ;;  %v3482_v34 = vld [vmem:[%s18509_s9 + $0x10] sm:$0xff]  ;;  %v3481_v40 = vld [vmem:[%s18509_s9 + $0x8] sm:$0xff]  ;;  %v4173_v16 = vstv %s4172_s29 }
0x1a40   :  { %10435 = vmatpush3.msra.mxu1 %v3198_v24  ;;  %10401 = vmatprep.subr.mxu0 %v12041_v2  ;;  %vm14814_vm5 = vcmp.eq.s32.totalorder %v4173_v16, 1  ;;  %v3652_v16 = vld [vmem:[%s18511_s11 + $0x68] sm:$0xff] }
0x1a41   :  { %10436 = vmatprep.subr.mxu1 %v12041_v2  ;;  %10402 = vmatpush3.msra.mxu0 %v3213_v43 }
0x1a42   :  { %10437 = vmatpush3.msra.mxu1 %v3197_v44  ;;  %10403 = vmatprep.subr.mxu0 %v12041_v2 }
0x1a43   :  { %10438 = vmatprep.subr.mxu1 %v12041_v2  ;;  %10404 = vmatpush3.msra.mxu0 %v3212_v46  ;;  %v3479_v46 = vld [vmem:[%s18508_s8 + $0x78] sm:$0xff] }
0x1a44   :  { %10439 = vmatpush3.msra.mxu1 %v3196_v47  ;;  %10405 = vmatprep.subr.mxu0 %v12041_v2  ;;  %v3478_v47 = vld [vmem:[%s18508_s8 + $0x70] sm:$0xff] }
0x1a45   :  { %10440 = vmatprep.subr.mxu1 %v12041_v2  ;;  %10406 = vmatpush3.msra.mxu0 %v3211_v48 }
0x1a46   :  { %10441 = vmatpush3.msra.mxu1 %v3195_v49  ;;  %10407 = vmatprep.subr.mxu0 %v12041_v2  ;;  %v3477_v49 = vld [vmem:[%s18508_s8 + $0x68] sm:$0xff] }
0x1a47   :  { %10442 = vmatprep.subr.mxu1 %v12041_v2  ;;  %10408 = vmatpush3.msra.mxu0 %v3210_v50  ;;  %v3476_v50 = vld [vmem:[%s18508_s8 + $0x60] sm:$0xff] }
0x1a48   :  { %10443 = vmatpush3.msra.mxu1 %v3194_v51  ;;  %10409 = vmatprep.subr.mxu0 %v12041_v2  ;;  %v3475_v51 = vld [vmem:[%s18508_s8 + $0x58] sm:$0xff] }
0x1a49   :  { %10444 = vmatprep.subr.mxu1 %v12041_v2  ;;  %10410 = vmatpush3.msra.mxu0 %v3209_v52  ;;  %v3474_v52 = vld [vmem:[%s18508_s8 + $0x50] sm:$0xff] }
0x1a4a   :  { %10445 = vmatpush3.msra.mxu1 %v3193_v42  ;;  %10446 = vmatprep.mubr.msk.f32.mxu1 %vm12042_vm0, %v12041_v2  ;;  %v3473_v42 = vld [vmem:[%s18508_s8 + $0x48] sm:$0xff] }
0x1a4b   :  { %10412 = vmatmul.mubr.f32.vlgmr.msra.gmra.mxu0 %v14659_v53  ;;  %10447 = vmatmul.mubr.f32.vlgmr.msra.gmra.mxu1 %v14661_v54 }
0x1a4c   :  { %10449 = vmatprep.subr.mxu0 %v12041_v2  ;;  %10481 = vmatprep.mubr.msk.f32.mxu0 %vm12042_vm0, %v12041_v2 }
0x1a4d   :  { %10484 = vmatprep.subr.mxu1 %v12041_v2  ;;  %10516 = vmatprep.mubr.msk.f32.mxu1 %vm12042_vm0, %v12041_v2 }
0x1a4e   :  { %10450 = vmatpush3.msra.mxu0 %v3393_v60  ;;  %10485 = vmatpush3.msra.mxu1 %v3495_v20  ;;  %v3464_v60 = vld [vmem:[%s18508_s8] sm:$0xff]  ;;  %v3676_v20 = vld [vmem:[%s18511_s11 + $0x128] sm:$0xff] }
0x1a4f   :  { %10451 = vmatprep.subr.mxu0 %v12041_v2  ;;  %10486 = vmatprep.subr.mxu1 %v12041_v2 }
0x1a50   :  { %10452 = vmatpush3.msra.mxu0 %v3392_v61  ;;  %10487 = vmatpush3.msra.mxu1 %v3494_v21  ;;  %v3480_v61 = vld [vmem:[%s18509_s9] sm:$0xff] }
0x1a51   :  { %10453 = vmatprep.subr.mxu0 %v12041_v2  ;;  %10488 = vmatprep.subr.mxu1 %v12041_v2  ;;  %v3675_v21 = vld [vmem:[%s18511_s11 + $0x120] sm:$0xff] }
0x1a52   :  { %10454 = vmatpush3.msra.mxu0 %v3391_v63  ;;  %10489 = vmatpush3.msra.mxu1 %v3493_v22  ;;  %v3685_v63 = vld [vmem:[%s18511_s11 + $0x170] sm:$0xff] }
0x1a53   :  { %10455 = vmatprep.subr.mxu0 %v12041_v2  ;;  %10490 = vmatprep.subr.mxu1 %v12041_v2  ;;  %v3673_v22 = vld [vmem:[%s18511_s11 + $0x110] sm:$0xff] }
0x1a54   :  { %10456 = vmatpush3.msra.mxu0 %v3390_v0  ;;  %10491 = vmatpush3.msra.mxu1 %v3492_v23  ;;  %v3686_v0 = vld [vmem:[%s18511_s11 + $0x178] sm:$0xff]  ;;  %v3672_v23 = vld [vmem:[%s18511_s11 + $0x108] sm:$0xff] }
0x1a55   :  { %10457 = vmatprep.subr.mxu0 %v12041_v2  ;;  %10492 = vmatprep.subr.mxu1 %v12041_v2 }
0x1a56   :  { %10458 = vmatpush3.msra.mxu0 %v3389_v1  ;;  %10493 = vmatpush3.msra.mxu1 %v3491_v26  ;;  %v3680_v1 = vld [vmem:[%s18511_s11 + $0x148] sm:$0xff]  ;;  %v3670_v26 = vld [vmem:[%s18511_s11 + $0xf8] sm:$0xff] }
0x1a57   :  { %10459 = vmatprep.subr.mxu0 %v12041_v2  ;;  %10494 = vmatprep.subr.mxu1 %v12041_v2 }
0x1a58   :  { %10460 = vmatpush3.msra.mxu0 %v3388_v3  ;;  %10495 = vmatpush3.msra.mxu1 %v3490_v27  ;;  %v3677_v3 = vld [vmem:[%s18511_s11 + $0x130] sm:$0xff] }
0x1a59   :  { %10461 = vmatprep.subr.mxu0 %v12041_v2  ;;  %10496 = vmatprep.subr.mxu1 %v12041_v2  ;;  %v3669_v27 = vld [vmem:[%s18511_s11 + $0xf0] sm:$0xff] }
0x1a5a   :  { %10462 = vmatpush3.msra.mxu0 %v3387_v4  ;;  %10497 = vmatpush3.msra.mxu1 %v3489_v28  ;;  %v3674_v4 = vld [vmem:[%s18511_s11 + $0x118] sm:$0xff]  ;;  %v3667_v28 = vld [vmem:[%s18511_s11 + $0xe0] sm:$0xff] }
0x1a5b   :  { %10463 = vmatprep.subr.mxu0 %v12041_v2  ;;  %10498 = vmatprep.subr.mxu1 %v12041_v2 }
0x1a5c   :  { %10464 = vmatpush3.msra.mxu0 %v3386_v5  ;;  %10499 = vmatpush3.msra.mxu1 %v3488_v30  ;;  %v3671_v5 = vld [vmem:[%s18511_s11 + $0x100] sm:$0xff]  ;;  %v3666_v30 = vld [vmem:[%s18511_s11 + $0xd8] sm:$0xff] }
0x1a5d   :  { %10465 = vmatprep.subr.mxu0 %v12041_v2  ;;  %10500 = vmatprep.subr.mxu1 %v12041_v2 }
0x1a5e   :  { %10466 = vmatpush3.msra.mxu0 %v3385_v11  ;;  %10501 = vmatpush3.msra.mxu1 %v3487_v31  ;;  %v3653_v11 = vld [vmem:[%s18511_s11 + $0x70] sm:$0xff]  ;;  %v3664_v31 = vld [vmem:[%s18511_s11 + $0xc8] sm:$0xff] }
0x1a5f   :  { %10467 = vmatprep.subr.mxu0 %v12041_v2  ;;  %10502 = vmatprep.subr.mxu1 %v12041_v2 }
0x1a60   :  { %10468 = vmatpush3.msra.mxu0 %v3384_v12  ;;  %10503 = vmatpush3.msra.mxu1 %v3486_v32  ;;  %v3684_v12 = vld [vmem:[%s18511_s11 + $0x168] sm:$0xff]  ;;  %v3663_v32 = vld [vmem:[%s18511_s11 + $0xc0] sm:$0xff] }
0x1a61   :  { %10469 = vmatprep.subr.mxu0 %v12041_v2  ;;  %10504 = vmatprep.subr.mxu1 %v12041_v2 }
0x1a62   :  { %10470 = vmatpush3.msra.mxu0 %v3383_v13  ;;  %10505 = vmatpush3.msra.mxu1 %v3485_v35  ;;  %v3661_v35 = vld [vmem:[%s18511_s11 + $0xb0] sm:$0xff] }
0x1a63   :  { %10471 = vmatprep.subr.mxu0 %v12041_v2  ;;  %10506 = vmatprep.subr.mxu1 %v12041_v2 }
0x1a64   :  { %10472 = vmatpush3.msra.mxu0 %v3382_v14  ;;  %10507 = vmatpush3.msra.mxu1 %v3484_v36  ;;  %v3682_v14 = vld [vmem:[%s18511_s11 + $0x158] sm:$0xff]  ;;  %v3660_v36 = vld [vmem:[%s18511_s11 + $0xa8] sm:$0xff] }
0x1a65   :  { %10473 = vmatprep.subr.mxu0 %v12041_v2  ;;  %10508 = vmatprep.subr.mxu1 %v12041_v2 }
0x1a66   :  { %10474 = vmatpush3.msra.mxu0 %v3381_v17  ;;  %10509 = vmatpush3.msra.mxu1 %v3483_v38  ;;  %v3681_v17 = vld [vmem:[%s18511_s11 + $0x150] sm:$0xff]  ;;  %v3658_v38 = vld [vmem:[%s18511_s11 + $0x98] sm:$0xff] }
0x1a67   :  { %10475 = vmatprep.subr.mxu0 %v12041_v2  ;;  %10510 = vmatprep.subr.mxu1 %v12041_v2 }
0x1a68   :  { %10476 = vmatpush3.msra.mxu0 %v3380_v18  ;;  %10511 = vmatpush3.msra.mxu1 %v3482_v34  ;;  %v3657_v34 = vld [vmem:[%s18511_s11 + $0x90] sm:$0xff] }
0x1a69   :  { %10477 = vmatprep.subr.mxu0 %v12041_v2  ;;  %10512 = vmatprep.subr.mxu1 %v12041_v2 }
0x1a6a   :  { %10478 = vmatpush3.msra.mxu0 %v3379_v19  ;;  %10513 = vmatpush3.msra.mxu1 %v3481_v40  ;;  %v3679_v19 = vld [vmem:[%s18511_s11 + $0x140] sm:$0xff] }
0x1a6b   :  { %10479 = vmatprep.subr.mxu0 %v12041_v2  ;;  %10514 = vmatprep.subr.mxu1 %v12041_v2  ;;  %v3655_v40 = vld [vmem:[%s18511_s11 + $0x80] sm:$0xff] }
0x1a6c   :  { %10480 = vmatpush3.msra.mxu0 %v3378_v33  ;;  %10515 = vmatpush3.msra.mxu1 %v3480_v61  ;;  %v3678_v33 = vld [vmem:[%s18511_s11 + $0x138] sm:$0xff] }
0x1a6d   :  { %10519 = vmatprep.subr.mxu0 %v12041_v2  ;;  %3704 = vmatprep.subr.mxu1 %v3685_v63 }
0x1b0b   :  { %v3291_v41 = vpop.f32.mrf.mxu0  ;;  %v3361_v29 = vpop.f32.mrf.mxu1 }
0x1b0c   :  { %v3362_v55 = vadd.f32 %v3361_v29, %v3291_v41  ;;  %v3472_v41 = vld [vmem:[%s18508_s8 + $0x40] sm:$0xff]  ;;  %v3471_v29 = vld [vmem:[%s18508_s8 + $0x38] sm:$0xff] }
0x1b0d   :  { %v10413_v56 = vpop.f32.mrf.mxu0  ;;  %v10448_v57 = vpop.f32.mrf.mxu1 }
0x1b0e   :  { %v3366_v58 = vadd.f32 %v3365_v25, %v3362_v55  ;;  %v3470_v25 = vld [vmem:[%s18508_s8 + $0x30] sm:$0xff]  ;;  %v3469_v55 = vld [vmem:[%s18508_s8 + $0x28] sm:$0xff]  ;;  %v3468_v56 = vld [vmem:[%s18508_s8 + $0x20] sm:$0xff] }
0x1b0f   :  { %v3467_v57 = vld [vmem:[%s18508_s8 + $0x18] sm:$0xff] }
0x1b10   :  { %v3367_v59 = vsel %vm264_vm1, %v3366_v58, -inf }
0x1b11   :  { %3368 = vmax.xlane.f32.xlu0 %v3367_v59  ;;  %v3465_v59 = vld [vmem:[%s18508_s8 + $0x8] sm:$0xff] }
0x1b9a   :  { %v3369_v6 = vpop.xlane.xlu0 %3368 }
0x1b9b   :  { %v3370_v7 = vsub.f32 %v3366_v58, %v3369_v6  ;;  %v3466_v58 = vld [vmem:[%s18508_s8 + $0x10] sm:$0xff]  ;;  %v3668_v6 = vld [vmem:[%s18511_s11 + $0xe8] sm:$0xff] }
0x1b9d   :  { %v3371_v8 = vmul.f32 1.442695, %v3370_v7  ;;  %v3665_v7 = vld [vmem:[%s18511_s11 + $0xd0] sm:$0xff] }
0x1b9f   :  { %11857 = vpow2.f32 %v3371_v8  ;;  %v3662_v8 = vld [vmem:[%s18511_s11 + $0xb8] sm:$0xff] }
0x1bac   :  { %v14711_v9 = vpop.eup %11857 }
0x1bad   :  { %v3373_v10 = vsel %vm264_vm1, %v14711_v9, 0.0 }
0x1bae   :  { %3374 = vadd.xlane.f32.xlu0 %v3373_v10  ;;  %v3656_v10 = vld [vmem:[%s18511_s11 + $0x88] sm:$0xff] }
0x1c37   :  { %v3375_v15 = vpop.xlane.xlu0 %3374 }
0x1c38   :  { %11859 = vrcp.f32 %v3375_v15  ;;  %v3654_v15 = vld [vmem:[%s18511_s11 + $0x78] sm:$0xff] }
0x1c45   :  { %v11860_v24 = vpop.eup %11859 }
0x1c46   :  { %v3377_v44 = vmul.f32 %v11860_v24, %v14711_v9  ;;  %v3659_v9 = vld [vmem:[%s18511_s11 + $0xa0] sm:$0xff] }
0x1c47   :  { %v3651_v24 = vld [vmem:[%s18511_s11 + $0x60] sm:$0xff] }
0x1c48   :  { %10482 = vmatmul.mubr.f32.vlgmr.msra.gmra.mxu0 %v3377_v44  ;;  %v4177_v48 = vsel %vm14814_vm5, %v3377_v44, 0.0  ;;  %v3649_v44 = vld [vmem:[%s18511_s11 + $0x50] sm:$0xff] }
0x1c49   :  { %10520 = vmatpush3.msra.mxu0 %v3479_v46  ;;  %10551 = vmatprep.mubr.msk.f32.mxu0 %vm12042_vm0, %v12041_v2  ;;  %4178 = vst [vmem:[#allocation9 + $0x3] sm:$0x1] %v4177_v48  ;;  %v3648_v46 = vld [vmem:[%s18511_s11 + $0x48] sm:$0xff] }
0x1c4a   :  { %10521 = vmatprep.subr.mxu0 %v12041_v2 }
0x1c4b   :  { %10522 = vmatpush3.msra.mxu0 %v3478_v47 }
0x1c4c   :  { %10523 = vmatprep.subr.mxu0 %v12041_v2 }
0x1c4d   :  { %10524 = vmatpush3.msra.mxu0 %v3477_v49  ;;  %v3646_v49 = vld [vmem:[%s18511_s11 + $0x38] sm:$0xff] }
0x1c4e   :  { %10525 = vmatprep.subr.mxu0 %v12041_v2 }
0x1c4f   :  { %10526 = vmatpush3.msra.mxu0 %v3476_v50  ;;  %v3650_v50 = vld [vmem:[%s18511_s11 + $0x58] sm:$0xff] }
0x1c50   :  { %10527 = vmatprep.subr.mxu0 %v12041_v2 }
0x1c51   :  { %10528 = vmatpush3.msra.mxu0 %v3475_v51  ;;  %v3645_v51 = vld [vmem:[%s18511_s11 + $0x30] sm:$0xff] }
0x1c52   :  { %10529 = vmatprep.subr.mxu0 %v12041_v2 }
0x1c53   :  { %10530 = vmatpush3.msra.mxu0 %v3474_v52  ;;  %v3643_v52 = vld [vmem:[%s18511_s11 + $0x20] sm:$0xff] }
0x1c54   :  { %10531 = vmatprep.subr.mxu0 %v12041_v2 }
0x1c55   :  { %10532 = vmatpush3.msra.mxu0 %v3473_v42  ;;  %v3647_v42 = vld [vmem:[%s18511_s11 + $0x40] sm:$0xff] }
0x1c56   :  { %10533 = vmatprep.subr.mxu0 %v12041_v2 }
0x1c57   :  { %10534 = vmatpush3.msra.mxu0 %v3472_v41  ;;  %v3642_v41 = vld [vmem:[%s18511_s11 + $0x18] sm:$0xff] }
0x1c58   :  { %10535 = vmatprep.subr.mxu0 %v12041_v2 }
0x1c59   :  { %10536 = vmatpush3.msra.mxu0 %v3471_v29  ;;  %v3640_v29 = vld [vmem:[%s18511_s11 + $0x8] sm:$0xff] }
0x1c5a   :  { %10537 = vmatprep.subr.mxu0 %v12041_v2 }
0x1c5b   :  { %10538 = vmatpush3.msra.mxu0 %v3470_v25  ;;  %v3644_v25 = vld [vmem:[%s18511_s11 + $0x28] sm:$0xff] }
0x1c5c   :  { %10539 = vmatprep.subr.mxu0 %v12041_v2 }
0x1c5d   :  { %10540 = vmatpush3.msra.mxu0 %v3469_v55  ;;  %v3639_v55 = vld [vmem:[%s18511_s11] sm:$0xff] }
0x1c5e   :  { %10541 = vmatprep.subr.mxu0 %v12041_v2 }
0x1c5f   :  { %10542 = vmatpush3.msra.mxu0 %v3468_v56  ;;  %v3641_v56 = vld [vmem:[%s18511_s11 + $0x10] sm:$0xff] }
0x1c60   :  { %10543 = vmatprep.subr.mxu0 %v12041_v2 }
0x1c61   :  { %10544 = vmatpush3.msra.mxu0 %v3467_v57  ;;  %v3891_v57 = vld [vmem:[%s18512_s12 + $0x170] sm:$0xff] }
0x1c62   :  { %10545 = vmatprep.subr.mxu0 %v12041_v2 }
0x1c63   :  { %10546 = vmatpush3.msra.mxu0 %v3466_v58 }
0x1c64   :  { %10547 = vmatprep.subr.mxu0 %v12041_v2 }
0x1c65   :  { %10548 = vmatpush3.msra.mxu0 %v3465_v59  ;;  %v3636_v59 = vld [vmem:[%s18510_s10] sm:$0x1] }
0x1c66   :  { %10549 = vmatprep.subr.mxu0 %v12041_v2 }
0x1c67   :  { %10550 = vmatpush3.msra.mxu0 %v3464_v60 }
0x1c68   :  { %10552 = vmatmul.mubr.f32.vlgmr.msra.gmra.mxu0 %v14661_v54  ;;  %10554 = vmatprep.subr.mxu0 %v12041_v2  ;;  %v3683_v54 = vld [vmem:[%s18511_s11 + $0x160] sm:$0xff] }
0x1c69   :  { %10586 = vmatprep.mubr.msk.f32.mxu0 %vm12042_vm0, %v12041_v2  ;;  %10555 = vmatpush3.msra.mxu0 %v3686_v0 }
0x1c6a   :  { %10556 = vmatprep.subr.mxu0 %v12041_v2 }
0x1c6b   :  { %10557 = vmatpush3.msra.mxu0 %v3683_v54  ;;  %v3890_v54 = vld [vmem:[%s18512_s12 + $0x168] sm:$0xff] }
0x1c6c   :  { %10558 = vmatprep.subr.mxu0 %v12041_v2 }
0x1c6d   :  { %10559 = vmatpush3.msra.mxu0 %v3680_v1  ;;  %v3888_v1 = vld [vmem:[%s18512_s12 + $0x158] sm:$0xff] }
0x1c6e   :  { %10560 = vmatprep.subr.mxu0 %v12041_v2 }
0x1c6f   :  { %10561 = vmatpush3.msra.mxu0 %v3677_v3  ;;  %v3892_v3 = vld [vmem:[%s18512_s12 + $0x178] sm:$0xff] }
0x1c70   :  { %10562 = vmatprep.subr.mxu0 %v12041_v2 }
0x1c71   :  { %10563 = vmatpush3.msra.mxu0 %v3674_v4  ;;  %v3887_v4 = vld [vmem:[%s18512_s12 + $0x150] sm:$0xff] }
0x1c72   :  { %10564 = vmatprep.subr.mxu0 %v12041_v2 }
0x1c73   :  { %10565 = vmatpush3.msra.mxu0 %v3671_v5  ;;  %v3885_v5 = vld [vmem:[%s18512_s12 + $0x140] sm:$0xff] }
0x1c74   :  { %10566 = vmatprep.subr.mxu0 %v12041_v2 }
0x1c75   :  { %10567 = vmatpush3.msra.mxu0 %v3668_v6  ;;  %v3889_v6 = vld [vmem:[%s18512_s12 + $0x160] sm:$0xff] }
0x1c76   :  { %10568 = vmatprep.subr.mxu0 %v12041_v2 }
0x1c77   :  { %10569 = vmatpush3.msra.mxu0 %v3665_v7  ;;  %v3884_v7 = vld [vmem:[%s18512_s12 + $0x138] sm:$0xff] }
0x1c78   :  { %10570 = vmatprep.subr.mxu0 %v12041_v2 }
0x1c79   :  { %10571 = vmatpush3.msra.mxu0 %v3662_v8  ;;  %v3882_v8 = vld [vmem:[%s18512_s12 + $0x128] sm:$0xff] }
0x1c7a   :  { %10572 = vmatprep.subr.mxu0 %v12041_v2 }
0x1c7b   :  { %10573 = vmatpush3.msra.mxu0 %v3659_v9  ;;  %v3886_v9 = vld [vmem:[%s18512_s12 + $0x148] sm:$0xff] }
0x1c7c   :  { %10574 = vmatprep.subr.mxu0 %v12041_v2 }
0x1c7d   :  { %10575 = vmatpush3.msra.mxu0 %v3656_v10  ;;  %v3881_v10 = vld [vmem:[%s18512_s12 + $0x120] sm:$0xff] }
0x1c7e   :  { %10576 = vmatprep.subr.mxu0 %v12041_v2 }
0x1c7f   :  { %10577 = vmatpush3.msra.mxu0 %v3653_v11  ;;  %v3879_v11 = vld [vmem:[%s18512_s12 + $0x110] sm:$0xff] }
0x1c80   :  { %10578 = vmatprep.subr.mxu0 %v12041_v2 }
0x1c81   :  { %10579 = vmatpush3.msra.mxu0 %v3650_v50  ;;  %v3853_v50 = vld [vmem:[%s18512_s12 + $0x40] sm:$0xff] }
0x1c82   :  { %10580 = vmatprep.subr.mxu0 %v12041_v2 }
0x1c83   :  { %10581 = vmatpush3.msra.mxu0 %v3647_v42  ;;  %v3850_v42 = vld [vmem:[%s18512_s12 + $0x28] sm:$0xff] }
0x1c84   :  { %10582 = vmatprep.subr.mxu0 %v12041_v2 }
0x1c85   :  { %10583 = vmatpush3.msra.mxu0 %v3644_v25  ;;  %v4087_v25 = vld [vmem:[%s18515_s15 + $0x78] sm:$0xff] }
0x1c86   :  { %10584 = vmatprep.subr.mxu0 %v12041_v2 }
0x1c87   :  { %10585 = vmatpush3.msra.mxu0 %v3641_v56  ;;  %v4085_v56 = vld [vmem:[%s18515_s15 + $0x68] sm:$0xff] }
0x1c88   :  { %10589 = vmatprep.subr.mxu0 %v12041_v2 }
0x1d08   :  { %v3460_v13 = vpop.f32.mrf.mxu0 }
0x1d09   :  { %10517 = vmatmul.mubr.f32.vlgmr.msra.gmra.mxu1 %v3460_v13  ;;  %v3878_v13 = vld [vmem:[%s18512_s12 + $0x108] sm:$0xff] }
0x1d0a   :  { %v10483_v18 = vpop.f32.mrf.mxu0  ;;  %3705 = vmatpush1.msra.mxu1 %v3684_v12  ;;  %3768 = vmatprep.mubr.f32.mxu1 %v12041_v2  ;;  %v3883_v12 = vld [vmem:[%s18512_s12 + $0x130] sm:$0xff] }
0x1d0b   :  { %3706 = vmatprep.subr.mxu1 %v3682_v14  ;;  %v3876_v14 = vld [vmem:[%s18512_s12 + $0xf8] sm:$0xff]  ;;  %v3875_v18 = vld [vmem:[%s18512_s12 + $0xf0] sm:$0xff] }
0x1d0c   :  { %3707 = vmatpush1.msra.mxu1 %v3681_v17  ;;  %v3880_v17 = vld [vmem:[%s18512_s12 + $0x118] sm:$0xff] }
0x1d0d   :  { %3708 = vmatprep.subr.mxu1 %v3679_v19  ;;  %v3873_v19 = vld [vmem:[%s18512_s12 + $0xe0] sm:$0xff] }
0x1d0e   :  { %3709 = vmatpush1.msra.mxu1 %v3678_v33  ;;  %v3877_v33 = vld [vmem:[%s18512_s12 + $0x100] sm:$0xff] }
0x1d0f   :  { %3710 = vmatprep.subr.mxu1 %v3676_v20  ;;  %v3872_v20 = vld [vmem:[%s18512_s12 + $0xd8] sm:$0xff] }
0x1d10   :  { %3711 = vmatpush1.msra.mxu1 %v3675_v21  ;;  %v3870_v21 = vld [vmem:[%s18512_s12 + $0xc8] sm:$0xff] }
0x1d11   :  { %3712 = vmatprep.subr.mxu1 %v3673_v22  ;;  %v3874_v22 = vld [vmem:[%s18512_s12 + $0xe8] sm:$0xff] }
0x1d12   :  { %3713 = vmatpush1.msra.mxu1 %v3672_v23  ;;  %v3869_v23 = vld [vmem:[%s18512_s12 + $0xc0] sm:$0xff] }
0x1d13   :  { %3714 = vmatprep.subr.mxu1 %v3670_v26  ;;  %v3867_v26 = vld [vmem:[%s18512_s12 + $0xb0] sm:$0xff] }
0x1d14   :  { %3715 = vmatpush1.msra.mxu1 %v3669_v27  ;;  %v3871_v27 = vld [vmem:[%s18512_s12 + $0xd0] sm:$0xff] }
0x1d15   :  { %3716 = vmatprep.subr.mxu1 %v3667_v28  ;;  %v3866_v28 = vld [vmem:[%s18512_s12 + $0xa8] sm:$0xff] }
0x1d16   :  { %3717 = vmatpush1.msra.mxu1 %v3666_v30  ;;  %v3864_v30 = vld [vmem:[%s18512_s12 + $0x98] sm:$0xff] }
0x1d17   :  { %3718 = vmatprep.subr.mxu1 %v3664_v31  ;;  %v3868_v31 = vld [vmem:[%s18512_s12 + $0xb8] sm:$0xff] }
0x1d18   :  { %3719 = vmatpush1.msra.mxu1 %v3663_v32  ;;  %v3863_v32 = vld [vmem:[%s18512_s12 + $0x90] sm:$0xff] }
0x1d19   :  { %3720 = vmatprep.subr.mxu1 %v3661_v35  ;;  %v3861_v35 = vld [vmem:[%s18512_s12 + $0x80] sm:$0xff] }
0x1d1a   :  { %3721 = vmatpush1.msra.mxu1 %v3660_v36  ;;  %v3865_v36 = vld [vmem:[%s18512_s12 + $0xa0] sm:$0xff] }
0x1d1b   :  { %3722 = vmatprep.subr.mxu1 %v3658_v38  ;;  %v3860_v38 = vld [vmem:[%s18512_s12 + $0x78] sm:$0xff] }
0x1d1c   :  { %3723 = vmatpush1.msra.mxu1 %v3657_v34  ;;  %v3858_v34 = vld [vmem:[%s18512_s12 + $0x68] sm:$0xff] }
0x1d1d   :  { %3724 = vmatprep.subr.mxu1 %v3655_v40  ;;  %v3862_v40 = vld [vmem:[%s18512_s12 + $0x88] sm:$0xff] }
0x1d1e   :  { %3725 = vmatpush1.msra.mxu1 %v3654_v15  ;;  %v3857_v15 = vld [vmem:[%s18512_s12 + $0x60] sm:$0xff] }
0x1d1f   :  { %3726 = vmatprep.subr.mxu1 %v3652_v16  ;;  %v3855_v16 = vld [vmem:[%s18512_s12 + $0x50] sm:$0xff] }
0x1d20   :  { %3727 = vmatpush1.msra.mxu1 %v3651_v24  ;;  %v3859_v24 = vld [vmem:[%s18512_s12 + $0x70] sm:$0xff] }
0x1d21   :  { %3728 = vmatprep.subr.mxu1 %v3649_v44  ;;  %v3854_v44 = vld [vmem:[%s18512_s12 + $0x48] sm:$0xff] }
0x1d22   :  { %3729 = vmatpush1.msra.mxu1 %v3648_v46  ;;  %v3852_v46 = vld [vmem:[%s18512_s12 + $0x38] sm:$0xff] }
0x1d23   :  { %3730 = vmatprep.subr.mxu1 %v3646_v49  ;;  %v3849_v49 = vld [vmem:[%s18512_s12 + $0x20] sm:$0xff] }
0x1d24   :  { %3731 = vmatpush1.msra.mxu1 %v3645_v51  ;;  %v3848_v51 = vld [vmem:[%s18512_s12 + $0x18] sm:$0xff] }
0x1d25   :  { %3732 = vmatprep.subr.mxu1 %v3643_v52  ;;  %v3846_v52 = vld [vmem:[%s18512_s12 + $0x8] sm:$0xff] }
0x1d26   :  { %3733 = vmatpush1.msra.mxu1 %v3642_v41  ;;  %v3845_v41 = vld [vmem:[%s18512_s12] sm:$0xff] }
0x1d27   :  { %3734 = vmatprep.subr.mxu1 %v3640_v29  ;;  %v3847_v29 = vld [vmem:[%s18512_s12 + $0x10] sm:$0xff] }
0x1d28   :  { %v3632_v47 = vpop.f32.mrf.mxu0  ;;  %3735 = vmatpush1.msra.mxu1 %v3639_v55  ;;  %v4086_v55 = vld [vmem:[%s18515_s15 + $0x70] sm:$0xff] }
0x1d29   :  { %3910 = vmatprep.subr.mxu1 %v3891_v57  ;;  %v4084_v57 = vld [vmem:[%s18515_s15 + $0x60] sm:$0xff] }
0x1d2a   :  { %v10553_v48 = vpop.f32.mrf.mxu0 }
0x1d2b   :  { %v3851_v48 = vld [vmem:[%s18512_s12 + $0x30] sm:$0xff] }
0x1dc9   :  { %v3562_v58 = vpop.f32.mrf.mxu1 }
0x1dca   :  { %v3633_v60 = vadd.f32 %v3632_v47, %v3562_v58  ;;  %v3856_v47 = vld [vmem:[%s18512_s12 + $0x58] sm:$0xff] }
0x1dcb   :  { %v10518_v61 = vpop.f32.mrf.mxu1  ;;  %v4083_v58 = vld [vmem:[%s18515_s15 + $0x58] sm:$0xff] }
0x1dcc   :  { %v3637_v63 = vadd.f32 %v3636_v59, %v3633_v60  ;;  %v4082_v59 = vld [vmem:[%s18515_s15 + $0x50] sm:$0xff]  ;;  %v4081_v60 = vld [vmem:[%s18515_s15 + $0x48] sm:$0xff]  ;;  %v4080_v61 = vld [vmem:[%s18515_s15 + $0x40] sm:$0xff] }
0x1dce   :  { %v3638_v0 = vmax.f32 %v3637_v63, 0.0  ;;  %v4079_v63 = vld [vmem:[%s18515_s15 + $0x38] sm:$0xff] }
0x1dd0   :  { %3769 = vmatmul.mubr.f32.vlgmr.msra.gmra.mxu1 %v3638_v0  ;;  %10587 = vmatmul.mubr.f32.vlgmr.msra.gmra.mxu0 %v3638_v0  ;;  %v4078_v0 = vld [vmem:[%s18515_s15 + $0x30] sm:$0xff] }
0x1dd1   :  { %3911 = vmatpush1.msra.mxu1 %v3890_v54  ;;  %3974 = vmatprep.mubr.f32.mxu1 %v12041_v2  ;;  %v4077_v54 = vld [vmem:[%s18515_s15 + $0x28] sm:$0xff] }
0x1dd2   :  { %3912 = vmatprep.subr.mxu1 %v3888_v1  ;;  %10590 = vmatpush3.msra.mxu0 %v3892_v3  ;;  %v4076_v1 = vld [vmem:[%s18515_s15 + $0x20] sm:$0xff]  ;;  %v4075_v3 = vld [vmem:[%s18515_s15 + $0x18] sm:$0xff] }
0x1dd3   :  { %3913 = vmatpush1.msra.mxu1 %v3887_v4  ;;  %10591 = vmatprep.subr.mxu0 %v12041_v2  ;;  %v4074_v4 = vld [vmem:[%s18515_s15 + $0x10] sm:$0xff] }
0x1dd4   :  { %3914 = vmatprep.subr.mxu1 %v3885_v5  ;;  %10592 = vmatpush3.msra.mxu0 %v3889_v6  ;;  %v4073_v5 = vld [vmem:[%s18515_s15 + $0x8] sm:$0xff]  ;;  %v4072_v6 = vld [vmem:[%s18515_s15] sm:$0xff] }
0x1dd5   :  { %3915 = vmatpush1.msra.mxu1 %v3884_v7  ;;  %10593 = vmatprep.subr.mxu0 %v12041_v2 }
0x1dd6   :  { %3916 = vmatprep.subr.mxu1 %v3882_v8  ;;  %10594 = vmatpush3.msra.mxu0 %v3886_v9  ;;  %v3687_v9 = vld [vmem:[%s18513_s13] sm:$0x7] }
0x1dd7   :  { %3917 = vmatpush1.msra.mxu1 %v3881_v10  ;;  %10595 = vmatprep.subr.mxu0 %v12041_v2 }
0x1dd8   :  { %3918 = vmatprep.subr.mxu1 %v3879_v11  ;;  %10596 = vmatpush3.msra.mxu0 %v3883_v12  ;;  %v3893_v11 = vld [vmem:[%s18514_s14] sm:$0x7]  ;;  %v3692_v12 = vrot.slane %v3687_v9, %v12904_v39 }
0x1dd9   :  { %3919 = vmatpush1.msra.mxu1 %v3878_v13  ;;  %10597 = vmatprep.subr.mxu0 %v12041_v2  ;;  %v3898_v13 = vrot.slane %v3893_v11, %v12904_v39 }
0x1dda   :  { %3920 = vmatprep.subr.mxu1 %v3876_v14  ;;  %10598 = vmatpush3.msra.mxu0 %v3880_v17 }
0x1ddb   :  { %3921 = vmatpush1.msra.mxu1 %v3875_v18  ;;  %10599 = vmatprep.subr.mxu0 %v12041_v2 }
0x1ddc   :  { %3922 = vmatprep.subr.mxu1 %v3873_v19  ;;  %10600 = vmatpush3.msra.mxu0 %v3877_v33  ;;  %v3902_v33 = vrot.slane %v3893_v11, %v12914_v45 }
0x1ddd   :  { %3923 = vmatpush1.msra.mxu1 %v3872_v20  ;;  %10601 = vmatprep.subr.mxu0 %v12041_v2 }
0x1dde   :  { %3924 = vmatprep.subr.mxu1 %v3870_v21  ;;  %10602 = vmatpush3.msra.mxu0 %v3874_v22  ;;  %v3696_v22 = vrot.slane %v3687_v9, %v12914_v45 }
0x1ddf   :  { %3925 = vmatpush1.msra.mxu1 %v3869_v23  ;;  %10603 = vmatprep.subr.mxu0 %v12041_v2 }
0x1de0   :  { %3926 = vmatprep.subr.mxu1 %v3867_v26  ;;  %10604 = vmatpush3.msra.mxu0 %v3871_v27 }
0x1de1   :  { %3927 = vmatpush1.msra.mxu1 %v3866_v28  ;;  %10605 = vmatprep.subr.mxu0 %v12041_v2 }
0x1de2   :  { %3928 = vmatprep.subr.mxu1 %v3864_v30  ;;  %10606 = vmatpush3.msra.mxu0 %v3868_v31 }
0x1de3   :  { %3929 = vmatpush1.msra.mxu1 %v3863_v32  ;;  %10607 = vmatprep.subr.mxu0 %v12041_v2 }
0x1de4   :  { %3930 = vmatprep.subr.mxu1 %v3861_v35  ;;  %10608 = vmatpush3.msra.mxu0 %v3865_v36 }
0x1de5   :  { %3931 = vmatpush1.msra.mxu1 %v3860_v38  ;;  %10609 = vmatprep.subr.mxu0 %v12041_v2  ;;  %v3906_v38 = vrot.slane %v3893_v11, %v12918_v62 }
0x1de6   :  { %3932 = vmatprep.subr.mxu1 %v3858_v34  ;;  %10610 = vmatpush3.msra.mxu0 %v3862_v40  ;;  %v3700_v40 = vrot.slane %v3687_v9, %v12918_v62 }
0x1de7   :  { %3933 = vmatpush1.msra.mxu1 %v3857_v15  ;;  %10611 = vmatprep.subr.mxu0 %v12041_v2 }
0x1de8   :  { %3934 = vmatprep.subr.mxu1 %v3855_v16  ;;  %10612 = vmatpush3.msra.mxu0 %v3859_v24 }
0x1de9   :  { %3935 = vmatpush1.msra.mxu1 %v3854_v44  ;;  %10613 = vmatprep.subr.mxu0 %v12041_v2 }
0x1dea   :  { %3936 = vmatprep.subr.mxu1 %v3852_v46  ;;  %10614 = vmatpush3.msra.mxu0 %v3856_v47 }
0x1deb   :  { %3937 = vmatpush1.msra.mxu1 %v3851_v48  ;;  %10615 = vmatprep.subr.mxu0 %v12041_v2 }
0x1dec   :  { %3938 = vmatprep.subr.mxu1 %v3849_v49  ;;  %10616 = vmatpush3.msra.mxu0 %v3853_v50 }
0x1ded   :  { %3939 = vmatpush1.msra.mxu1 %v3848_v51  ;;  %10617 = vmatprep.subr.mxu0 %v12041_v2 }
0x1dee   :  { %3940 = vmatprep.subr.mxu1 %v3846_v52  ;;  %10618 = vmatpush3.msra.mxu0 %v3850_v42 }
0x1def   :  { %3941 = vmatpush1.msra.mxu1 %v3845_v41  ;;  %10619 = vmatprep.subr.mxu0 %v12041_v2  ;;  %v4088_v41 = vld [vmem:[%s18516_s16] sm:$0x1] }
0x1df0   :  { %3975 = vmatmul.mubr.f32.vlgmr.msra.gmra.mxu1 %v14659_v53  ;;  %10620 = vmatpush3.msra.mxu0 %v3847_v29 }
0x1df1   :  { %10621 = vmatprep.mubr.msk.f32.mxu0 %vm12042_vm0, %v12041_v2  ;;  %10624 = vmatprep.subr.mxu1 %v12041_v2 }
0x1df2   :  { %10622 = vmatmul.mubr.f32.vlgmr.msra.gmra.mxu0 %v14659_v53  ;;  %10656 = vmatprep.mubr.msk.f32.mxu1 %vm12042_vm0, %v12041_v2 }
0x1df3   :  { %10625 = vmatpush3.msra.mxu1 %v4087_v25 }
0x1df4   :  { %10626 = vmatprep.subr.mxu1 %v12041_v2 }
0x1df5   :  { %10627 = vmatpush3.msra.mxu1 %v4086_v55 }
0x1df6   :  { %10628 = vmatprep.subr.mxu1 %v12041_v2 }
0x1df7   :  { %10629 = vmatpush3.msra.mxu1 %v4085_v56 }
0x1df8   :  { %10630 = vmatprep.subr.mxu1 %v12041_v2 }
0x1df9   :  { %10631 = vmatpush3.msra.mxu1 %v4084_v57 }
0x1dfa   :  { %10632 = vmatprep.subr.mxu1 %v12041_v2 }
0x1dfb   :  { %10633 = vmatpush3.msra.mxu1 %v4083_v58 }
0x1dfc   :  { %10634 = vmatprep.subr.mxu1 %v12041_v2 }
0x1dfd   :  { %10635 = vmatpush3.msra.mxu1 %v4082_v59 }
0x1dfe   :  { %10636 = vmatprep.subr.mxu1 %v12041_v2 }
0x1dff   :  { %10637 = vmatpush3.msra.mxu1 %v4081_v60 }
0x1e00   :  { %10638 = vmatprep.subr.mxu1 %v12041_v2 }
0x1e01   :  { %10639 = vmatpush3.msra.mxu1 %v4080_v61 }
0x1e02   :  { %10640 = vmatprep.subr.mxu1 %v12041_v2 }
0x1e03   :  { %10641 = vmatpush3.msra.mxu1 %v4079_v63 }
0x1e04   :  { %10642 = vmatprep.subr.mxu1 %v12041_v2 }
0x1e05   :  { %10643 = vmatpush3.msra.mxu1 %v4078_v0 }
0x1e06   :  { %10644 = vmatprep.subr.mxu1 %v12041_v2 }
0x1e07   :  { %10645 = vmatpush3.msra.mxu1 %v4077_v54 }
0x1e08   :  { %10646 = vmatprep.subr.mxu1 %v12041_v2 }
0x1e09   :  { %10647 = vmatpush3.msra.mxu1 %v4076_v1 }
0x1e0a   :  { %10648 = vmatprep.subr.mxu1 %v12041_v2 }
0x1e0b   :  { %10649 = vmatpush3.msra.mxu1 %v4075_v3 }
0x1e0c   :  { %10650 = vmatprep.subr.mxu1 %v12041_v2 }
0x1e0d   :  { %10651 = vmatpush3.msra.mxu1 %v4074_v4 }
0x1e0e   :  { %10652 = vmatprep.subr.mxu1 %v12041_v2 }
0x1e0f   :  { %10653 = vmatpush3.msra.mxu1 %v4073_v5 }
0x1e10   :  { %10654 = vmatprep.subr.mxu1 %v12041_v2 }
0x1e11   :  { %10655 = vmatpush3.msra.mxu1 %v4072_v6 }
0x1e90   :  { %v3841_v7 = vpop.f32.mrf.mxu0  ;;  %v3770_v10 = vpop.f32.mrf.mxu1 }
0x1e91   :  { %v3771_v18 = vadd.f32 %v3770_v10, %v3692_v12  ;;  %v3842_v44 = vadd.f32 %v3841_v7, %v3700_v40 }
0x1e92   :  { %v10588_v8 = vpop.f32.mrf.mxu0  ;;  %v3772_v14 = vpop.f32.mrf.mxu1 }
0x1e93   :  { %v3773_v30 = vadd.f32 %v3772_v14, %v3696_v22 }
0x1eb0   :  { %v3976_v17 = vpop.f32.mrf.mxu1 }
0x1eb1   :  { %v3977_v19 = vadd.f32 %v3976_v17, %v3898_v13 }
0x1eb2   :  { %v3978_v20 = vpop.f32.mrf.mxu1  ;;  %v4047_v21 = vpop.f32.mrf.mxu0 }
0x1eb3   :  { %v4051_v23 = vadd.f32 %v3977_v19, %v3771_v18  ;;  %v3979_v28 = vadd.f32 %v3978_v20, %v3902_v33  ;;  %v4048_v16 = vadd.f32 %v4047_v21, %v3906_v38 }
0x1eb4   :  { %v10623_v26 = vpop.f32.mrf.mxu0 }
0x1eb5   :  { %v8428_v27 = vmul.f32 -1.442695, %v4051_v23  ;;  %v4058_v31 = vadd.f32 %v3979_v28, %v3773_v30 }
0x1eb7   :  { %11861 = vpow2.f32 %v8428_v27  ;;  %v8429_v32 = vmul.f32 -1.442695, %v4058_v31 }
0x1eb9   :  { %11863 = vpow2.f32 %v8429_v32 }
0x1ec4   :  { %v11862_v35 = vpop.eup %11861 }
0x1ec5   :  { %v4055_v36 = vadd.f32 1.0, %v11862_v35 }
0x1ec6   :  { %v11864_v34 = vpop.eup %11863 }
0x1ec7   :  { %11865 = vrcp.f32 %v4055_v36  ;;  %v4062_v15 = vadd.f32 1.0, %v11864_v34 }
0x1ec9   :  { %11867 = vrcp.f32 %v4062_v15 }
0x1ed4   :  { %v11866_v24 = vpop.eup %11865 }
0x1ed5   :  { %v4065_v46 = vmul.f32 %v11866_v24, %v4048_v16 }
0x1ed6   :  { %v11868_v48 = vpop.eup %11867 }
0x1ed7   :  { %v4066_v47 = vadd.f32 %v4065_v46, %v3842_v44  ;;  %v4068_v49 = vsub.f32 1.0, %v11868_v48  ;;  %v4070_v52 = vmul.f32 %v11868_v48, %v14659_v53 }
0x1ed9   :  { %11869 = vtanh.f32 %v4066_v47 }
0x1ee6   :  { %v11870_v50 = vpop.eup %11869 }
0x1ee7   :  { %v4069_v51 = vmul.f32 %v11870_v50, %v4068_v49 }
0x1ee9   :  { %v15300_v42 = vadd.f32 %v4070_v52, %v4069_v51 }
0x1eeb   :  { %10657 = vmatmul.mubr.f32.vlgmr.msra.gmra.mxu1 %v15300_v42 }
0x1fab   :  { %v4155_v29 = vpop.f32.mrf.mxu1 }
0x1fac   :  { %v4156_v25 = vadd.f32 %v4155_v29, %v4088_v41 }
0x1fad   :  { %v10658_v55 = vpop.f32.mrf.mxu1 }
0x1fae   :  { %v4159_v56 = vsel %vm264_vm1, %v4156_v25, -inf }
0x1faf   :  { %4160 = vmax.xlane.f32.xlu1 %v4159_v56 }
0x2038   :  { %v4161_v57 = vpop.xlane.xlu1 %4160 }
0x2039   :  { %v4162_v58 = vsub.f32 %v4156_v25, %v4161_v57 }
0x203b   :  { %v4163_v59 = vmul.f32 1.442695, %v4162_v58 }
0x203d   :  { %11871 = vpow2.f32 %v4163_v59 }
0x204a   :  { %v11872_v60 = vpop.eup %11871 }
0x204b   :  { %v4165_v61 = vsel %vm264_vm1, %v11872_v60, 0.0 }
0x204c   :  { %4166 = vadd.xlane.f32.xlu1 %v4165_v61 }
0x20d5   :  { %v4167_v63 = vpop.xlane.xlu1 %4166 }
0x20d6   :  { %11873 = vlog2.f32 %v4167_v63 }
0x20e3   :  { %v11874_v0 = vpop.eup %11873 }
0x20e4   :  { %v4169_v54 = vmul.f32 0.6931472, %v11874_v0 }
0x20e5   :  { %4183 = sbr.rel (%p8430_p8) target bundleno = 8917 (0x22d5), region = 93 }
0x20e6   :  { %v4170_v1 = vsub.f32 %v4162_v58, %v4169_v54 }
0x20e8   :  { %v4175_v3 = vsel %vm14814_vm5, %v4170_v1, 0.0 }
0x20e9   :  { %4176 = vst [vmem:[#allocation8 + $0x3] sm:$0x1] %v4175_v3 }
0x20ea   :  { %v4186_v4 = vsel %vm264_vm1, %v4170_v1, -inf  ;;  %v4185_v5 = vand.u32 127, %v587_v37 }
0x20eb   :  { %4187 = vmax.xlane.f32.xlu0 %v4186_v4 }
0x2174   :  { %v4188_v6 = vpop.xlane.xlu0 %4187 }
0x2175   :  { %vm4189_vm6 = vcmp.eq.f32.partialorder %v4170_v1, %v4188_v6 }
0x2176   :  { %v4190_v7 = vsel %vm4189_vm6, %v4185_v5, 128 }
0x2177   :  { %v4191_v8 = vsel %vm264_vm1, %v4190_v7, 2147483647 }
0x2178   :  { %v4193_v9 = vshra.s32 %v4191_v8, 16  ;;  %v4192_v11 = vand.u32 65535, %v4191_v8 }
0x217a   :  { %v4195_v10 = vcvt.s32.f32 %v4193_v9  ;;  %v4194_v13 = vcvt.s32.f32 %v4192_v11 }
0x217c   :  { %4196 = vmin.xlane.f32.xlu0 %v4195_v10 }
0x2205   :  { %v4197_v12 = vpop.xlane.xlu0 %4196 }
0x2206   :  { %vm4198_vm7 = vcmp.eq.f32.partialorder %v4195_v10, %v4197_v12  ;;  %v4203_v17 = vcvt.f32.s32 %v4197_v12 }
0x2207   :  { %v4199_v14 = vsel %vm4198_vm7, %v4194_v13, inf }
0x2208   :  { %4200 = vmin.xlane.f32.xlu1 %v4199_v14  ;;  %v4204_v19 = vshll.u32 %v4203_v17, 16 }
0x2291   :  { %v4201_v18 = vpop.xlane.xlu1 %4200 }
0x2292   :  { %v4202_v33 = vcvt.f32.s32 %v4201_v18 }
0x2294   :  { %v4205_v20 = vadd.s32 %v4204_v19, %v4202_v33 }
0x2296   :  { %v4206_v21 = vrot.slane %v4205_v20, 4 }
0x2298   :  { %vm4207_vm8 = vcmp.lt.s32.totalorder %v4205_v20, %v4206_v21 }
0x2299   :  { %v4208_v22 = vsel %vm4207_vm8, %v4205_v20, %v4206_v21 }
0x229a   :  { %v4209_v23 = vrot.slane %v4208_v22, 2 }
0x229c   :  { %vm4210_vm9 = vcmp.lt.s32.totalorder %v4208_v22, %v4209_v23 }
0x229d   :  { %v4211_v26 = vsel %vm4210_vm9, %v4208_v22, %v4209_v23 }
0x229e   :  { %v4212_v27 = vrot.slane %v4211_v26, 1 }
0x22a0   :  { %vm4213_vm10 = vcmp.lt.s32.totalorder %v4211_v26, %v4212_v27 }
0x22a1   :  { %v4214_v28 = vsel %vm4213_vm10, %v4211_v26, %v4212_v27 }
0x22a2   :  { %11785 = vpush %v4214_v28 }
0x22d3   :  { %s11786_s24 = spop %11785 }
0x22d4   :  { %4216 = sst [smem:[#allocation2]] %s11786_s24 }
0x22d5 PF:  { %s15314_s21 = sld [smem:[#allocation6 + $0x4]]  ;;  %10659 = vmatprep.subr.mxu0 %v12041_v2  ;;  %10694 = vmatprep.subr.mxu1 %v12041_v2  ;;  %v4260_v30 = vld [vmem:[%s18506_s6 + $0x78] sm:$0xff]  ;;  %v4259_v32 = vld [vmem:[%s18506_s6 + $0x70] sm:$0xff]  ;;  %v4258_v36 = vld [vmem:[%s18506_s6 + $0x68] sm:$0xff]  ;;  %v15454_v1 = vsel %vm14814_vm5, %v15300_v42, %v14659_v53  ;;  %s4220_s29 = ssub.s32 1, %s14519_s28 }
0x22d6   :  { %v4244_v31 = vld [vmem:[%s18505_s5 + $0x78] sm:$0xff]  ;;  %10660 = vmatpush3.msra.mxu0 %v4260_v30  ;;  %v4243_v35 = vld [vmem:[%s18505_s5 + $0x70] sm:$0xff]  ;;  %v4242_v38 = vld [vmem:[%s18505_s5 + $0x68] sm:$0xff]  ;;  %s8432_s0 = sld [smem:[#allocation3 + $0x4]]  ;;  %10691 = vmatprep.mubr.msk.f32.mxu0 %vm12042_vm0, %v12041_v2 }
0x22d7   :  { %10695 = vmatpush3.msra.mxu1 %v4244_v31  ;;  %10661 = vmatprep.subr.mxu0 %v12041_v2  ;;  %v4257_v34 = vld [vmem:[%s18506_s6 + $0x60] sm:$0xff]  ;;  %v4256_v15 = vld [vmem:[%s18506_s6 + $0x58] sm:$0xff]  ;;  %s15354_s30 = sld [smem:[#allocation2]]  ;;  %v4255_v24 = vld [vmem:[%s18506_s6 + $0x50] sm:$0xff] }
0x22d8   :  { %10696 = vmatprep.subr.mxu1 %v12041_v2  ;;  %10662 = vmatpush3.msra.mxu0 %v4259_v32  ;;  %v4241_v40 = vld [vmem:[%s18505_s5 + $0x60] sm:$0xff]  ;;  %v4240_v16 = vld [vmem:[%s18505_s5 + $0x58] sm:$0xff]  ;;  %v4239_v44 = vld [vmem:[%s18505_s5 + $0x50] sm:$0xff]  ;;  %s18546_s25 = sld [smem:[#allocation19_spill]] }
0x22d9   :  { %10697 = vmatpush3.msra.mxu1 %v4243_v35  ;;  %10663 = vmatprep.subr.mxu0 %v12041_v2  ;;  %v4254_v46 = vld [vmem:[%s18506_s6 + $0x48] sm:$0xff]  ;;  %v4253_v48 = vld [vmem:[%s18506_s6 + $0x40] sm:$0xff]  ;;  %v4252_v50 = vld [vmem:[%s18506_s6 + $0x38] sm:$0xff] }
0x22da   :  { %10698 = vmatprep.subr.mxu1 %v12041_v2  ;;  %10664 = vmatpush3.msra.mxu0 %v4258_v36  ;;  %v4238_v47 = vld [vmem:[%s18505_s5 + $0x48] sm:$0xff]  ;;  %v4237_v49 = vld [vmem:[%s18505_s5 + $0x40] sm:$0xff]  ;;  %v4236_v51 = vld [vmem:[%s18505_s5 + $0x38] sm:$0xff] }
0x22db   :  { %10699 = vmatpush3.msra.mxu1 %v4242_v38  ;;  %10665 = vmatprep.subr.mxu0 %v12041_v2  ;;  %v4251_v52 = vld [vmem:[%s18506_s6 + $0x30] sm:$0xff]  ;;  %v4250_v29 = vld [vmem:[%s18506_s6 + $0x28] sm:$0xff]  ;;  %v4249_v55 = vld [vmem:[%s18506_s6 + $0x20] sm:$0xff]  ;;  %p8435_p12 = scmp.ne.s32.totalorder %s15314_s21, 0 }
0x22dc   :  { %10700 = vmatprep.subr.mxu1 %v12041_v2  ;;  %10666 = vmatpush3.msra.mxu0 %v4257_v34  ;;  %5215 = sst [smem:[#allocation2]] %s8432_s0  ;;  %v4235_v41 = vld [vmem:[%s18505_s5 + $0x30] sm:$0xff]  ;;  %v4234_v25 = vld [vmem:[%s18505_s5 + $0x28] sm:$0xff]  ;;  %v4233_v56 = vld [vmem:[%s18505_s5 + $0x20] sm:$0xff] }
0x22dd   :  { %10701 = vmatpush3.msra.mxu1 %v4241_v40  ;;  %10667 = vmatprep.subr.mxu0 %v12041_v2  ;;  %v4248_v57 = vld [vmem:[%s18506_s6 + $0x18] sm:$0xff]  ;;  %v4247_v59 = vld [vmem:[%s18506_s6 + $0x10] sm:$0xff]  ;;  %v4246_v61 = vld [vmem:[%s18506_s6 + $0x8] sm:$0xff]  ;;  %s4227_s26 = scalar_lea.vmem %s18504_s4, %s15354_s30  ;;  %p4218_p9 = scmp.eq.s32.totalorder %s15354_s30, 1 }
0x22de   :  { %10702 = vmatprep.subr.mxu1 %v12041_v2  ;;  %10668 = vmatpush3.msra.mxu0 %v4256_v15  ;;  %v4232_v58 = vld [vmem:[%s18505_s5 + $0x18] sm:$0xff]  ;;  %v4231_v60 = vld [vmem:[%s18505_s5 + $0x10] sm:$0xff]  ;;  %v4230_v63 = vld [vmem:[%s18505_s5 + $0x8] sm:$0xff] }
0x22df   :  { %10703 = vmatpush3.msra.mxu1 %v4240_v16  ;;  %10669 = vmatprep.subr.mxu0 %v12041_v2  ;;  %v4245_v0 = vld [vmem:[%s18506_s6] sm:$0xff]  ;;  %v4429_v9 = vld [vmem:[%s18546_s25 + $0x78] sm:$0xff]  ;;  %v4428_v10 = vld [vmem:[%s18546_s25 + $0x70] sm:$0xff]  ;;  %s4219_s2 = scalar_select %p4218_p9, 1, 0 }
0x22e0   :  { %10704 = vmatprep.subr.mxu1 %v12041_v2  ;;  %10670 = vmatpush3.msra.mxu0 %v4255_v24  ;;  %v4229_v54 = vld [vmem:[%s18505_s5] sm:$0xff]  ;;  %v4427_v11 = vld [vmem:[%s18546_s25 + $0x68] sm:$0xff]  ;;  %v4425_v13 = vld [vmem:[%s18546_s25 + $0x58] sm:$0xff] }
0x22e1   :  { %10705 = vmatpush3.msra.mxu1 %v4239_v44  ;;  %10671 = vmatprep.subr.mxu0 %v12041_v2  ;;  %v15456_v3 = vld [vmem:[%s4227_s26] sm:$0x1]  ;;  %v4424_v14 = vld [vmem:[%s18546_s25 + $0x50] sm:$0xff]  ;;  %v4423_v17 = vld [vmem:[%s18546_s25 + $0x48] sm:$0xff]  ;;  %s4221_s23 = smul.u32 %s4220_s29, %s4219_s2 }
0x22e2   :  { %10706 = vmatprep.subr.mxu1 %v12041_v2  ;;  %10672 = vmatpush3.msra.mxu0 %v4254_v46  ;;  %v4401_v42 = vld [vmem:[%s18507_s7] sm:$0x1]  ;;  %v4421_v23 = vld [vmem:[%s18546_s25 + $0x38] sm:$0xff]  ;;  %v4420_v26 = vld [vmem:[%s18546_s25 + $0x30] sm:$0xff] }
0x22e3   :  { %10707 = vmatpush3.msra.mxu1 %v4238_v47  ;;  %10673 = vmatprep.subr.mxu0 %v12041_v2  ;;  %v4426_v12 = vld [vmem:[%s18546_s25 + $0x60] sm:$0xff]  ;;  %v4419_v27 = vld [vmem:[%s18546_s25 + $0x28] sm:$0xff]  ;;  %v4417_v30 = vld [vmem:[%s18546_s25 + $0x18] sm:$0xff]  ;;  %p4222_p10 = scmp.gt.s32.totalorder %s18563_s20, %s4221_s23 }
0x22e4   :  { %10708 = vmatprep.subr.mxu1 %v12041_v2  ;;  %10674 = vmatpush3.msra.mxu0 %v4253_v48  ;;  %v4422_v18 = vld [vmem:[%s18546_s25 + $0x40] sm:$0xff]  ;;  %v4416_v31 = vld [vmem:[%s18546_s25 + $0x10] sm:$0xff]  ;;  %v4415_v32 = vld [vmem:[%s18546_s25 + $0x8] sm:$0xff] }
0x22e5   :  { %10709 = vmatpush3.msra.mxu1 %v4237_v49  ;;  %10675 = vmatprep.subr.mxu0 %v12041_v2  ;;  %v4418_v28 = vld [vmem:[%s18546_s25 + $0x20] sm:$0xff]  ;;  %v4531_v36 = vld [vmem:[%s18509_s9 + $0x78] sm:$0xff]  ;;  %v4530_v38 = vld [vmem:[%s18509_s9 + $0x70] sm:$0xff]  ;;  %s18565_s20 = smov (!%p4222_p10, %s18563_s20), %s4221_s23 }
0x22e6   :  { %10710 = vmatprep.subr.mxu1 %v12041_v2  ;;  %10676 = vmatpush3.msra.mxu0 %v4252_v50  ;;  %v4414_v35 = vld [vmem:[%s18546_s25] sm:$0xff]  ;;  %v4529_v34 = vld [vmem:[%s18509_s9 + $0x68] sm:$0xff]  ;;  %v4527_v15 = vld [vmem:[%s18509_s9 + $0x58] sm:$0xff]  ;;  %p5207_p11 = scmp.eq.s32.totalorder %s18565_s20, 0 }
0x22e7   :  { %10711 = vmatpush3.msra.mxu1 %v4236_v51  ;;  %10677 = vmatprep.subr.mxu0 %v12041_v2  ;;  %v4528_v40 = vld [vmem:[%s18509_s9 + $0x60] sm:$0xff]  ;;  %v4526_v16 = vld [vmem:[%s18509_s9 + $0x50] sm:$0xff]  ;;  %v4525_v24 = vld [vmem:[%s18509_s9 + $0x48] sm:$0xff] }
0x22e8   :  { %10712 = vmatprep.subr.mxu1 %v12041_v2  ;;  %10678 = vmatpush3.msra.mxu0 %v4251_v52  ;;  %v4524_v44 = vld [vmem:[%s18509_s9 + $0x40] sm:$0xff]  ;;  %v4523_v46 = vld [vmem:[%s18509_s9 + $0x38] sm:$0xff]  ;;  %v4522_v47 = vld [vmem:[%s18509_s9 + $0x30] sm:$0xff]  ;;  %s5208_s0 = scalar_select %p5207_p11, 1, 0 }
0x22e9   :  { %10713 = vmatpush3.msra.mxu1 %v4235_v41  ;;  %10679 = vmatprep.subr.mxu0 %v12041_v2  ;;  %v4521_v48 = vld [vmem:[%s18509_s9 + $0x28] sm:$0xff]  ;;  %v4520_v49 = vld [vmem:[%s18509_s9 + $0x20] sm:$0xff]  ;;  %v4519_v50 = vld [vmem:[%s18509_s9 + $0x18] sm:$0xff] }
0x22ea   :  { %10714 = vmatprep.subr.mxu1 %v12041_v2  ;;  %10680 = vmatpush3.msra.mxu0 %v4250_v29  ;;  %v4518_v51 = vld [vmem:[%s18509_s9 + $0x10] sm:$0xff]  ;;  %v4517_v52 = vld [vmem:[%s18509_s9 + $0x8] sm:$0xff]  ;;  %v5209_v29 = vstv %s5208_s0 }
0x22eb   :  { %10715 = vmatpush3.msra.mxu1 %v4234_v25  ;;  %10681 = vmatprep.subr.mxu0 %v12041_v2  ;;  %vm15609_vm11 = vcmp.eq.s32.totalorder %v5209_v29, 1  ;;  %v4688_v29 = vld [vmem:[%s18511_s11 + $0x68] sm:$0xff] }
0x22ec   :  { %10716 = vmatprep.subr.mxu1 %v12041_v2  ;;  %10682 = vmatpush3.msra.mxu0 %v4249_v55 }
0x22ed   :  { %10717 = vmatpush3.msra.mxu1 %v4233_v56  ;;  %10683 = vmatprep.subr.mxu0 %v12041_v2 }
0x22ee   :  { %10718 = vmatprep.subr.mxu1 %v12041_v2  ;;  %10684 = vmatpush3.msra.mxu0 %v4248_v57  ;;  %v4515_v57 = vld [vmem:[%s18508_s8 + $0x78] sm:$0xff] }
0x22ef   :  { %10719 = vmatpush3.msra.mxu1 %v4232_v58  ;;  %10685 = vmatprep.subr.mxu0 %v12041_v2  ;;  %v4514_v58 = vld [vmem:[%s18508_s8 + $0x70] sm:$0xff] }
0x22f0   :  { %10720 = vmatprep.subr.mxu1 %v12041_v2  ;;  %10686 = vmatpush3.msra.mxu0 %v4247_v59 }
0x22f1   :  { %10721 = vmatpush3.msra.mxu1 %v4231_v60  ;;  %10687 = vmatprep.subr.mxu0 %v12041_v2  ;;  %v4513_v60 = vld [vmem:[%s18508_s8 + $0x68] sm:$0xff] }
0x22f2   :  { %10722 = vmatprep.subr.mxu1 %v12041_v2  ;;  %10688 = vmatpush3.msra.mxu0 %v4246_v61  ;;  %v4512_v61 = vld [vmem:[%s18508_s8 + $0x60] sm:$0xff] }
0x22f3   :  { %10723 = vmatpush3.msra.mxu1 %v4230_v63  ;;  %10689 = vmatprep.subr.mxu0 %v12041_v2  ;;  %v4511_v63 = vld [vmem:[%s18508_s8 + $0x58] sm:$0xff] }
0x22f4   :  { %10724 = vmatprep.subr.mxu1 %v12041_v2  ;;  %10690 = vmatpush3.msra.mxu0 %v4245_v0  ;;  %v4510_v0 = vld [vmem:[%s18508_s8 + $0x50] sm:$0xff] }
0x22f5   :  { %10725 = vmatpush3.msra.mxu1 %v4229_v54  ;;  %10726 = vmatprep.mubr.msk.f32.mxu1 %vm12042_vm0, %v12041_v2  ;;  %v4509_v54 = vld [vmem:[%s18508_s8 + $0x48] sm:$0xff] }
0x22f6   :  { %10692 = vmatmul.mubr.f32.vlgmr.msra.gmra.mxu0 %v15454_v1  ;;  %10727 = vmatmul.mubr.f32.vlgmr.msra.gmra.mxu1 %v15456_v3 }
0x22f7   :  { %10729 = vmatprep.subr.mxu0 %v12041_v2  ;;  %10761 = vmatprep.mubr.msk.f32.mxu0 %vm12042_vm0, %v12041_v2 }
0x22f8   :  { %10764 = vmatprep.subr.mxu1 %v12041_v2  ;;  %10796 = vmatprep.mubr.msk.f32.mxu1 %vm12042_vm0, %v12041_v2 }
0x22f9   :  { %10730 = vmatpush3.msra.mxu0 %v4429_v9  ;;  %10765 = vmatpush3.msra.mxu1 %v4531_v36  ;;  %v4500_v9 = vld [vmem:[%s18508_s8] sm:$0xff]  ;;  %v4712_v36 = vld [vmem:[%s18511_s11 + $0x128] sm:$0xff] }
0x22fa   :  { %10731 = vmatprep.subr.mxu0 %v12041_v2  ;;  %10766 = vmatprep.subr.mxu1 %v12041_v2 }
0x22fb   :  { %10732 = vmatpush3.msra.mxu0 %v4428_v10  ;;  %10767 = vmatpush3.msra.mxu1 %v4530_v38  ;;  %v4516_v10 = vld [vmem:[%s18509_s9] sm:$0xff] }
0x22fc   :  { %10733 = vmatprep.subr.mxu0 %v12041_v2  ;;  %10768 = vmatprep.subr.mxu1 %v12041_v2  ;;  %v4711_v38 = vld [vmem:[%s18511_s11 + $0x120] sm:$0xff] }
0x22fd   :  { %10734 = vmatpush3.msra.mxu0 %v4427_v11  ;;  %10769 = vmatpush3.msra.mxu1 %v4529_v34  ;;  %v4721_v11 = vld [vmem:[%s18511_s11 + $0x170] sm:$0xff] }
0x22fe   :  { %10735 = vmatprep.subr.mxu0 %v12041_v2  ;;  %10770 = vmatprep.subr.mxu1 %v12041_v2  ;;  %v4709_v34 = vld [vmem:[%s18511_s11 + $0x110] sm:$0xff] }
0x22ff   :  { %10736 = vmatpush3.msra.mxu0 %v4426_v12  ;;  %10771 = vmatpush3.msra.mxu1 %v4528_v40  ;;  %v4722_v12 = vld [vmem:[%s18511_s11 + $0x178] sm:$0xff]  ;;  %v4708_v40 = vld [vmem:[%s18511_s11 + $0x108] sm:$0xff] }
0x2300   :  { %10737 = vmatprep.subr.mxu0 %v12041_v2  ;;  %10772 = vmatprep.subr.mxu1 %v12041_v2 }
0x2301   :  { %10738 = vmatpush3.msra.mxu0 %v4425_v13  ;;  %10773 = vmatpush3.msra.mxu1 %v4527_v15  ;;  %v4716_v13 = vld [vmem:[%s18511_s11 + $0x148] sm:$0xff]  ;;  %v4706_v15 = vld [vmem:[%s18511_s11 + $0xf8] sm:$0xff] }
0x2302   :  { %10739 = vmatprep.subr.mxu0 %v12041_v2  ;;  %10774 = vmatprep.subr.mxu1 %v12041_v2 }
0x2303   :  { %10740 = vmatpush3.msra.mxu0 %v4424_v14  ;;  %10775 = vmatpush3.msra.mxu1 %v4526_v16  ;;  %v4713_v14 = vld [vmem:[%s18511_s11 + $0x130] sm:$0xff] }
0x2304   :  { %10741 = vmatprep.subr.mxu0 %v12041_v2  ;;  %10776 = vmatprep.subr.mxu1 %v12041_v2  ;;  %v4705_v16 = vld [vmem:[%s18511_s11 + $0xf0] sm:$0xff] }
0x2305   :  { %10742 = vmatpush3.msra.mxu0 %v4423_v17  ;;  %10777 = vmatpush3.msra.mxu1 %v4525_v24  ;;  %v4710_v17 = vld [vmem:[%s18511_s11 + $0x118] sm:$0xff]  ;;  %v4703_v24 = vld [vmem:[%s18511_s11 + $0xe0] sm:$0xff] }
0x2306   :  { %10743 = vmatprep.subr.mxu0 %v12041_v2  ;;  %10778 = vmatprep.subr.mxu1 %v12041_v2 }
0x2307   :  { %10744 = vmatpush3.msra.mxu0 %v4422_v18  ;;  %10779 = vmatpush3.msra.mxu1 %v4524_v44  ;;  %v4707_v18 = vld [vmem:[%s18511_s11 + $0x100] sm:$0xff]  ;;  %v4702_v44 = vld [vmem:[%s18511_s11 + $0xd8] sm:$0xff] }
0x2308   :  { %10745 = vmatprep.subr.mxu0 %v12041_v2  ;;  %10780 = vmatprep.subr.mxu1 %v12041_v2 }
0x2309   :  { %10746 = vmatpush3.msra.mxu0 %v4421_v23  ;;  %10781 = vmatpush3.msra.mxu1 %v4523_v46  ;;  %v4689_v23 = vld [vmem:[%s18511_s11 + $0x70] sm:$0xff]  ;;  %v4700_v46 = vld [vmem:[%s18511_s11 + $0xc8] sm:$0xff] }
0x230a   :  { %10747 = vmatprep.subr.mxu0 %v12041_v2  ;;  %10782 = vmatprep.subr.mxu1 %v12041_v2 }
0x230b   :  { %10748 = vmatpush3.msra.mxu0 %v4420_v26  ;;  %10783 = vmatpush3.msra.mxu1 %v4522_v47  ;;  %v4720_v26 = vld [vmem:[%s18511_s11 + $0x168] sm:$0xff]  ;;  %v4699_v47 = vld [vmem:[%s18511_s11 + $0xc0] sm:$0xff] }
0x230c   :  { %10749 = vmatprep.subr.mxu0 %v12041_v2  ;;  %10784 = vmatprep.subr.mxu1 %v12041_v2 }
0x230d   :  { %10750 = vmatpush3.msra.mxu0 %v4419_v27  ;;  %10785 = vmatpush3.msra.mxu1 %v4521_v48  ;;  %v4697_v48 = vld [vmem:[%s18511_s11 + $0xb0] sm:$0xff] }
0x230e   :  { %10751 = vmatprep.subr.mxu0 %v12041_v2  ;;  %10786 = vmatprep.subr.mxu1 %v12041_v2 }
0x230f   :  { %10752 = vmatpush3.msra.mxu0 %v4418_v28  ;;  %10787 = vmatpush3.msra.mxu1 %v4520_v49  ;;  %v4718_v28 = vld [vmem:[%s18511_s11 + $0x158] sm:$0xff]  ;;  %v4696_v49 = vld [vmem:[%s18511_s11 + $0xa8] sm:$0xff] }
0x2310   :  { %10753 = vmatprep.subr.mxu0 %v12041_v2  ;;  %10788 = vmatprep.subr.mxu1 %v12041_v2 }
0x2311   :  { %10754 = vmatpush3.msra.mxu0 %v4417_v30  ;;  %10789 = vmatpush3.msra.mxu1 %v4519_v50  ;;  %v4717_v30 = vld [vmem:[%s18511_s11 + $0x150] sm:$0xff]  ;;  %v4694_v50 = vld [vmem:[%s18511_s11 + $0x98] sm:$0xff] }
0x2312   :  { %10755 = vmatprep.subr.mxu0 %v12041_v2  ;;  %10790 = vmatprep.subr.mxu1 %v12041_v2 }
0x2313   :  { %10756 = vmatpush3.msra.mxu0 %v4416_v31  ;;  %10791 = vmatpush3.msra.mxu1 %v4518_v51  ;;  %v4693_v51 = vld [vmem:[%s18511_s11 + $0x90] sm:$0xff] }
0x2314   :  { %10757 = vmatprep.subr.mxu0 %v12041_v2  ;;  %10792 = vmatprep.subr.mxu1 %v12041_v2 }
0x2315   :  { %10758 = vmatpush3.msra.mxu0 %v4415_v32  ;;  %10793 = vmatpush3.msra.mxu1 %v4517_v52  ;;  %v4715_v32 = vld [vmem:[%s18511_s11 + $0x140] sm:$0xff] }
0x2316   :  { %10759 = vmatprep.subr.mxu0 %v12041_v2  ;;  %10794 = vmatprep.subr.mxu1 %v12041_v2  ;;  %v4691_v52 = vld [vmem:[%s18511_s11 + $0x80] sm:$0xff] }
0x2317   :  { %10760 = vmatpush3.msra.mxu0 %v4414_v35  ;;  %10795 = vmatpush3.msra.mxu1 %v4516_v10  ;;  %v4714_v35 = vld [vmem:[%s18511_s11 + $0x138] sm:$0xff] }
0x2318   :  { %10799 = vmatprep.subr.mxu0 %v12041_v2  ;;  %4740 = vmatprep.subr.mxu1 %v4721_v11 }
0x23b6   :  { %v4327_v53 = vpop.f32.mrf.mxu0  ;;  %v4397_v43 = vpop.f32.mrf.mxu1 }
0x23b7   :  { %v4398_v4 = vadd.f32 %v4397_v43, %v4327_v53  ;;  %v4508_v53 = vld [vmem:[%s18508_s8 + $0x40] sm:$0xff]  ;;  %v4507_v43 = vld [vmem:[%s18508_s8 + $0x38] sm:$0xff] }
0x23b8   :  { %v10693_v5 = vpop.f32.mrf.mxu0  ;;  %v10728_v6 = vpop.f32.mrf.mxu1 }
0x23b9   :  { %v4402_v7 = vadd.f32 %v4401_v42, %v4398_v4  ;;  %v4506_v42 = vld [vmem:[%s18508_s8 + $0x30] sm:$0xff]  ;;  %v4505_v4 = vld [vmem:[%s18508_s8 + $0x28] sm:$0xff]  ;;  %v4504_v5 = vld [vmem:[%s18508_s8 + $0x20] sm:$0xff] }
0x23ba   :  { %v4503_v6 = vld [vmem:[%s18508_s8 + $0x18] sm:$0xff] }
0x23bb   :  { %v4403_v8 = vsel %vm264_vm1, %v4402_v7, -inf }
0x23bc   :  { %4404 = vmax.xlane.f32.xlu0 %v4403_v8  ;;  %v4501_v8 = vld [vmem:[%s18508_s8 + $0x8] sm:$0xff] }
0x2445   :  { %v4405_v19 = vpop.xlane.xlu0 %4404 }
0x2446   :  { %v4406_v33 = vsub.f32 %v4402_v7, %v4405_v19  ;;  %v4502_v7 = vld [vmem:[%s18508_s8 + $0x10] sm:$0xff]  ;;  %v4704_v19 = vld [vmem:[%s18511_s11 + $0xe8] sm:$0xff] }
0x2448   :  { %v4407_v20 = vmul.f32 1.442695, %v4406_v33  ;;  %v4701_v33 = vld [vmem:[%s18511_s11 + $0xd0] sm:$0xff] }
0x244a   :  { %11875 = vpow2.f32 %v4407_v20  ;;  %v4698_v20 = vld [vmem:[%s18511_s11 + $0xb8] sm:$0xff] }
0x2457   :  { %v15506_v21 = vpop.eup %11875 }
0x2458   :  { %v4409_v22 = vsel %vm264_vm1, %v15506_v21, 0.0 }
0x2459   :  { %4410 = vadd.xlane.f32.xlu0 %v4409_v22  ;;  %v4692_v22 = vld [vmem:[%s18511_s11 + $0x88] sm:$0xff] }
0x24e2   :  { %v4411_v41 = vpop.xlane.xlu0 %4410 }
0x24e3   :  { %11877 = vrcp.f32 %v4411_v41  ;;  %v4690_v41 = vld [vmem:[%s18511_s11 + $0x78] sm:$0xff] }
0x24f0   :  { %v11878_v25 = vpop.eup %11877 }
0x24f1   :  { %v4413_v56 = vmul.f32 %v11878_v25, %v15506_v21  ;;  %v4695_v21 = vld [vmem:[%s18511_s11 + $0xa0] sm:$0xff] }
0x24f2   :  { %v4687_v25 = vld [vmem:[%s18511_s11 + $0x60] sm:$0xff] }
0x24f3   :  { %10762 = vmatmul.mubr.f32.vlgmr.msra.gmra.mxu0 %v4413_v56  ;;  %v5213_v59 = vsel %vm15609_vm11, %v4413_v56, 0.0  ;;  %v4685_v56 = vld [vmem:[%s18511_s11 + $0x50] sm:$0xff] }
0x24f4   :  { %10800 = vmatpush3.msra.mxu0 %v4515_v57  ;;  %10831 = vmatprep.mubr.msk.f32.mxu0 %vm12042_vm0, %v12041_v2  ;;  %5214 = vst [vmem:[#allocation9 + $0x4] sm:$0x1] %v5213_v59  ;;  %v4684_v57 = vld [vmem:[%s18511_s11 + $0x48] sm:$0xff] }
0x24f5   :  { %10801 = vmatprep.subr.mxu0 %v12041_v2 }
0x24f6   :  { %10802 = vmatpush3.msra.mxu0 %v4514_v58 }
0x24f7   :  { %10803 = vmatprep.subr.mxu0 %v12041_v2 }
0x24f8   :  { %10804 = vmatpush3.msra.mxu0 %v4513_v60  ;;  %v4682_v60 = vld [vmem:[%s18511_s11 + $0x38] sm:$0xff] }
0x24f9   :  { %10805 = vmatprep.subr.mxu0 %v12041_v2 }
0x24fa   :  { %10806 = vmatpush3.msra.mxu0 %v4512_v61  ;;  %v4686_v61 = vld [vmem:[%s18511_s11 + $0x58] sm:$0xff] }
0x24fb   :  { %10807 = vmatprep.subr.mxu0 %v12041_v2 }
0x24fc   :  { %10808 = vmatpush3.msra.mxu0 %v4511_v63  ;;  %v4681_v63 = vld [vmem:[%s18511_s11 + $0x30] sm:$0xff] }
0x24fd   :  { %10809 = vmatprep.subr.mxu0 %v12041_v2 }
0x24fe   :  { %10810 = vmatpush3.msra.mxu0 %v4510_v0  ;;  %v4679_v0 = vld [vmem:[%s18511_s11 + $0x20] sm:$0xff] }
0x24ff   :  { %10811 = vmatprep.subr.mxu0 %v12041_v2 }
0x2500   :  { %10812 = vmatpush3.msra.mxu0 %v4509_v54  ;;  %v4683_v54 = vld [vmem:[%s18511_s11 + $0x40] sm:$0xff] }
0x2501   :  { %10813 = vmatprep.subr.mxu0 %v12041_v2 }
0x2502   :  { %10814 = vmatpush3.msra.mxu0 %v4508_v53  ;;  %v4678_v53 = vld [vmem:[%s18511_s11 + $0x18] sm:$0xff] }
0x2503   :  { %10815 = vmatprep.subr.mxu0 %v12041_v2 }
0x2504   :  { %10816 = vmatpush3.msra.mxu0 %v4507_v43  ;;  %v4676_v43 = vld [vmem:[%s18511_s11 + $0x8] sm:$0xff] }
0x2505   :  { %10817 = vmatprep.subr.mxu0 %v12041_v2 }
0x2506   :  { %10818 = vmatpush3.msra.mxu0 %v4506_v42  ;;  %v4680_v42 = vld [vmem:[%s18511_s11 + $0x28] sm:$0xff] }
0x2507   :  { %10819 = vmatprep.subr.mxu0 %v12041_v2 }
0x2508   :  { %10820 = vmatpush3.msra.mxu0 %v4505_v4  ;;  %v4675_v4 = vld [vmem:[%s18511_s11] sm:$0xff] }
0x2509   :  { %10821 = vmatprep.subr.mxu0 %v12041_v2 }
0x250a   :  { %10822 = vmatpush3.msra.mxu0 %v4504_v5  ;;  %v4677_v5 = vld [vmem:[%s18511_s11 + $0x10] sm:$0xff] }
0x250b   :  { %10823 = vmatprep.subr.mxu0 %v12041_v2 }
0x250c   :  { %10824 = vmatpush3.msra.mxu0 %v4503_v6  ;;  %v4927_v6 = vld [vmem:[%s18512_s12 + $0x170] sm:$0xff] }
0x250d   :  { %10825 = vmatprep.subr.mxu0 %v12041_v2 }
0x250e   :  { %10826 = vmatpush3.msra.mxu0 %v4502_v7 }
0x250f   :  { %10827 = vmatprep.subr.mxu0 %v12041_v2 }
0x2510   :  { %10828 = vmatpush3.msra.mxu0 %v4501_v8  ;;  %v4672_v8 = vld [vmem:[%s18510_s10] sm:$0x1] }
0x2511   :  { %10829 = vmatprep.subr.mxu0 %v12041_v2 }
0x2512   :  { %10830 = vmatpush3.msra.mxu0 %v4500_v9 }
0x2513   :  { %10832 = vmatmul.mubr.f32.vlgmr.msra.gmra.mxu0 %v15456_v3  ;;  %10834 = vmatprep.subr.mxu0 %v12041_v2  ;;  %v4719_v3 = vld [vmem:[%s18511_s11 + $0x160] sm:$0xff] }
0x2514   :  { %10866 = vmatprep.mubr.msk.f32.mxu0 %vm12042_vm0, %v12041_v2  ;;  %10835 = vmatpush3.msra.mxu0 %v4722_v12 }
0x2515   :  { %10836 = vmatprep.subr.mxu0 %v12041_v2 }
0x2516   :  { %10837 = vmatpush3.msra.mxu0 %v4719_v3  ;;  %v4926_v3 = vld [vmem:[%s18512_s12 + $0x168] sm:$0xff] }
0x2517   :  { %10838 = vmatprep.subr.mxu0 %v12041_v2 }
0x2518   :  { %10839 = vmatpush3.msra.mxu0 %v4716_v13  ;;  %v4924_v13 = vld [vmem:[%s18512_s12 + $0x158] sm:$0xff] }
0x2519   :  { %10840 = vmatprep.subr.mxu0 %v12041_v2 }
0x251a   :  { %10841 = vmatpush3.msra.mxu0 %v4713_v14  ;;  %v4928_v14 = vld [vmem:[%s18512_s12 + $0x178] sm:$0xff] }
0x251b   :  { %10842 = vmatprep.subr.mxu0 %v12041_v2 }
0x251c   :  { %10843 = vmatpush3.msra.mxu0 %v4710_v17  ;;  %v4923_v17 = vld [vmem:[%s18512_s12 + $0x150] sm:$0xff] }
0x251d   :  { %10844 = vmatprep.subr.mxu0 %v12041_v2 }
0x251e   :  { %10845 = vmatpush3.msra.mxu0 %v4707_v18  ;;  %v4921_v18 = vld [vmem:[%s18512_s12 + $0x140] sm:$0xff] }
0x251f   :  { %10846 = vmatprep.subr.mxu0 %v12041_v2 }
0x2520   :  { %10847 = vmatpush3.msra.mxu0 %v4704_v19  ;;  %v4925_v19 = vld [vmem:[%s18512_s12 + $0x160] sm:$0xff] }
0x2521   :  { %10848 = vmatprep.subr.mxu0 %v12041_v2 }
0x2522   :  { %10849 = vmatpush3.msra.mxu0 %v4701_v33  ;;  %v4920_v33 = vld [vmem:[%s18512_s12 + $0x138] sm:$0xff] }
0x2523   :  { %10850 = vmatprep.subr.mxu0 %v12041_v2 }
0x2524   :  { %10851 = vmatpush3.msra.mxu0 %v4698_v20  ;;  %v4918_v20 = vld [vmem:[%s18512_s12 + $0x128] sm:$0xff] }
0x2525   :  { %10852 = vmatprep.subr.mxu0 %v12041_v2 }
0x2526   :  { %10853 = vmatpush3.msra.mxu0 %v4695_v21  ;;  %v4922_v21 = vld [vmem:[%s18512_s12 + $0x148] sm:$0xff] }
0x2527   :  { %10854 = vmatprep.subr.mxu0 %v12041_v2 }
0x2528   :  { %10855 = vmatpush3.msra.mxu0 %v4692_v22  ;;  %v4917_v22 = vld [vmem:[%s18512_s12 + $0x120] sm:$0xff] }
0x2529   :  { %10856 = vmatprep.subr.mxu0 %v12041_v2 }
0x252a   :  { %10857 = vmatpush3.msra.mxu0 %v4689_v23  ;;  %v4915_v23 = vld [vmem:[%s18512_s12 + $0x110] sm:$0xff] }
0x252b   :  { %10858 = vmatprep.subr.mxu0 %v12041_v2 }
0x252c   :  { %10859 = vmatpush3.msra.mxu0 %v4686_v61  ;;  %v4889_v61 = vld [vmem:[%s18512_s12 + $0x40] sm:$0xff] }
0x252d   :  { %10860 = vmatprep.subr.mxu0 %v12041_v2 }
0x252e   :  { %10861 = vmatpush3.msra.mxu0 %v4683_v54  ;;  %v4886_v54 = vld [vmem:[%s18512_s12 + $0x28] sm:$0xff] }
0x252f   :  { %10862 = vmatprep.subr.mxu0 %v12041_v2 }
0x2530   :  { %10863 = vmatpush3.msra.mxu0 %v4680_v42  ;;  %v5123_v42 = vld [vmem:[%s18515_s15 + $0x78] sm:$0xff] }
0x2531   :  { %10864 = vmatprep.subr.mxu0 %v12041_v2 }
0x2532   :  { %10865 = vmatpush3.msra.mxu0 %v4677_v5  ;;  %v5121_v5 = vld [vmem:[%s18515_s15 + $0x68] sm:$0xff] }
0x2533   :  { %10869 = vmatprep.subr.mxu0 %v12041_v2 }
0x25b3   :  { %v4496_v27 = vpop.f32.mrf.mxu0 }
0x25b4   :  { %10797 = vmatmul.mubr.f32.vlgmr.msra.gmra.mxu1 %v4496_v27  ;;  %v4914_v27 = vld [vmem:[%s18512_s12 + $0x108] sm:$0xff] }
0x25b5   :  { %v10763_v31 = vpop.f32.mrf.mxu0  ;;  %4741 = vmatpush1.msra.mxu1 %v4720_v26  ;;  %4804 = vmatprep.mubr.f32.mxu1 %v12041_v2  ;;  %v4919_v26 = vld [vmem:[%s18512_s12 + $0x130] sm:$0xff] }
0x25b6   :  { %4742 = vmatprep.subr.mxu1 %v4718_v28  ;;  %v4912_v28 = vld [vmem:[%s18512_s12 + $0xf8] sm:$0xff]  ;;  %v4911_v31 = vld [vmem:[%s18512_s12 + $0xf0] sm:$0xff] }
0x25b7   :  { %4743 = vmatpush1.msra.mxu1 %v4717_v30  ;;  %v4916_v30 = vld [vmem:[%s18512_s12 + $0x118] sm:$0xff] }
0x25b8   :  { %4744 = vmatprep.subr.mxu1 %v4715_v32  ;;  %v4909_v32 = vld [vmem:[%s18512_s12 + $0xe0] sm:$0xff] }
0x25b9   :  { %4745 = vmatpush1.msra.mxu1 %v4714_v35  ;;  %v4913_v35 = vld [vmem:[%s18512_s12 + $0x100] sm:$0xff] }
0x25ba   :  { %4746 = vmatprep.subr.mxu1 %v4712_v36  ;;  %v4908_v36 = vld [vmem:[%s18512_s12 + $0xd8] sm:$0xff] }
0x25bb   :  { %4747 = vmatpush1.msra.mxu1 %v4711_v38  ;;  %v4906_v38 = vld [vmem:[%s18512_s12 + $0xc8] sm:$0xff] }
0x25bc   :  { %4748 = vmatprep.subr.mxu1 %v4709_v34  ;;  %v4910_v34 = vld [vmem:[%s18512_s12 + $0xe8] sm:$0xff] }
0x25bd   :  { %4749 = vmatpush1.msra.mxu1 %v4708_v40  ;;  %v4905_v40 = vld [vmem:[%s18512_s12 + $0xc0] sm:$0xff] }
0x25be   :  { %4750 = vmatprep.subr.mxu1 %v4706_v15  ;;  %v4903_v15 = vld [vmem:[%s18512_s12 + $0xb0] sm:$0xff] }
0x25bf   :  { %4751 = vmatpush1.msra.mxu1 %v4705_v16  ;;  %v4907_v16 = vld [vmem:[%s18512_s12 + $0xd0] sm:$0xff] }
0x25c0   :  { %4752 = vmatprep.subr.mxu1 %v4703_v24  ;;  %v4902_v24 = vld [vmem:[%s18512_s12 + $0xa8] sm:$0xff] }
0x25c1   :  { %4753 = vmatpush1.msra.mxu1 %v4702_v44  ;;  %v4900_v44 = vld [vmem:[%s18512_s12 + $0x98] sm:$0xff] }
0x25c2   :  { %4754 = vmatprep.subr.mxu1 %v4700_v46  ;;  %v4904_v46 = vld [vmem:[%s18512_s12 + $0xb8] sm:$0xff] }
0x25c3   :  { %4755 = vmatpush1.msra.mxu1 %v4699_v47  ;;  %v4899_v47 = vld [vmem:[%s18512_s12 + $0x90] sm:$0xff] }
0x25c4   :  { %4756 = vmatprep.subr.mxu1 %v4697_v48  ;;  %v4897_v48 = vld [vmem:[%s18512_s12 + $0x80] sm:$0xff] }
0x25c5   :  { %4757 = vmatpush1.msra.mxu1 %v4696_v49  ;;  %v4901_v49 = vld [vmem:[%s18512_s12 + $0xa0] sm:$0xff] }
0x25c6   :  { %4758 = vmatprep.subr.mxu1 %v4694_v50  ;;  %v4896_v50 = vld [vmem:[%s18512_s12 + $0x78] sm:$0xff] }
0x25c7   :  { %4759 = vmatpush1.msra.mxu1 %v4693_v51  ;;  %v4894_v51 = vld [vmem:[%s18512_s12 + $0x68] sm:$0xff] }
0x25c8   :  { %4760 = vmatprep.subr.mxu1 %v4691_v52  ;;  %v4898_v52 = vld [vmem:[%s18512_s12 + $0x88] sm:$0xff] }
0x25c9   :  { %4761 = vmatpush1.msra.mxu1 %v4690_v41  ;;  %v4893_v41 = vld [vmem:[%s18512_s12 + $0x60] sm:$0xff] }
0x25ca   :  { %4762 = vmatprep.subr.mxu1 %v4688_v29  ;;  %v4891_v29 = vld [vmem:[%s18512_s12 + $0x50] sm:$0xff] }
0x25cb   :  { %4763 = vmatpush1.msra.mxu1 %v4687_v25  ;;  %v4895_v25 = vld [vmem:[%s18512_s12 + $0x70] sm:$0xff] }
0x25cc   :  { %4764 = vmatprep.subr.mxu1 %v4685_v56  ;;  %v4890_v56 = vld [vmem:[%s18512_s12 + $0x48] sm:$0xff] }
0x25cd   :  { %4765 = vmatpush1.msra.mxu1 %v4684_v57  ;;  %v4888_v57 = vld [vmem:[%s18512_s12 + $0x38] sm:$0xff] }
0x25ce   :  { %4766 = vmatprep.subr.mxu1 %v4682_v60  ;;  %v4885_v60 = vld [vmem:[%s18512_s12 + $0x20] sm:$0xff] }
0x25cf   :  { %4767 = vmatpush1.msra.mxu1 %v4681_v63  ;;  %v4884_v63 = vld [vmem:[%s18512_s12 + $0x18] sm:$0xff] }
0x25d0   :  { %4768 = vmatprep.subr.mxu1 %v4679_v0  ;;  %v4882_v0 = vld [vmem:[%s18512_s12 + $0x8] sm:$0xff] }
0x25d1   :  { %4769 = vmatpush1.msra.mxu1 %v4678_v53  ;;  %v4881_v53 = vld [vmem:[%s18512_s12] sm:$0xff] }
0x25d2   :  { %4770 = vmatprep.subr.mxu1 %v4676_v43  ;;  %v4883_v43 = vld [vmem:[%s18512_s12 + $0x10] sm:$0xff] }
0x25d3   :  { %v4668_v58 = vpop.f32.mrf.mxu0  ;;  %4771 = vmatpush1.msra.mxu1 %v4675_v4  ;;  %v5122_v4 = vld [vmem:[%s18515_s15 + $0x70] sm:$0xff] }
0x25d4   :  { %4946 = vmatprep.subr.mxu1 %v4927_v6  ;;  %v5120_v6 = vld [vmem:[%s18515_s15 + $0x60] sm:$0xff] }
0x25d5   :  { %v10833_v59 = vpop.f32.mrf.mxu0 }
0x25d6   :  { %v4887_v59 = vld [vmem:[%s18512_s12 + $0x30] sm:$0xff] }
0x2674   :  { %v4598_v7 = vpop.f32.mrf.mxu1 }
0x2675   :  { %v4669_v9 = vadd.f32 %v4668_v58, %v4598_v7  ;;  %v4892_v58 = vld [vmem:[%s18512_s12 + $0x58] sm:$0xff] }
0x2676   :  { %v10798_v10 = vpop.f32.mrf.mxu1  ;;  %v5119_v7 = vld [vmem:[%s18515_s15 + $0x58] sm:$0xff] }
0x2677   :  { %v4673_v11 = vadd.f32 %v4672_v8, %v4669_v9  ;;  %v5118_v8 = vld [vmem:[%s18515_s15 + $0x50] sm:$0xff]  ;;  %v5117_v9 = vld [vmem:[%s18515_s15 + $0x48] sm:$0xff]  ;;  %v5116_v10 = vld [vmem:[%s18515_s15 + $0x40] sm:$0xff] }
0x2679   :  { %v4674_v12 = vmax.f32 %v4673_v11, 0.0  ;;  %v5115_v11 = vld [vmem:[%s18515_s15 + $0x38] sm:$0xff] }
0x267b   :  { %4805 = vmatmul.mubr.f32.vlgmr.msra.gmra.mxu1 %v4674_v12  ;;  %10867 = vmatmul.mubr.f32.vlgmr.msra.gmra.mxu0 %v4674_v12  ;;  %v5114_v12 = vld [vmem:[%s18515_s15 + $0x30] sm:$0xff] }
0x267c   :  { %4947 = vmatpush1.msra.mxu1 %v4926_v3  ;;  %5010 = vmatprep.mubr.f32.mxu1 %v12041_v2  ;;  %v5113_v3 = vld [vmem:[%s18515_s15 + $0x28] sm:$0xff] }
0x267d   :  { %4948 = vmatprep.subr.mxu1 %v4924_v13  ;;  %10870 = vmatpush3.msra.mxu0 %v4928_v14  ;;  %v5112_v13 = vld [vmem:[%s18515_s15 + $0x20] sm:$0xff]  ;;  %v5111_v14 = vld [vmem:[%s18515_s15 + $0x18] sm:$0xff] }
0x267e   :  { %4949 = vmatpush1.msra.mxu1 %v4923_v17  ;;  %10871 = vmatprep.subr.mxu0 %v12041_v2  ;;  %v5110_v17 = vld [vmem:[%s18515_s15 + $0x10] sm:$0xff] }
0x267f   :  { %4950 = vmatprep.subr.mxu1 %v4921_v18  ;;  %10872 = vmatpush3.msra.mxu0 %v4925_v19  ;;  %v5109_v18 = vld [vmem:[%s18515_s15 + $0x8] sm:$0xff]  ;;  %v5108_v19 = vld [vmem:[%s18515_s15] sm:$0xff] }
0x2680   :  { %4951 = vmatpush1.msra.mxu1 %v4920_v33  ;;  %10873 = vmatprep.subr.mxu0 %v12041_v2 }
0x2681   :  { %4952 = vmatprep.subr.mxu1 %v4918_v20  ;;  %10874 = vmatpush3.msra.mxu0 %v4922_v21  ;;  %v4723_v21 = vld [vmem:[%s18513_s13] sm:$0x7] }
0x2682   :  { %4953 = vmatpush1.msra.mxu1 %v4917_v22  ;;  %10875 = vmatprep.subr.mxu0 %v12041_v2 }
0x2683   :  { %4954 = vmatprep.subr.mxu1 %v4915_v23  ;;  %10876 = vmatpush3.msra.mxu0 %v4919_v26  ;;  %v4929_v23 = vld [vmem:[%s18514_s14] sm:$0x7]  ;;  %v4728_v26 = vrot.slane %v4723_v21, %v12904_v39 }
0x2684   :  { %4955 = vmatpush1.msra.mxu1 %v4914_v27  ;;  %10877 = vmatprep.subr.mxu0 %v12041_v2  ;;  %v4934_v27 = vrot.slane %v4929_v23, %v12904_v39 }
0x2685   :  { %4956 = vmatprep.subr.mxu1 %v4912_v28  ;;  %10878 = vmatpush3.msra.mxu0 %v4916_v30 }
0x2686   :  { %4957 = vmatpush1.msra.mxu1 %v4911_v31  ;;  %10879 = vmatprep.subr.mxu0 %v12041_v2 }
0x2687   :  { %4958 = vmatprep.subr.mxu1 %v4909_v32  ;;  %10880 = vmatpush3.msra.mxu0 %v4913_v35  ;;  %v4938_v35 = vrot.slane %v4929_v23, %v12914_v45 }
0x2688   :  { %4959 = vmatpush1.msra.mxu1 %v4908_v36  ;;  %10881 = vmatprep.subr.mxu0 %v12041_v2 }
0x2689   :  { %4960 = vmatprep.subr.mxu1 %v4906_v38  ;;  %10882 = vmatpush3.msra.mxu0 %v4910_v34  ;;  %v4732_v34 = vrot.slane %v4723_v21, %v12914_v45 }
0x268a   :  { %4961 = vmatpush1.msra.mxu1 %v4905_v40  ;;  %10883 = vmatprep.subr.mxu0 %v12041_v2 }
0x268b   :  { %4962 = vmatprep.subr.mxu1 %v4903_v15  ;;  %10884 = vmatpush3.msra.mxu0 %v4907_v16 }
0x268c   :  { %4963 = vmatpush1.msra.mxu1 %v4902_v24  ;;  %10885 = vmatprep.subr.mxu0 %v12041_v2 }
0x268d   :  { %4964 = vmatprep.subr.mxu1 %v4900_v44  ;;  %10886 = vmatpush3.msra.mxu0 %v4904_v46 }
0x268e   :  { %4965 = vmatpush1.msra.mxu1 %v4899_v47  ;;  %10887 = vmatprep.subr.mxu0 %v12041_v2 }
0x268f   :  { %4966 = vmatprep.subr.mxu1 %v4897_v48  ;;  %10888 = vmatpush3.msra.mxu0 %v4901_v49 }
0x2690   :  { %4967 = vmatpush1.msra.mxu1 %v4896_v50  ;;  %10889 = vmatprep.subr.mxu0 %v12041_v2  ;;  %v4942_v50 = vrot.slane %v4929_v23, %v12918_v62 }
0x2691   :  { %4968 = vmatprep.subr.mxu1 %v4894_v51  ;;  %10890 = vmatpush3.msra.mxu0 %v4898_v52  ;;  %v4736_v52 = vrot.slane %v4723_v21, %v12918_v62 }
0x2692   :  { %4969 = vmatpush1.msra.mxu1 %v4893_v41  ;;  %10891 = vmatprep.subr.mxu0 %v12041_v2 }
0x2693   :  { %4970 = vmatprep.subr.mxu1 %v4891_v29  ;;  %10892 = vmatpush3.msra.mxu0 %v4895_v25 }
0x2694   :  { %4971 = vmatpush1.msra.mxu1 %v4890_v56  ;;  %10893 = vmatprep.subr.mxu0 %v12041_v2 }
0x2695   :  { %4972 = vmatprep.subr.mxu1 %v4888_v57  ;;  %10894 = vmatpush3.msra.mxu0 %v4892_v58 }
0x2696   :  { %4973 = vmatpush1.msra.mxu1 %v4887_v59  ;;  %10895 = vmatprep.subr.mxu0 %v12041_v2 }
0x2697   :  { %4974 = vmatprep.subr.mxu1 %v4885_v60  ;;  %10896 = vmatpush3.msra.mxu0 %v4889_v61 }
0x2698   :  { %4975 = vmatpush1.msra.mxu1 %v4884_v63  ;;  %10897 = vmatprep.subr.mxu0 %v12041_v2 }
0x2699   :  { %4976 = vmatprep.subr.mxu1 %v4882_v0  ;;  %10898 = vmatpush3.msra.mxu0 %v4886_v54 }
0x269a   :  { %4977 = vmatpush1.msra.mxu1 %v4881_v53  ;;  %10899 = vmatprep.subr.mxu0 %v12041_v2  ;;  %v5124_v53 = vld [vmem:[%s18516_s16] sm:$0x1] }
0x269b   :  { %5011 = vmatmul.mubr.f32.vlgmr.msra.gmra.mxu1 %v15454_v1  ;;  %10900 = vmatpush3.msra.mxu0 %v4883_v43 }
0x269c   :  { %10901 = vmatprep.mubr.msk.f32.mxu0 %vm12042_vm0, %v12041_v2  ;;  %10904 = vmatprep.subr.mxu1 %v12041_v2 }
0x269d   :  { %10902 = vmatmul.mubr.f32.vlgmr.msra.gmra.mxu0 %v15454_v1  ;;  %10936 = vmatprep.mubr.msk.f32.mxu1 %vm12042_vm0, %v12041_v2 }
0x269e   :  { %10905 = vmatpush3.msra.mxu1 %v5123_v42 }
0x269f   :  { %10906 = vmatprep.subr.mxu1 %v12041_v2 }
0x26a0   :  { %10907 = vmatpush3.msra.mxu1 %v5122_v4 }
0x26a1   :  { %10908 = vmatprep.subr.mxu1 %v12041_v2 }
0x26a2   :  { %10909 = vmatpush3.msra.mxu1 %v5121_v5 }
0x26a3   :  { %10910 = vmatprep.subr.mxu1 %v12041_v2 }
0x26a4   :  { %10911 = vmatpush3.msra.mxu1 %v5120_v6 }
0x26a5   :  { %10912 = vmatprep.subr.mxu1 %v12041_v2 }
0x26a6   :  { %10913 = vmatpush3.msra.mxu1 %v5119_v7 }
0x26a7   :  { %10914 = vmatprep.subr.mxu1 %v12041_v2 }
0x26a8   :  { %10915 = vmatpush3.msra.mxu1 %v5118_v8 }
0x26a9   :  { %10916 = vmatprep.subr.mxu1 %v12041_v2 }
0x26aa   :  { %10917 = vmatpush3.msra.mxu1 %v5117_v9 }
0x26ab   :  { %10918 = vmatprep.subr.mxu1 %v12041_v2 }
0x26ac   :  { %10919 = vmatpush3.msra.mxu1 %v5116_v10 }
0x26ad   :  { %10920 = vmatprep.subr.mxu1 %v12041_v2 }
0x26ae   :  { %10921 = vmatpush3.msra.mxu1 %v5115_v11 }
0x26af   :  { %10922 = vmatprep.subr.mxu1 %v12041_v2 }
0x26b0   :  { %10923 = vmatpush3.msra.mxu1 %v5114_v12 }
0x26b1   :  { %10924 = vmatprep.subr.mxu1 %v12041_v2 }
0x26b2   :  { %10925 = vmatpush3.msra.mxu1 %v5113_v3 }
0x26b3   :  { %10926 = vmatprep.subr.mxu1 %v12041_v2 }
0x26b4   :  { %10927 = vmatpush3.msra.mxu1 %v5112_v13 }
0x26b5   :  { %10928 = vmatprep.subr.mxu1 %v12041_v2 }
0x26b6   :  { %10929 = vmatpush3.msra.mxu1 %v5111_v14 }
0x26b7   :  { %10930 = vmatprep.subr.mxu1 %v12041_v2 }
0x26b8   :  { %10931 = vmatpush3.msra.mxu1 %v5110_v17 }
0x26b9   :  { %10932 = vmatprep.subr.mxu1 %v12041_v2 }
0x26ba   :  { %10933 = vmatpush3.msra.mxu1 %v5109_v18 }
0x26bb   :  { %10934 = vmatprep.subr.mxu1 %v12041_v2 }
0x26bc   :  { %10935 = vmatpush3.msra.mxu1 %v5108_v19 }
0x273b   :  { %v4877_v33 = vpop.f32.mrf.mxu0  ;;  %v4806_v22 = vpop.f32.mrf.mxu1 }
0x273c   :  { %v4807_v31 = vadd.f32 %v4806_v22, %v4728_v26  ;;  %v4878_v56 = vadd.f32 %v4877_v33, %v4736_v52 }
0x273d   :  { %v10868_v20 = vpop.f32.mrf.mxu0  ;;  %v4808_v28 = vpop.f32.mrf.mxu1 }
0x273e   :  { %v4809_v44 = vadd.f32 %v4808_v28, %v4732_v34 }
0x275b   :  { %v5012_v30 = vpop.f32.mrf.mxu1 }
0x275c   :  { %v5013_v32 = vadd.f32 %v5012_v30, %v4934_v27 }
0x275d   :  { %v5014_v36 = vpop.f32.mrf.mxu1  ;;  %v5083_v38 = vpop.f32.mrf.mxu0 }
0x275e   :  { %v5087_v40 = vadd.f32 %v5013_v32, %v4807_v31  ;;  %v5015_v24 = vadd.f32 %v5014_v36, %v4938_v35  ;;  %v5084_v29 = vadd.f32 %v5083_v38, %v4942_v50 }
0x275f   :  { %v10903_v15 = vpop.f32.mrf.mxu0 }
0x2760   :  { %v8433_v16 = vmul.f32 -1.442695, %v5087_v40  ;;  %v5094_v46 = vadd.f32 %v5015_v24, %v4809_v44 }
0x2762   :  { %11879 = vpow2.f32 %v8433_v16  ;;  %v8434_v47 = vmul.f32 -1.442695, %v5094_v46 }
0x2764   :  { %11881 = vpow2.f32 %v8434_v47 }
0x276f   :  { %v11880_v48 = vpop.eup %11879 }
0x2770   :  { %v5091_v49 = vadd.f32 1.0, %v11880_v48 }
0x2771   :  { %v11882_v51 = vpop.eup %11881 }
0x2772   :  { %11883 = vrcp.f32 %v5091_v49  ;;  %v5098_v41 = vadd.f32 1.0, %v11882_v51 }
0x2774   :  { %11885 = vrcp.f32 %v5098_v41 }
0x277f   :  { %v11884_v25 = vpop.eup %11883 }
0x2780   :  { %v5101_v57 = vmul.f32 %v11884_v25, %v5084_v29 }
0x2781   :  { %v11886_v59 = vpop.eup %11885 }
0x2782   :  { %v5102_v58 = vadd.f32 %v5101_v57, %v4878_v56  ;;  %v5104_v60 = vsub.f32 1.0, %v11886_v59  ;;  %v5106_v0 = vmul.f32 %v11886_v59, %v15454_v1 }
0x2784   :  { %11887 = vtanh.f32 %v5102_v58 }
0x2791   :  { %v11888_v61 = vpop.eup %11887 }
0x2792   :  { %v5105_v63 = vmul.f32 %v11888_v61, %v5104_v60 }
0x2794   :  { %v16095_v54 = vadd.f32 %v5106_v0, %v5105_v63 }
0x2796   :  { %10937 = vmatmul.mubr.f32.vlgmr.msra.gmra.mxu1 %v16095_v54 }
0x2856   :  { %v5191_v43 = vpop.f32.mrf.mxu1 }
0x2857   :  { %v5192_v42 = vadd.f32 %v5191_v43, %v5124_v53 }
0x2858   :  { %v10938_v4 = vpop.f32.mrf.mxu1 }
0x2859   :  { %v5195_v5 = vsel %vm264_vm1, %v5192_v42, -inf }
0x285a   :  { %5196 = vmax.xlane.f32.xlu1 %v5195_v5 }
0x28e3   :  { %v5197_v6 = vpop.xlane.xlu1 %5196 }
0x28e4   :  { %v5198_v7 = vsub.f32 %v5192_v42, %v5197_v6 }
0x28e6   :  { %v5199_v8 = vmul.f32 1.442695, %v5198_v7 }
0x28e8   :  { %11889 = vpow2.f32 %v5199_v8 }
0x28f5   :  { %v11890_v9 = vpop.eup %11889 }
0x28f6   :  { %v5201_v10 = vsel %vm264_vm1, %v11890_v9, 0.0 }
0x28f7   :  { %5202 = vadd.xlane.f32.xlu1 %v5201_v10 }
0x2980   :  { %v5203_v11 = vpop.xlane.xlu1 %5202 }
0x2981   :  { %11891 = vlog2.f32 %v5203_v11 }
0x298e   :  { %v11892_v12 = vpop.eup %11891 }
0x298f   :  { %v5205_v3 = vmul.f32 0.6931472, %v11892_v12 }
0x2990   :  { %5219 = sbr.rel (%p8435_p12) target bundleno = 11136 (0x2b80), region = 97 }
0x2991   :  { %v5206_v13 = vsub.f32 %v5198_v7, %v5205_v3 }
0x2993   :  { %v5211_v14 = vsel %vm15609_vm11, %v5206_v13, 0.0 }
0x2994   :  { %5212 = vst [vmem:[#allocation8 + $0x4] sm:$0x1] %v5211_v14 }
0x2995   :  { %v5222_v17 = vsel %vm264_vm1, %v5206_v13, -inf  ;;  %v5221_v18 = vand.u32 127, %v587_v37 }
0x2996   :  { %5223 = vmax.xlane.f32.xlu0 %v5222_v17 }
0x2a1f   :  { %v5224_v19 = vpop.xlane.xlu0 %5223 }
0x2a20   :  { %vm5225_vm12 = vcmp.eq.f32.partialorder %v5206_v13, %v5224_v19 }
0x2a21   :  { %v5226_v33 = vsel %vm5225_vm12, %v5221_v18, 128 }
0x2a22   :  { %v5227_v20 = vsel %vm264_vm1, %v5226_v33, 2147483647 }
0x2a23   :  { %v5229_v21 = vshra.s32 %v5227_v20, 16  ;;  %v5228_v23 = vand.u32 65535, %v5227_v20 }
0x2a25   :  { %v5231_v22 = vcvt.s32.f32 %v5229_v21  ;;  %v5230_v27 = vcvt.s32.f32 %v5228_v23 }
0x2a27   :  { %5232 = vmin.xlane.f32.xlu0 %v5231_v22 }
0x2ab0   :  { %v5233_v26 = vpop.xlane.xlu0 %5232 }
0x2ab1   :  { %vm5234_vm13 = vcmp.eq.f32.partialorder %v5231_v22, %v5233_v26  ;;  %v5239_v30 = vcvt.f32.s32 %v5233_v26 }
0x2ab2   :  { %v5235_v28 = vsel %vm5234_vm13, %v5230_v27, inf }
0x2ab3   :  { %5236 = vmin.xlane.f32.xlu1 %v5235_v28  ;;  %v5240_v32 = vshll.u32 %v5239_v30, 16 }
0x2b3c   :  { %v5237_v31 = vpop.xlane.xlu1 %5236 }
0x2b3d   :  { %v5238_v35 = vcvt.f32.s32 %v5237_v31 }
0x2b3f   :  { %v5241_v36 = vadd.s32 %v5240_v32, %v5238_v35 }
0x2b41   :  { %v5242_v38 = vrot.slane %v5241_v36, 4 }
0x2b43   :  { %vm5243_vm14 = vcmp.lt.s32.totalorder %v5241_v36, %v5242_v38 }
0x2b44   :  { %v5244_v34 = vsel %vm5243_vm14, %v5241_v36, %v5242_v38 }
0x2b45   :  { %v5245_v40 = vrot.slane %v5244_v34, 2 }
0x2b47   :  { %vm5246_vm15 = vcmp.lt.s32.totalorder %v5244_v34, %v5245_v40 }
0x2b48   :  { %v5247_v15 = vsel %vm5246_vm15, %v5244_v34, %v5245_v40 }
0x2b49   :  { %v5248_v16 = vrot.slane %v5247_v15, 1 }
0x2b4b   :  { %vm5249_vm2 = vcmp.lt.s32.totalorder %v5247_v15, %v5248_v16 }
0x2b4c   :  { %v5250_v24 = vsel %vm5249_vm2, %v5247_v15, %v5248_v16 }
0x2b4d   :  { %11787 = vpush %v5250_v24 }
0x2b7e   :  { %s11788_s24 = spop %11787 }
0x2b7f   :  { %5252 = sst [smem:[#allocation2]] %s11788_s24 }
0x2b80 PF:  { %s16109_s22 = sld [smem:[#allocation6 + $0x5]]  ;;  %10939 = vmatprep.subr.mxu0 %v12041_v2  ;;  %10974 = vmatprep.subr.mxu1 %v12041_v2  ;;  %v5296_v44 = vld [vmem:[%s18506_s6 + $0x78] sm:$0xff]  ;;  %v5295_v47 = vld [vmem:[%s18506_s6 + $0x70] sm:$0xff]  ;;  %v5294_v49 = vld [vmem:[%s18506_s6 + $0x68] sm:$0xff]  ;;  %v16249_v13 = vsel %vm15609_vm11, %v16095_v54, %v15454_v1  ;;  %s5256_s0 = ssub.s32 1, %s15314_s21 }
0x2b81   :  { %v5280_v46 = vld [vmem:[%s18505_s5 + $0x78] sm:$0xff]  ;;  %10940 = vmatpush3.msra.mxu0 %v5296_v44  ;;  %v5279_v48 = vld [vmem:[%s18505_s5 + $0x70] sm:$0xff]  ;;  %v5278_v50 = vld [vmem:[%s18505_s5 + $0x68] sm:$0xff]  ;;  %s8437_s3 = sld [smem:[#allocation3 + $0x5]]  ;;  %10971 = vmatprep.mubr.msk.f32.mxu0 %vm12042_vm0, %v12041_v2 }
0x2b82   :  { %10975 = vmatpush3.msra.mxu1 %v5280_v46  ;;  %10941 = vmatprep.subr.mxu0 %v12041_v2  ;;  %v5293_v51 = vld [vmem:[%s18506_s6 + $0x60] sm:$0xff]  ;;  %v5292_v41 = vld [vmem:[%s18506_s6 + $0x58] sm:$0xff]  ;;  %s16149_s27 = sld [smem:[#allocation2]]  ;;  %v5291_v25 = vld [vmem:[%s18506_s6 + $0x50] sm:$0xff] }
0x2b83   :  { %10976 = vmatprep.subr.mxu1 %v12041_v2  ;;  %10942 = vmatpush3.msra.mxu0 %v5295_v47  ;;  %v5277_v52 = vld [vmem:[%s18505_s5 + $0x60] sm:$0xff]  ;;  %v5276_v29 = vld [vmem:[%s18505_s5 + $0x58] sm:$0xff]  ;;  %v5275_v56 = vld [vmem:[%s18505_s5 + $0x50] sm:$0xff]  ;;  %s18549_s26 = sld [smem:[#allocation19_spill]] }
0x2b84   :  { %10977 = vmatpush3.msra.mxu1 %v5279_v48  ;;  %10943 = vmatprep.subr.mxu0 %v12041_v2  ;;  %v5290_v57 = vld [vmem:[%s18506_s6 + $0x48] sm:$0xff]  ;;  %v5289_v59 = vld [vmem:[%s18506_s6 + $0x40] sm:$0xff]  ;;  %v5288_v61 = vld [vmem:[%s18506_s6 + $0x38] sm:$0xff] }
0x2b85   :  { %10978 = vmatprep.subr.mxu1 %v12041_v2  ;;  %10944 = vmatpush3.msra.mxu0 %v5294_v49  ;;  %v5274_v58 = vld [vmem:[%s18505_s5 + $0x48] sm:$0xff]  ;;  %v5273_v60 = vld [vmem:[%s18505_s5 + $0x40] sm:$0xff]  ;;  %v5272_v63 = vld [vmem:[%s18505_s5 + $0x38] sm:$0xff] }
0x2b86   :  { %10979 = vmatpush3.msra.mxu1 %v5278_v50  ;;  %10945 = vmatprep.subr.mxu0 %v12041_v2  ;;  %v5287_v0 = vld [vmem:[%s18506_s6 + $0x30] sm:$0xff]  ;;  %v5286_v43 = vld [vmem:[%s18506_s6 + $0x28] sm:$0xff]  ;;  %v5285_v4 = vld [vmem:[%s18506_s6 + $0x20] sm:$0xff]  ;;  %p8440_p2 = scmp.ne.s32.totalorder %s16109_s22, 0 }
0x2b87   :  { %10980 = vmatprep.subr.mxu1 %v12041_v2  ;;  %10946 = vmatpush3.msra.mxu0 %v5293_v51  ;;  %6251 = sst [smem:[#allocation2]] %s8437_s3  ;;  %v5271_v53 = vld [vmem:[%s18505_s5 + $0x30] sm:$0xff]  ;;  %v5270_v42 = vld [vmem:[%s18505_s5 + $0x28] sm:$0xff]  ;;  %v5269_v5 = vld [vmem:[%s18505_s5 + $0x20] sm:$0xff] }
0x2b88   :  { %10981 = vmatpush3.msra.mxu1 %v5277_v52  ;;  %10947 = vmatprep.subr.mxu0 %v12041_v2  ;;  %v5284_v6 = vld [vmem:[%s18506_s6 + $0x18] sm:$0xff]  ;;  %v5283_v8 = vld [vmem:[%s18506_s6 + $0x10] sm:$0xff]  ;;  %v5282_v10 = vld [vmem:[%s18506_s6 + $0x8] sm:$0xff]  ;;  %s5263_s28 = scalar_lea.vmem %s18504_s4, %s16149_s27  ;;  %p5254_p13 = scmp.eq.s32.totalorder %s16149_s27, 1 }
0x2b89   :  { %10982 = vmatprep.subr.mxu1 %v12041_v2  ;;  %10948 = vmatpush3.msra.mxu0 %v5292_v41  ;;  %v5268_v7 = vld [vmem:[%s18505_s5 + $0x18] sm:$0xff]  ;;  %v5267_v9 = vld [vmem:[%s18505_s5 + $0x10] sm:$0xff]  ;;  %v5266_v11 = vld [vmem:[%s18505_s5 + $0x8] sm:$0xff] }
0x2b8a   :  { %10983 = vmatpush3.msra.mxu1 %v5276_v29  ;;  %10949 = vmatprep.subr.mxu0 %v12041_v2  ;;  %v5281_v12 = vld [vmem:[%s18506_s6] sm:$0xff]  ;;  %v5465_v21 = vld [vmem:[%s18549_s26 + $0x78] sm:$0xff]  ;;  %v5464_v22 = vld [vmem:[%s18549_s26 + $0x70] sm:$0xff]  ;;  %s5255_s23 = scalar_select %p5254_p13, 1, 0 }
0x2b8b   :  { %10984 = vmatprep.subr.mxu1 %v12041_v2  ;;  %10950 = vmatpush3.msra.mxu0 %v5291_v25  ;;  %v5265_v3 = vld [vmem:[%s18505_s5] sm:$0xff]  ;;  %v5463_v23 = vld [vmem:[%s18549_s26 + $0x68] sm:$0xff]  ;;  %v5461_v27 = vld [vmem:[%s18549_s26 + $0x58] sm:$0xff] }
0x2b8c   :  { %10985 = vmatpush3.msra.mxu1 %v5275_v56  ;;  %10951 = vmatprep.subr.mxu0 %v12041_v2  ;;  %v16251_v14 = vld [vmem:[%s5263_s28] sm:$0x1]  ;;  %v5460_v28 = vld [vmem:[%s18549_s26 + $0x50] sm:$0xff]  ;;  %v5459_v30 = vld [vmem:[%s18549_s26 + $0x48] sm:$0xff]  ;;  %s5257_s30 = smul.u32 %s5256_s0, %s5255_s23 }
0x2b8d   :  { %10986 = vmatprep.subr.mxu1 %v12041_v2  ;;  %10952 = vmatpush3.msra.mxu0 %v5290_v57  ;;  %v5437_v54 = vld [vmem:[%s18507_s7] sm:$0x1]  ;;  %v5457_v40 = vld [vmem:[%s18549_s26 + $0x38] sm:$0xff]  ;;  %v5456_v15 = vld [vmem:[%s18549_s26 + $0x30] sm:$0xff] }
0x2b8e   :  { %10987 = vmatpush3.msra.mxu1 %v5274_v58  ;;  %10953 = vmatprep.subr.mxu0 %v12041_v2  ;;  %v5462_v26 = vld [vmem:[%s18549_s26 + $0x60] sm:$0xff]  ;;  %v5455_v16 = vld [vmem:[%s18549_s26 + $0x28] sm:$0xff]  ;;  %v5453_v44 = vld [vmem:[%s18549_s26 + $0x18] sm:$0xff]  ;;  %p5258_p0 = scmp.gt.s32.totalorder %s18565_s20, %s5257_s30 }
0x2b8f   :  { %10988 = vmatprep.subr.mxu1 %v12041_v2  ;;  %10954 = vmatpush3.msra.mxu0 %v5289_v59  ;;  %v5458_v31 = vld [vmem:[%s18549_s26 + $0x40] sm:$0xff]  ;;  %v5452_v46 = vld [vmem:[%s18549_s26 + $0x10] sm:$0xff]  ;;  %v5451_v47 = vld [vmem:[%s18549_s26 + $0x8] sm:$0xff] }
0x2b90   :  { %10989 = vmatpush3.msra.mxu1 %v5273_v60  ;;  %10955 = vmatprep.subr.mxu0 %v12041_v2  ;;  %v5454_v24 = vld [vmem:[%s18549_s26 + $0x20] sm:$0xff]  ;;  %v5567_v49 = vld [vmem:[%s18509_s9 + $0x78] sm:$0xff]  ;;  %v5566_v50 = vld [vmem:[%s18509_s9 + $0x70] sm:$0xff]  ;;  %s18567_s20 = smov (!%p5258_p0, %s18565_s20), %s5257_s30 }
0x2b91   :  { %10990 = vmatprep.subr.mxu1 %v12041_v2  ;;  %10956 = vmatpush3.msra.mxu0 %v5288_v61  ;;  %v5450_v48 = vld [vmem:[%s18549_s26] sm:$0xff]  ;;  %v5565_v51 = vld [vmem:[%s18509_s9 + $0x68] sm:$0xff]  ;;  %v5563_v41 = vld [vmem:[%s18509_s9 + $0x58] sm:$0xff]  ;;  %p6243_p1 = scmp.eq.s32.totalorder %s18567_s20, 0 }
0x2b92   :  { %10991 = vmatpush3.msra.mxu1 %v5272_v63  ;;  %10957 = vmatprep.subr.mxu0 %v12041_v2  ;;  %v5564_v52 = vld [vmem:[%s18509_s9 + $0x60] sm:$0xff]  ;;  %v5562_v29 = vld [vmem:[%s18509_s9 + $0x50] sm:$0xff]  ;;  %v5561_v25 = vld [vmem:[%s18509_s9 + $0x48] sm:$0xff] }
0x2b93   :  { %10992 = vmatprep.subr.mxu1 %v12041_v2  ;;  %10958 = vmatpush3.msra.mxu0 %v5287_v0  ;;  %v5560_v56 = vld [vmem:[%s18509_s9 + $0x40] sm:$0xff]  ;;  %v5559_v57 = vld [vmem:[%s18509_s9 + $0x38] sm:$0xff]  ;;  %v5558_v58 = vld [vmem:[%s18509_s9 + $0x30] sm:$0xff]  ;;  %s6244_s3 = scalar_select %p6243_p1, 1, 0 }
0x2b94   :  { %10993 = vmatpush3.msra.mxu1 %v5271_v53  ;;  %10959 = vmatprep.subr.mxu0 %v12041_v2  ;;  %v5557_v59 = vld [vmem:[%s18509_s9 + $0x28] sm:$0xff]  ;;  %v5556_v60 = vld [vmem:[%s18509_s9 + $0x20] sm:$0xff]  ;;  %v5555_v61 = vld [vmem:[%s18509_s9 + $0x18] sm:$0xff] }
0x2b95   :  { %10994 = vmatprep.subr.mxu1 %v12041_v2  ;;  %10960 = vmatpush3.msra.mxu0 %v5286_v43  ;;  %v5554_v63 = vld [vmem:[%s18509_s9 + $0x10] sm:$0xff]  ;;  %v5553_v0 = vld [vmem:[%s18509_s9 + $0x8] sm:$0xff]  ;;  %v6245_v43 = vstv %s6244_s3 }
0x2b96   :  { %10995 = vmatpush3.msra.mxu1 %v5270_v42  ;;  %10961 = vmatprep.subr.mxu0 %v12041_v2  ;;  %vm16404_vm3 = vcmp.eq.s32.totalorder %v6245_v43, 1  ;;  %v5724_v43 = vld [vmem:[%s18511_s11 + $0x68] sm:$0xff] }
0x2b97   :  { %10996 = vmatprep.subr.mxu1 %v12041_v2  ;;  %10962 = vmatpush3.msra.mxu0 %v5285_v4 }
0x2b98   :  { %10997 = vmatpush3.msra.mxu1 %v5269_v5  ;;  %10963 = vmatprep.subr.mxu0 %v12041_v2 }
0x2b99   :  { %10998 = vmatprep.subr.mxu1 %v12041_v2  ;;  %10964 = vmatpush3.msra.mxu0 %v5284_v6  ;;  %v5551_v6 = vld [vmem:[%s18508_s8 + $0x78] sm:$0xff] }
0x2b9a   :  { %10999 = vmatpush3.msra.mxu1 %v5268_v7  ;;  %10965 = vmatprep.subr.mxu0 %v12041_v2  ;;  %v5550_v7 = vld [vmem:[%s18508_s8 + $0x70] sm:$0xff] }
0x2b9b   :  { %11000 = vmatprep.subr.mxu1 %v12041_v2  ;;  %10966 = vmatpush3.msra.mxu0 %v5283_v8 }
0x2b9c   :  { %11001 = vmatpush3.msra.mxu1 %v5267_v9  ;;  %10967 = vmatprep.subr.mxu0 %v12041_v2  ;;  %v5549_v9 = vld [vmem:[%s18508_s8 + $0x68] sm:$0xff] }
0x2b9d   :  { %11002 = vmatprep.subr.mxu1 %v12041_v2  ;;  %10968 = vmatpush3.msra.mxu0 %v5282_v10  ;;  %v5548_v10 = vld [vmem:[%s18508_s8 + $0x60] sm:$0xff] }
0x2b9e   :  { %11003 = vmatpush3.msra.mxu1 %v5266_v11  ;;  %10969 = vmatprep.subr.mxu0 %v12041_v2  ;;  %v5547_v11 = vld [vmem:[%s18508_s8 + $0x58] sm:$0xff] }
0x2b9f   :  { %11004 = vmatprep.subr.mxu1 %v12041_v2  ;;  %10970 = vmatpush3.msra.mxu0 %v5281_v12  ;;  %v5546_v12 = vld [vmem:[%s18508_s8 + $0x50] sm:$0xff] }
0x2ba0   :  { %11005 = vmatpush3.msra.mxu1 %v5265_v3  ;;  %11006 = vmatprep.mubr.msk.f32.mxu1 %vm12042_vm0, %v12041_v2  ;;  %v5545_v3 = vld [vmem:[%s18508_s8 + $0x48] sm:$0xff] }
0x2ba1   :  { %10972 = vmatmul.mubr.f32.vlgmr.msra.gmra.mxu0 %v16249_v13  ;;  %11007 = vmatmul.mubr.f32.vlgmr.msra.gmra.mxu1 %v16251_v14 }
0x2ba2   :  { %11009 = vmatprep.subr.mxu0 %v12041_v2  ;;  %11041 = vmatprep.mubr.msk.f32.mxu0 %vm12042_vm0, %v12041_v2 }
0x2ba3   :  { %11044 = vmatprep.subr.mxu1 %v12041_v2  ;;  %11076 = vmatprep.mubr.msk.f32.mxu1 %vm12042_vm0, %v12041_v2 }
0x2ba4   :  { %11010 = vmatpush3.msra.mxu0 %v5465_v21  ;;  %11045 = vmatpush3.msra.mxu1 %v5567_v49  ;;  %v5536_v21 = vld [vmem:[%s18508_s8] sm:$0xff]  ;;  %v5748_v49 = vld [vmem:[%s18511_s11 + $0x128] sm:$0xff] }
0x2ba5   :  { %11011 = vmatprep.subr.mxu0 %v12041_v2  ;;  %11046 = vmatprep.subr.mxu1 %v12041_v2 }
0x2ba6   :  { %11012 = vmatpush3.msra.mxu0 %v5464_v22  ;;  %11047 = vmatpush3.msra.mxu1 %v5566_v50  ;;  %v5552_v22 = vld [vmem:[%s18509_s9] sm:$0xff] }
0x2ba7   :  { %11013 = vmatprep.subr.mxu0 %v12041_v2  ;;  %11048 = vmatprep.subr.mxu1 %v12041_v2  ;;  %v5747_v50 = vld [vmem:[%s18511_s11 + $0x120] sm:$0xff] }
0x2ba8   :  { %11014 = vmatpush3.msra.mxu0 %v5463_v23  ;;  %11049 = vmatpush3.msra.mxu1 %v5565_v51  ;;  %v5757_v23 = vld [vmem:[%s18511_s11 + $0x170] sm:$0xff] }
0x2ba9   :  { %11015 = vmatprep.subr.mxu0 %v12041_v2  ;;  %11050 = vmatprep.subr.mxu1 %v12041_v2  ;;  %v5745_v51 = vld [vmem:[%s18511_s11 + $0x110] sm:$0xff] }
0x2baa   :  { %11016 = vmatpush3.msra.mxu0 %v5462_v26  ;;  %11051 = vmatpush3.msra.mxu1 %v5564_v52  ;;  %v5758_v26 = vld [vmem:[%s18511_s11 + $0x178] sm:$0xff]  ;;  %v5744_v52 = vld [vmem:[%s18511_s11 + $0x108] sm:$0xff] }
0x2bab   :  { %11017 = vmatprep.subr.mxu0 %v12041_v2  ;;  %11052 = vmatprep.subr.mxu1 %v12041_v2 }
0x2bac   :  { %11018 = vmatpush3.msra.mxu0 %v5461_v27  ;;  %11053 = vmatpush3.msra.mxu1 %v5563_v41  ;;  %v5752_v27 = vld [vmem:[%s18511_s11 + $0x148] sm:$0xff]  ;;  %v5742_v41 = vld [vmem:[%s18511_s11 + $0xf8] sm:$0xff] }
0x2bad   :  { %11019 = vmatprep.subr.mxu0 %v12041_v2  ;;  %11054 = vmatprep.subr.mxu1 %v12041_v2 }
0x2bae   :  { %11020 = vmatpush3.msra.mxu0 %v5460_v28  ;;  %11055 = vmatpush3.msra.mxu1 %v5562_v29  ;;  %v5749_v28 = vld [vmem:[%s18511_s11 + $0x130] sm:$0xff] }
0x2baf   :  { %11021 = vmatprep.subr.mxu0 %v12041_v2  ;;  %11056 = vmatprep.subr.mxu1 %v12041_v2  ;;  %v5741_v29 = vld [vmem:[%s18511_s11 + $0xf0] sm:$0xff] }
0x2bb0   :  { %11022 = vmatpush3.msra.mxu0 %v5459_v30  ;;  %11057 = vmatpush3.msra.mxu1 %v5561_v25  ;;  %v5746_v30 = vld [vmem:[%s18511_s11 + $0x118] sm:$0xff]  ;;  %v5739_v25 = vld [vmem:[%s18511_s11 + $0xe0] sm:$0xff] }
0x2bb1   :  { %11023 = vmatprep.subr.mxu0 %v12041_v2  ;;  %11058 = vmatprep.subr.mxu1 %v12041_v2 }
0x2bb2   :  { %11024 = vmatpush3.msra.mxu0 %v5458_v31  ;;  %11059 = vmatpush3.msra.mxu1 %v5560_v56  ;;  %v5743_v31 = vld [vmem:[%s18511_s11 + $0x100] sm:$0xff]  ;;  %v5738_v56 = vld [vmem:[%s18511_s11 + $0xd8] sm:$0xff] }
0x2bb3   :  { %11025 = vmatprep.subr.mxu0 %v12041_v2  ;;  %11060 = vmatprep.subr.mxu1 %v12041_v2 }
0x2bb4   :  { %11026 = vmatpush3.msra.mxu0 %v5457_v40  ;;  %11061 = vmatpush3.msra.mxu1 %v5559_v57  ;;  %v5725_v40 = vld [vmem:[%s18511_s11 + $0x70] sm:$0xff]  ;;  %v5736_v57 = vld [vmem:[%s18511_s11 + $0xc8] sm:$0xff] }
0x2bb5   :  { %11027 = vmatprep.subr.mxu0 %v12041_v2  ;;  %11062 = vmatprep.subr.mxu1 %v12041_v2 }
0x2bb6   :  { %11028 = vmatpush3.msra.mxu0 %v5456_v15  ;;  %11063 = vmatpush3.msra.mxu1 %v5558_v58  ;;  %v5756_v15 = vld [vmem:[%s18511_s11 + $0x168] sm:$0xff]  ;;  %v5735_v58 = vld [vmem:[%s18511_s11 + $0xc0] sm:$0xff] }
0x2bb7   :  { %11029 = vmatprep.subr.mxu0 %v12041_v2  ;;  %11064 = vmatprep.subr.mxu1 %v12041_v2 }
0x2bb8   :  { %11030 = vmatpush3.msra.mxu0 %v5455_v16  ;;  %11065 = vmatpush3.msra.mxu1 %v5557_v59  ;;  %v5733_v59 = vld [vmem:[%s18511_s11 + $0xb0] sm:$0xff] }
0x2bb9   :  { %11031 = vmatprep.subr.mxu0 %v12041_v2  ;;  %11066 = vmatprep.subr.mxu1 %v12041_v2 }
0x2bba   :  { %11032 = vmatpush3.msra.mxu0 %v5454_v24  ;;  %11067 = vmatpush3.msra.mxu1 %v5556_v60  ;;  %v5754_v24 = vld [vmem:[%s18511_s11 + $0x158] sm:$0xff]  ;;  %v5732_v60 = vld [vmem:[%s18511_s11 + $0xa8] sm:$0xff] }
0x2bbb   :  { %11033 = vmatprep.subr.mxu0 %v12041_v2  ;;  %11068 = vmatprep.subr.mxu1 %v12041_v2 }
0x2bbc   :  { %11034 = vmatpush3.msra.mxu0 %v5453_v44  ;;  %11069 = vmatpush3.msra.mxu1 %v5555_v61  ;;  %v5753_v44 = vld [vmem:[%s18511_s11 + $0x150] sm:$0xff]  ;;  %v5730_v61 = vld [vmem:[%s18511_s11 + $0x98] sm:$0xff] }
0x2bbd   :  { %11035 = vmatprep.subr.mxu0 %v12041_v2  ;;  %11070 = vmatprep.subr.mxu1 %v12041_v2 }
0x2bbe   :  { %11036 = vmatpush3.msra.mxu0 %v5452_v46  ;;  %11071 = vmatpush3.msra.mxu1 %v5554_v63  ;;  %v5729_v63 = vld [vmem:[%s18511_s11 + $0x90] sm:$0xff] }
0x2bbf   :  { %11037 = vmatprep.subr.mxu0 %v12041_v2  ;;  %11072 = vmatprep.subr.mxu1 %v12041_v2 }
0x2bc0   :  { %11038 = vmatpush3.msra.mxu0 %v5451_v47  ;;  %11073 = vmatpush3.msra.mxu1 %v5553_v0  ;;  %v5751_v47 = vld [vmem:[%s18511_s11 + $0x140] sm:$0xff] }
0x2bc1   :  { %11039 = vmatprep.subr.mxu0 %v12041_v2  ;;  %11074 = vmatprep.subr.mxu1 %v12041_v2  ;;  %v5727_v0 = vld [vmem:[%s18511_s11 + $0x80] sm:$0xff] }
0x2bc2   :  { %11040 = vmatpush3.msra.mxu0 %v5450_v48  ;;  %11075 = vmatpush3.msra.mxu1 %v5552_v22  ;;  %v5750_v48 = vld [vmem:[%s18511_s11 + $0x138] sm:$0xff] }
0x2bc3   :  { %11079 = vmatprep.subr.mxu0 %v12041_v2  ;;  %5776 = vmatprep.subr.mxu1 %v5757_v23 }
0x2c61   :  { %v5363_v1 = vpop.f32.mrf.mxu0  ;;  %v5433_v55 = vpop.f32.mrf.mxu1 }
0x2c62   :  { %v5434_v17 = vadd.f32 %v5433_v55, %v5363_v1  ;;  %v5544_v1 = vld [vmem:[%s18508_s8 + $0x40] sm:$0xff]  ;;  %v5543_v55 = vld [vmem:[%s18508_s8 + $0x38] sm:$0xff] }
0x2c63   :  { %v10973_v18 = vpop.f32.mrf.mxu0  ;;  %v11008_v19 = vpop.f32.mrf.mxu1 }
0x2c64   :  { %v5438_v33 = vadd.f32 %v5437_v54, %v5434_v17  ;;  %v5542_v54 = vld [vmem:[%s18508_s8 + $0x30] sm:$0xff]  ;;  %v5541_v17 = vld [vmem:[%s18508_s8 + $0x28] sm:$0xff]  ;;  %v5540_v18 = vld [vmem:[%s18508_s8 + $0x20] sm:$0xff] }
0x2c65   :  { %v5539_v19 = vld [vmem:[%s18508_s8 + $0x18] sm:$0xff] }
0x2c66   :  { %v5439_v20 = vsel %vm264_vm1, %v5438_v33, -inf }
0x2c67   :  { %5440 = vmax.xlane.f32.xlu0 %v5439_v20  ;;  %v5537_v20 = vld [vmem:[%s18508_s8 + $0x8] sm:$0xff] }
0x2cf0   :  { %v5441_v32 = vpop.xlane.xlu0 %5440 }
0x2cf1   :  { %v5442_v35 = vsub.f32 %v5438_v33, %v5441_v32  ;;  %v5538_v33 = vld [vmem:[%s18508_s8 + $0x10] sm:$0xff]  ;;  %v5740_v32 = vld [vmem:[%s18511_s11 + $0xe8] sm:$0xff] }
0x2cf3   :  { %v5443_v36 = vmul.f32 1.442695, %v5442_v35  ;;  %v5737_v35 = vld [vmem:[%s18511_s11 + $0xd0] sm:$0xff] }
0x2cf5   :  { %11893 = vpow2.f32 %v5443_v36  ;;  %v5734_v36 = vld [vmem:[%s18511_s11 + $0xb8] sm:$0xff] }
0x2d02   :  { %v16301_v38 = vpop.eup %11893 }
0x2d03   :  { %v5445_v34 = vsel %vm264_vm1, %v16301_v38, 0.0 }
0x2d04   :  { %5446 = vadd.xlane.f32.xlu0 %v5445_v34  ;;  %v5728_v34 = vld [vmem:[%s18511_s11 + $0x88] sm:$0xff] }
0x2d8d   :  { %v5447_v53 = vpop.xlane.xlu0 %5446 }
0x2d8e   :  { %11895 = vrcp.f32 %v5447_v53  ;;  %v5726_v53 = vld [vmem:[%s18511_s11 + $0x78] sm:$0xff] }
0x2d9b   :  { %v11896_v42 = vpop.eup %11895 }
0x2d9c   :  { %v5449_v5 = vmul.f32 %v11896_v42, %v16301_v38  ;;  %v5731_v38 = vld [vmem:[%s18511_s11 + $0xa0] sm:$0xff] }
0x2d9d   :  { %v5723_v42 = vld [vmem:[%s18511_s11 + $0x60] sm:$0xff] }
0x2d9e   :  { %11042 = vmatmul.mubr.f32.vlgmr.msra.gmra.mxu0 %v5449_v5  ;;  %v6249_v8 = vsel %vm16404_vm3, %v5449_v5, 0.0  ;;  %v5721_v5 = vld [vmem:[%s18511_s11 + $0x50] sm:$0xff] }
0x2d9f   :  { %11080 = vmatpush3.msra.mxu0 %v5551_v6  ;;  %11111 = vmatprep.mubr.msk.f32.mxu0 %vm12042_vm0, %v12041_v2  ;;  %6250 = vst [vmem:[#allocation9 + $0x5] sm:$0x1] %v6249_v8  ;;  %v5720_v6 = vld [vmem:[%s18511_s11 + $0x48] sm:$0xff] }
0x2da0   :  { %11081 = vmatprep.subr.mxu0 %v12041_v2 }
0x2da1   :  { %11082 = vmatpush3.msra.mxu0 %v5550_v7 }
0x2da2   :  { %11083 = vmatprep.subr.mxu0 %v12041_v2 }
0x2da3   :  { %11084 = vmatpush3.msra.mxu0 %v5549_v9  ;;  %v5718_v9 = vld [vmem:[%s18511_s11 + $0x38] sm:$0xff] }
0x2da4   :  { %11085 = vmatprep.subr.mxu0 %v12041_v2 }
0x2da5   :  { %11086 = vmatpush3.msra.mxu0 %v5548_v10  ;;  %v5722_v10 = vld [vmem:[%s18511_s11 + $0x58] sm:$0xff] }
0x2da6   :  { %11087 = vmatprep.subr.mxu0 %v12041_v2 }
0x2da7   :  { %11088 = vmatpush3.msra.mxu0 %v5547_v11  ;;  %v5717_v11 = vld [vmem:[%s18511_s11 + $0x30] sm:$0xff] }
0x2da8   :  { %11089 = vmatprep.subr.mxu0 %v12041_v2 }
0x2da9   :  { %11090 = vmatpush3.msra.mxu0 %v5546_v12  ;;  %v5715_v12 = vld [vmem:[%s18511_s11 + $0x20] sm:$0xff] }
0x2daa   :  { %11091 = vmatprep.subr.mxu0 %v12041_v2 }
0x2dab   :  { %11092 = vmatpush3.msra.mxu0 %v5545_v3  ;;  %v5719_v3 = vld [vmem:[%s18511_s11 + $0x40] sm:$0xff] }
0x2dac   :  { %11093 = vmatprep.subr.mxu0 %v12041_v2 }
0x2dad   :  { %11094 = vmatpush3.msra.mxu0 %v5544_v1  ;;  %v5714_v1 = vld [vmem:[%s18511_s11 + $0x18] sm:$0xff] }
0x2dae   :  { %11095 = vmatprep.subr.mxu0 %v12041_v2 }
0x2daf   :  { %11096 = vmatpush3.msra.mxu0 %v5543_v55  ;;  %v5712_v55 = vld [vmem:[%s18511_s11 + $0x8] sm:$0xff] }
0x2db0   :  { %11097 = vmatprep.subr.mxu0 %v12041_v2 }
0x2db1   :  { %11098 = vmatpush3.msra.mxu0 %v5542_v54  ;;  %v5716_v54 = vld [vmem:[%s18511_s11 + $0x28] sm:$0xff] }
0x2db2   :  { %11099 = vmatprep.subr.mxu0 %v12041_v2 }
0x2db3   :  { %11100 = vmatpush3.msra.mxu0 %v5541_v17  ;;  %v5711_v17 = vld [vmem:[%s18511_s11] sm:$0xff] }
0x2db4   :  { %11101 = vmatprep.subr.mxu0 %v12041_v2 }
0x2db5   :  { %11102 = vmatpush3.msra.mxu0 %v5540_v18  ;;  %v5713_v18 = vld [vmem:[%s18511_s11 + $0x10] sm:$0xff] }
0x2db6   :  { %11103 = vmatprep.subr.mxu0 %v12041_v2 }
0x2db7   :  { %11104 = vmatpush3.msra.mxu0 %v5539_v19  ;;  %v5963_v19 = vld [vmem:[%s18512_s12 + $0x170] sm:$0xff] }
0x2db8   :  { %11105 = vmatprep.subr.mxu0 %v12041_v2 }
0x2db9   :  { %11106 = vmatpush3.msra.mxu0 %v5538_v33 }
0x2dba   :  { %11107 = vmatprep.subr.mxu0 %v12041_v2 }
0x2dbb   :  { %11108 = vmatpush3.msra.mxu0 %v5537_v20  ;;  %v5708_v20 = vld [vmem:[%s18510_s10] sm:$0x1] }
0x2dbc   :  { %11109 = vmatprep.subr.mxu0 %v12041_v2 }
0x2dbd   :  { %11110 = vmatpush3.msra.mxu0 %v5536_v21 }
0x2dbe   :  { %11112 = vmatmul.mubr.f32.vlgmr.msra.gmra.mxu0 %v16251_v14  ;;  %11114 = vmatprep.subr.mxu0 %v12041_v2  ;;  %v5755_v14 = vld [vmem:[%s18511_s11 + $0x160] sm:$0xff] }
0x2dbf   :  { %11146 = vmatprep.mubr.msk.f32.mxu0 %vm12042_vm0, %v12041_v2  ;;  %11115 = vmatpush3.msra.mxu0 %v5758_v26 }
0x2dc0   :  { %11116 = vmatprep.subr.mxu0 %v12041_v2 }
0x2dc1   :  { %11117 = vmatpush3.msra.mxu0 %v5755_v14  ;;  %v5962_v14 = vld [vmem:[%s18512_s12 + $0x168] sm:$0xff] }
0x2dc2   :  { %11118 = vmatprep.subr.mxu0 %v12041_v2 }
0x2dc3   :  { %11119 = vmatpush3.msra.mxu0 %v5752_v27  ;;  %v5960_v27 = vld [vmem:[%s18512_s12 + $0x158] sm:$0xff] }
0x2dc4   :  { %11120 = vmatprep.subr.mxu0 %v12041_v2 }
0x2dc5   :  { %11121 = vmatpush3.msra.mxu0 %v5749_v28  ;;  %v5964_v28 = vld [vmem:[%s18512_s12 + $0x178] sm:$0xff] }
0x2dc6   :  { %11122 = vmatprep.subr.mxu0 %v12041_v2 }
0x2dc7   :  { %11123 = vmatpush3.msra.mxu0 %v5746_v30  ;;  %v5959_v30 = vld [vmem:[%s18512_s12 + $0x150] sm:$0xff] }
0x2dc8   :  { %11124 = vmatprep.subr.mxu0 %v12041_v2 }
0x2dc9   :  { %11125 = vmatpush3.msra.mxu0 %v5743_v31  ;;  %v5957_v31 = vld [vmem:[%s18512_s12 + $0x140] sm:$0xff] }
0x2dca   :  { %11126 = vmatprep.subr.mxu0 %v12041_v2 }
0x2dcb   :  { %11127 = vmatpush3.msra.mxu0 %v5740_v32  ;;  %v5961_v32 = vld [vmem:[%s18512_s12 + $0x160] sm:$0xff] }
0x2dcc   :  { %11128 = vmatprep.subr.mxu0 %v12041_v2 }
0x2dcd   :  { %11129 = vmatpush3.msra.mxu0 %v5737_v35  ;;  %v5956_v35 = vld [vmem:[%s18512_s12 + $0x138] sm:$0xff] }
0x2dce   :  { %11130 = vmatprep.subr.mxu0 %v12041_v2 }
0x2dcf   :  { %11131 = vmatpush3.msra.mxu0 %v5734_v36  ;;  %v5954_v36 = vld [vmem:[%s18512_s12 + $0x128] sm:$0xff] }
0x2dd0   :  { %11132 = vmatprep.subr.mxu0 %v12041_v2 }
0x2dd1   :  { %11133 = vmatpush3.msra.mxu0 %v5731_v38  ;;  %v5958_v38 = vld [vmem:[%s18512_s12 + $0x148] sm:$0xff] }
0x2dd2   :  { %11134 = vmatprep.subr.mxu0 %v12041_v2 }
0x2dd3   :  { %11135 = vmatpush3.msra.mxu0 %v5728_v34  ;;  %v5953_v34 = vld [vmem:[%s18512_s12 + $0x120] sm:$0xff] }
0x2dd4   :  { %11136 = vmatprep.subr.mxu0 %v12041_v2 }
0x2dd5   :  { %11137 = vmatpush3.msra.mxu0 %v5725_v40  ;;  %v5951_v40 = vld [vmem:[%s18512_s12 + $0x110] sm:$0xff] }
0x2dd6   :  { %11138 = vmatprep.subr.mxu0 %v12041_v2 }
0x2dd7   :  { %11139 = vmatpush3.msra.mxu0 %v5722_v10  ;;  %v5925_v10 = vld [vmem:[%s18512_s12 + $0x40] sm:$0xff] }
0x2dd8   :  { %11140 = vmatprep.subr.mxu0 %v12041_v2 }
0x2dd9   :  { %11141 = vmatpush3.msra.mxu0 %v5719_v3  ;;  %v5922_v3 = vld [vmem:[%s18512_s12 + $0x28] sm:$0xff] }
0x2dda   :  { %11142 = vmatprep.subr.mxu0 %v12041_v2 }
0x2ddb   :  { %11143 = vmatpush3.msra.mxu0 %v5716_v54  ;;  %v6159_v54 = vld [vmem:[%s18515_s15 + $0x78] sm:$0xff] }
0x2ddc   :  { %11144 = vmatprep.subr.mxu0 %v12041_v2 }
0x2ddd   :  { %11145 = vmatpush3.msra.mxu0 %v5713_v18  ;;  %v6157_v18 = vld [vmem:[%s18515_s15 + $0x68] sm:$0xff] }
0x2dde   :  { %11149 = vmatprep.subr.mxu0 %v12041_v2 }
0x2e5e   :  { %v5532_v16 = vpop.f32.mrf.mxu0 }
0x2e5f   :  { %11077 = vmatmul.mubr.f32.vlgmr.msra.gmra.mxu1 %v5532_v16  ;;  %v5950_v16 = vld [vmem:[%s18512_s12 + $0x108] sm:$0xff] }
0x2e60   :  { %v11043_v46 = vpop.f32.mrf.mxu0  ;;  %5777 = vmatpush1.msra.mxu1 %v5756_v15  ;;  %5840 = vmatprep.mubr.f32.mxu1 %v12041_v2  ;;  %v5955_v15 = vld [vmem:[%s18512_s12 + $0x130] sm:$0xff] }
0x2e61   :  { %5778 = vmatprep.subr.mxu1 %v5754_v24  ;;  %v5948_v24 = vld [vmem:[%s18512_s12 + $0xf8] sm:$0xff]  ;;  %v5947_v46 = vld [vmem:[%s18512_s12 + $0xf0] sm:$0xff] }
0x2e62   :  { %5779 = vmatpush1.msra.mxu1 %v5753_v44  ;;  %v5952_v44 = vld [vmem:[%s18512_s12 + $0x118] sm:$0xff] }
0x2e63   :  { %5780 = vmatprep.subr.mxu1 %v5751_v47  ;;  %v5945_v47 = vld [vmem:[%s18512_s12 + $0xe0] sm:$0xff] }
0x2e64   :  { %5781 = vmatpush1.msra.mxu1 %v5750_v48  ;;  %v5949_v48 = vld [vmem:[%s18512_s12 + $0x100] sm:$0xff] }
0x2e65   :  { %5782 = vmatprep.subr.mxu1 %v5748_v49  ;;  %v5944_v49 = vld [vmem:[%s18512_s12 + $0xd8] sm:$0xff] }
0x2e66   :  { %5783 = vmatpush1.msra.mxu1 %v5747_v50  ;;  %v5942_v50 = vld [vmem:[%s18512_s12 + $0xc8] sm:$0xff] }
0x2e67   :  { %5784 = vmatprep.subr.mxu1 %v5745_v51  ;;  %v5946_v51 = vld [vmem:[%s18512_s12 + $0xe8] sm:$0xff] }
0x2e68   :  { %5785 = vmatpush1.msra.mxu1 %v5744_v52  ;;  %v5941_v52 = vld [vmem:[%s18512_s12 + $0xc0] sm:$0xff] }
0x2e69   :  { %5786 = vmatprep.subr.mxu1 %v5742_v41  ;;  %v5939_v41 = vld [vmem:[%s18512_s12 + $0xb0] sm:$0xff] }
0x2e6a   :  { %5787 = vmatpush1.msra.mxu1 %v5741_v29  ;;  %v5943_v29 = vld [vmem:[%s18512_s12 + $0xd0] sm:$0xff] }
0x2e6b   :  { %5788 = vmatprep.subr.mxu1 %v5739_v25  ;;  %v5938_v25 = vld [vmem:[%s18512_s12 + $0xa8] sm:$0xff] }
0x2e6c   :  { %5789 = vmatpush1.msra.mxu1 %v5738_v56  ;;  %v5936_v56 = vld [vmem:[%s18512_s12 + $0x98] sm:$0xff] }
0x2e6d   :  { %5790 = vmatprep.subr.mxu1 %v5736_v57  ;;  %v5940_v57 = vld [vmem:[%s18512_s12 + $0xb8] sm:$0xff] }
0x2e6e   :  { %5791 = vmatpush1.msra.mxu1 %v5735_v58  ;;  %v5935_v58 = vld [vmem:[%s18512_s12 + $0x90] sm:$0xff] }
0x2e6f   :  { %5792 = vmatprep.subr.mxu1 %v5733_v59  ;;  %v5933_v59 = vld [vmem:[%s18512_s12 + $0x80] sm:$0xff] }
0x2e70   :  { %5793 = vmatpush1.msra.mxu1 %v5732_v60  ;;  %v5937_v60 = vld [vmem:[%s18512_s12 + $0xa0] sm:$0xff] }
0x2e71   :  { %5794 = vmatprep.subr.mxu1 %v5730_v61  ;;  %v5932_v61 = vld [vmem:[%s18512_s12 + $0x78] sm:$0xff] }
0x2e72   :  { %5795 = vmatpush1.msra.mxu1 %v5729_v63  ;;  %v5930_v63 = vld [vmem:[%s18512_s12 + $0x68] sm:$0xff] }
0x2e73   :  { %5796 = vmatprep.subr.mxu1 %v5727_v0  ;;  %v5934_v0 = vld [vmem:[%s18512_s12 + $0x88] sm:$0xff] }
0x2e74   :  { %5797 = vmatpush1.msra.mxu1 %v5726_v53  ;;  %v5929_v53 = vld [vmem:[%s18512_s12 + $0x60] sm:$0xff] }
0x2e75   :  { %5798 = vmatprep.subr.mxu1 %v5724_v43  ;;  %v5927_v43 = vld [vmem:[%s18512_s12 + $0x50] sm:$0xff] }
0x2e76   :  { %5799 = vmatpush1.msra.mxu1 %v5723_v42  ;;  %v5931_v42 = vld [vmem:[%s18512_s12 + $0x70] sm:$0xff] }
0x2e77   :  { %5800 = vmatprep.subr.mxu1 %v5721_v5  ;;  %v5926_v5 = vld [vmem:[%s18512_s12 + $0x48] sm:$0xff] }
0x2e78   :  { %5801 = vmatpush1.msra.mxu1 %v5720_v6  ;;  %v5924_v6 = vld [vmem:[%s18512_s12 + $0x38] sm:$0xff] }
0x2e79   :  { %5802 = vmatprep.subr.mxu1 %v5718_v9  ;;  %v5921_v9 = vld [vmem:[%s18512_s12 + $0x20] sm:$0xff] }
0x2e7a   :  { %5803 = vmatpush1.msra.mxu1 %v5717_v11  ;;  %v5920_v11 = vld [vmem:[%s18512_s12 + $0x18] sm:$0xff] }
0x2e7b   :  { %5804 = vmatprep.subr.mxu1 %v5715_v12  ;;  %v5918_v12 = vld [vmem:[%s18512_s12 + $0x8] sm:$0xff] }
0x2e7c   :  { %5805 = vmatpush1.msra.mxu1 %v5714_v1  ;;  %v5917_v1 = vld [vmem:[%s18512_s12] sm:$0xff] }
0x2e7d   :  { %5806 = vmatprep.subr.mxu1 %v5712_v55  ;;  %v5919_v55 = vld [vmem:[%s18512_s12 + $0x10] sm:$0xff] }
0x2e7e   :  { %v5704_v7 = vpop.f32.mrf.mxu0  ;;  %5807 = vmatpush1.msra.mxu1 %v5711_v17  ;;  %v6158_v17 = vld [vmem:[%s18515_s15 + $0x70] sm:$0xff] }
0x2e7f   :  { %5982 = vmatprep.subr.mxu1 %v5963_v19  ;;  %v6156_v19 = vld [vmem:[%s18515_s15 + $0x60] sm:$0xff] }
0x2e80   :  { %v11113_v8 = vpop.f32.mrf.mxu0 }
0x2e81   :  { %v5923_v8 = vld [vmem:[%s18512_s12 + $0x30] sm:$0xff] }
0x2f1f   :  { %v5634_v33 = vpop.f32.mrf.mxu1 }
0x2f20   :  { %v5705_v21 = vadd.f32 %v5704_v7, %v5634_v33  ;;  %v5928_v7 = vld [vmem:[%s18512_s12 + $0x58] sm:$0xff] }
0x2f21   :  { %v11078_v22 = vpop.f32.mrf.mxu1  ;;  %v6155_v33 = vld [vmem:[%s18515_s15 + $0x58] sm:$0xff] }
0x2f22   :  { %v5709_v23 = vadd.f32 %v5708_v20, %v5705_v21  ;;  %v6154_v20 = vld [vmem:[%s18515_s15 + $0x50] sm:$0xff]  ;;  %v6153_v21 = vld [vmem:[%s18515_s15 + $0x48] sm:$0xff]  ;;  %v6152_v22 = vld [vmem:[%s18515_s15 + $0x40] sm:$0xff] }
0x2f24   :  { %v5710_v26 = vmax.f32 %v5709_v23, 0.0  ;;  %v6151_v23 = vld [vmem:[%s18515_s15 + $0x38] sm:$0xff] }
0x2f26   :  { %5841 = vmatmul.mubr.f32.vlgmr.msra.gmra.mxu1 %v5710_v26  ;;  %11147 = vmatmul.mubr.f32.vlgmr.msra.gmra.mxu0 %v5710_v26  ;;  %v6150_v26 = vld [vmem:[%s18515_s15 + $0x30] sm:$0xff] }
0x2f27   :  { %5983 = vmatpush1.msra.mxu1 %v5962_v14  ;;  %6046 = vmatprep.mubr.f32.mxu1 %v12041_v2  ;;  %v6149_v14 = vld [vmem:[%s18515_s15 + $0x28] sm:$0xff] }
0x2f28   :  { %5984 = vmatprep.subr.mxu1 %v5960_v27  ;;  %11150 = vmatpush3.msra.mxu0 %v5964_v28  ;;  %v6148_v27 = vld [vmem:[%s18515_s15 + $0x20] sm:$0xff]  ;;  %v6147_v28 = vld [vmem:[%s18515_s15 + $0x18] sm:$0xff] }
0x2f29   :  { %5985 = vmatpush1.msra.mxu1 %v5959_v30  ;;  %11151 = vmatprep.subr.mxu0 %v12041_v2  ;;  %v6146_v30 = vld [vmem:[%s18515_s15 + $0x10] sm:$0xff] }
0x2f2a   :  { %5986 = vmatprep.subr.mxu1 %v5957_v31  ;;  %11152 = vmatpush3.msra.mxu0 %v5961_v32  ;;  %v6145_v31 = vld [vmem:[%s18515_s15 + $0x8] sm:$0xff]  ;;  %v6144_v32 = vld [vmem:[%s18515_s15] sm:$0xff] }
0x2f2b   :  { %5987 = vmatpush1.msra.mxu1 %v5956_v35  ;;  %11153 = vmatprep.subr.mxu0 %v12041_v2 }
0x2f2c   :  { %5988 = vmatprep.subr.mxu1 %v5954_v36  ;;  %11154 = vmatpush3.msra.mxu0 %v5958_v38  ;;  %v5759_v38 = vld [vmem:[%s18513_s13] sm:$0x7] }
0x2f2d   :  { %5989 = vmatpush1.msra.mxu1 %v5953_v34  ;;  %11155 = vmatprep.subr.mxu0 %v12041_v2 }
0x2f2e   :  { %5990 = vmatprep.subr.mxu1 %v5951_v40  ;;  %11156 = vmatpush3.msra.mxu0 %v5955_v15  ;;  %v5965_v40 = vld [vmem:[%s18514_s14] sm:$0x7]  ;;  %v5764_v15 = vrot.slane %v5759_v38, %v12904_v39 }
0x2f2f   :  { %5991 = vmatpush1.msra.mxu1 %v5950_v16  ;;  %11157 = vmatprep.subr.mxu0 %v12041_v2  ;;  %v5970_v16 = vrot.slane %v5965_v40, %v12904_v39 }
0x2f30   :  { %5992 = vmatprep.subr.mxu1 %v5948_v24  ;;  %11158 = vmatpush3.msra.mxu0 %v5952_v44 }
0x2f31   :  { %5993 = vmatpush1.msra.mxu1 %v5947_v46  ;;  %11159 = vmatprep.subr.mxu0 %v12041_v2 }
0x2f32   :  { %5994 = vmatprep.subr.mxu1 %v5945_v47  ;;  %11160 = vmatpush3.msra.mxu0 %v5949_v48  ;;  %v5974_v48 = vrot.slane %v5965_v40, %v12914_v45 }
0x2f33   :  { %5995 = vmatpush1.msra.mxu1 %v5944_v49  ;;  %11161 = vmatprep.subr.mxu0 %v12041_v2 }
0x2f34   :  { %5996 = vmatprep.subr.mxu1 %v5942_v50  ;;  %11162 = vmatpush3.msra.mxu0 %v5946_v51  ;;  %v5768_v51 = vrot.slane %v5759_v38, %v12914_v45 }
0x2f35   :  { %5997 = vmatpush1.msra.mxu1 %v5941_v52  ;;  %11163 = vmatprep.subr.mxu0 %v12041_v2 }
0x2f36   :  { %5998 = vmatprep.subr.mxu1 %v5939_v41  ;;  %11164 = vmatpush3.msra.mxu0 %v5943_v29 }
0x2f37   :  { %5999 = vmatpush1.msra.mxu1 %v5938_v25  ;;  %11165 = vmatprep.subr.mxu0 %v12041_v2 }
0x2f38   :  { %6000 = vmatprep.subr.mxu1 %v5936_v56  ;;  %11166 = vmatpush3.msra.mxu0 %v5940_v57 }
0x2f39   :  { %6001 = vmatpush1.msra.mxu1 %v5935_v58  ;;  %11167 = vmatprep.subr.mxu0 %v12041_v2 }
0x2f3a   :  { %6002 = vmatprep.subr.mxu1 %v5933_v59  ;;  %11168 = vmatpush3.msra.mxu0 %v5937_v60 }
0x2f3b   :  { %6003 = vmatpush1.msra.mxu1 %v5932_v61  ;;  %11169 = vmatprep.subr.mxu0 %v12041_v2  ;;  %v5978_v61 = vrot.slane %v5965_v40, %v12918_v62 }
0x2f3c   :  { %6004 = vmatprep.subr.mxu1 %v5930_v63  ;;  %11170 = vmatpush3.msra.mxu0 %v5934_v0  ;;  %v5772_v0 = vrot.slane %v5759_v38, %v12918_v62 }
0x2f3d   :  { %6005 = vmatpush1.msra.mxu1 %v5929_v53  ;;  %11171 = vmatprep.subr.mxu0 %v12041_v2 }
0x2f3e   :  { %6006 = vmatprep.subr.mxu1 %v5927_v43  ;;  %11172 = vmatpush3.msra.mxu0 %v5931_v42 }
0x2f3f   :  { %6007 = vmatpush1.msra.mxu1 %v5926_v5  ;;  %11173 = vmatprep.subr.mxu0 %v12041_v2 }
0x2f40   :  { %6008 = vmatprep.subr.mxu1 %v5924_v6  ;;  %11174 = vmatpush3.msra.mxu0 %v5928_v7 }
0x2f41   :  { %6009 = vmatpush1.msra.mxu1 %v5923_v8  ;;  %11175 = vmatprep.subr.mxu0 %v12041_v2 }
0x2f42   :  { %6010 = vmatprep.subr.mxu1 %v5921_v9  ;;  %11176 = vmatpush3.msra.mxu0 %v5925_v10 }
0x2f43   :  { %6011 = vmatpush1.msra.mxu1 %v5920_v11  ;;  %11177 = vmatprep.subr.mxu0 %v12041_v2 }
0x2f44   :  { %6012 = vmatprep.subr.mxu1 %v5918_v12  ;;  %11178 = vmatpush3.msra.mxu0 %v5922_v3 }
0x2f45   :  { %6013 = vmatpush1.msra.mxu1 %v5917_v1  ;;  %11179 = vmatprep.subr.mxu0 %v12041_v2  ;;  %v6160_v1 = vld [vmem:[%s18516_s16] sm:$0x1] }
0x2f46   :  { %6047 = vmatmul.mubr.f32.vlgmr.msra.gmra.mxu1 %v16249_v13  ;;  %11180 = vmatpush3.msra.mxu0 %v5919_v55 }
0x2f47   :  { %11181 = vmatprep.mubr.msk.f32.mxu0 %vm12042_vm0, %v12041_v2  ;;  %11184 = vmatprep.subr.mxu1 %v12041_v2 }
0x2f48   :  { %11182 = vmatmul.mubr.f32.vlgmr.msra.gmra.mxu0 %v16249_v13  ;;  %11216 = vmatprep.mubr.msk.f32.mxu1 %vm12042_vm0, %v12041_v2 }
0x2f49   :  { %11185 = vmatpush3.msra.mxu1 %v6159_v54 }
0x2f4a   :  { %11186 = vmatprep.subr.mxu1 %v12041_v2 }
0x2f4b   :  { %11187 = vmatpush3.msra.mxu1 %v6158_v17 }
0x2f4c   :  { %11188 = vmatprep.subr.mxu1 %v12041_v2 }
0x2f4d   :  { %11189 = vmatpush3.msra.mxu1 %v6157_v18 }
0x2f4e   :  { %11190 = vmatprep.subr.mxu1 %v12041_v2 }
0x2f4f   :  { %11191 = vmatpush3.msra.mxu1 %v6156_v19 }
0x2f50   :  { %11192 = vmatprep.subr.mxu1 %v12041_v2 }
0x2f51   :  { %11193 = vmatpush3.msra.mxu1 %v6155_v33 }
0x2f52   :  { %11194 = vmatprep.subr.mxu1 %v12041_v2 }
0x2f53   :  { %11195 = vmatpush3.msra.mxu1 %v6154_v20 }
0x2f54   :  { %11196 = vmatprep.subr.mxu1 %v12041_v2 }
0x2f55   :  { %11197 = vmatpush3.msra.mxu1 %v6153_v21 }
0x2f56   :  { %11198 = vmatprep.subr.mxu1 %v12041_v2 }
0x2f57   :  { %11199 = vmatpush3.msra.mxu1 %v6152_v22 }
0x2f58   :  { %11200 = vmatprep.subr.mxu1 %v12041_v2 }
0x2f59   :  { %11201 = vmatpush3.msra.mxu1 %v6151_v23 }
0x2f5a   :  { %11202 = vmatprep.subr.mxu1 %v12041_v2 }
0x2f5b   :  { %11203 = vmatpush3.msra.mxu1 %v6150_v26 }
0x2f5c   :  { %11204 = vmatprep.subr.mxu1 %v12041_v2 }
0x2f5d   :  { %11205 = vmatpush3.msra.mxu1 %v6149_v14 }
0x2f5e   :  { %11206 = vmatprep.subr.mxu1 %v12041_v2 }
0x2f5f   :  { %11207 = vmatpush3.msra.mxu1 %v6148_v27 }
0x2f60   :  { %11208 = vmatprep.subr.mxu1 %v12041_v2 }
0x2f61   :  { %11209 = vmatpush3.msra.mxu1 %v6147_v28 }
0x2f62   :  { %11210 = vmatprep.subr.mxu1 %v12041_v2 }
0x2f63   :  { %11211 = vmatpush3.msra.mxu1 %v6146_v30 }
0x2f64   :  { %11212 = vmatprep.subr.mxu1 %v12041_v2 }
0x2f65   :  { %11213 = vmatpush3.msra.mxu1 %v6145_v31 }
0x2f66   :  { %11214 = vmatprep.subr.mxu1 %v12041_v2 }
0x2f67   :  { %11215 = vmatpush3.msra.mxu1 %v6144_v32 }
0x2fe6   :  { %v5913_v35 = vpop.f32.mrf.mxu0  ;;  %v5842_v34 = vpop.f32.mrf.mxu1 }
0x2fe7   :  { %v5843_v46 = vadd.f32 %v5842_v34, %v5764_v15  ;;  %v5914_v5 = vadd.f32 %v5913_v35, %v5772_v0 }
0x2fe8   :  { %v11148_v36 = vpop.f32.mrf.mxu0  ;;  %v5844_v24 = vpop.f32.mrf.mxu1 }
0x2fe9   :  { %v5845_v56 = vadd.f32 %v5844_v24, %v5768_v51 }
0x3006   :  { %v6048_v44 = vpop.f32.mrf.mxu1 }
0x3007   :  { %v6049_v47 = vadd.f32 %v6048_v44, %v5970_v16 }
0x3008   :  { %v6050_v49 = vpop.f32.mrf.mxu1  ;;  %v6119_v50 = vpop.f32.mrf.mxu0 }
0x3009   :  { %v6123_v52 = vadd.f32 %v6049_v47, %v5843_v46  ;;  %v6051_v25 = vadd.f32 %v6050_v49, %v5974_v48  ;;  %v6120_v43 = vadd.f32 %v6119_v50, %v5978_v61 }
0x300a   :  { %v11183_v41 = vpop.f32.mrf.mxu0 }
0x300b   :  { %v8438_v29 = vmul.f32 -1.442695, %v6123_v52  ;;  %v6130_v57 = vadd.f32 %v6051_v25, %v5845_v56 }
0x300d   :  { %11897 = vpow2.f32 %v8438_v29  ;;  %v8439_v58 = vmul.f32 -1.442695, %v6130_v57 }
0x300f   :  { %11899 = vpow2.f32 %v8439_v58 }
0x301a   :  { %v11898_v59 = vpop.eup %11897 }
0x301b   :  { %v6127_v60 = vadd.f32 1.0, %v11898_v59 }
0x301c   :  { %v11900_v63 = vpop.eup %11899 }
0x301d   :  { %11901 = vrcp.f32 %v6127_v60  ;;  %v6134_v53 = vadd.f32 1.0, %v11900_v63 }
0x301f   :  { %11903 = vrcp.f32 %v6134_v53 }
0x302a   :  { %v11902_v42 = vpop.eup %11901 }
0x302b   :  { %v6137_v6 = vmul.f32 %v11902_v42, %v6120_v43 }
0x302c   :  { %v11904_v8 = vpop.eup %11903 }
0x302d   :  { %v6138_v7 = vadd.f32 %v6137_v6, %v5914_v5  ;;  %v6140_v9 = vsub.f32 1.0, %v11904_v8  ;;  %v6142_v12 = vmul.f32 %v11904_v8, %v16249_v13 }
0x302f   :  { %11905 = vtanh.f32 %v6138_v7 }
0x303c   :  { %v11906_v10 = vpop.eup %11905 }
0x303d   :  { %v6141_v11 = vmul.f32 %v11906_v10, %v6140_v9 }
0x303f   :  { %v16890_v3 = vadd.f32 %v6142_v12, %v6141_v11 }
0x3041   :  { %11217 = vmatmul.mubr.f32.vlgmr.msra.gmra.mxu1 %v16890_v3 }
0x3101   :  { %v6227_v55 = vpop.f32.mrf.mxu1 }
0x3102   :  { %v6228_v54 = vadd.f32 %v6227_v55, %v6160_v1 }
0x3103   :  { %v11218_v17 = vpop.f32.mrf.mxu1 }
0x3104   :  { %v6231_v18 = vsel %vm264_vm1, %v6228_v54, -inf }
0x3105   :  { %6232 = vmax.xlane.f32.xlu1 %v6231_v18 }
0x318e   :  { %v6233_v19 = vpop.xlane.xlu1 %6232 }
0x318f   :  { %v6234_v33 = vsub.f32 %v6228_v54, %v6233_v19 }
0x3191   :  { %v6235_v20 = vmul.f32 1.442695, %v6234_v33 }
0x3193   :  { %11907 = vpow2.f32 %v6235_v20 }
0x31a0   :  { %v11908_v21 = vpop.eup %11907 }
0x31a1   :  { %v6237_v22 = vsel %vm264_vm1, %v11908_v21, 0.0 }
0x31a2   :  { %6238 = vadd.xlane.f32.xlu1 %v6237_v22 }
0x322b   :  { %v6239_v23 = vpop.xlane.xlu1 %6238 }
0x322c   :  { %11909 = vlog2.f32 %v6239_v23 }
0x3239   :  { %v11910_v26 = vpop.eup %11909 }
0x323a   :  { %v6241_v14 = vmul.f32 0.6931472, %v11910_v26 }
0x323b   :  { %6255 = sbr.rel (%p8440_p2) target bundleno = 13355 (0x342b), region = 101 }
0x323c   :  { %v6242_v27 = vsub.f32 %v6234_v33, %v6241_v14 }
0x323e   :  { %v6247_v28 = vsel %vm16404_vm3, %v6242_v27, 0.0 }
0x323f   :  { %6248 = vst [vmem:[#allocation8 + $0x5] sm:$0x1] %v6247_v28 }
0x3240   :  { %v6258_v30 = vsel %vm264_vm1, %v6242_v27, -inf  ;;  %v6257_v31 = vand.u32 127, %v587_v37 }
0x3241   :  { %6259 = vmax.xlane.f32.xlu0 %v6258_v30 }
0x32ca   :  { %v6260_v32 = vpop.xlane.xlu0 %6259 }
0x32cb   :  { %vm6261_vm4 = vcmp.eq.f32.partialorder %v6242_v27, %v6260_v32 }
0x32cc   :  { %v6262_v35 = vsel %vm6261_vm4, %v6257_v31, 128 }
0x32cd   :  { %v6263_v36 = vsel %vm264_vm1, %v6262_v35, 2147483647 }
0x32ce   :  { %v6265_v38 = vshra.s32 %v6263_v36, 16  ;;  %v6264_v40 = vand.u32 65535, %v6263_v36 }
0x32d0   :  { %v6267_v34 = vcvt.s32.f32 %v6265_v38  ;;  %v6266_v16 = vcvt.s32.f32 %v6264_v40 }
0x32d2   :  { %6268 = vmin.xlane.f32.xlu0 %v6267_v34 }
0x335b   :  { %v6269_v15 = vpop.xlane.xlu0 %6268 }
0x335c   :  { %vm6270_vm5 = vcmp.eq.f32.partialorder %v6267_v34, %v6269_v15  ;;  %v6275_v44 = vcvt.f32.s32 %v6269_v15 }
0x335d   :  { %v6271_v24 = vsel %vm6270_vm5, %v6266_v16, inf }
0x335e   :  { %6272 = vmin.xlane.f32.xlu1 %v6271_v24  ;;  %v6276_v47 = vshll.u32 %v6275_v44, 16 }
0x33e7   :  { %v6273_v46 = vpop.xlane.xlu1 %6272 }
0x33e8   :  { %v6274_v48 = vcvt.f32.s32 %v6273_v46 }
0x33ea   :  { %v6277_v49 = vadd.s32 %v6276_v47, %v6274_v48 }
0x33ec   :  { %v6278_v50 = vrot.slane %v6277_v49, 4 }
0x33ee   :  { %vm6279_vm6 = vcmp.lt.s32.totalorder %v6277_v49, %v6278_v50 }
0x33ef   :  { %v6280_v51 = vsel %vm6279_vm6, %v6277_v49, %v6278_v50 }
0x33f0   :  { %v6281_v52 = vrot.slane %v6280_v51, 2 }
0x33f2   :  { %vm6282_vm7 = vcmp.lt.s32.totalorder %v6280_v51, %v6281_v52 }
0x33f3   :  { %v6283_v41 = vsel %vm6282_vm7, %v6280_v51, %v6281_v52 }
0x33f4   :  { %v6284_v29 = vrot.slane %v6283_v41, 1 }
0x33f6   :  { %vm6285_vm8 = vcmp.lt.s32.totalorder %v6283_v41, %v6284_v29 }
0x33f7   :  { %v6286_v25 = vsel %vm6285_vm8, %v6283_v41, %v6284_v29 }
0x33f8   :  { %11789 = vpush %v6286_v25 }
0x3429   :  { %s11790_s24 = spop %11789 }
0x342a   :  { %6288 = sst [smem:[#allocation2]] %s11790_s24 }
0x342b PF:  { %s16904_s2 = sld [smem:[#allocation6 + $0x6]]  ;;  %11219 = vmatprep.subr.mxu0 %v12041_v2  ;;  %11254 = vmatprep.subr.mxu1 %v12041_v2  ;;  %v6332_v56 = vld [vmem:[%s18506_s6 + $0x78] sm:$0xff]  ;;  %v6331_v58 = vld [vmem:[%s18506_s6 + $0x70] sm:$0xff]  ;;  %v6330_v60 = vld [vmem:[%s18506_s6 + $0x68] sm:$0xff]  ;;  %v17044_v27 = vsel %vm16404_vm3, %v16890_v3, %v16249_v13  ;;  %s6292_s3 = ssub.s32 1, %s16109_s22 }
0x342c   :  { %v6316_v57 = vld [vmem:[%s18505_s5 + $0x78] sm:$0xff]  ;;  %11220 = vmatpush3.msra.mxu0 %v6332_v56  ;;  %v6315_v59 = vld [vmem:[%s18505_s5 + $0x70] sm:$0xff]  ;;  %v6314_v61 = vld [vmem:[%s18505_s5 + $0x68] sm:$0xff]  ;;  %s8442_s29 = sld [smem:[#allocation3 + $0x6]]  ;;  %11251 = vmatprep.mubr.msk.f32.mxu0 %vm12042_vm0, %v12041_v2 }
0x342d   :  { %11255 = vmatpush3.msra.mxu1 %v6316_v57  ;;  %11221 = vmatprep.subr.mxu0 %v12041_v2  ;;  %v6329_v63 = vld [vmem:[%s18506_s6 + $0x60] sm:$0xff]  ;;  %v6328_v53 = vld [vmem:[%s18506_s6 + $0x58] sm:$0xff]  ;;  %s16944_s25 = sld [smem:[#allocation2]]  ;;  %v6327_v42 = vld [vmem:[%s18506_s6 + $0x50] sm:$0xff] }
0x342e   :  { %11256 = vmatprep.subr.mxu1 %v12041_v2  ;;  %11222 = vmatpush3.msra.mxu0 %v6331_v58  ;;  %v6313_v0 = vld [vmem:[%s18505_s5 + $0x60] sm:$0xff]  ;;  %v6312_v43 = vld [vmem:[%s18505_s5 + $0x58] sm:$0xff]  ;;  %v6311_v5 = vld [vmem:[%s18505_s5 + $0x50] sm:$0xff]  ;;  %s18552_s28 = sld [smem:[#allocation19_spill]] }
0x342f   :  { %11257 = vmatpush3.msra.mxu1 %v6315_v59  ;;  %11223 = vmatprep.subr.mxu0 %v12041_v2  ;;  %v6326_v6 = vld [vmem:[%s18506_s6 + $0x48] sm:$0xff]  ;;  %v6325_v8 = vld [vmem:[%s18506_s6 + $0x40] sm:$0xff]  ;;  %v6324_v10 = vld [vmem:[%s18506_s6 + $0x38] sm:$0xff] }
0x3430   :  { %11258 = vmatprep.subr.mxu1 %v12041_v2  ;;  %11224 = vmatpush3.msra.mxu0 %v6330_v60  ;;  %v6310_v7 = vld [vmem:[%s18505_s5 + $0x48] sm:$0xff]  ;;  %v6309_v9 = vld [vmem:[%s18505_s5 + $0x40] sm:$0xff]  ;;  %v6308_v11 = vld [vmem:[%s18505_s5 + $0x38] sm:$0xff] }
0x3431   :  { %11259 = vmatpush3.msra.mxu1 %v6314_v61  ;;  %11225 = vmatprep.subr.mxu0 %v12041_v2  ;;  %v6323_v12 = vld [vmem:[%s18506_s6 + $0x30] sm:$0xff]  ;;  %v6322_v55 = vld [vmem:[%s18506_s6 + $0x28] sm:$0xff]  ;;  %v6321_v17 = vld [vmem:[%s18506_s6 + $0x20] sm:$0xff]  ;;  %p8445_p6 = scmp.ne.s32.totalorder %s16904_s2, 0 }
0x3432   :  { %11260 = vmatprep.subr.mxu1 %v12041_v2  ;;  %11226 = vmatpush3.msra.mxu0 %v6329_v63  ;;  %7287 = sst [smem:[#allocation2]] %s8442_s29  ;;  %v6307_v1 = vld [vmem:[%s18505_s5 + $0x30] sm:$0xff]  ;;  %v6306_v54 = vld [vmem:[%s18505_s5 + $0x28] sm:$0xff]  ;;  %v6305_v18 = vld [vmem:[%s18505_s5 + $0x20] sm:$0xff] }
0x3433   :  { %11261 = vmatpush3.msra.mxu1 %v6313_v0  ;;  %11227 = vmatprep.subr.mxu0 %v12041_v2  ;;  %v6320_v19 = vld [vmem:[%s18506_s6 + $0x18] sm:$0xff]  ;;  %v6319_v20 = vld [vmem:[%s18506_s6 + $0x10] sm:$0xff]  ;;  %v6318_v22 = vld [vmem:[%s18506_s6 + $0x8] sm:$0xff]  ;;  %s6299_s21 = scalar_lea.vmem %s18504_s4, %s16944_s25  ;;  %p6290_p3 = scmp.eq.s32.totalorder %s16944_s25, 1 }
0x3434   :  { %11262 = vmatprep.subr.mxu1 %v12041_v2  ;;  %11228 = vmatpush3.msra.mxu0 %v6328_v53  ;;  %v6304_v33 = vld [vmem:[%s18505_s5 + $0x18] sm:$0xff]  ;;  %v6303_v21 = vld [vmem:[%s18505_s5 + $0x10] sm:$0xff]  ;;  %v6302_v23 = vld [vmem:[%s18505_s5 + $0x8] sm:$0xff] }
0x3435   :  { %11263 = vmatpush3.msra.mxu1 %v6312_v43  ;;  %11229 = vmatprep.subr.mxu0 %v12041_v2  ;;  %v6317_v26 = vld [vmem:[%s18506_s6] sm:$0xff]  ;;  %v6501_v38 = vld [vmem:[%s18552_s28 + $0x78] sm:$0xff]  ;;  %v6500_v34 = vld [vmem:[%s18552_s28 + $0x70] sm:$0xff]  ;;  %s6291_s30 = scalar_select %p6290_p3, 1, 0 }
0x3436   :  { %11264 = vmatprep.subr.mxu1 %v12041_v2  ;;  %11230 = vmatpush3.msra.mxu0 %v6327_v42  ;;  %v6301_v14 = vld [vmem:[%s18505_s5] sm:$0xff]  ;;  %v6499_v40 = vld [vmem:[%s18552_s28 + $0x68] sm:$0xff]  ;;  %v6497_v16 = vld [vmem:[%s18552_s28 + $0x58] sm:$0xff] }
0x3437   :  { %11265 = vmatpush3.msra.mxu1 %v6311_v5  ;;  %11231 = vmatprep.subr.mxu0 %v12041_v2  ;;  %v17046_v28 = vld [vmem:[%s6299_s21] sm:$0x1]  ;;  %v6496_v24 = vld [vmem:[%s18552_s28 + $0x50] sm:$0xff]  ;;  %v6495_v44 = vld [vmem:[%s18552_s28 + $0x48] sm:$0xff]  ;;  %s6293_s27 = smul.u32 %s6292_s3, %s6291_s30 }
0x3438   :  { %11266 = vmatprep.subr.mxu1 %v12041_v2  ;;  %11232 = vmatpush3.msra.mxu0 %v6326_v6  ;;  %v6473_v3 = vld [vmem:[%s18507_s7] sm:$0x1]  ;;  %v6493_v52 = vld [vmem:[%s18552_s28 + $0x38] sm:$0xff]  ;;  %v6492_v41 = vld [vmem:[%s18552_s28 + $0x30] sm:$0xff] }
0x3439   :  { %11267 = vmatpush3.msra.mxu1 %v6310_v7  ;;  %11233 = vmatprep.subr.mxu0 %v12041_v2  ;;  %v6498_v15 = vld [vmem:[%s18552_s28 + $0x60] sm:$0xff]  ;;  %v6491_v29 = vld [vmem:[%s18552_s28 + $0x28] sm:$0xff]  ;;  %v6489_v56 = vld [vmem:[%s18552_s28 + $0x18] sm:$0xff]  ;;  %p6294_p4 = scmp.gt.s32.totalorder %s18567_s20, %s6293_s27 }
0x343a   :  { %11268 = vmatprep.subr.mxu1 %v12041_v2  ;;  %11234 = vmatpush3.msra.mxu0 %v6325_v8  ;;  %v6494_v46 = vld [vmem:[%s18552_s28 + $0x40] sm:$0xff]  ;;  %v6488_v57 = vld [vmem:[%s18552_s28 + $0x10] sm:$0xff]  ;;  %v6487_v58 = vld [vmem:[%s18552_s28 + $0x8] sm:$0xff] }
0x343b   :  { %11269 = vmatpush3.msra.mxu1 %v6309_v9  ;;  %11235 = vmatprep.subr.mxu0 %v12041_v2  ;;  %v6490_v25 = vld [vmem:[%s18552_s28 + $0x20] sm:$0xff]  ;;  %v6603_v60 = vld [vmem:[%s18509_s9 + $0x78] sm:$0xff]  ;;  %v6602_v61 = vld [vmem:[%s18509_s9 + $0x70] sm:$0xff]  ;;  %s18569_s20 = smov (!%p6294_p4, %s18567_s20), %s6293_s27 }
0x343c   :  { %11270 = vmatprep.subr.mxu1 %v12041_v2  ;;  %11236 = vmatpush3.msra.mxu0 %v6324_v10  ;;  %v6486_v59 = vld [vmem:[%s18552_s28] sm:$0xff]  ;;  %v6601_v63 = vld [vmem:[%s18509_s9 + $0x68] sm:$0xff]  ;;  %v6599_v53 = vld [vmem:[%s18509_s9 + $0x58] sm:$0xff]  ;;  %p7279_p5 = scmp.eq.s32.totalorder %s18569_s20, 0 }
0x343d   :  { %11271 = vmatpush3.msra.mxu1 %v6308_v11  ;;  %11237 = vmatprep.subr.mxu0 %v12041_v2  ;;  %v6600_v0 = vld [vmem:[%s18509_s9 + $0x60] sm:$0xff]  ;;  %v6598_v43 = vld [vmem:[%s18509_s9 + $0x50] sm:$0xff]  ;;  %v6597_v42 = vld [vmem:[%s18509_s9 + $0x48] sm:$0xff] }
0x343e   :  { %11272 = vmatprep.subr.mxu1 %v12041_v2  ;;  %11238 = vmatpush3.msra.mxu0 %v6323_v12  ;;  %v6596_v5 = vld [vmem:[%s18509_s9 + $0x40] sm:$0xff]  ;;  %v6595_v6 = vld [vmem:[%s18509_s9 + $0x38] sm:$0xff]  ;;  %v6594_v7 = vld [vmem:[%s18509_s9 + $0x30] sm:$0xff]  ;;  %s7280_s29 = scalar_select %p7279_p5, 1, 0 }
0x343f   :  { %11273 = vmatpush3.msra.mxu1 %v6307_v1  ;;  %11239 = vmatprep.subr.mxu0 %v12041_v2  ;;  %v6593_v8 = vld [vmem:[%s18509_s9 + $0x28] sm:$0xff]  ;;  %v6592_v9 = vld [vmem:[%s18509_s9 + $0x20] sm:$0xff]  ;;  %v6591_v10 = vld [vmem:[%s18509_s9 + $0x18] sm:$0xff] }
0x3440   :  { %11274 = vmatprep.subr.mxu1 %v12041_v2  ;;  %11240 = vmatpush3.msra.mxu0 %v6322_v55  ;;  %v6590_v11 = vld [vmem:[%s18509_s9 + $0x10] sm:$0xff]  ;;  %v6589_v12 = vld [vmem:[%s18509_s9 + $0x8] sm:$0xff]  ;;  %v7281_v55 = vstv %s7280_s29 }
0x3441   :  { %11275 = vmatpush3.msra.mxu1 %v6306_v54  ;;  %11241 = vmatprep.subr.mxu0 %v12041_v2  ;;  %vm17199_vm9 = vcmp.eq.s32.totalorder %v7281_v55, 1  ;;  %v6760_v55 = vld [vmem:[%s18511_s11 + $0x68] sm:$0xff] }
0x3442   :  { %11276 = vmatprep.subr.mxu1 %v12041_v2  ;;  %11242 = vmatpush3.msra.mxu0 %v6321_v17 }
0x3443   :  { %11277 = vmatpush3.msra.mxu1 %v6305_v18  ;;  %11243 = vmatprep.subr.mxu0 %v12041_v2 }
0x3444   :  { %11278 = vmatprep.subr.mxu1 %v12041_v2  ;;  %11244 = vmatpush3.msra.mxu0 %v6320_v19  ;;  %v6587_v19 = vld [vmem:[%s18508_s8 + $0x78] sm:$0xff] }
0x3445   :  { %11279 = vmatpush3.msra.mxu1 %v6304_v33  ;;  %11245 = vmatprep.subr.mxu0 %v12041_v2  ;;  %v6586_v33 = vld [vmem:[%s18508_s8 + $0x70] sm:$0xff] }
0x3446   :  { %11280 = vmatprep.subr.mxu1 %v12041_v2  ;;  %11246 = vmatpush3.msra.mxu0 %v6319_v20 }
0x3447   :  { %11281 = vmatpush3.msra.mxu1 %v6303_v21  ;;  %11247 = vmatprep.subr.mxu0 %v12041_v2  ;;  %v6585_v21 = vld [vmem:[%s18508_s8 + $0x68] sm:$0xff] }
0x3448   :  { %11282 = vmatprep.subr.mxu1 %v12041_v2  ;;  %11248 = vmatpush3.msra.mxu0 %v6318_v22  ;;  %v6584_v22 = vld [vmem:[%s18508_s8 + $0x60] sm:$0xff] }
0x3449   :  { %11283 = vmatpush3.msra.mxu1 %v6302_v23  ;;  %11249 = vmatprep.subr.mxu0 %v12041_v2  ;;  %v6583_v23 = vld [vmem:[%s18508_s8 + $0x58] sm:$0xff] }
0x344a   :  { %11284 = vmatprep.subr.mxu1 %v12041_v2  ;;  %11250 = vmatpush3.msra.mxu0 %v6317_v26  ;;  %v6582_v26 = vld [vmem:[%s18508_s8 + $0x50] sm:$0xff] }
0x344b   :  { %11285 = vmatpush3.msra.mxu1 %v6301_v14  ;;  %11286 = vmatprep.mubr.msk.f32.mxu1 %vm12042_vm0, %v12041_v2  ;;  %v6581_v14 = vld [vmem:[%s18508_s8 + $0x48] sm:$0xff] }
0x344c   :  { %11252 = vmatmul.mubr.f32.vlgmr.msra.gmra.mxu0 %v17044_v27  ;;  %11287 = vmatmul.mubr.f32.vlgmr.msra.gmra.mxu1 %v17046_v28 }
0x344d   :  { %11289 = vmatprep.subr.mxu0 %v12041_v2  ;;  %11321 = vmatprep.mubr.msk.f32.mxu0 %vm12042_vm0, %v12041_v2 }
0x344e   :  { %11324 = vmatprep.subr.mxu1 %v12041_v2  ;;  %11356 = vmatprep.mubr.msk.f32.mxu1 %vm12042_vm0, %v12041_v2 }
0x344f   :  { %11290 = vmatpush3.msra.mxu0 %v6501_v38  ;;  %11325 = vmatpush3.msra.mxu1 %v6603_v60  ;;  %v6572_v38 = vld [vmem:[%s18508_s8] sm:$0xff]  ;;  %v6784_v60 = vld [vmem:[%s18511_s11 + $0x128] sm:$0xff] }
0x3450   :  { %11291 = vmatprep.subr.mxu0 %v12041_v2  ;;  %11326 = vmatprep.subr.mxu1 %v12041_v2 }
0x3451   :  { %11292 = vmatpush3.msra.mxu0 %v6500_v34  ;;  %11327 = vmatpush3.msra.mxu1 %v6602_v61  ;;  %v6588_v34 = vld [vmem:[%s18509_s9] sm:$0xff] }
0x3452   :  { %11293 = vmatprep.subr.mxu0 %v12041_v2  ;;  %11328 = vmatprep.subr.mxu1 %v12041_v2  ;;  %v6783_v61 = vld [vmem:[%s18511_s11 + $0x120] sm:$0xff] }
0x3453   :  { %11294 = vmatpush3.msra.mxu0 %v6499_v40  ;;  %11329 = vmatpush3.msra.mxu1 %v6601_v63  ;;  %v6793_v40 = vld [vmem:[%s18511_s11 + $0x170] sm:$0xff] }
0x3454   :  { %11295 = vmatprep.subr.mxu0 %v12041_v2  ;;  %11330 = vmatprep.subr.mxu1 %v12041_v2  ;;  %v6781_v63 = vld [vmem:[%s18511_s11 + $0x110] sm:$0xff] }
0x3455   :  { %11296 = vmatpush3.msra.mxu0 %v6498_v15  ;;  %11331 = vmatpush3.msra.mxu1 %v6600_v0  ;;  %v6794_v15 = vld [vmem:[%s18511_s11 + $0x178] sm:$0xff]  ;;  %v6780_v0 = vld [vmem:[%s18511_s11 + $0x108] sm:$0xff] }
0x3456   :  { %11297 = vmatprep.subr.mxu0 %v12041_v2  ;;  %11332 = vmatprep.subr.mxu1 %v12041_v2 }
0x3457   :  { %11298 = vmatpush3.msra.mxu0 %v6497_v16  ;;  %11333 = vmatpush3.msra.mxu1 %v6599_v53  ;;  %v6788_v16 = vld [vmem:[%s18511_s11 + $0x148] sm:$0xff]  ;;  %v6778_v53 = vld [vmem:[%s18511_s11 + $0xf8] sm:$0xff] }
0x3458   :  { %11299 = vmatprep.subr.mxu0 %v12041_v2  ;;  %11334 = vmatprep.subr.mxu1 %v12041_v2 }
0x3459   :  { %11300 = vmatpush3.msra.mxu0 %v6496_v24  ;;  %11335 = vmatpush3.msra.mxu1 %v6598_v43  ;;  %v6785_v24 = vld [vmem:[%s18511_s11 + $0x130] sm:$0xff] }
0x345a   :  { %11301 = vmatprep.subr.mxu0 %v12041_v2  ;;  %11336 = vmatprep.subr.mxu1 %v12041_v2  ;;  %v6777_v43 = vld [vmem:[%s18511_s11 + $0xf0] sm:$0xff] }
0x345b   :  { %11302 = vmatpush3.msra.mxu0 %v6495_v44  ;;  %11337 = vmatpush3.msra.mxu1 %v6597_v42  ;;  %v6782_v44 = vld [vmem:[%s18511_s11 + $0x118] sm:$0xff]  ;;  %v6775_v42 = vld [vmem:[%s18511_s11 + $0xe0] sm:$0xff] }
0x345c   :  { %11303 = vmatprep.subr.mxu0 %v12041_v2  ;;  %11338 = vmatprep.subr.mxu1 %v12041_v2 }
0x345d   :  { %11304 = vmatpush3.msra.mxu0 %v6494_v46  ;;  %11339 = vmatpush3.msra.mxu1 %v6596_v5  ;;  %v6779_v46 = vld [vmem:[%s18511_s11 + $0x100] sm:$0xff]  ;;  %v6774_v5 = vld [vmem:[%s18511_s11 + $0xd8] sm:$0xff] }
0x345e   :  { %11305 = vmatprep.subr.mxu0 %v12041_v2  ;;  %11340 = vmatprep.subr.mxu1 %v12041_v2 }
0x345f   :  { %11306 = vmatpush3.msra.mxu0 %v6493_v52  ;;  %11341 = vmatpush3.msra.mxu1 %v6595_v6  ;;  %v6761_v52 = vld [vmem:[%s18511_s11 + $0x70] sm:$0xff]  ;;  %v6772_v6 = vld [vmem:[%s18511_s11 + $0xc8] sm:$0xff] }
0x3460   :  { %11307 = vmatprep.subr.mxu0 %v12041_v2  ;;  %11342 = vmatprep.subr.mxu1 %v12041_v2 }
0x3461   :  { %11308 = vmatpush3.msra.mxu0 %v6492_v41  ;;  %11343 = vmatpush3.msra.mxu1 %v6594_v7  ;;  %v6792_v41 = vld [vmem:[%s18511_s11 + $0x168] sm:$0xff]  ;;  %v6771_v7 = vld [vmem:[%s18511_s11 + $0xc0] sm:$0xff] }
0x3462   :  { %11309 = vmatprep.subr.mxu0 %v12041_v2  ;;  %11344 = vmatprep.subr.mxu1 %v12041_v2 }
0x3463   :  { %11310 = vmatpush3.msra.mxu0 %v6491_v29  ;;  %11345 = vmatpush3.msra.mxu1 %v6593_v8  ;;  %v6769_v8 = vld [vmem:[%s18511_s11 + $0xb0] sm:$0xff] }
0x3464   :  { %11311 = vmatprep.subr.mxu0 %v12041_v2  ;;  %11346 = vmatprep.subr.mxu1 %v12041_v2 }
0x3465   :  { %11312 = vmatpush3.msra.mxu0 %v6490_v25  ;;  %11347 = vmatpush3.msra.mxu1 %v6592_v9  ;;  %v6790_v25 = vld [vmem:[%s18511_s11 + $0x158] sm:$0xff]  ;;  %v6768_v9 = vld [vmem:[%s18511_s11 + $0xa8] sm:$0xff] }
0x3466   :  { %11313 = vmatprep.subr.mxu0 %v12041_v2  ;;  %11348 = vmatprep.subr.mxu1 %v12041_v2 }
0x3467   :  { %11314 = vmatpush3.msra.mxu0 %v6489_v56  ;;  %11349 = vmatpush3.msra.mxu1 %v6591_v10  ;;  %v6789_v56 = vld [vmem:[%s18511_s11 + $0x150] sm:$0xff]  ;;  %v6766_v10 = vld [vmem:[%s18511_s11 + $0x98] sm:$0xff] }
0x3468   :  { %11315 = vmatprep.subr.mxu0 %v12041_v2  ;;  %11350 = vmatprep.subr.mxu1 %v12041_v2 }
0x3469   :  { %11316 = vmatpush3.msra.mxu0 %v6488_v57  ;;  %11351 = vmatpush3.msra.mxu1 %v6590_v11  ;;  %v6765_v11 = vld [vmem:[%s18511_s11 + $0x90] sm:$0xff] }
0x346a   :  { %11317 = vmatprep.subr.mxu0 %v12041_v2  ;;  %11352 = vmatprep.subr.mxu1 %v12041_v2 }
0x346b   :  { %11318 = vmatpush3.msra.mxu0 %v6487_v58  ;;  %11353 = vmatpush3.msra.mxu1 %v6589_v12  ;;  %v6787_v58 = vld [vmem:[%s18511_s11 + $0x140] sm:$0xff] }
0x346c   :  { %11319 = vmatprep.subr.mxu0 %v12041_v2  ;;  %11354 = vmatprep.subr.mxu1 %v12041_v2  ;;  %v6763_v12 = vld [vmem:[%s18511_s11 + $0x80] sm:$0xff] }
0x346d   :  { %11320 = vmatpush3.msra.mxu0 %v6486_v59  ;;  %11355 = vmatpush3.msra.mxu1 %v6588_v34  ;;  %v6786_v59 = vld [vmem:[%s18511_s11 + $0x138] sm:$0xff] }
0x346e   :  { %11359 = vmatprep.subr.mxu0 %v12041_v2  ;;  %6812 = vmatprep.subr.mxu1 %v6793_v40 }
0x350c   :  { %v6399_v13 = vpop.f32.mrf.mxu0  ;;  %v6469_v4 = vpop.f32.mrf.mxu1 }
0x350d   :  { %v6470_v30 = vadd.f32 %v6469_v4, %v6399_v13  ;;  %v6580_v13 = vld [vmem:[%s18508_s8 + $0x40] sm:$0xff]  ;;  %v6579_v4 = vld [vmem:[%s18508_s8 + $0x38] sm:$0xff] }
0x350e   :  { %v11253_v31 = vpop.f32.mrf.mxu0  ;;  %v11288_v32 = vpop.f32.mrf.mxu1 }
0x350f   :  { %v6474_v35 = vadd.f32 %v6473_v3, %v6470_v30  ;;  %v6578_v3 = vld [vmem:[%s18508_s8 + $0x30] sm:$0xff]  ;;  %v6577_v30 = vld [vmem:[%s18508_s8 + $0x28] sm:$0xff]  ;;  %v6576_v31 = vld [vmem:[%s18508_s8 + $0x20] sm:$0xff] }
0x3510   :  { %v6575_v32 = vld [vmem:[%s18508_s8 + $0x18] sm:$0xff] }
0x3511   :  { %v6475_v36 = vsel %vm264_vm1, %v6474_v35, -inf }
0x3512   :  { %6476 = vmax.xlane.f32.xlu0 %v6475_v36  ;;  %v6573_v36 = vld [vmem:[%s18508_s8 + $0x8] sm:$0xff] }
0x359b   :  { %v6477_v47 = vpop.xlane.xlu0 %6476 }
0x359c   :  { %v6478_v48 = vsub.f32 %v6474_v35, %v6477_v47  ;;  %v6574_v35 = vld [vmem:[%s18508_s8 + $0x10] sm:$0xff]  ;;  %v6776_v47 = vld [vmem:[%s18511_s11 + $0xe8] sm:$0xff] }
0x359e   :  { %v6479_v49 = vmul.f32 1.442695, %v6478_v48  ;;  %v6773_v48 = vld [vmem:[%s18511_s11 + $0xd0] sm:$0xff] }
0x35a0   :  { %11911 = vpow2.f32 %v6479_v49  ;;  %v6770_v49 = vld [vmem:[%s18511_s11 + $0xb8] sm:$0xff] }
0x35ad   :  { %v17096_v50 = vpop.eup %11911 }
0x35ae   :  { %v6481_v51 = vsel %vm264_vm1, %v17096_v50, 0.0 }
0x35af   :  { %6482 = vadd.xlane.f32.xlu0 %v6481_v51  ;;  %v6764_v51 = vld [vmem:[%s18511_s11 + $0x88] sm:$0xff] }
0x3638   :  { %v6483_v1 = vpop.xlane.xlu0 %6482 }
0x3639   :  { %11913 = vrcp.f32 %v6483_v1  ;;  %v6762_v1 = vld [vmem:[%s18511_s11 + $0x78] sm:$0xff] }
0x3646   :  { %v11914_v54 = vpop.eup %11913 }
0x3647   :  { %v6485_v18 = vmul.f32 %v11914_v54, %v17096_v50  ;;  %v6767_v50 = vld [vmem:[%s18511_s11 + $0xa0] sm:$0xff] }
0x3648   :  { %v6759_v54 = vld [vmem:[%s18511_s11 + $0x60] sm:$0xff] }
0x3649   :  { %11322 = vmatmul.mubr.f32.vlgmr.msra.gmra.mxu0 %v6485_v18  ;;  %v7285_v20 = vsel %vm17199_vm9, %v6485_v18, 0.0  ;;  %v6757_v18 = vld [vmem:[%s18511_s11 + $0x50] sm:$0xff] }
0x364a   :  { %11360 = vmatpush3.msra.mxu0 %v6587_v19  ;;  %11391 = vmatprep.mubr.msk.f32.mxu0 %vm12042_vm0, %v12041_v2  ;;  %7286 = vst [vmem:[#allocation9 + $0x6] sm:$0x1] %v7285_v20  ;;  %v6756_v19 = vld [vmem:[%s18511_s11 + $0x48] sm:$0xff] }
0x364b   :  { %11361 = vmatprep.subr.mxu0 %v12041_v2 }
0x364c   :  { %11362 = vmatpush3.msra.mxu0 %v6586_v33 }
0x364d   :  { %11363 = vmatprep.subr.mxu0 %v12041_v2 }
0x364e   :  { %11364 = vmatpush3.msra.mxu0 %v6585_v21  ;;  %v6754_v21 = vld [vmem:[%s18511_s11 + $0x38] sm:$0xff] }
0x364f   :  { %11365 = vmatprep.subr.mxu0 %v12041_v2 }
0x3650   :  { %11366 = vmatpush3.msra.mxu0 %v6584_v22  ;;  %v6758_v22 = vld [vmem:[%s18511_s11 + $0x58] sm:$0xff] }
0x3651   :  { %11367 = vmatprep.subr.mxu0 %v12041_v2 }
0x3652   :  { %11368 = vmatpush3.msra.mxu0 %v6583_v23  ;;  %v6753_v23 = vld [vmem:[%s18511_s11 + $0x30] sm:$0xff] }
0x3653   :  { %11369 = vmatprep.subr.mxu0 %v12041_v2 }
0x3654   :  { %11370 = vmatpush3.msra.mxu0 %v6582_v26  ;;  %v6751_v26 = vld [vmem:[%s18511_s11 + $0x20] sm:$0xff] }
0x3655   :  { %11371 = vmatprep.subr.mxu0 %v12041_v2 }
0x3656   :  { %11372 = vmatpush3.msra.mxu0 %v6581_v14  ;;  %v6755_v14 = vld [vmem:[%s18511_s11 + $0x40] sm:$0xff] }
0x3657   :  { %11373 = vmatprep.subr.mxu0 %v12041_v2 }
0x3658   :  { %11374 = vmatpush3.msra.mxu0 %v6580_v13  ;;  %v6750_v13 = vld [vmem:[%s18511_s11 + $0x18] sm:$0xff] }
0x3659   :  { %11375 = vmatprep.subr.mxu0 %v12041_v2 }
0x365a   :  { %11376 = vmatpush3.msra.mxu0 %v6579_v4  ;;  %v6748_v4 = vld [vmem:[%s18511_s11 + $0x8] sm:$0xff] }
0x365b   :  { %11377 = vmatprep.subr.mxu0 %v12041_v2 }
0x365c   :  { %11378 = vmatpush3.msra.mxu0 %v6578_v3  ;;  %v6752_v3 = vld [vmem:[%s18511_s11 + $0x28] sm:$0xff] }
0x365d   :  { %11379 = vmatprep.subr.mxu0 %v12041_v2 }
0x365e   :  { %11380 = vmatpush3.msra.mxu0 %v6577_v30  ;;  %v6747_v30 = vld [vmem:[%s18511_s11] sm:$0xff] }
0x365f   :  { %11381 = vmatprep.subr.mxu0 %v12041_v2 }
0x3660   :  { %11382 = vmatpush3.msra.mxu0 %v6576_v31  ;;  %v6749_v31 = vld [vmem:[%s18511_s11 + $0x10] sm:$0xff] }
0x3661   :  { %11383 = vmatprep.subr.mxu0 %v12041_v2 }
0x3662   :  { %11384 = vmatpush3.msra.mxu0 %v6575_v32  ;;  %v6999_v32 = vld [vmem:[%s18512_s12 + $0x170] sm:$0xff] }
0x3663   :  { %11385 = vmatprep.subr.mxu0 %v12041_v2 }
0x3664   :  { %11386 = vmatpush3.msra.mxu0 %v6574_v35 }
0x3665   :  { %11387 = vmatprep.subr.mxu0 %v12041_v2 }
0x3666   :  { %11388 = vmatpush3.msra.mxu0 %v6573_v36  ;;  %v6744_v36 = vld [vmem:[%s18510_s10] sm:$0x1] }
0x3667   :  { %11389 = vmatprep.subr.mxu0 %v12041_v2 }
0x3668   :  { %11390 = vmatpush3.msra.mxu0 %v6572_v38 }
0x3669   :  { %11392 = vmatmul.mubr.f32.vlgmr.msra.gmra.mxu0 %v17046_v28  ;;  %11394 = vmatprep.subr.mxu0 %v12041_v2  ;;  %v6791_v28 = vld [vmem:[%s18511_s11 + $0x160] sm:$0xff] }
0x366a   :  { %11426 = vmatprep.mubr.msk.f32.mxu0 %vm12042_vm0, %v12041_v2  ;;  %11395 = vmatpush3.msra.mxu0 %v6794_v15 }
0x366b   :  { %11396 = vmatprep.subr.mxu0 %v12041_v2 }
0x366c   :  { %11397 = vmatpush3.msra.mxu0 %v6791_v28  ;;  %v6998_v28 = vld [vmem:[%s18512_s12 + $0x168] sm:$0xff] }
0x366d   :  { %11398 = vmatprep.subr.mxu0 %v12041_v2 }
0x366e   :  { %11399 = vmatpush3.msra.mxu0 %v6788_v16  ;;  %v6996_v16 = vld [vmem:[%s18512_s12 + $0x158] sm:$0xff] }
0x366f   :  { %11400 = vmatprep.subr.mxu0 %v12041_v2 }
0x3670   :  { %11401 = vmatpush3.msra.mxu0 %v6785_v24  ;;  %v7000_v24 = vld [vmem:[%s18512_s12 + $0x178] sm:$0xff] }
0x3671   :  { %11402 = vmatprep.subr.mxu0 %v12041_v2 }
0x3672   :  { %11403 = vmatpush3.msra.mxu0 %v6782_v44  ;;  %v6995_v44 = vld [vmem:[%s18512_s12 + $0x150] sm:$0xff] }
0x3673   :  { %11404 = vmatprep.subr.mxu0 %v12041_v2 }
0x3674   :  { %11405 = vmatpush3.msra.mxu0 %v6779_v46  ;;  %v6993_v46 = vld [vmem:[%s18512_s12 + $0x140] sm:$0xff] }
0x3675   :  { %11406 = vmatprep.subr.mxu0 %v12041_v2 }
0x3676   :  { %11407 = vmatpush3.msra.mxu0 %v6776_v47  ;;  %v6997_v47 = vld [vmem:[%s18512_s12 + $0x160] sm:$0xff] }
0x3677   :  { %11408 = vmatprep.subr.mxu0 %v12041_v2 }
0x3678   :  { %11409 = vmatpush3.msra.mxu0 %v6773_v48  ;;  %v6992_v48 = vld [vmem:[%s18512_s12 + $0x138] sm:$0xff] }
0x3679   :  { %11410 = vmatprep.subr.mxu0 %v12041_v2 }
0x367a   :  { %11411 = vmatpush3.msra.mxu0 %v6770_v49  ;;  %v6990_v49 = vld [vmem:[%s18512_s12 + $0x128] sm:$0xff] }
0x367b   :  { %11412 = vmatprep.subr.mxu0 %v12041_v2 }
0x367c   :  { %11413 = vmatpush3.msra.mxu0 %v6767_v50  ;;  %v6994_v50 = vld [vmem:[%s18512_s12 + $0x148] sm:$0xff] }
0x367d   :  { %11414 = vmatprep.subr.mxu0 %v12041_v2 }
0x367e   :  { %11415 = vmatpush3.msra.mxu0 %v6764_v51  ;;  %v6989_v51 = vld [vmem:[%s18512_s12 + $0x120] sm:$0xff] }
0x367f   :  { %11416 = vmatprep.subr.mxu0 %v12041_v2 }
0x3680   :  { %11417 = vmatpush3.msra.mxu0 %v6761_v52  ;;  %v6987_v52 = vld [vmem:[%s18512_s12 + $0x110] sm:$0xff] }
0x3681   :  { %11418 = vmatprep.subr.mxu0 %v12041_v2 }
0x3682   :  { %11419 = vmatpush3.msra.mxu0 %v6758_v22  ;;  %v6961_v22 = vld [vmem:[%s18512_s12 + $0x40] sm:$0xff] }
0x3683   :  { %11420 = vmatprep.subr.mxu0 %v12041_v2 }
0x3684   :  { %11421 = vmatpush3.msra.mxu0 %v6755_v14  ;;  %v6958_v14 = vld [vmem:[%s18512_s12 + $0x28] sm:$0xff] }
0x3685   :  { %11422 = vmatprep.subr.mxu0 %v12041_v2 }
0x3686   :  { %11423 = vmatpush3.msra.mxu0 %v6752_v3  ;;  %v7195_v3 = vld [vmem:[%s18515_s15 + $0x78] sm:$0xff] }
0x3687   :  { %11424 = vmatprep.subr.mxu0 %v12041_v2 }
0x3688   :  { %11425 = vmatpush3.msra.mxu0 %v6749_v31  ;;  %v7193_v31 = vld [vmem:[%s18515_s15 + $0x68] sm:$0xff] }
0x3689   :  { %11429 = vmatprep.subr.mxu0 %v12041_v2 }
0x3709   :  { %v6568_v29 = vpop.f32.mrf.mxu0 }
0x370a   :  { %11357 = vmatmul.mubr.f32.vlgmr.msra.gmra.mxu1 %v6568_v29  ;;  %v6986_v29 = vld [vmem:[%s18512_s12 + $0x108] sm:$0xff] }
0x370b   :  { %v11323_v57 = vpop.f32.mrf.mxu0  ;;  %6813 = vmatpush1.msra.mxu1 %v6792_v41  ;;  %6876 = vmatprep.mubr.f32.mxu1 %v12041_v2  ;;  %v6991_v41 = vld [vmem:[%s18512_s12 + $0x130] sm:$0xff] }
0x370c   :  { %6814 = vmatprep.subr.mxu1 %v6790_v25  ;;  %v6984_v25 = vld [vmem:[%s18512_s12 + $0xf8] sm:$0xff]  ;;  %v6983_v57 = vld [vmem:[%s18512_s12 + $0xf0] sm:$0xff] }
0x370d   :  { %6815 = vmatpush1.msra.mxu1 %v6789_v56  ;;  %v6988_v56 = vld [vmem:[%s18512_s12 + $0x118] sm:$0xff] }
0x370e   :  { %6816 = vmatprep.subr.mxu1 %v6787_v58  ;;  %v6981_v58 = vld [vmem:[%s18512_s12 + $0xe0] sm:$0xff] }
0x370f   :  { %6817 = vmatpush1.msra.mxu1 %v6786_v59  ;;  %v6985_v59 = vld [vmem:[%s18512_s12 + $0x100] sm:$0xff] }
0x3710   :  { %6818 = vmatprep.subr.mxu1 %v6784_v60  ;;  %v6980_v60 = vld [vmem:[%s18512_s12 + $0xd8] sm:$0xff] }
0x3711   :  { %6819 = vmatpush1.msra.mxu1 %v6783_v61  ;;  %v6978_v61 = vld [vmem:[%s18512_s12 + $0xc8] sm:$0xff] }
0x3712   :  { %6820 = vmatprep.subr.mxu1 %v6781_v63  ;;  %v6982_v63 = vld [vmem:[%s18512_s12 + $0xe8] sm:$0xff] }
0x3713   :  { %6821 = vmatpush1.msra.mxu1 %v6780_v0  ;;  %v6977_v0 = vld [vmem:[%s18512_s12 + $0xc0] sm:$0xff] }
0x3714   :  { %6822 = vmatprep.subr.mxu1 %v6778_v53  ;;  %v6975_v53 = vld [vmem:[%s18512_s12 + $0xb0] sm:$0xff] }
0x3715   :  { %6823 = vmatpush1.msra.mxu1 %v6777_v43  ;;  %v6979_v43 = vld [vmem:[%s18512_s12 + $0xd0] sm:$0xff] }
0x3716   :  { %6824 = vmatprep.subr.mxu1 %v6775_v42  ;;  %v6974_v42 = vld [vmem:[%s18512_s12 + $0xa8] sm:$0xff] }
0x3717   :  { %6825 = vmatpush1.msra.mxu1 %v6774_v5  ;;  %v6972_v5 = vld [vmem:[%s18512_s12 + $0x98] sm:$0xff] }
0x3718   :  { %6826 = vmatprep.subr.mxu1 %v6772_v6  ;;  %v6976_v6 = vld [vmem:[%s18512_s12 + $0xb8] sm:$0xff] }
0x3719   :  { %6827 = vmatpush1.msra.mxu1 %v6771_v7  ;;  %v6971_v7 = vld [vmem:[%s18512_s12 + $0x90] sm:$0xff] }
0x371a   :  { %6828 = vmatprep.subr.mxu1 %v6769_v8  ;;  %v6969_v8 = vld [vmem:[%s18512_s12 + $0x80] sm:$0xff] }
0x371b   :  { %6829 = vmatpush1.msra.mxu1 %v6768_v9  ;;  %v6973_v9 = vld [vmem:[%s18512_s12 + $0xa0] sm:$0xff] }
0x371c   :  { %6830 = vmatprep.subr.mxu1 %v6766_v10  ;;  %v6968_v10 = vld [vmem:[%s18512_s12 + $0x78] sm:$0xff] }
0x371d   :  { %6831 = vmatpush1.msra.mxu1 %v6765_v11  ;;  %v6966_v11 = vld [vmem:[%s18512_s12 + $0x68] sm:$0xff] }
0x371e   :  { %6832 = vmatprep.subr.mxu1 %v6763_v12  ;;  %v6970_v12 = vld [vmem:[%s18512_s12 + $0x88] sm:$0xff] }
0x371f   :  { %6833 = vmatpush1.msra.mxu1 %v6762_v1  ;;  %v6965_v1 = vld [vmem:[%s18512_s12 + $0x60] sm:$0xff] }
0x3720   :  { %6834 = vmatprep.subr.mxu1 %v6760_v55  ;;  %v6963_v55 = vld [vmem:[%s18512_s12 + $0x50] sm:$0xff] }
0x3721   :  { %6835 = vmatpush1.msra.mxu1 %v6759_v54  ;;  %v6967_v54 = vld [vmem:[%s18512_s12 + $0x70] sm:$0xff] }
0x3722   :  { %6836 = vmatprep.subr.mxu1 %v6757_v18  ;;  %v6962_v18 = vld [vmem:[%s18512_s12 + $0x48] sm:$0xff] }
0x3723   :  { %6837 = vmatpush1.msra.mxu1 %v6756_v19  ;;  %v6960_v19 = vld [vmem:[%s18512_s12 + $0x38] sm:$0xff] }
0x3724   :  { %6838 = vmatprep.subr.mxu1 %v6754_v21  ;;  %v6957_v21 = vld [vmem:[%s18512_s12 + $0x20] sm:$0xff] }
0x3725   :  { %6839 = vmatpush1.msra.mxu1 %v6753_v23  ;;  %v6956_v23 = vld [vmem:[%s18512_s12 + $0x18] sm:$0xff] }
0x3726   :  { %6840 = vmatprep.subr.mxu1 %v6751_v26  ;;  %v6954_v26 = vld [vmem:[%s18512_s12 + $0x8] sm:$0xff] }
0x3727   :  { %6841 = vmatpush1.msra.mxu1 %v6750_v13  ;;  %v6953_v13 = vld [vmem:[%s18512_s12] sm:$0xff] }
0x3728   :  { %6842 = vmatprep.subr.mxu1 %v6748_v4  ;;  %v6955_v4 = vld [vmem:[%s18512_s12 + $0x10] sm:$0xff] }
0x3729   :  { %v6740_v33 = vpop.f32.mrf.mxu0  ;;  %6843 = vmatpush1.msra.mxu1 %v6747_v30  ;;  %v7194_v30 = vld [vmem:[%s18515_s15 + $0x70] sm:$0xff] }
0x372a   :  { %7018 = vmatprep.subr.mxu1 %v6999_v32  ;;  %v7192_v32 = vld [vmem:[%s18515_s15 + $0x60] sm:$0xff] }
0x372b   :  { %v11393_v20 = vpop.f32.mrf.mxu0 }
0x372c   :  { %v6959_v20 = vld [vmem:[%s18512_s12 + $0x30] sm:$0xff] }
0x37ca   :  { %v6670_v35 = vpop.f32.mrf.mxu1 }
0x37cb   :  { %v6741_v38 = vadd.f32 %v6740_v33, %v6670_v35  ;;  %v6964_v33 = vld [vmem:[%s18512_s12 + $0x58] sm:$0xff] }
0x37cc   :  { %v11358_v34 = vpop.f32.mrf.mxu1  ;;  %v7191_v35 = vld [vmem:[%s18515_s15 + $0x58] sm:$0xff] }
0x37cd   :  { %v6745_v40 = vadd.f32 %v6744_v36, %v6741_v38  ;;  %v7190_v36 = vld [vmem:[%s18515_s15 + $0x50] sm:$0xff]  ;;  %v7189_v38 = vld [vmem:[%s18515_s15 + $0x48] sm:$0xff]  ;;  %v7188_v34 = vld [vmem:[%s18515_s15 + $0x40] sm:$0xff] }
0x37cf   :  { %v6746_v15 = vmax.f32 %v6745_v40, 0.0  ;;  %v7187_v40 = vld [vmem:[%s18515_s15 + $0x38] sm:$0xff] }
0x37d1   :  { %6877 = vmatmul.mubr.f32.vlgmr.msra.gmra.mxu1 %v6746_v15  ;;  %11427 = vmatmul.mubr.f32.vlgmr.msra.gmra.mxu0 %v6746_v15  ;;  %v7186_v15 = vld [vmem:[%s18515_s15 + $0x30] sm:$0xff] }
0x37d2   :  { %7019 = vmatpush1.msra.mxu1 %v6998_v28  ;;  %7082 = vmatprep.mubr.f32.mxu1 %v12041_v2  ;;  %v7185_v28 = vld [vmem:[%s18515_s15 + $0x28] sm:$0xff] }
0x37d3   :  { %7020 = vmatprep.subr.mxu1 %v6996_v16  ;;  %11430 = vmatpush3.msra.mxu0 %v7000_v24  ;;  %v7184_v16 = vld [vmem:[%s18515_s15 + $0x20] sm:$0xff]  ;;  %v7183_v24 = vld [vmem:[%s18515_s15 + $0x18] sm:$0xff] }
0x37d4   :  { %7021 = vmatpush1.msra.mxu1 %v6995_v44  ;;  %11431 = vmatprep.subr.mxu0 %v12041_v2  ;;  %v7182_v44 = vld [vmem:[%s18515_s15 + $0x10] sm:$0xff] }
0x37d5   :  { %7022 = vmatprep.subr.mxu1 %v6993_v46  ;;  %11432 = vmatpush3.msra.mxu0 %v6997_v47  ;;  %v7181_v46 = vld [vmem:[%s18515_s15 + $0x8] sm:$0xff]  ;;  %v7180_v47 = vld [vmem:[%s18515_s15] sm:$0xff] }
0x37d6   :  { %7023 = vmatpush1.msra.mxu1 %v6992_v48  ;;  %11433 = vmatprep.subr.mxu0 %v12041_v2 }
0x37d7   :  { %7024 = vmatprep.subr.mxu1 %v6990_v49  ;;  %11434 = vmatpush3.msra.mxu0 %v6994_v50  ;;  %v6795_v50 = vld [vmem:[%s18513_s13] sm:$0x7] }
0x37d8   :  { %7025 = vmatpush1.msra.mxu1 %v6989_v51  ;;  %11435 = vmatprep.subr.mxu0 %v12041_v2 }
0x37d9   :  { %7026 = vmatprep.subr.mxu1 %v6987_v52  ;;  %11436 = vmatpush3.msra.mxu0 %v6991_v41  ;;  %v7001_v52 = vld [vmem:[%s18514_s14] sm:$0x7]  ;;  %v6800_v41 = vrot.slane %v6795_v50, %v12904_v39 }
0x37da   :  { %7027 = vmatpush1.msra.mxu1 %v6986_v29  ;;  %11437 = vmatprep.subr.mxu0 %v12041_v2  ;;  %v7006_v29 = vrot.slane %v7001_v52, %v12904_v39 }
0x37db   :  { %7028 = vmatprep.subr.mxu1 %v6984_v25  ;;  %11438 = vmatpush3.msra.mxu0 %v6988_v56 }
0x37dc   :  { %7029 = vmatpush1.msra.mxu1 %v6983_v57  ;;  %11439 = vmatprep.subr.mxu0 %v12041_v2 }
0x37dd   :  { %7030 = vmatprep.subr.mxu1 %v6981_v58  ;;  %11440 = vmatpush3.msra.mxu0 %v6985_v59  ;;  %v7010_v59 = vrot.slane %v7001_v52, %v12914_v45 }
0x37de   :  { %7031 = vmatpush1.msra.mxu1 %v6980_v60  ;;  %11441 = vmatprep.subr.mxu0 %v12041_v2 }
0x37df   :  { %7032 = vmatprep.subr.mxu1 %v6978_v61  ;;  %11442 = vmatpush3.msra.mxu0 %v6982_v63  ;;  %v6804_v63 = vrot.slane %v6795_v50, %v12914_v45 }
0x37e0   :  { %7033 = vmatpush1.msra.mxu1 %v6977_v0  ;;  %11443 = vmatprep.subr.mxu0 %v12041_v2 }
0x37e1   :  { %7034 = vmatprep.subr.mxu1 %v6975_v53  ;;  %11444 = vmatpush3.msra.mxu0 %v6979_v43 }
0x37e2   :  { %7035 = vmatpush1.msra.mxu1 %v6974_v42  ;;  %11445 = vmatprep.subr.mxu0 %v12041_v2 }
0x37e3   :  { %7036 = vmatprep.subr.mxu1 %v6972_v5  ;;  %11446 = vmatpush3.msra.mxu0 %v6976_v6 }
0x37e4   :  { %7037 = vmatpush1.msra.mxu1 %v6971_v7  ;;  %11447 = vmatprep.subr.mxu0 %v12041_v2 }
0x37e5   :  { %7038 = vmatprep.subr.mxu1 %v6969_v8  ;;  %11448 = vmatpush3.msra.mxu0 %v6973_v9 }
0x37e6   :  { %7039 = vmatpush1.msra.mxu1 %v6968_v10  ;;  %11449 = vmatprep.subr.mxu0 %v12041_v2  ;;  %v7014_v10 = vrot.slane %v7001_v52, %v12918_v62 }
0x37e7   :  { %7040 = vmatprep.subr.mxu1 %v6966_v11  ;;  %11450 = vmatpush3.msra.mxu0 %v6970_v12  ;;  %v6808_v12 = vrot.slane %v6795_v50, %v12918_v62 }
0x37e8   :  { %7041 = vmatpush1.msra.mxu1 %v6965_v1  ;;  %11451 = vmatprep.subr.mxu0 %v12041_v2 }
0x37e9   :  { %7042 = vmatprep.subr.mxu1 %v6963_v55  ;;  %11452 = vmatpush3.msra.mxu0 %v6967_v54 }
0x37ea   :  { %7043 = vmatpush1.msra.mxu1 %v6962_v18  ;;  %11453 = vmatprep.subr.mxu0 %v12041_v2 }
0x37eb   :  { %7044 = vmatprep.subr.mxu1 %v6960_v19  ;;  %11454 = vmatpush3.msra.mxu0 %v6964_v33 }
0x37ec   :  { %7045 = vmatpush1.msra.mxu1 %v6959_v20  ;;  %11455 = vmatprep.subr.mxu0 %v12041_v2 }
0x37ed   :  { %7046 = vmatprep.subr.mxu1 %v6957_v21  ;;  %11456 = vmatpush3.msra.mxu0 %v6961_v22 }
0x37ee   :  { %7047 = vmatpush1.msra.mxu1 %v6956_v23  ;;  %11457 = vmatprep.subr.mxu0 %v12041_v2 }
0x37ef   :  { %7048 = vmatprep.subr.mxu1 %v6954_v26  ;;  %11458 = vmatpush3.msra.mxu0 %v6958_v14 }
0x37f0   :  { %7049 = vmatpush1.msra.mxu1 %v6953_v13  ;;  %11459 = vmatprep.subr.mxu0 %v12041_v2  ;;  %v7196_v13 = vld [vmem:[%s18516_s16] sm:$0x1] }
0x37f1   :  { %7083 = vmatmul.mubr.f32.vlgmr.msra.gmra.mxu1 %v17044_v27  ;;  %11460 = vmatpush3.msra.mxu0 %v6955_v4 }
0x37f2   :  { %11461 = vmatprep.mubr.msk.f32.mxu0 %vm12042_vm0, %v12041_v2  ;;  %11464 = vmatprep.subr.mxu1 %v12041_v2 }
0x37f3   :  { %11462 = vmatmul.mubr.f32.vlgmr.msra.gmra.mxu0 %v17044_v27  ;;  %11496 = vmatprep.mubr.msk.f32.mxu1 %vm12042_vm0, %v12041_v2 }
0x37f4   :  { %11465 = vmatpush3.msra.mxu1 %v7195_v3 }
0x37f5   :  { %11466 = vmatprep.subr.mxu1 %v12041_v2 }
0x37f6   :  { %11467 = vmatpush3.msra.mxu1 %v7194_v30 }
0x37f7   :  { %11468 = vmatprep.subr.mxu1 %v12041_v2 }
0x37f8   :  { %11469 = vmatpush3.msra.mxu1 %v7193_v31 }
0x37f9   :  { %11470 = vmatprep.subr.mxu1 %v12041_v2 }
0x37fa   :  { %11471 = vmatpush3.msra.mxu1 %v7192_v32 }
0x37fb   :  { %11472 = vmatprep.subr.mxu1 %v12041_v2 }
0x37fc   :  { %11473 = vmatpush3.msra.mxu1 %v7191_v35 }
0x37fd   :  { %11474 = vmatprep.subr.mxu1 %v12041_v2 }
0x37fe   :  { %11475 = vmatpush3.msra.mxu1 %v7190_v36 }
0x37ff   :  { %11476 = vmatprep.subr.mxu1 %v12041_v2 }
0x3800   :  { %11477 = vmatpush3.msra.mxu1 %v7189_v38 }
0x3801   :  { %11478 = vmatprep.subr.mxu1 %v12041_v2 }
0x3802   :  { %11479 = vmatpush3.msra.mxu1 %v7188_v34 }
0x3803   :  { %11480 = vmatprep.subr.mxu1 %v12041_v2 }
0x3804   :  { %11481 = vmatpush3.msra.mxu1 %v7187_v40 }
0x3805   :  { %11482 = vmatprep.subr.mxu1 %v12041_v2 }
0x3806   :  { %11483 = vmatpush3.msra.mxu1 %v7186_v15 }
0x3807   :  { %11484 = vmatprep.subr.mxu1 %v12041_v2 }
0x3808   :  { %11485 = vmatpush3.msra.mxu1 %v7185_v28 }
0x3809   :  { %11486 = vmatprep.subr.mxu1 %v12041_v2 }
0x380a   :  { %11487 = vmatpush3.msra.mxu1 %v7184_v16 }
0x380b   :  { %11488 = vmatprep.subr.mxu1 %v12041_v2 }
0x380c   :  { %11489 = vmatpush3.msra.mxu1 %v7183_v24 }
0x380d   :  { %11490 = vmatprep.subr.mxu1 %v12041_v2 }
0x380e   :  { %11491 = vmatpush3.msra.mxu1 %v7182_v44 }
0x380f   :  { %11492 = vmatprep.subr.mxu1 %v12041_v2 }
0x3810   :  { %11493 = vmatpush3.msra.mxu1 %v7181_v46 }
0x3811   :  { %11494 = vmatprep.subr.mxu1 %v12041_v2 }
0x3812   :  { %11495 = vmatpush3.msra.mxu1 %v7180_v47 }
0x3891   :  { %v6949_v48 = vpop.f32.mrf.mxu0  ;;  %v6878_v51 = vpop.f32.mrf.mxu1 }
0x3892   :  { %v6879_v57 = vadd.f32 %v6878_v51, %v6800_v41  ;;  %v6950_v18 = vadd.f32 %v6949_v48, %v6808_v12 }
0x3893   :  { %v11428_v49 = vpop.f32.mrf.mxu0  ;;  %v6880_v25 = vpop.f32.mrf.mxu1 }
0x3894   :  { %v6881_v5 = vadd.f32 %v6880_v25, %v6804_v63 }
0x38b1   :  { %v7084_v56 = vpop.f32.mrf.mxu1 }
0x38b2   :  { %v7085_v58 = vadd.f32 %v7084_v56, %v7006_v29 }
0x38b3   :  { %v7086_v60 = vpop.f32.mrf.mxu1  ;;  %v7155_v61 = vpop.f32.mrf.mxu0 }
0x38b4   :  { %v7159_v0 = vadd.f32 %v7085_v58, %v6879_v57  ;;  %v7087_v42 = vadd.f32 %v7086_v60, %v7010_v59  ;;  %v7156_v55 = vadd.f32 %v7155_v61, %v7014_v10 }
0x38b5   :  { %v11463_v53 = vpop.f32.mrf.mxu0 }
0x38b6   :  { %v8443_v43 = vmul.f32 -1.442695, %v7159_v0  ;;  %v7166_v6 = vadd.f32 %v7087_v42, %v6881_v5 }
0x38b8   :  { %11915 = vpow2.f32 %v8443_v43  ;;  %v8444_v7 = vmul.f32 -1.442695, %v7166_v6 }
0x38ba   :  { %11917 = vpow2.f32 %v8444_v7 }
0x38c5   :  { %v11916_v8 = vpop.eup %11915 }
0x38c6   :  { %v7163_v9 = vadd.f32 1.0, %v11916_v8 }
0x38c7   :  { %v11918_v11 = vpop.eup %11917 }
0x38c8   :  { %11919 = vrcp.f32 %v7163_v9  ;;  %v7170_v1 = vadd.f32 1.0, %v11918_v11 }
0x38ca   :  { %11921 = vrcp.f32 %v7170_v1 }
0x38d5   :  { %v11920_v54 = vpop.eup %11919 }
0x38d6   :  { %v7173_v19 = vmul.f32 %v11920_v54, %v7156_v55 }
0x38d7   :  { %v11922_v20 = vpop.eup %11921 }
0x38d8   :  { %v7174_v33 = vadd.f32 %v7173_v19, %v6950_v18  ;;  %v7176_v21 = vsub.f32 1.0, %v11922_v20  ;;  %v7178_v26 = vmul.f32 %v11922_v20, %v17044_v27 }
0x38da   :  { %11923 = vtanh.f32 %v7174_v33 }
0x38e7   :  { %v11924_v22 = vpop.eup %11923 }
0x38e8   :  { %v7177_v23 = vmul.f32 %v11924_v22, %v7176_v21 }
0x38ea   :  { %v17685_v14 = vadd.f32 %v7178_v26, %v7177_v23 }
0x38ec   :  { %11497 = vmatmul.mubr.f32.vlgmr.msra.gmra.mxu1 %v17685_v14 }
0x39ac   :  { %v7263_v4 = vpop.f32.mrf.mxu1 }
0x39ad   :  { %v7264_v3 = vadd.f32 %v7263_v4, %v7196_v13 }
0x39ae   :  { %v11498_v30 = vpop.f32.mrf.mxu1 }
0x39af   :  { %v7267_v31 = vsel %vm264_vm1, %v7264_v3, -inf }
0x39b0   :  { %7268 = vmax.xlane.f32.xlu1 %v7267_v31 }
0x3a39   :  { %v7269_v32 = vpop.xlane.xlu1 %7268 }
0x3a3a   :  { %v7270_v35 = vsub.f32 %v7264_v3, %v7269_v32 }
0x3a3c   :  { %v7271_v36 = vmul.f32 1.442695, %v7270_v35 }
0x3a3e   :  { %11925 = vpow2.f32 %v7271_v36 }
0x3a4b   :  { %v11926_v38 = vpop.eup %11925 }
0x3a4c   :  { %v7273_v34 = vsel %vm264_vm1, %v11926_v38, 0.0 }
0x3a4d   :  { %7274 = vadd.xlane.f32.xlu1 %v7273_v34 }
0x3ad6   :  { %v7275_v40 = vpop.xlane.xlu1 %7274 }
0x3ad7   :  { %11927 = vlog2.f32 %v7275_v40 }
0x3ae4   :  { %v11928_v15 = vpop.eup %11927 }
0x3ae5   :  { %v7277_v28 = vmul.f32 0.6931472, %v11928_v15 }
0x3ae6   :  { %7291 = sbr.rel (%p8445_p6) target bundleno = 15574 (0x3cd6), region = 105 }
0x3ae7   :  { %v7278_v16 = vsub.f32 %v7270_v35, %v7277_v28 }
0x3ae9   :  { %v7283_v24 = vsel %vm17199_vm9, %v7278_v16, 0.0 }
0x3aea   :  { %7284 = vst [vmem:[#allocation8 + $0x6] sm:$0x1] %v7283_v24 }
0x3aeb   :  { %v7294_v44 = vsel %vm264_vm1, %v7278_v16, -inf  ;;  %v7293_v46 = vand.u32 127, %v587_v37 }
0x3aec   :  { %7295 = vmax.xlane.f32.xlu0 %v7294_v44 }
0x3b75   :  { %v7296_v47 = vpop.xlane.xlu0 %7295 }
0x3b76   :  { %vm7297_vm10 = vcmp.eq.f32.partialorder %v7278_v16, %v7296_v47 }
0x3b77   :  { %v7298_v48 = vsel %vm7297_vm10, %v7293_v46, 128 }
0x3b78   :  { %v7299_v49 = vsel %vm264_vm1, %v7298_v48, 2147483647 }
0x3b79   :  { %v7301_v50 = vshra.s32 %v7299_v49, 16  ;;  %v7300_v52 = vand.u32 65535, %v7299_v49 }
0x3b7b   :  { %v7303_v51 = vcvt.s32.f32 %v7301_v50  ;;  %v7302_v29 = vcvt.s32.f32 %v7300_v52 }
0x3b7d   :  { %7304 = vmin.xlane.f32.xlu0 %v7303_v51 }
0x3c06   :  { %v7305_v41 = vpop.xlane.xlu0 %7304 }
0x3c07   :  { %vm7306_vm11 = vcmp.eq.f32.partialorder %v7303_v51, %v7305_v41  ;;  %v7311_v56 = vcvt.f32.s32 %v7305_v41 }
0x3c08   :  { %v7307_v25 = vsel %vm7306_vm11, %v7302_v29, inf }
0x3c09   :  { %7308 = vmin.xlane.f32.xlu1 %v7307_v25  ;;  %v7312_v58 = vshll.u32 %v7311_v56, 16 }
0x3c92   :  { %v7309_v57 = vpop.xlane.xlu1 %7308 }
0x3c93   :  { %v7310_v59 = vcvt.f32.s32 %v7309_v57 }
0x3c95   :  { %v7313_v60 = vadd.s32 %v7312_v58, %v7310_v59 }
0x3c97   :  { %v7314_v61 = vrot.slane %v7313_v60, 4 }
0x3c99   :  { %vm7315_vm12 = vcmp.lt.s32.totalorder %v7313_v60, %v7314_v61 }
0x3c9a   :  { %v7316_v63 = vsel %vm7315_vm12, %v7313_v60, %v7314_v61 }
0x3c9b   :  { %v7317_v0 = vrot.slane %v7316_v63, 2 }
0x3c9d   :  { %vm7318_vm13 = vcmp.lt.s32.totalorder %v7316_v63, %v7317_v0 }
0x3c9e   :  { %v7319_v53 = vsel %vm7318_vm13, %v7316_v63, %v7317_v0 }
0x3c9f   :  { %v7320_v43 = vrot.slane %v7319_v53, 1 }
0x3ca1   :  { %vm7321_vm14 = vcmp.lt.s32.totalorder %v7319_v53, %v7320_v43 }
0x3ca2   :  { %v7322_v42 = vsel %vm7321_vm14, %v7319_v53, %v7320_v43 }
0x3ca3   :  { %11791 = vpush %v7322_v42 }
0x3cd4   :  { %s11792_s24 = spop %11791 }
0x3cd5   :  { %7324 = sst [smem:[#allocation2]] %s11792_s24 }
0x3cd6 PF:  { %s17699_s23 = sld [smem:[#allocation6 + $0x7]]  ;;  %11499 = vmatprep.subr.mxu0 %v12041_v2  ;;  %11534 = vmatprep.subr.mxu1 %v12041_v2  ;;  %v7368_v5 = vld [vmem:[%s18506_s6 + $0x78] sm:$0xff]  ;;  %v7367_v7 = vld [vmem:[%s18506_s6 + $0x70] sm:$0xff]  ;;  %v7366_v9 = vld [vmem:[%s18506_s6 + $0x68] sm:$0xff]  ;;  %v17839_v16 = vsel %vm17199_vm9, %v17685_v14, %v17044_v27 }
0x3cd7   :  { %v7352_v6 = vld [vmem:[%s18505_s5 + $0x78] sm:$0xff]  ;;  %11500 = vmatpush3.msra.mxu0 %v7368_v5  ;;  %v7351_v8 = vld [vmem:[%s18505_s5 + $0x70] sm:$0xff]  ;;  %v7350_v10 = vld [vmem:[%s18505_s5 + $0x68] sm:$0xff]  ;;  %s8447_s0 = sld [smem:[#allocation3 + $0x7]]  ;;  %11531 = vmatprep.mubr.msk.f32.mxu0 %vm12042_vm0, %v12041_v2 }
0x3cd8   :  { %11535 = vmatpush3.msra.mxu1 %v7352_v6  ;;  %11501 = vmatprep.subr.mxu0 %v12041_v2  ;;  %v7365_v11 = vld [vmem:[%s18506_s6 + $0x60] sm:$0xff]  ;;  %v7364_v1 = vld [vmem:[%s18506_s6 + $0x58] sm:$0xff]  ;;  %s17739_s26 = sld [smem:[#allocation2]]  ;;  %v7363_v54 = vld [vmem:[%s18506_s6 + $0x50] sm:$0xff] }
0x3cd9   :  { %11536 = vmatprep.subr.mxu1 %v12041_v2  ;;  %11502 = vmatpush3.msra.mxu0 %v7367_v7  ;;  %v7349_v12 = vld [vmem:[%s18505_s5 + $0x60] sm:$0xff]  ;;  %v7348_v55 = vld [vmem:[%s18505_s5 + $0x58] sm:$0xff]  ;;  %v7347_v18 = vld [vmem:[%s18505_s5 + $0x50] sm:$0xff]  ;;  %s18555_s27 = sld [smem:[#allocation19_spill]] }
0x3cda   :  { %11537 = vmatpush3.msra.mxu1 %v7351_v8  ;;  %11503 = vmatprep.subr.mxu0 %v12041_v2  ;;  %v7362_v19 = vld [vmem:[%s18506_s6 + $0x48] sm:$0xff]  ;;  %v7361_v20 = vld [vmem:[%s18506_s6 + $0x40] sm:$0xff]  ;;  %v7360_v22 = vld [vmem:[%s18506_s6 + $0x38] sm:$0xff] }
0x3cdb   :  { %11538 = vmatprep.subr.mxu1 %v12041_v2  ;;  %11504 = vmatpush3.msra.mxu0 %v7366_v9  ;;  %v7346_v33 = vld [vmem:[%s18505_s5 + $0x48] sm:$0xff]  ;;  %v7345_v21 = vld [vmem:[%s18505_s5 + $0x40] sm:$0xff]  ;;  %v7344_v23 = vld [vmem:[%s18505_s5 + $0x38] sm:$0xff] }
0x3cdc   :  { %11539 = vmatpush3.msra.mxu1 %v7350_v10  ;;  %11505 = vmatprep.subr.mxu0 %v12041_v2  ;;  %v7359_v26 = vld [vmem:[%s18506_s6 + $0x30] sm:$0xff]  ;;  %v7358_v4 = vld [vmem:[%s18506_s6 + $0x28] sm:$0xff]  ;;  %v7357_v30 = vld [vmem:[%s18506_s6 + $0x20] sm:$0xff]  ;;  %p8450_p10 = scmp.ne.s32.totalorder %s17699_s23, 0 }
0x3cdd   :  { %11540 = vmatprep.subr.mxu1 %v12041_v2  ;;  %11506 = vmatpush3.msra.mxu0 %v7365_v11  ;;  %8323 = sst [smem:[#allocation2]] %s8447_s0  ;;  %v7343_v13 = vld [vmem:[%s18505_s5 + $0x30] sm:$0xff]  ;;  %v7342_v3 = vld [vmem:[%s18505_s5 + $0x28] sm:$0xff]  ;;  %v7341_v31 = vld [vmem:[%s18505_s5 + $0x20] sm:$0xff] }
0x3cde   :  { %11541 = vmatpush3.msra.mxu1 %v7349_v12  ;;  %11507 = vmatprep.subr.mxu0 %v12041_v2  ;;  %v7356_v32 = vld [vmem:[%s18506_s6 + $0x18] sm:$0xff]  ;;  %v7355_v36 = vld [vmem:[%s18506_s6 + $0x10] sm:$0xff]  ;;  %v7354_v34 = vld [vmem:[%s18506_s6 + $0x8] sm:$0xff]  ;;  %s7335_s22 = scalar_lea.vmem %s18504_s4, %s17739_s26  ;;  %p7326_p7 = scmp.eq.s32.totalorder %s17739_s26, 1 }
0x3cdf   :  { %11542 = vmatprep.subr.mxu1 %v12041_v2  ;;  %11508 = vmatpush3.msra.mxu0 %v7364_v1  ;;  %v7340_v35 = vld [vmem:[%s18505_s5 + $0x18] sm:$0xff]  ;;  %v7339_v38 = vld [vmem:[%s18505_s5 + $0x10] sm:$0xff]  ;;  %v7338_v40 = vld [vmem:[%s18505_s5 + $0x8] sm:$0xff] }
0x3ce0   :  { %11543 = vmatpush3.msra.mxu1 %v7348_v55  ;;  %11509 = vmatprep.subr.mxu0 %v12041_v2  ;;  %v7353_v15 = vld [vmem:[%s18506_s6] sm:$0xff]  ;;  %v7537_v50 = vld [vmem:[%s18555_s27 + $0x78] sm:$0xff]  ;;  %v7536_v51 = vld [vmem:[%s18555_s27 + $0x70] sm:$0xff]  ;;  %s7327_s21 = scalar_select %p7326_p7, 1, 0 }
0x3ce1   :  { %11544 = vmatprep.subr.mxu1 %v12041_v2  ;;  %11510 = vmatpush3.msra.mxu0 %v7363_v54  ;;  %v7337_v28 = vld [vmem:[%s18505_s5] sm:$0xff]  ;;  %v7535_v52 = vld [vmem:[%s18555_s27 + $0x68] sm:$0xff]  ;;  %v7533_v29 = vld [vmem:[%s18555_s27 + $0x58] sm:$0xff] }
0x3ce2   :  { %11545 = vmatpush3.msra.mxu1 %v7347_v18  ;;  %11511 = vmatprep.subr.mxu0 %v12041_v2  ;;  %v17841_v24 = vld [vmem:[%s7335_s22] sm:$0x1]  ;;  %v7532_v25 = vld [vmem:[%s18555_s27 + $0x50] sm:$0xff]  ;;  %v7531_v56 = vld [vmem:[%s18555_s27 + $0x48] sm:$0xff] }
0x3ce3   :  { %11546 = vmatprep.subr.mxu1 %v12041_v2  ;;  %11512 = vmatpush3.msra.mxu0 %v7362_v19  ;;  %v7509_v14 = vld [vmem:[%s18507_s7] sm:$0x1]  ;;  %v7529_v0 = vld [vmem:[%s18555_s27 + $0x38] sm:$0xff]  ;;  %v7528_v53 = vld [vmem:[%s18555_s27 + $0x30] sm:$0xff]  ;;  %s7328_s7 = ssub.s32 1, %s16904_s2 }
0x3ce4   :  { %11547 = vmatpush3.msra.mxu1 %v7346_v33  ;;  %11513 = vmatprep.subr.mxu0 %v12041_v2  ;;  %v7534_v41 = vld [vmem:[%s18555_s27 + $0x60] sm:$0xff]  ;;  %v7527_v43 = vld [vmem:[%s18555_s27 + $0x28] sm:$0xff]  ;;  %v7525_v5 = vld [vmem:[%s18555_s27 + $0x18] sm:$0xff]  ;;  %s7329_s0 = smul.u32 %s7328_s7, %s7327_s21 }
0x3ce5   :  { %11548 = vmatprep.subr.mxu1 %v12041_v2  ;;  %11514 = vmatpush3.msra.mxu0 %v7361_v20  ;;  %v7530_v57 = vld [vmem:[%s18555_s27 + $0x40] sm:$0xff]  ;;  %v7524_v6 = vld [vmem:[%s18555_s27 + $0x10] sm:$0xff]  ;;  %v7523_v7 = vld [vmem:[%s18555_s27 + $0x8] sm:$0xff] }
0x3ce6   :  { %11549 = vmatpush3.msra.mxu1 %v7345_v21  ;;  %11515 = vmatprep.subr.mxu0 %v12041_v2  ;;  %v7526_v42 = vld [vmem:[%s18555_s27 + $0x20] sm:$0xff]  ;;  %v7639_v9 = vld [vmem:[%s18509_s9 + $0x78] sm:$0xff]  ;;  %v7638_v10 = vld [vmem:[%s18509_s9 + $0x70] sm:$0xff]  ;;  %p7330_p8 = scmp.gt.s32.totalorder %s18569_s20, %s7329_s0 }
0x3ce7   :  { %11550 = vmatprep.subr.mxu1 %v12041_v2  ;;  %11516 = vmatpush3.msra.mxu0 %v7360_v22  ;;  %v7522_v8 = vld [vmem:[%s18555_s27] sm:$0xff]  ;;  %v7637_v11 = vld [vmem:[%s18509_s9 + $0x68] sm:$0xff]  ;;  %v7635_v1 = vld [vmem:[%s18509_s9 + $0x58] sm:$0xff] }
0x3ce8   :  { %11551 = vmatpush3.msra.mxu1 %v7344_v23  ;;  %11517 = vmatprep.subr.mxu0 %v12041_v2  ;;  %v7636_v12 = vld [vmem:[%s18509_s9 + $0x60] sm:$0xff]  ;;  %v7634_v55 = vld [vmem:[%s18509_s9 + $0x50] sm:$0xff]  ;;  %v7633_v54 = vld [vmem:[%s18509_s9 + $0x48] sm:$0xff]  ;;  %s18571_s20 = smov (!%p7330_p8, %s18569_s20), %s7329_s0 }
0x3ce9   :  { %11552 = vmatprep.subr.mxu1 %v12041_v2  ;;  %11518 = vmatpush3.msra.mxu0 %v7359_v26  ;;  %v7632_v18 = vld [vmem:[%s18509_s9 + $0x40] sm:$0xff]  ;;  %v7631_v19 = vld [vmem:[%s18509_s9 + $0x38] sm:$0xff]  ;;  %v7630_v33 = vld [vmem:[%s18509_s9 + $0x30] sm:$0xff]  ;;  %p8315_p9 = scmp.eq.s32.totalorder %s18571_s20, 0 }
0x3cea   :  { %11553 = vmatpush3.msra.mxu1 %v7343_v13  ;;  %11519 = vmatprep.subr.mxu0 %v12041_v2  ;;  %v7629_v20 = vld [vmem:[%s18509_s9 + $0x28] sm:$0xff]  ;;  %v7628_v21 = vld [vmem:[%s18509_s9 + $0x20] sm:$0xff]  ;;  %v7627_v22 = vld [vmem:[%s18509_s9 + $0x18] sm:$0xff] }
0x3ceb   :  { %11554 = vmatprep.subr.mxu1 %v12041_v2  ;;  %11520 = vmatpush3.msra.mxu0 %v7358_v4  ;;  %v7626_v23 = vld [vmem:[%s18509_s9 + $0x10] sm:$0xff]  ;;  %v7625_v26 = vld [vmem:[%s18509_s9 + $0x8] sm:$0xff]  ;;  %s8316_s22 = scalar_select %p8315_p9, 1, 0 }
0x3cec   :  { %11555 = vmatpush3.msra.mxu1 %v7342_v3  ;;  %11521 = vmatprep.subr.mxu0 %v12041_v2 }
0x3ced   :  { %11556 = vmatprep.subr.mxu1 %v12041_v2  ;;  %11522 = vmatpush3.msra.mxu0 %v7357_v30  ;;  %v8317_v4 = vstv %s8316_s22 }
0x3cee   :  { %11557 = vmatpush3.msra.mxu1 %v7341_v31  ;;  %11523 = vmatprep.subr.mxu0 %v12041_v2  ;;  %vm17991_vm15 = vcmp.eq.s32.totalorder %v8317_v4, 1  ;;  %v7796_v4 = vld [vmem:[%s18511_s11 + $0x68] sm:$0xff] }
0x3cef   :  { %11558 = vmatprep.subr.mxu1 %v12041_v2  ;;  %11524 = vmatpush3.msra.mxu0 %v7356_v32  ;;  %v7623_v32 = vld [vmem:[%s18508_s8 + $0x78] sm:$0xff] }
0x3cf0   :  { %11559 = vmatpush3.msra.mxu1 %v7340_v35  ;;  %11525 = vmatprep.subr.mxu0 %v12041_v2  ;;  %v7622_v35 = vld [vmem:[%s18508_s8 + $0x70] sm:$0xff] }
0x3cf1   :  { %11560 = vmatprep.subr.mxu1 %v12041_v2  ;;  %11526 = vmatpush3.msra.mxu0 %v7355_v36 }
0x3cf2   :  { %11561 = vmatpush3.msra.mxu1 %v7339_v38  ;;  %11527 = vmatprep.subr.mxu0 %v12041_v2  ;;  %v7621_v38 = vld [vmem:[%s18508_s8 + $0x68] sm:$0xff] }
0x3cf3   :  { %11562 = vmatprep.subr.mxu1 %v12041_v2  ;;  %11528 = vmatpush3.msra.mxu0 %v7354_v34  ;;  %v7620_v34 = vld [vmem:[%s18508_s8 + $0x60] sm:$0xff] }
0x3cf4   :  { %11563 = vmatpush3.msra.mxu1 %v7338_v40  ;;  %11529 = vmatprep.subr.mxu0 %v12041_v2  ;;  %v7619_v40 = vld [vmem:[%s18508_s8 + $0x58] sm:$0xff] }
0x3cf5   :  { %11564 = vmatprep.subr.mxu1 %v12041_v2  ;;  %11530 = vmatpush3.msra.mxu0 %v7353_v15  ;;  %v7618_v15 = vld [vmem:[%s18508_s8 + $0x50] sm:$0xff] }
0x3cf6   :  { %11565 = vmatpush3.msra.mxu1 %v7337_v28  ;;  %11566 = vmatprep.mubr.msk.f32.mxu1 %vm12042_vm0, %v12041_v2  ;;  %v7617_v28 = vld [vmem:[%s18508_s8 + $0x48] sm:$0xff] }
0x3cf7   :  { %11532 = vmatmul.mubr.f32.vlgmr.msra.gmra.mxu0 %v17839_v16  ;;  %11567 = vmatmul.mubr.f32.vlgmr.msra.gmra.mxu1 %v17841_v24 }
0x3cf8   :  { %11569 = vmatprep.subr.mxu0 %v12041_v2  ;;  %11601 = vmatprep.mubr.msk.f32.mxu0 %vm12042_vm0, %v12041_v2 }
0x3cf9   :  { %11604 = vmatprep.subr.mxu1 %v12041_v2  ;;  %11636 = vmatprep.mubr.msk.f32.mxu1 %vm12042_vm0, %v12041_v2 }
0x3cfa   :  { %11570 = vmatpush3.msra.mxu0 %v7537_v50  ;;  %11605 = vmatpush3.msra.mxu1 %v7639_v9  ;;  %v7608_v50 = vld [vmem:[%s18508_s8] sm:$0xff]  ;;  %v7820_v9 = vld [vmem:[%s18511_s11 + $0x128] sm:$0xff] }
0x3cfb   :  { %11571 = vmatprep.subr.mxu0 %v12041_v2  ;;  %11606 = vmatprep.subr.mxu1 %v12041_v2 }
0x3cfc   :  { %11572 = vmatpush3.msra.mxu0 %v7536_v51  ;;  %11607 = vmatpush3.msra.mxu1 %v7638_v10  ;;  %v7624_v51 = vld [vmem:[%s18509_s9] sm:$0xff] }
0x3cfd   :  { %11573 = vmatprep.subr.mxu0 %v12041_v2  ;;  %11608 = vmatprep.subr.mxu1 %v12041_v2  ;;  %v7819_v10 = vld [vmem:[%s18511_s11 + $0x120] sm:$0xff] }
0x3cfe   :  { %11574 = vmatpush3.msra.mxu0 %v7535_v52  ;;  %11609 = vmatpush3.msra.mxu1 %v7637_v11  ;;  %v7829_v52 = vld [vmem:[%s18511_s11 + $0x170] sm:$0xff] }
0x3cff   :  { %11575 = vmatprep.subr.mxu0 %v12041_v2  ;;  %11610 = vmatprep.subr.mxu1 %v12041_v2  ;;  %v7817_v11 = vld [vmem:[%s18511_s11 + $0x110] sm:$0xff] }
0x3d00   :  { %11576 = vmatpush3.msra.mxu0 %v7534_v41  ;;  %11611 = vmatpush3.msra.mxu1 %v7636_v12  ;;  %v7830_v41 = vld [vmem:[%s18511_s11 + $0x178] sm:$0xff]  ;;  %v7816_v12 = vld [vmem:[%s18511_s11 + $0x108] sm:$0xff] }
0x3d01   :  { %11577 = vmatprep.subr.mxu0 %v12041_v2  ;;  %11612 = vmatprep.subr.mxu1 %v12041_v2 }
0x3d02   :  { %11578 = vmatpush3.msra.mxu0 %v7533_v29  ;;  %11613 = vmatpush3.msra.mxu1 %v7635_v1  ;;  %v7824_v29 = vld [vmem:[%s18511_s11 + $0x148] sm:$0xff]  ;;  %v7814_v1 = vld [vmem:[%s18511_s11 + $0xf8] sm:$0xff] }
0x3d03   :  { %11579 = vmatprep.subr.mxu0 %v12041_v2  ;;  %11614 = vmatprep.subr.mxu1 %v12041_v2 }
0x3d04   :  { %11580 = vmatpush3.msra.mxu0 %v7532_v25  ;;  %11615 = vmatpush3.msra.mxu1 %v7634_v55  ;;  %v7821_v25 = vld [vmem:[%s18511_s11 + $0x130] sm:$0xff] }
0x3d05   :  { %11581 = vmatprep.subr.mxu0 %v12041_v2  ;;  %11616 = vmatprep.subr.mxu1 %v12041_v2  ;;  %v7813_v55 = vld [vmem:[%s18511_s11 + $0xf0] sm:$0xff] }
0x3d06   :  { %11582 = vmatpush3.msra.mxu0 %v7531_v56  ;;  %11617 = vmatpush3.msra.mxu1 %v7633_v54  ;;  %v7818_v56 = vld [vmem:[%s18511_s11 + $0x118] sm:$0xff]  ;;  %v7811_v54 = vld [vmem:[%s18511_s11 + $0xe0] sm:$0xff] }
0x3d07   :  { %11583 = vmatprep.subr.mxu0 %v12041_v2  ;;  %11618 = vmatprep.subr.mxu1 %v12041_v2 }
0x3d08   :  { %11584 = vmatpush3.msra.mxu0 %v7530_v57  ;;  %11619 = vmatpush3.msra.mxu1 %v7632_v18  ;;  %v7815_v57 = vld [vmem:[%s18511_s11 + $0x100] sm:$0xff]  ;;  %v7810_v18 = vld [vmem:[%s18511_s11 + $0xd8] sm:$0xff] }
0x3d09   :  { %11585 = vmatprep.subr.mxu0 %v12041_v2  ;;  %11620 = vmatprep.subr.mxu1 %v12041_v2 }
0x3d0a   :  { %11586 = vmatpush3.msra.mxu0 %v7529_v0  ;;  %11621 = vmatpush3.msra.mxu1 %v7631_v19  ;;  %v7797_v0 = vld [vmem:[%s18511_s11 + $0x70] sm:$0xff]  ;;  %v7808_v19 = vld [vmem:[%s18511_s11 + $0xc8] sm:$0xff] }
0x3d0b   :  { %11587 = vmatprep.subr.mxu0 %v12041_v2  ;;  %11622 = vmatprep.subr.mxu1 %v12041_v2 }
0x3d0c   :  { %11588 = vmatpush3.msra.mxu0 %v7528_v53  ;;  %11623 = vmatpush3.msra.mxu1 %v7630_v33  ;;  %v7828_v53 = vld [vmem:[%s18511_s11 + $0x168] sm:$0xff]  ;;  %v7807_v33 = vld [vmem:[%s18511_s11 + $0xc0] sm:$0xff] }
0x3d0d   :  { %11589 = vmatprep.subr.mxu0 %v12041_v2  ;;  %11624 = vmatprep.subr.mxu1 %v12041_v2 }
0x3d0e   :  { %11590 = vmatpush3.msra.mxu0 %v7527_v43  ;;  %11625 = vmatpush3.msra.mxu1 %v7629_v20  ;;  %v7805_v20 = vld [vmem:[%s18511_s11 + $0xb0] sm:$0xff] }
0x3d0f   :  { %11591 = vmatprep.subr.mxu0 %v12041_v2  ;;  %11626 = vmatprep.subr.mxu1 %v12041_v2 }
0x3d10   :  { %11592 = vmatpush3.msra.mxu0 %v7526_v42  ;;  %11627 = vmatpush3.msra.mxu1 %v7628_v21  ;;  %v7826_v42 = vld [vmem:[%s18511_s11 + $0x158] sm:$0xff]  ;;  %v7804_v21 = vld [vmem:[%s18511_s11 + $0xa8] sm:$0xff] }
0x3d11   :  { %11593 = vmatprep.subr.mxu0 %v12041_v2  ;;  %11628 = vmatprep.subr.mxu1 %v12041_v2 }
0x3d12   :  { %11594 = vmatpush3.msra.mxu0 %v7525_v5  ;;  %11629 = vmatpush3.msra.mxu1 %v7627_v22  ;;  %v7825_v5 = vld [vmem:[%s18511_s11 + $0x150] sm:$0xff]  ;;  %v7802_v22 = vld [vmem:[%s18511_s11 + $0x98] sm:$0xff] }
0x3d13   :  { %11595 = vmatprep.subr.mxu0 %v12041_v2  ;;  %11630 = vmatprep.subr.mxu1 %v12041_v2 }
0x3d14   :  { %11596 = vmatpush3.msra.mxu0 %v7524_v6  ;;  %11631 = vmatpush3.msra.mxu1 %v7626_v23  ;;  %v7801_v23 = vld [vmem:[%s18511_s11 + $0x90] sm:$0xff] }
0x3d15   :  { %11597 = vmatprep.subr.mxu0 %v12041_v2  ;;  %11632 = vmatprep.subr.mxu1 %v12041_v2 }
0x3d16   :  { %11598 = vmatpush3.msra.mxu0 %v7523_v7  ;;  %11633 = vmatpush3.msra.mxu1 %v7625_v26  ;;  %v7823_v7 = vld [vmem:[%s18511_s11 + $0x140] sm:$0xff] }
0x3d17   :  { %11599 = vmatprep.subr.mxu0 %v12041_v2  ;;  %11634 = vmatprep.subr.mxu1 %v12041_v2  ;;  %v7799_v26 = vld [vmem:[%s18511_s11 + $0x80] sm:$0xff] }
0x3d18   :  { %11600 = vmatpush3.msra.mxu0 %v7522_v8  ;;  %11635 = vmatpush3.msra.mxu1 %v7624_v51  ;;  %v7822_v8 = vld [vmem:[%s18511_s11 + $0x138] sm:$0xff] }
0x3d19   :  { %11639 = vmatprep.subr.mxu0 %v12041_v2  ;;  %7848 = vmatprep.subr.mxu1 %v7829_v52 }
0x3db7   :  { %v7435_v27 = vpop.f32.mrf.mxu0  ;;  %v7505_v17 = vpop.f32.mrf.mxu1 }
0x3db8   :  { %v7506_v44 = vadd.f32 %v7505_v17, %v7435_v27  ;;  %v7616_v27 = vld [vmem:[%s18508_s8 + $0x40] sm:$0xff]  ;;  %v7615_v17 = vld [vmem:[%s18508_s8 + $0x38] sm:$0xff] }
0x3db9   :  { %v11533_v46 = vpop.f32.mrf.mxu0  ;;  %v11568_v47 = vpop.f32.mrf.mxu1 }
0x3dba   :  { %v7510_v48 = vadd.f32 %v7509_v14, %v7506_v44  ;;  %v7614_v14 = vld [vmem:[%s18508_s8 + $0x30] sm:$0xff]  ;;  %v7613_v44 = vld [vmem:[%s18508_s8 + $0x28] sm:$0xff]  ;;  %v7612_v46 = vld [vmem:[%s18508_s8 + $0x20] sm:$0xff] }
0x3dbb   :  { %v7611_v47 = vld [vmem:[%s18508_s8 + $0x18] sm:$0xff] }
0x3dbc   :  { %v7511_v49 = vsel %vm264_vm1, %v7510_v48, -inf }
0x3dbd   :  { %7512 = vmax.xlane.f32.xlu0 %v7511_v49  ;;  %v7609_v49 = vld [vmem:[%s18508_s8 + $0x8] sm:$0xff] }
0x3e46   :  { %v7513_v58 = vpop.xlane.xlu0 %7512 }
0x3e47   :  { %v7514_v59 = vsub.f32 %v7510_v48, %v7513_v58  ;;  %v7610_v48 = vld [vmem:[%s18508_s8 + $0x10] sm:$0xff]  ;;  %v7812_v58 = vld [vmem:[%s18511_s11 + $0xe8] sm:$0xff] }
0x3e49   :  { %v7515_v60 = vmul.f32 1.442695, %v7514_v59  ;;  %v7809_v59 = vld [vmem:[%s18511_s11 + $0xd0] sm:$0xff] }
0x3e4b   :  { %11929 = vpow2.f32 %v7515_v60  ;;  %v7806_v60 = vld [vmem:[%s18511_s11 + $0xb8] sm:$0xff] }
0x3e58   :  { %v17891_v61 = vpop.eup %11929 }
0x3e59   :  { %v7517_v63 = vsel %vm264_vm1, %v17891_v61, 0.0 }
0x3e5a   :  { %7518 = vadd.xlane.f32.xlu0 %v7517_v63  ;;  %v7800_v63 = vld [vmem:[%s18511_s11 + $0x88] sm:$0xff] }
0x3ee3   :  { %v7519_v13 = vpop.xlane.xlu0 %7518 }
0x3ee4   :  { %11931 = vrcp.f32 %v7519_v13  ;;  %v7798_v13 = vld [vmem:[%s18511_s11 + $0x78] sm:$0xff] }
0x3ef1   :  { %v11932_v3 = vpop.eup %11931 }
0x3ef2   :  { %v7521_v31 = vmul.f32 %v11932_v3, %v17891_v61  ;;  %v7803_v61 = vld [vmem:[%s18511_s11 + $0xa0] sm:$0xff] }
0x3ef3   :  { %v7795_v3 = vld [vmem:[%s18511_s11 + $0x60] sm:$0xff] }
0x3ef4   :  { %11602 = vmatmul.mubr.f32.vlgmr.msra.gmra.mxu0 %v7521_v31  ;;  %v8321_v36 = vsel %vm17991_vm15, %v7521_v31, 0.0  ;;  %v7793_v31 = vld [vmem:[%s18511_s11 + $0x50] sm:$0xff] }
0x3ef5   :  { %11640 = vmatpush3.msra.mxu0 %v7623_v32  ;;  %11671 = vmatprep.mubr.msk.f32.mxu0 %vm12042_vm0, %v12041_v2  ;;  %8322 = vst [vmem:[#allocation9 + $0x7] sm:$0x1] %v8321_v36  ;;  %v7792_v32 = vld [vmem:[%s18511_s11 + $0x48] sm:$0xff] }
0x3ef6   :  { %11641 = vmatprep.subr.mxu0 %v12041_v2 }
0x3ef7   :  { %11642 = vmatpush3.msra.mxu0 %v7622_v35 }
0x3ef8   :  { %11643 = vmatprep.subr.mxu0 %v12041_v2 }
0x3ef9   :  { %11644 = vmatpush3.msra.mxu0 %v7621_v38  ;;  %v7790_v38 = vld [vmem:[%s18511_s11 + $0x38] sm:$0xff] }
0x3efa   :  { %11645 = vmatprep.subr.mxu0 %v12041_v2 }
0x3efb   :  { %11646 = vmatpush3.msra.mxu0 %v7620_v34  ;;  %v7794_v34 = vld [vmem:[%s18511_s11 + $0x58] sm:$0xff] }
0x3efc   :  { %11647 = vmatprep.subr.mxu0 %v12041_v2 }
0x3efd   :  { %11648 = vmatpush3.msra.mxu0 %v7619_v40  ;;  %v7789_v40 = vld [vmem:[%s18511_s11 + $0x30] sm:$0xff] }
0x3efe   :  { %11649 = vmatprep.subr.mxu0 %v12041_v2 }
0x3eff   :  { %11650 = vmatpush3.msra.mxu0 %v7618_v15  ;;  %v7787_v15 = vld [vmem:[%s18511_s11 + $0x20] sm:$0xff] }
0x3f00   :  { %11651 = vmatprep.subr.mxu0 %v12041_v2 }
0x3f01   :  { %11652 = vmatpush3.msra.mxu0 %v7617_v28  ;;  %v7791_v28 = vld [vmem:[%s18511_s11 + $0x40] sm:$0xff] }
0x3f02   :  { %11653 = vmatprep.subr.mxu0 %v12041_v2 }
0x3f03   :  { %11654 = vmatpush3.msra.mxu0 %v7616_v27  ;;  %v7786_v27 = vld [vmem:[%s18511_s11 + $0x18] sm:$0xff] }
0x3f04   :  { %11655 = vmatprep.subr.mxu0 %v12041_v2 }
0x3f05   :  { %11656 = vmatpush3.msra.mxu0 %v7615_v17  ;;  %v7784_v17 = vld [vmem:[%s18511_s11 + $0x8] sm:$0xff] }
0x3f06   :  { %11657 = vmatprep.subr.mxu0 %v12041_v2 }
0x3f07   :  { %11658 = vmatpush3.msra.mxu0 %v7614_v14  ;;  %v7788_v14 = vld [vmem:[%s18511_s11 + $0x28] sm:$0xff] }
0x3f08   :  { %11659 = vmatprep.subr.mxu0 %v12041_v2 }
0x3f09   :  { %11660 = vmatpush3.msra.mxu0 %v7613_v44  ;;  %v7783_v44 = vld [vmem:[%s18511_s11] sm:$0xff] }
0x3f0a   :  { %11661 = vmatprep.subr.mxu0 %v12041_v2 }
0x3f0b   :  { %11662 = vmatpush3.msra.mxu0 %v7612_v46  ;;  %v7785_v46 = vld [vmem:[%s18511_s11 + $0x10] sm:$0xff] }
0x3f0c   :  { %11663 = vmatprep.subr.mxu0 %v12041_v2 }
0x3f0d   :  { %11664 = vmatpush3.msra.mxu0 %v7611_v47  ;;  %v8035_v47 = vld [vmem:[%s18512_s12 + $0x170] sm:$0xff] }
0x3f0e   :  { %11665 = vmatprep.subr.mxu0 %v12041_v2 }
0x3f0f   :  { %11666 = vmatpush3.msra.mxu0 %v7610_v48 }
0x3f10   :  { %11667 = vmatprep.subr.mxu0 %v12041_v2 }
0x3f11   :  { %11668 = vmatpush3.msra.mxu0 %v7609_v49  ;;  %v7780_v49 = vld [vmem:[%s18510_s10] sm:$0x1] }
0x3f12   :  { %11669 = vmatprep.subr.mxu0 %v12041_v2 }
0x3f13   :  { %11670 = vmatpush3.msra.mxu0 %v7608_v50 }
0x3f14   :  { %11672 = vmatmul.mubr.f32.vlgmr.msra.gmra.mxu0 %v17841_v24  ;;  %11674 = vmatprep.subr.mxu0 %v12041_v2  ;;  %v7827_v24 = vld [vmem:[%s18511_s11 + $0x160] sm:$0xff] }
0x3f15   :  { %11706 = vmatprep.mubr.msk.f32.mxu0 %vm12042_vm0, %v12041_v2  ;;  %11675 = vmatpush3.msra.mxu0 %v7830_v41 }
0x3f16   :  { %11676 = vmatprep.subr.mxu0 %v12041_v2 }
0x3f17   :  { %11677 = vmatpush3.msra.mxu0 %v7827_v24  ;;  %v8034_v24 = vld [vmem:[%s18512_s12 + $0x168] sm:$0xff] }
0x3f18   :  { %11678 = vmatprep.subr.mxu0 %v12041_v2 }
0x3f19   :  { %11679 = vmatpush3.msra.mxu0 %v7824_v29  ;;  %v8032_v29 = vld [vmem:[%s18512_s12 + $0x158] sm:$0xff] }
0x3f1a   :  { %11680 = vmatprep.subr.mxu0 %v12041_v2 }
0x3f1b   :  { %11681 = vmatpush3.msra.mxu0 %v7821_v25  ;;  %v8036_v25 = vld [vmem:[%s18512_s12 + $0x178] sm:$0xff] }
0x3f1c   :  { %11682 = vmatprep.subr.mxu0 %v12041_v2 }
0x3f1d   :  { %11683 = vmatpush3.msra.mxu0 %v7818_v56  ;;  %v8031_v56 = vld [vmem:[%s18512_s12 + $0x150] sm:$0xff] }
0x3f1e   :  { %11684 = vmatprep.subr.mxu0 %v12041_v2 }
0x3f1f   :  { %11685 = vmatpush3.msra.mxu0 %v7815_v57  ;;  %v8029_v57 = vld [vmem:[%s18512_s12 + $0x140] sm:$0xff] }
0x3f20   :  { %11686 = vmatprep.subr.mxu0 %v12041_v2 }
0x3f21   :  { %11687 = vmatpush3.msra.mxu0 %v7812_v58  ;;  %v8033_v58 = vld [vmem:[%s18512_s12 + $0x160] sm:$0xff] }
0x3f22   :  { %11688 = vmatprep.subr.mxu0 %v12041_v2 }
0x3f23   :  { %11689 = vmatpush3.msra.mxu0 %v7809_v59  ;;  %v8028_v59 = vld [vmem:[%s18512_s12 + $0x138] sm:$0xff] }
0x3f24   :  { %11690 = vmatprep.subr.mxu0 %v12041_v2 }
0x3f25   :  { %11691 = vmatpush3.msra.mxu0 %v7806_v60  ;;  %v8026_v60 = vld [vmem:[%s18512_s12 + $0x128] sm:$0xff] }
0x3f26   :  { %11692 = vmatprep.subr.mxu0 %v12041_v2 }
0x3f27   :  { %11693 = vmatpush3.msra.mxu0 %v7803_v61  ;;  %v8030_v61 = vld [vmem:[%s18512_s12 + $0x148] sm:$0xff] }
0x3f28   :  { %11694 = vmatprep.subr.mxu0 %v12041_v2 }
0x3f29   :  { %11695 = vmatpush3.msra.mxu0 %v7800_v63  ;;  %v8025_v63 = vld [vmem:[%s18512_s12 + $0x120] sm:$0xff] }
0x3f2a   :  { %11696 = vmatprep.subr.mxu0 %v12041_v2 }
0x3f2b   :  { %11697 = vmatpush3.msra.mxu0 %v7797_v0  ;;  %v8023_v0 = vld [vmem:[%s18512_s12 + $0x110] sm:$0xff] }
0x3f2c   :  { %11698 = vmatprep.subr.mxu0 %v12041_v2 }
0x3f2d   :  { %11699 = vmatpush3.msra.mxu0 %v7794_v34  ;;  %v7997_v34 = vld [vmem:[%s18512_s12 + $0x40] sm:$0xff] }
0x3f2e   :  { %11700 = vmatprep.subr.mxu0 %v12041_v2 }
0x3f2f   :  { %11701 = vmatpush3.msra.mxu0 %v7791_v28  ;;  %v7994_v28 = vld [vmem:[%s18512_s12 + $0x28] sm:$0xff] }
0x3f30   :  { %11702 = vmatprep.subr.mxu0 %v12041_v2 }
0x3f31   :  { %11703 = vmatpush3.msra.mxu0 %v7788_v14  ;;  %v8231_v14 = vld [vmem:[%s18515_s15 + $0x78] sm:$0xff] }
0x3f32   :  { %11704 = vmatprep.subr.mxu0 %v12041_v2 }
0x3f33   :  { %11705 = vmatpush3.msra.mxu0 %v7785_v46  ;;  %v8229_v46 = vld [vmem:[%s18515_s15 + $0x68] sm:$0xff] }
0x3f34   :  { %11709 = vmatprep.subr.mxu0 %v12041_v2 }
0x3fb4   :  { %v7604_v43 = vpop.f32.mrf.mxu0 }
0x3fb5   :  { %11637 = vmatmul.mubr.f32.vlgmr.msra.gmra.mxu1 %v7604_v43  ;;  %v8022_v43 = vld [vmem:[%s18512_s12 + $0x108] sm:$0xff] }
0x3fb6   :  { %v11603_v6 = vpop.f32.mrf.mxu0  ;;  %7849 = vmatpush1.msra.mxu1 %v7828_v53  ;;  %7912 = vmatprep.mubr.f32.mxu1 %v12041_v2  ;;  %v8027_v53 = vld [vmem:[%s18512_s12 + $0x130] sm:$0xff] }
0x3fb7   :  { %7850 = vmatprep.subr.mxu1 %v7826_v42  ;;  %v8020_v42 = vld [vmem:[%s18512_s12 + $0xf8] sm:$0xff]  ;;  %v8019_v6 = vld [vmem:[%s18512_s12 + $0xf0] sm:$0xff] }
0x3fb8   :  { %7851 = vmatpush1.msra.mxu1 %v7825_v5  ;;  %v8024_v5 = vld [vmem:[%s18512_s12 + $0x118] sm:$0xff] }
0x3fb9   :  { %7852 = vmatprep.subr.mxu1 %v7823_v7  ;;  %v8017_v7 = vld [vmem:[%s18512_s12 + $0xe0] sm:$0xff] }
0x3fba   :  { %7853 = vmatpush1.msra.mxu1 %v7822_v8  ;;  %v8021_v8 = vld [vmem:[%s18512_s12 + $0x100] sm:$0xff] }
0x3fbb   :  { %7854 = vmatprep.subr.mxu1 %v7820_v9  ;;  %v8016_v9 = vld [vmem:[%s18512_s12 + $0xd8] sm:$0xff] }
0x3fbc   :  { %7855 = vmatpush1.msra.mxu1 %v7819_v10  ;;  %v8014_v10 = vld [vmem:[%s18512_s12 + $0xc8] sm:$0xff] }
0x3fbd   :  { %7856 = vmatprep.subr.mxu1 %v7817_v11  ;;  %v8018_v11 = vld [vmem:[%s18512_s12 + $0xe8] sm:$0xff] }
0x3fbe   :  { %7857 = vmatpush1.msra.mxu1 %v7816_v12  ;;  %v8013_v12 = vld [vmem:[%s18512_s12 + $0xc0] sm:$0xff] }
0x3fbf   :  { %7858 = vmatprep.subr.mxu1 %v7814_v1  ;;  %v8011_v1 = vld [vmem:[%s18512_s12 + $0xb0] sm:$0xff] }
0x3fc0   :  { %7859 = vmatpush1.msra.mxu1 %v7813_v55  ;;  %v8015_v55 = vld [vmem:[%s18512_s12 + $0xd0] sm:$0xff] }
0x3fc1   :  { %7860 = vmatprep.subr.mxu1 %v7811_v54  ;;  %v8010_v54 = vld [vmem:[%s18512_s12 + $0xa8] sm:$0xff] }
0x3fc2   :  { %7861 = vmatpush1.msra.mxu1 %v7810_v18  ;;  %v8008_v18 = vld [vmem:[%s18512_s12 + $0x98] sm:$0xff] }
0x3fc3   :  { %7862 = vmatprep.subr.mxu1 %v7808_v19  ;;  %v8012_v19 = vld [vmem:[%s18512_s12 + $0xb8] sm:$0xff] }
0x3fc4   :  { %7863 = vmatpush1.msra.mxu1 %v7807_v33  ;;  %v8007_v33 = vld [vmem:[%s18512_s12 + $0x90] sm:$0xff] }
0x3fc5   :  { %7864 = vmatprep.subr.mxu1 %v7805_v20  ;;  %v8005_v20 = vld [vmem:[%s18512_s12 + $0x80] sm:$0xff] }
0x3fc6   :  { %7865 = vmatpush1.msra.mxu1 %v7804_v21  ;;  %v8009_v21 = vld [vmem:[%s18512_s12 + $0xa0] sm:$0xff] }
0x3fc7   :  { %7866 = vmatprep.subr.mxu1 %v7802_v22  ;;  %v8004_v22 = vld [vmem:[%s18512_s12 + $0x78] sm:$0xff] }
0x3fc8   :  { %7867 = vmatpush1.msra.mxu1 %v7801_v23  ;;  %v8002_v23 = vld [vmem:[%s18512_s12 + $0x68] sm:$0xff] }
0x3fc9   :  { %7868 = vmatprep.subr.mxu1 %v7799_v26  ;;  %v8006_v26 = vld [vmem:[%s18512_s12 + $0x88] sm:$0xff] }
0x3fca   :  { %7869 = vmatpush1.msra.mxu1 %v7798_v13  ;;  %v8001_v13 = vld [vmem:[%s18512_s12 + $0x60] sm:$0xff] }
0x3fcb   :  { %7870 = vmatprep.subr.mxu1 %v7796_v4  ;;  %v7999_v4 = vld [vmem:[%s18512_s12 + $0x50] sm:$0xff] }
0x3fcc   :  { %7871 = vmatpush1.msra.mxu1 %v7795_v3  ;;  %v8003_v3 = vld [vmem:[%s18512_s12 + $0x70] sm:$0xff] }
0x3fcd   :  { %7872 = vmatprep.subr.mxu1 %v7793_v31  ;;  %v7998_v31 = vld [vmem:[%s18512_s12 + $0x48] sm:$0xff] }
0x3fce   :  { %7873 = vmatpush1.msra.mxu1 %v7792_v32  ;;  %v7996_v32 = vld [vmem:[%s18512_s12 + $0x38] sm:$0xff] }
0x3fcf   :  { %7874 = vmatprep.subr.mxu1 %v7790_v38  ;;  %v7993_v38 = vld [vmem:[%s18512_s12 + $0x20] sm:$0xff] }
0x3fd0   :  { %7875 = vmatpush1.msra.mxu1 %v7789_v40  ;;  %v7992_v40 = vld [vmem:[%s18512_s12 + $0x18] sm:$0xff] }
0x3fd1   :  { %7876 = vmatprep.subr.mxu1 %v7787_v15  ;;  %v7990_v15 = vld [vmem:[%s18512_s12 + $0x8] sm:$0xff] }
0x3fd2   :  { %7877 = vmatpush1.msra.mxu1 %v7786_v27  ;;  %v7989_v27 = vld [vmem:[%s18512_s12] sm:$0xff] }
0x3fd3   :  { %7878 = vmatprep.subr.mxu1 %v7784_v17  ;;  %v7991_v17 = vld [vmem:[%s18512_s12 + $0x10] sm:$0xff] }
0x3fd4   :  { %v7776_v35 = vpop.f32.mrf.mxu0  ;;  %7879 = vmatpush1.msra.mxu1 %v7783_v44  ;;  %v8230_v44 = vld [vmem:[%s18515_s15 + $0x70] sm:$0xff] }
0x3fd5   :  { %8054 = vmatprep.subr.mxu1 %v8035_v47  ;;  %v8228_v47 = vld [vmem:[%s18515_s15 + $0x60] sm:$0xff] }
0x3fd6   :  { %v11673_v36 = vpop.f32.mrf.mxu0 }
0x3fd7   :  { %v7995_v36 = vld [vmem:[%s18512_s12 + $0x30] sm:$0xff] }
0x4075   :  { %v7706_v48 = vpop.f32.mrf.mxu1 }
0x4076   :  { %v7777_v50 = vadd.f32 %v7776_v35, %v7706_v48  ;;  %v8000_v35 = vld [vmem:[%s18512_s12 + $0x58] sm:$0xff] }
0x4077   :  { %v11638_v51 = vpop.f32.mrf.mxu1  ;;  %v8227_v48 = vld [vmem:[%s18515_s15 + $0x58] sm:$0xff] }
0x4078   :  { %v7781_v52 = vadd.f32 %v7780_v49, %v7777_v50  ;;  %v8226_v49 = vld [vmem:[%s18515_s15 + $0x50] sm:$0xff]  ;;  %v8225_v50 = vld [vmem:[%s18515_s15 + $0x48] sm:$0xff]  ;;  %v8224_v51 = vld [vmem:[%s18515_s15 + $0x40] sm:$0xff] }
0x407a   :  { %v7782_v41 = vmax.f32 %v7781_v52, 0.0  ;;  %v8223_v52 = vld [vmem:[%s18515_s15 + $0x38] sm:$0xff] }
0x407c   :  { %7913 = vmatmul.mubr.f32.vlgmr.msra.gmra.mxu1 %v7782_v41  ;;  %11707 = vmatmul.mubr.f32.vlgmr.msra.gmra.mxu0 %v7782_v41  ;;  %v8222_v41 = vld [vmem:[%s18515_s15 + $0x30] sm:$0xff] }
0x407d   :  { %8055 = vmatpush1.msra.mxu1 %v8034_v24  ;;  %8118 = vmatprep.mubr.f32.mxu1 %v12041_v2  ;;  %v8221_v24 = vld [vmem:[%s18515_s15 + $0x28] sm:$0xff] }
0x407e   :  { %8056 = vmatprep.subr.mxu1 %v8032_v29  ;;  %11710 = vmatpush3.msra.mxu0 %v8036_v25  ;;  %v8220_v29 = vld [vmem:[%s18515_s15 + $0x20] sm:$0xff]  ;;  %v8219_v25 = vld [vmem:[%s18515_s15 + $0x18] sm:$0xff] }
0x407f   :  { %8057 = vmatpush1.msra.mxu1 %v8031_v56  ;;  %11711 = vmatprep.subr.mxu0 %v12041_v2  ;;  %v8218_v56 = vld [vmem:[%s18515_s15 + $0x10] sm:$0xff] }
0x4080   :  { %8058 = vmatprep.subr.mxu1 %v8029_v57  ;;  %11712 = vmatpush3.msra.mxu0 %v8033_v58  ;;  %v8217_v57 = vld [vmem:[%s18515_s15 + $0x8] sm:$0xff]  ;;  %v8216_v58 = vld [vmem:[%s18515_s15] sm:$0xff] }
0x4081   :  { %8059 = vmatpush1.msra.mxu1 %v8028_v59  ;;  %11713 = vmatprep.subr.mxu0 %v12041_v2 }
0x4082   :  { %8060 = vmatprep.subr.mxu1 %v8026_v60  ;;  %11714 = vmatpush3.msra.mxu0 %v8030_v61  ;;  %v7831_v61 = vld [vmem:[%s18513_s13] sm:$0x7] }
0x4083   :  { %8061 = vmatpush1.msra.mxu1 %v8025_v63  ;;  %11715 = vmatprep.subr.mxu0 %v12041_v2 }
0x4084   :  { %8062 = vmatprep.subr.mxu1 %v8023_v0  ;;  %11716 = vmatpush3.msra.mxu0 %v8027_v53  ;;  %v8037_v0 = vld [vmem:[%s18514_s14] sm:$0x7]  ;;  %v7836_v53 = vrot.slane %v7831_v61, %v12904_v39 }
0x4085   :  { %8063 = vmatpush1.msra.mxu1 %v8022_v43  ;;  %11717 = vmatprep.subr.mxu0 %v12041_v2  ;;  %v8042_v43 = vrot.slane %v8037_v0, %v12904_v39 }
0x4086   :  { %8064 = vmatprep.subr.mxu1 %v8020_v42  ;;  %11718 = vmatpush3.msra.mxu0 %v8024_v5 }
0x4087   :  { %8065 = vmatpush1.msra.mxu1 %v8019_v6  ;;  %11719 = vmatprep.subr.mxu0 %v12041_v2 }
0x4088   :  { %8066 = vmatprep.subr.mxu1 %v8017_v7  ;;  %11720 = vmatpush3.msra.mxu0 %v8021_v8  ;;  %v8046_v7 = vrot.slane %v8037_v0, %v12914_v45 }
0x4089   :  { %8067 = vmatpush1.msra.mxu1 %v8016_v9  ;;  %11721 = vmatprep.subr.mxu0 %v12041_v2 }
0x408a   :  { %8068 = vmatprep.subr.mxu1 %v8014_v10  ;;  %11722 = vmatpush3.msra.mxu0 %v8018_v11  ;;  %v7840_v10 = vrot.slane %v7831_v61, %v12914_v45 }
0x408b   :  { %8069 = vmatpush1.msra.mxu1 %v8013_v12  ;;  %11723 = vmatprep.subr.mxu0 %v12041_v2 }
0x408c   :  { %8070 = vmatprep.subr.mxu1 %v8011_v1  ;;  %11724 = vmatpush3.msra.mxu0 %v8015_v55 }
0x408d   :  { %8071 = vmatpush1.msra.mxu1 %v8010_v54  ;;  %11725 = vmatprep.subr.mxu0 %v12041_v2 }
0x408e   :  { %8072 = vmatprep.subr.mxu1 %v8008_v18  ;;  %11726 = vmatpush3.msra.mxu0 %v8012_v19 }
0x408f   :  { %8073 = vmatpush1.msra.mxu1 %v8007_v33  ;;  %11727 = vmatprep.subr.mxu0 %v12041_v2 }
0x4090   :  { %8074 = vmatprep.subr.mxu1 %v8005_v20  ;;  %11728 = vmatpush3.msra.mxu0 %v8009_v21  ;;  %v8050_v20 = vrot.slane %v8037_v0, %v12918_v62 }
0x4091   :  { %8075 = vmatpush1.msra.mxu1 %v8004_v22  ;;  %11729 = vmatprep.subr.mxu0 %v12041_v2  ;;  %v7844_v22 = vrot.slane %v7831_v61, %v12918_v62  ;;  %v8232_v62 = vld [vmem:[%s18516_s16] sm:$0x1] }
0x4092   :  { %8076 = vmatprep.subr.mxu1 %v8002_v23  ;;  %11730 = vmatpush3.msra.mxu0 %v8006_v26 }
0x4093   :  { %8077 = vmatpush1.msra.mxu1 %v8001_v13  ;;  %11731 = vmatprep.subr.mxu0 %v12041_v2 }
0x4094   :  { %8078 = vmatprep.subr.mxu1 %v7999_v4  ;;  %11732 = vmatpush3.msra.mxu0 %v8003_v3 }
0x4095   :  { %8079 = vmatpush1.msra.mxu1 %v7998_v31  ;;  %11733 = vmatprep.subr.mxu0 %v12041_v2 }
0x4096   :  { %8080 = vmatprep.subr.mxu1 %v7996_v32  ;;  %11734 = vmatpush3.msra.mxu0 %v8000_v35 }
0x4097   :  { %8081 = vmatpush1.msra.mxu1 %v7995_v36  ;;  %11735 = vmatprep.subr.mxu0 %v12041_v2 }
0x4098   :  { %8082 = vmatprep.subr.mxu1 %v7993_v38  ;;  %11736 = vmatpush3.msra.mxu0 %v7997_v34 }
0x4099   :  { %8083 = vmatpush1.msra.mxu1 %v7992_v40  ;;  %11737 = vmatprep.subr.mxu0 %v12041_v2 }
0x409a   :  { %8084 = vmatprep.subr.mxu1 %v7990_v15  ;;  %11738 = vmatpush3.msra.mxu0 %v7994_v28 }
0x409b   :  { %8085 = vmatpush1.msra.mxu1 %v7989_v27  ;;  %11739 = vmatprep.subr.mxu0 %v12041_v2 }
0x409c   :  { %8119 = vmatmul.mubr.f32.vlgmr.msra.gmra.mxu1 %v17839_v16  ;;  %11740 = vmatpush3.msra.mxu0 %v7991_v17 }
0x409d   :  { %11741 = vmatprep.mubr.msk.f32.mxu0 %vm12042_vm0, %v12041_v2  ;;  %11744 = vmatprep.subr.mxu1 %v12041_v2 }
0x409e   :  { %11742 = vmatmul.mubr.f32.vlgmr.msra.gmra.mxu0 %v17839_v16  ;;  %11776 = vmatprep.mubr.msk.f32.mxu1 %vm12042_vm0, %v12041_v2 }
0x409f   :  { %11745 = vmatpush3.msra.mxu1 %v8231_v14 }
0x40a0   :  { %11746 = vmatprep.subr.mxu1 %v12041_v2 }
0x40a1   :  { %11747 = vmatpush3.msra.mxu1 %v8230_v44 }
0x40a2   :  { %11748 = vmatprep.subr.mxu1 %v12041_v2 }
0x40a3   :  { %11749 = vmatpush3.msra.mxu1 %v8229_v46 }
0x40a4   :  { %11750 = vmatprep.subr.mxu1 %v12041_v2 }
0x40a5   :  { %11751 = vmatpush3.msra.mxu1 %v8228_v47 }
0x40a6   :  { %11752 = vmatprep.subr.mxu1 %v12041_v2 }
0x40a7   :  { %11753 = vmatpush3.msra.mxu1 %v8227_v48 }
0x40a8   :  { %11754 = vmatprep.subr.mxu1 %v12041_v2 }
0x40a9   :  { %11755 = vmatpush3.msra.mxu1 %v8226_v49 }
0x40aa   :  { %11756 = vmatprep.subr.mxu1 %v12041_v2 }
0x40ab   :  { %11757 = vmatpush3.msra.mxu1 %v8225_v50 }
0x40ac   :  { %11758 = vmatprep.subr.mxu1 %v12041_v2 }
0x40ad   :  { %11759 = vmatpush3.msra.mxu1 %v8224_v51 }
0x40ae   :  { %11760 = vmatprep.subr.mxu1 %v12041_v2 }
0x40af   :  { %11761 = vmatpush3.msra.mxu1 %v8223_v52 }
0x40b0   :  { %11762 = vmatprep.subr.mxu1 %v12041_v2 }
0x40b1   :  { %11763 = vmatpush3.msra.mxu1 %v8222_v41 }
0x40b2   :  { %11764 = vmatprep.subr.mxu1 %v12041_v2 }
0x40b3   :  { %11765 = vmatpush3.msra.mxu1 %v8221_v24 }
0x40b4   :  { %11766 = vmatprep.subr.mxu1 %v12041_v2 }
0x40b5   :  { %11767 = vmatpush3.msra.mxu1 %v8220_v29 }
0x40b6   :  { %11768 = vmatprep.subr.mxu1 %v12041_v2 }
0x40b7   :  { %11769 = vmatpush3.msra.mxu1 %v8219_v25 }
0x40b8   :  { %11770 = vmatprep.subr.mxu1 %v12041_v2 }
0x40b9   :  { %11771 = vmatpush3.msra.mxu1 %v8218_v56 }
0x40ba   :  { %11772 = vmatprep.subr.mxu1 %v12041_v2 }
0x40bb   :  { %11773 = vmatpush3.msra.mxu1 %v8217_v57 }
0x40bc   :  { %11774 = vmatprep.subr.mxu1 %v12041_v2 }
0x40bd   :  { %11775 = vmatpush3.msra.mxu1 %v8216_v58 }
0x413c   :  { %v7985_v59 = vpop.f32.mrf.mxu0  ;;  %v7914_v63 = vpop.f32.mrf.mxu1 }
0x413d   :  { %v7915_v6 = vadd.f32 %v7914_v63, %v7836_v53  ;;  %v7986_v13 = vadd.f32 %v7985_v59, %v7844_v22 }
0x413e   :  { %v11708_v60 = vpop.f32.mrf.mxu0  ;;  %v7916_v42 = vpop.f32.mrf.mxu1 }
0x413f   :  { %v7917_v54 = vadd.f32 %v7916_v42, %v7840_v10 }
0x415c   :  { %v8120_v5 = vpop.f32.mrf.mxu1 }
0x415d   :  { %v8121_v2 = vadd.f32 %v8120_v5, %v8042_v43 }
0x415e   :  { %v8122_v8 = vpop.f32.mrf.mxu1  ;;  %v8191_v9 = vpop.f32.mrf.mxu0 }
0x415f   :  { %v8195_v11 = vadd.f32 %v8121_v2, %v7915_v6  ;;  %v8123_v55 = vadd.f32 %v8122_v8, %v8046_v7  ;;  %v8192_v26 = vadd.f32 %v8191_v9, %v8050_v20 }
0x4160   :  { %v11743_v12 = vpop.f32.mrf.mxu0 }
0x4161   :  { %v8448_v1 = vmul.f32 -1.442695, %v8195_v11  ;;  %v8202_v18 = vadd.f32 %v8123_v55, %v7917_v54 }
0x4163   :  { %11933 = vpow2.f32 %v8448_v1  ;;  %v8449_v19 = vmul.f32 -1.442695, %v8202_v18 }
0x4165   :  { %11935 = vpow2.f32 %v8449_v19 }
0x4170   :  { %v11934_v39 = vpop.eup %11933 }
0x4171   :  { %v8199_v33 = vadd.f32 1.0, %v11934_v39 }
0x4172   :  { %v11936_v21 = vpop.eup %11935 }
0x4173   :  { %11937 = vrcp.f32 %v8199_v33  ;;  %v8206_v23 = vadd.f32 1.0, %v11936_v21 }
0x4175   :  { %11939 = vrcp.f32 %v8206_v23 }
0x4180   :  { %v11938_v45 = vpop.eup %11937 }
0x4181   :  { %v8209_v4 = vmul.f32 %v11938_v45, %v8192_v26 }
0x4182   :  { %v11940_v31 = vpop.eup %11939 }
0x4183   :  { %v8210_v3 = vadd.f32 %v8209_v4, %v7986_v13  ;;  %v8212_v32 = vsub.f32 1.0, %v11940_v31  ;;  %v8214_v38 = vmul.f32 %v11940_v31, %v17839_v16 }
0x4185   :  { %11941 = vtanh.f32 %v8210_v3 }
0x4192   :  { %v11942_v35 = vpop.eup %11941 }
0x4193   :  { %v8213_v36 = vmul.f32 %v11942_v35, %v8212_v32 }
0x4195   :  { %v8215_v34 = vadd.f32 %v8214_v38, %v8213_v36 }
0x4197   :  { %11777 = vmatmul.mubr.f32.vlgmr.msra.gmra.mxu1 %v8215_v34 }
0x4257   :  { %v8299_v40 = vpop.f32.mrf.mxu1 }
0x4258   :  { %v8300_v15 = vadd.f32 %v8299_v40, %v8232_v62 }
0x4259   :  { %v11778_v28 = vpop.f32.mrf.mxu1 }
0x425a   :  { %v8303_v27 = vsel %vm264_vm1, %v8300_v15, -inf }
0x425b   :  { %8304 = vmax.xlane.f32.xlu1 %v8303_v27 }
0x42e4   :  { %v8305_v17 = vpop.xlane.xlu1 %8304 }
0x42e5   :  { %v8306_v14 = vsub.f32 %v8300_v15, %v8305_v17 }
0x42e7   :  { %v8307_v44 = vmul.f32 1.442695, %v8306_v14 }
0x42e9   :  { %11943 = vpow2.f32 %v8307_v44 }
0x42f6   :  { %v11944_v46 = vpop.eup %11943 }
0x42f7   :  { %v8309_v47 = vsel %vm264_vm1, %v11944_v46, 0.0 }
0x42f8   :  { %8310 = vadd.xlane.f32.xlu1 %v8309_v47 }
0x4381   :  { %v8311_v48 = vpop.xlane.xlu1 %8310 }
0x4382   :  { %11945 = vlog2.f32 %v8311_v48 }
0x438f   :  { %v11946_v49 = vpop.eup %11945 }
0x4390   :  { %v8313_v50 = vmul.f32 0.6931472, %v11946_v49 }
0x4391   :  { %8327 = sbr.rel (%p8450_p10) target bundleno = 17793 (0x4581), region = 109 }
0x4392   :  { %v8314_v51 = vsub.f32 %v8306_v14, %v8313_v50 }
0x4394   :  { %v8319_v52 = vsel %vm17991_vm15, %v8314_v51, 0.0 }
0x4395   :  { %8320 = vst [vmem:[#allocation8 + $0x7] sm:$0x1] %v8319_v52 }
0x4396   :  { %v8330_v41 = vsel %vm264_vm1, %v8314_v51, -inf  ;;  %v8329_v24 = vand.u32 127, %v587_v37 }
0x4397   :  { %8331 = vmax.xlane.f32.xlu0 %v8330_v41 }
0x4420   :  { %v8332_v29 = vpop.xlane.xlu0 %8331 }
0x4421   :  { %vm8333_vm0 = vcmp.eq.f32.partialorder %v8314_v51, %v8332_v29 }
0x4422   :  { %v8334_v25 = vsel %vm8333_vm0, %v8329_v24, 128 }
0x4423   :  { %v8335_v56 = vsel %vm264_vm1, %v8334_v25, 2147483647 }
0x4424   :  { %v8337_v57 = vshra.s32 %v8335_v56, 16  ;;  %v8336_v59 = vand.u32 65535, %v8335_v56 }
0x4426   :  { %v8339_v58 = vcvt.s32.f32 %v8337_v57  ;;  %v8338_v61 = vcvt.s32.f32 %v8336_v59 }
0x4428   :  { %8340 = vmin.xlane.f32.xlu0 %v8339_v58 }
0x44b1   :  { %v8341_v60 = vpop.xlane.xlu0 %8340 }
0x44b2   :  { %vm8342_vm2 = vcmp.eq.f32.partialorder %v8339_v58, %v8341_v60  ;;  %v8347_v0 = vcvt.f32.s32 %v8341_v60 }
0x44b3   :  { %v8343_v63 = vsel %vm8342_vm2, %v8338_v61, inf }
0x44b4   :  { %8344 = vmin.xlane.f32.xlu1 %v8343_v63  ;;  %v8348_v43 = vshll.u32 %v8347_v0, 16 }
0x453d   :  { %v8345_v53 = vpop.xlane.xlu1 %8344 }
0x453e   :  { %v8346_v42 = vcvt.f32.s32 %v8345_v53 }
0x4540   :  { %v8349_v5 = vadd.s32 %v8348_v43, %v8346_v42 }
0x4542   :  { %v8350_v37 = vrot.slane %v8349_v5, 4 }
0x4544   :  { %vm8351_vm3 = vcmp.lt.s32.totalorder %v8349_v5, %v8350_v37 }
0x4545   :  { %v8352_v6 = vsel %vm8351_vm3, %v8349_v5, %v8350_v37 }
0x4546   :  { %v8353_v2 = vrot.slane %v8352_v6, 2 }
0x4548   :  { %vm8354_vm4 = vcmp.lt.s32.totalorder %v8352_v6, %v8353_v2 }
0x4549   :  { %v8355_v7 = vsel %vm8354_vm4, %v8352_v6, %v8353_v2 }
0x454a   :  { %v8356_v8 = vrot.slane %v8355_v7, 1 }
0x454c   :  { %vm8357_vm1 = vcmp.lt.s32.totalorder %v8355_v7, %v8356_v8 }
0x454d   :  { %v8358_v9 = vsel %vm8357_vm1, %v8355_v7, %v8356_v8 }
0x454e   :  { %11793 = vpush %v8358_v9 }
0x457f   :  { %s11794_s15 = spop %11793 }
0x4580   :  { %8360 = sst [smem:[#allocation2]] %s11794_s15 }
0x4581 PF:  { %v8361_v10 = vsel %vm17991_vm15, %v8215_v34, %v17839_v16  ;;  %s12043_s16 = smov [#allocation9]   ;;  %s12044_s29 = smov [#allocation8]  }
0x4582   :  { %8362 = vst [vmem:[#allocation11] sm:$0x1] %v8361_v10  ;;  %s8379_s23 = sshll.u32 %s12043_s16, 4  ;;  %s8369_s25 = sshll.u32 %s12044_s29, 4  ;;  %s8380_s23 = int_to_ptr.vmem [resolvable:$true] %s8379_s23  ;;  %s8370_s25 = int_to_ptr.vmem [resolvable:$true] %s8369_s25 }
0x4583   :  { %s11971_s21 = scalar_lea.vmem %s8380_s23, 128  ;;  %p11976_p12 = scmp.lt.s32.totalorder %s8380_s23, %s8380_s23 }
0x4584   :  { %p11972_p11 = scmp.ne.s32.totalorder %s8380_s23, %s11971_s21  ;;  %p11977_p13 = scmp.lt.s32.totalorder %s11971_s21, %s11971_s21 }
0x4586   :  { %p11978_p0 = por %p11977_p13, %p11976_p12 }
0x4588   :  { %p11979_p1 = pnand %p11978_p0, %p11972_p11 }
0x458a   :  { %11982 = shalt.err (!%p11979_p1)
}
0x458b   :  { %8382 = dma.vmem_to_hbm [thread:$0]  %s8380_s23, 128, %s18518_s18, [#allocation10]  }
0x458c   :  { %s11991_s22 = scalar_lea.vmem %s8370_s25, 128  ;;  %p11996_p3 = scmp.lt.s32.totalorder %s8370_s25, %s8370_s25 }
0x458d   :  { %p11992_p2 = scmp.ne.s32.totalorder %s8370_s25, %s11991_s22  ;;  %p11997_p4 = scmp.lt.s32.totalorder %s11991_s22, %s11991_s22 }
0x458f   :  { %p11998_p5 = por %p11997_p4, %p11996_p3 }
0x4591   :  { %p11999_p6 = pnand %p11998_p5, %p11992_p2 }
0x4593   :  { %12002 = shalt.err (!%p11999_p6)
}
0x4594   :  { %8372 = dma.vmem_to_hbm [thread:$0]  %s8370_s25, 128, %s18517_s17, [#allocation4]  }
0x4595   :  { %s12045_s27 = smov [#allocation11]  }
0x4596   :  { %s8389_s1 = sshll.u32 %s12045_s27, 4  ;;  %s8390_s1 = int_to_ptr.vmem [resolvable:$true] %s8389_s1 }
0x4597   :  { %s12011_s2 = scalar_lea.vmem %s8390_s1, 16  ;;  %s12015_s12 = scalar_lea.vmem %s8390_s1, 32 }
0x4598   :  { %p12012_p7 = scmp.ne.s32.totalorder %s8390_s1, %s12011_s2  ;;  %p12016_p8 = scmp.lt.s32.totalorder %s8390_s1, %s8390_s1 }
0x4599   :  { %p12017_p9 = scmp.lt.s32.totalorder %s12015_s12, %s12011_s2 }
0x459b   :  { %p12018_p10 = por %p12017_p9, %p12016_p8 }
0x459d   :  { %p12019_p11 = pnand %p12018_p10, %p12012_p7 }
0x459f   :  { %12022 = shalt.err (!%p12019_p11)
}
0x45a0   :  { %8392 = dma.vmem_to_hbm [thread:$0]  %s8390_s1, 16, %s18519_s19, [#allocation10]  }
0x45a1   :  { %12035 = dma.done.wait [#allocation4], 128  }
0x45a2   :  { %12036 = vsyncadd [#allocation4], 4294967168 }
0x45a3   :  { %12037 = dma.done.wait [#allocation10], 144  }
0x45a4   :  { %12038 = vsyncadd [#allocation10], 4294967152 }
0x45a5   :  { %8402 = vsyncpa [#allocation4], 1 }
0x45a6   :  { %8403 = vsyncpa [#allocation10], 1 }
0x45a7   :  { %8404 = vsyncpa [#allocation5], 1 }
0x45a8   :  { %8405 = vsyncpa [#allocation7], 1 }

</bundles_post_ra>
